<compile_context>
chip_gen: v7x
topology: tpu7x:2x2x1
jax: 0.10.0
libtpu: 0.0.40
codegen_flags: <defaults>
</compile_context>

<pallas_src>
import jax
import jax.numpy as jnp
import numpy as np
from jax.experimental import pallas as pl
from jax.experimental.pallas import tpu as pltpu

D_IN = 1024          # fixed by nn.Linear(1024, 512)
D_HID = 512
D_MODEL = 128        # video_feature_dim (small, divisible by nhead)
N_HEADS = 4
HEAD_DIM = D_MODEL // N_HEADS
D_FF = 2048          # TransformerEncoderLayer default dim_feedforward
N_LAYERS = 3
LN_EPS = 1e-5

_LAYER_KEYS = ("wqkv", "bqkv", "wo", "bo", "g1", "be1",
               "w1", "b1", "w2", "b2", "g2", "be2")
_BF16_KEYS = frozenset({"wqkv", "wo", "w1", "w2"})     # matmul weight matrices
_N_LAYER_PARAMS = len(_LAYER_KEYS)


# ----------------------------- shared math helpers -----------------------------
def _layernorm(x, gamma, beta):
    # single-pass statistics: one reduction sweep for mean and mean-of-squares
    mu = jnp.mean(x, axis=-1, keepdims=True)
    msq = jnp.mean(x * x, axis=-1, keepdims=True)
    var = jnp.maximum(msq - mu * mu, 0.0)
    return (x - mu) * jax.lax.rsqrt(var + LN_EPS) * gamma + beta


def _mish_kernel(x):
    # mish(x) = x * tanh(softplus(x)) rewritten with a single exp:
    #   t = exp(x);  tanh(log1p(t)) = (t^2 + 2t) / (t^2 + 2t + 2)
    # clamping keeps exp finite; for x >= 20 the ratio is 1.0 to f32 precision,
    # so the clamped form still returns x (the correct limit).
    t = jnp.exp(jnp.minimum(x, 20.0))
    u = t * (t + 2.0)
    return x * u * pl.reciprocal(u + 2.0, approx=True)


def _softplus_ref(x):
    return jnp.maximum(x, 0.0) + jnp.log1p(jnp.exp(-jnp.abs(x)))


def _mish_ref(x):
    return x * jnp.tanh(_softplus_ref(x))


# ------------------------------ fused forward kernel ----------------------------
def fused_encoder_kernel(*refs):
    x_ref = refs[0]
    ffn_w1, ffn_b1, ffn_w2, ffn_b2 = refs[1:5]
    layer_refs = refs[5:5 + N_LAYERS * _N_LAYER_PARAMS]
    o_ref = refs[5 + N_LAYERS * _N_LAYER_PARAMS]

    bt, s, _ = x_ref.shape
    rows = bt * s
    # flatten batch tile -> big M; cast to bf16 once for the first GEMM
    x = x_ref[...].reshape(rows, D_IN).astype(jnp.bfloat16)

    # ---- Mish FFN: 1024 -> 512 -> 128 (bf16 matmuls, f32 accumulation) ----
    h = jnp.dot(x, ffn_w1[...], preferred_element_type=jnp.float32) + ffn_b1[...]
    h = _mish_kernel(h)
    h = jnp.dot(h.astype(jnp.bfloat16), ffn_w2[...],
                preferred_element_type=jnp.float32) + ffn_b2[...]
    h = _mish_kernel(h)                                # (rows, D_MODEL), f32

    scale = 1.0 / (HEAD_DIM ** 0.5)

    # ---- 3 post-norm transformer encoder layers, weights VMEM-resident ----
    for li in range(N_LAYERS):
        (wqkv, bqkv, wo, bo, g1, be1,
         w1, b1, w2, b2, g2, be2) = layer_refs[li * _N_LAYER_PARAMS:
                                               (li + 1) * _N_LAYER_PARAMS]

        # fused in-projection for q, k, v over all rows of the batch tile
        qkv = jnp.dot(h.astype(jnp.bfloat16), wqkv[...],
                      preferred_element_type=jnp.float32) + bqkv[...]
        # fold the 1/sqrt(head_dim) score scale into q (f32, before bf16 cast)
        q = (qkv[:, :D_MODEL] * scale).astype(jnp.bfloat16)
        k = qkv[:, D_MODEL:2 * D_MODEL].astype(jnp.bfloat16)
        v = qkv[:, 2 * D_MODEL:].astype(jnp.bfloat16)
        wo_all = wo[...]

        ctx = None
        for hh in range(N_HEADS):          # static unroll; each head batched over bt
            sl = slice(hh * HEAD_DIM, (hh + 1) * HEAD_DIM)
            qh = q[:, sl].reshape(bt, s, HEAD_DIM)
            kh = k[:, sl].reshape(bt, s, HEAD_DIM)
            vh = v[:, sl].reshape(bt, s, HEAD_DIM)
            sc = jnp.einsum("bqd,bkd->bqk", qh, kh,
                            preferred_element_type=jnp.float32)
            sc = sc - jnp.max(sc, axis=-1, keepdims=True)
            p = jnp.exp(sc)
            p = p * pl.reciprocal(jnp.sum(p, axis=-1, keepdims=True), approx=True)
            oh = jnp.einsum("bqk,bkd->bqd", p.astype(jnp.bfloat16), vh,
                            preferred_element_type=jnp.float32)
            # Fold this head's output straight into its slice of the output
            # projection: avoids a 32-lane concatenate / lane repack.
            contrib = jnp.dot(oh.reshape(rows, HEAD_DIM).astype(jnp.bfloat16),
                              wo_all[sl, :], preferred_element_type=jnp.float32)
            ctx = contrib if ctx is None else ctx + contrib
        attn = ctx + bo[...]

        # post-norm residual blocks (norm_first=False), f32 epilogue
        x1 = _layernorm(h + attn, g1[...], be1[...])
        ff = jnp.dot(x1.astype(jnp.bfloat16), w1[...],
                     preferred_element_type=jnp.float32) + b1[...]
        ff = jnp.maximum(ff, 0.0)                      # default activation: relu
        ff = jnp.dot(ff.astype(jnp.bfloat16), w2[...],
                     preferred_element_type=jnp.float32) + b2[...]
        h = _layernorm(x1 + ff, g2[...], be2[...])

    o_ref[...] = h.reshape(bt, s, D_MODEL)             # 128-lane dense store


# ---------------------------------- wrapper --------------------------------------
def _pick_batch_tile(B, S, target_rows=512):
    """Largest divisor of B such that the tile has <= ~target_rows rows."""
    max_bt = max(1, target_rows // max(S, 1))
    bt = 1
    for d in range(1, B + 1):
        if B % d == 0 and d <= max_bt:
            bt = d
    return bt


def video_encoder_forward(video_feature, params):
    B, S, _ = video_feature.shape
    bt = _pick_batch_tile(B, S)

    flat_params = [params["ffn_w1"].astype(jnp.bfloat16), params["ffn_b1"],
                   params["ffn_w2"].astype(jnp.bfloat16), params["ffn_b2"]]
    for lp in params["layers"]:
        for key in _LAYER_KEYS:
            p = lp[key]
            flat_params.append(p.astype(jnp.bfloat16) if key in _BF16_KEYS else p)

    in_specs = [pl.BlockSpec((bt, S, D_IN), lambda b: (b, 0, 0))]
    # all parameters are 2-D, grid-invariant (loaded once, VMEM-resident)
    in_specs += [pl.BlockSpec(p.shape, lambda b: (0, 0)) for p in flat_params]

    return pl.pallas_call(
        fused_encoder_kernel,
        out_shape=jax.ShapeDtypeStruct((B, S, D_MODEL), jnp.float32),
        grid=(B // bt,),
        in_specs=in_specs,
        out_specs=pl.BlockSpec((bt, S, D_MODEL), lambda b: (b, 0, 0)),
        compiler_params=pltpu.CompilerParams(
            dimension_semantics=("parallel",),
            vmem_limit_bytes=48 * 1024 * 1024,
        ),
    )(video_feature, *flat_params)


# --------------------------- pure-JAX reference (checking) ----------------------
def video_encoder_reference(video_feature, params):
    B, S, _ = video_feature.shape
    x = video_feature.reshape(B * S, D_IN)
    x = _mish_ref(x @ params["ffn_w1"] + params["ffn_b1"])
    x = _mish_ref(x @ params["ffn_w2"] + params["ffn_b2"])
    x = x.reshape(B, S, D_MODEL)
    for lp in params["layers"]:
        qkv = x @ lp["wqkv"] + lp["bqkv"]
        q, k, v = qkv[..., :D_MODEL], qkv[..., D_MODEL:2 * D_MODEL], qkv[..., 2 * D_MODEL:]
        q = q.reshape(B, S, N_HEADS, HEAD_DIM)
        k = k.reshape(B, S, N_HEADS, HEAD_DIM)
        v = v.reshape(B, S, N_HEADS, HEAD_DIM)
        s = jnp.einsum("bqhd,bkhd->bhqk", q, k) / (HEAD_DIM ** 0.5)
        p = jax.nn.softmax(s, axis=-1)
        o = jnp.einsum("bhqk,bkhd->bqhd", p, v).reshape(B, S, D_MODEL)
        o = o @ lp["wo"] + lp["bo"]
        x1 = _layernorm(x + o, lp["g1"], lp["be1"])
        ff = jnp.maximum(x1 @ lp["w1"] + lp["b1"], 0.0) @ lp["w2"] + lp["b2"]
        x = _layernorm(x1 + ff, lp["g2"], lp["be2"])
    return x


# ----------------------------- deterministic params -----------------------------
def init_params(key):
    def lin(key, fan_in, fan_out):
        kw, kb = jax.random.split(key)
        w = jax.random.normal(kw, (fan_in, fan_out), jnp.float32) / np.sqrt(fan_in)
        b = jax.random.normal(kb, (1, fan_out), jnp.float32) * 0.01
        return w, b

    keys = jax.random.split(key, 2 + N_LAYERS)
    w1, b1 = lin(keys[0], D_IN, D_HID)
    w2, b2 = lin(keys[1], D_HID, D_MODEL)
    params = {"ffn_w1": w1, "ffn_b1": b1, "ffn_w2": w2, "ffn_b2": b2, "layers": []}
    for li in range(N_LAYERS):
        lk = jax.random.split(keys[2 + li], 4)
        wqkv, bqkv = lin(lk[0], D_MODEL, 3 * D_MODEL)
        wo, bo = lin(lk[1], D_MODEL, D_MODEL)
        wf1, bf1 = lin(lk[2], D_MODEL, D_FF)
        wf2, bf2 = lin(lk[3], D_FF, D_MODEL)
        params["layers"].append({
            "wqkv": wqkv, "bqkv": bqkv, "wo": wo, "bo": bo,
            "g1": jnp.ones((1, D_MODEL), jnp.float32),
            "be1": jnp.zeros((1, D_MODEL), jnp.float32),
            "w1": wf1, "b1": bf1, "w2": wf2, "b2": bf2,
            "g2": jnp.ones((1, D_MODEL), jnp.float32),
            "be2": jnp.zeros((1, D_MODEL), jnp.float32),
        })
    return params


if __name__ == "__main__":
    B, S = 2, 8
    key = jax.random.PRNGKey(0)
    k_x, k_p = jax.random.split(key)
    video_feature = jax.random.normal(k_x, (B, S, D_IN), jnp.float32)
    params = init_params(k_p)

    out = jax.block_until_ready(video_encoder_forward(video_feature, params))
    assert out.shape == (B, S, D_MODEL), out.shape
    assert bool(jnp.all(jnp.isfinite(out)))

    ref = jax.block_until_ready(video_encoder_reference(video_feature, params))
    np.testing.assert_allclose(np.asarray(out), np.asarray(ref), rtol=5e-2, atol=5e-2)

    print("KERNEL_OK")
</pallas_src>

<mosaic_0001>
module attributes {stable_mosaic.version = 11 : i64} {
  func.func @fused_encoder_kernel(%arg0: i32, %arg1: memref<2x8x1024xf32, #tpu.memory_space<vmem>>, %arg2: memref<1024x512xbf16, #tpu.memory_space<vmem>>, %arg3: memref<1x512xf32, #tpu.memory_space<vmem>>, %arg4: memref<512x128xbf16, #tpu.memory_space<vmem>>, %arg5: memref<1x128xf32, #tpu.memory_space<vmem>>, %arg6: memref<128x384xbf16, #tpu.memory_space<vmem>>, %arg7: memref<1x384xf32, #tpu.memory_space<vmem>>, %arg8: memref<128x128xbf16, #tpu.memory_space<vmem>>, %arg9: memref<1x128xf32, #tpu.memory_space<vmem>>, %arg10: memref<1x128xf32, #tpu.memory_space<vmem>>, %arg11: memref<1x128xf32, #tpu.memory_space<vmem>>, %arg12: memref<128x2048xbf16, #tpu.memory_space<vmem>>, %arg13: memref<1x2048xf32, #tpu.memory_space<vmem>>, %arg14: memref<2048x128xbf16, #tpu.memory_space<vmem>>, %arg15: memref<1x128xf32, #tpu.memory_space<vmem>>, %arg16: memref<1x128xf32, #tpu.memory_space<vmem>>, %arg17: memref<1x128xf32, #tpu.memory_space<vmem>>, %arg18: memref<128x384xbf16, #tpu.memory_space<vmem>>, %arg19: memref<1x384xf32, #tpu.memory_space<vmem>>, %arg20: memref<128x128xbf16, #tpu.memory_space<vmem>>, %arg21: memref<1x128xf32, #tpu.memory_space<vmem>>, %arg22: memref<1x128xf32, #tpu.memory_space<vmem>>, %arg23: memref<1x128xf32, #tpu.memory_space<vmem>>, %arg24: memref<128x2048xbf16, #tpu.memory_space<vmem>>, %arg25: memref<1x2048xf32, #tpu.memory_space<vmem>>, %arg26: memref<2048x128xbf16, #tpu.memory_space<vmem>>, %arg27: memref<1x128xf32, #tpu.memory_space<vmem>>, %arg28: memref<1x128xf32, #tpu.memory_space<vmem>>, %arg29: memref<1x128xf32, #tpu.memory_space<vmem>>, %arg30: memref<128x384xbf16, #tpu.memory_space<vmem>>, %arg31: memref<1x384xf32, #tpu.memory_space<vmem>>, %arg32: memref<128x128xbf16, #tpu.memory_space<vmem>>, %arg33: memref<1x128xf32, #tpu.memory_space<vmem>>, %arg34: memref<1x128xf32, #tpu.memory_space<vmem>>, %arg35: memref<1x128xf32, #tpu.memory_space<vmem>>, %arg36: memref<128x2048xbf16, #tpu.memory_space<vmem>>, %arg37: memref<1x2048xf32, #tpu.memory_space<vmem>>, %arg38: memref<2048x128xbf16, #tpu.memory_space<vmem>>, %arg39: memref<1x128xf32, #tpu.memory_space<vmem>>, %arg40: memref<1x128xf32, #tpu.memory_space<vmem>>, %arg41: memref<1x128xf32, #tpu.memory_space<vmem>>, %arg42: memref<2x8x128xf32, #tpu.memory_space<vmem>>) attributes {dimension_semantics = [#tpu.dimension_semantics<parallel>], iteration_bounds = array<i64: 1>, scalar_prefetch = 0 : i64, scratch_operands = 0 : i64, tpu.core_type = #tpu.core_type<tc>, window_params = [{transform_indices = @transform_0, window_bounds = array<i64: 2, 8, 1024>}, {pipeline_mode = #tpu.pipeline_mode<synchronous>, transform_indices = @transform_1, window_bounds = array<i64: 1024, 512>}, {pipeline_mode = #tpu.pipeline_mode<synchronous>, transform_indices = @transform_2, window_bounds = array<i64: 1, 512>}, {pipeline_mode = #tpu.pipeline_mode<synchronous>, transform_indices = @transform_3, window_bounds = array<i64: 512, 128>}, {pipeline_mode = #tpu.pipeline_mode<synchronous>, transform_indices = @transform_4, window_bounds = array<i64: 1, 128>}, {pipeline_mode = #tpu.pipeline_mode<synchronous>, transform_indices = @transform_5, window_bounds = array<i64: 128, 384>}, {pipeline_mode = #tpu.pipeline_mode<synchronous>, transform_indices = @transform_6, window_bounds = array<i64: 1, 384>}, {pipeline_mode = #tpu.pipeline_mode<synchronous>, transform_indices = @transform_7, window_bounds = array<i64: 128, 128>}, {pipeline_mode = #tpu.pipeline_mode<synchronous>, transform_indices = @transform_8, window_bounds = array<i64: 1, 128>}, {pipeline_mode = #tpu.pipeline_mode<synchronous>, transform_indices = @transform_9, window_bounds = array<i64: 1, 128>}, {pipeline_mode = #tpu.pipeline_mode<synchronous>, transform_indices = @transform_10, window_bounds = array<i64: 1, 128>}, {pipeline_mode = #tpu.pipeline_mode<synchronous>, transform_indices = @transform_11, window_bounds = array<i64: 128, 2048>}, {pipeline_mode = #tpu.pipeline_mode<synchronous>, transform_indices = @transform_12, window_bounds = array<i64: 1, 2048>}, {pipeline_mode = #tpu.pipeline_mode<synchronous>, transform_indices = @transform_13, window_bounds = array<i64: 2048, 128>}, {pipeline_mode = #tpu.pipeline_mode<synchronous>, transform_indices = @transform_14, window_bounds = array<i64: 1, 128>}, {pipeline_mode = #tpu.pipeline_mode<synchronous>, transform_indices = @transform_15, window_bounds = array<i64: 1, 128>}, {pipeline_mode = #tpu.pipeline_mode<synchronous>, transform_indices = @transform_16, window_bounds = array<i64: 1, 128>}, {pipeline_mode = #tpu.pipeline_mode<synchronous>, transform_indices = @transform_17, window_bounds = array<i64: 128, 384>}, {pipeline_mode = #tpu.pipeline_mode<synchronous>, transform_indices = @transform_18, window_bounds = array<i64: 1, 384>}, {pipeline_mode = #tpu.pipeline_mode<synchronous>, transform_indices = @transform_19, window_bounds = array<i64: 128, 128>}, {pipeline_mode = #tpu.pipeline_mode<synchronous>, transform_indices = @transform_20, window_bounds = array<i64: 1, 128>}, {pipeline_mode = #tpu.pipeline_mode<synchronous>, transform_indices = @transform_21, window_bounds = array<i64: 1, 128>}, {pipeline_mode = #tpu.pipeline_mode<synchronous>, transform_indices = @transform_22, window_bounds = array<i64: 1, 128>}, {pipeline_mode = #tpu.pipeline_mode<synchronous>, transform_indices = @transform_23, window_bounds = array<i64: 128, 2048>}, {pipeline_mode = #tpu.pipeline_mode<synchronous>, transform_indices = @transform_24, window_bounds = array<i64: 1, 2048>}, {pipeline_mode = #tpu.pipeline_mode<synchronous>, transform_indices = @transform_25, window_bounds = array<i64: 2048, 128>}, {pipeline_mode = #tpu.pipeline_mode<synchronous>, transform_indices = @transform_26, window_bounds = array<i64: 1, 128>}, {pipeline_mode = #tpu.pipeline_mode<synchronous>, transform_indices = @transform_27, window_bounds = array<i64: 1, 128>}, {pipeline_mode = #tpu.pipeline_mode<synchronous>, transform_indices = @transform_28, window_bounds = array<i64: 1, 128>}, {pipeline_mode = #tpu.pipeline_mode<synchronous>, transform_indices = @transform_29, window_bounds = array<i64: 128, 384>}, {pipeline_mode = #tpu.pipeline_mode<synchronous>, transform_indices = @transform_30, window_bounds = array<i64: 1, 384>}, {pipeline_mode = #tpu.pipeline_mode<synchronous>, transform_indices = @transform_31, window_bounds = array<i64: 128, 128>}, {pipeline_mode = #tpu.pipeline_mode<synchronous>, transform_indices = @transform_32, window_bounds = array<i64: 1, 128>}, {pipeline_mode = #tpu.pipeline_mode<synchronous>, transform_indices = @transform_33, window_bounds = array<i64: 1, 128>}, {pipeline_mode = #tpu.pipeline_mode<synchronous>, transform_indices = @transform_34, window_bounds = array<i64: 1, 128>}, {pipeline_mode = #tpu.pipeline_mode<synchronous>, transform_indices = @transform_35, window_bounds = array<i64: 128, 2048>}, {pipeline_mode = #tpu.pipeline_mode<synchronous>, transform_indices = @transform_36, window_bounds = array<i64: 1, 2048>}, {pipeline_mode = #tpu.pipeline_mode<synchronous>, transform_indices = @transform_37, window_bounds = array<i64: 2048, 128>}, {pipeline_mode = #tpu.pipeline_mode<synchronous>, transform_indices = @transform_38, window_bounds = array<i64: 1, 128>}, {pipeline_mode = #tpu.pipeline_mode<synchronous>, transform_indices = @transform_39, window_bounds = array<i64: 1, 128>}, {pipeline_mode = #tpu.pipeline_mode<synchronous>, transform_indices = @transform_40, window_bounds = array<i64: 1, 128>}, {transform_indices = @transform_41, window_bounds = array<i64: 2, 8, 128>}]} {
    %c0 = arith.constant 0 : index
    %c0_0 = arith.constant 0 : index
    %c0_1 = arith.constant 0 : index
    %0 = vector.load %arg1[%c0, %c0_0, %c0_1] : memref<2x8x1024xf32, #tpu.memory_space<vmem>>, vector<2x8x1024xf32>
    %1 = vector.shape_cast %0 : vector<2x8x1024xf32> to vector<16x1024xf32>
    %2 = arith.truncf %1 : vector<16x1024xf32> to vector<16x1024xbf16>
    %c0_2 = arith.constant 0 : index
    %c0_3 = arith.constant 0 : index
    %3 = vector.load %arg2[%c0_2, %c0_3] : memref<1024x512xbf16, #tpu.memory_space<vmem>>, vector<1024x512xbf16>
    %cst = arith.constant dense<0.000000e+00> : vector<16x512xf32>
    %4 = tpu.matmul %2, %3, %cst {dimension_numbers = #tpu.dot_dimension_numbers<[1], [0], [0], [1], [0, 0, 1, 1], [], []>} : vector<16x1024xbf16>, vector<1024x512xbf16>, vector<16x512xf32> -> vector<16x512xf32>
    %c0_4 = arith.constant 0 : index
    %c0_5 = arith.constant 0 : index
    %5 = vector.load %arg3[%c0_4, %c0_5] : memref<1x512xf32, #tpu.memory_space<vmem>>, vector<1x512xf32>
    %6 = vector.broadcast %5 : vector<1x512xf32> to vector<16x512xf32>
    %7 = arith.addf %4, %6 : vector<16x512xf32>
    %cst_6 = arith.constant 2.000000e+01 : f32
    %8 = vector.broadcast %cst_6 : f32 to vector<16x512xf32>
    %9 = arith.minimumf %7, %8 : vector<16x512xf32>
    %10 = math.exp %9 : vector<16x512xf32>
    %cst_7 = arith.constant 2.000000e+00 : f32
    %11 = vector.broadcast %cst_7 : f32 to vector<16x512xf32>
    %12 = arith.addf %10, %11 : vector<16x512xf32>
    %13 = arith.mulf %10, %12 : vector<16x512xf32>
    %14 = arith.mulf %7, %13 : vector<16x512xf32>
    %cst_8 = arith.constant 2.000000e+00 : f32
    %15 = vector.broadcast %cst_8 : f32 to vector<16x512xf32>
    %16 = arith.addf %13, %15 : vector<16x512xf32>
    %17 = tpu.reciprocal %16 {approx = true} : vector<16x512xf32> -> vector<16x512xf32>
    %18 = arith.mulf %14, %17 : vector<16x512xf32>
    %19 = arith.truncf %18 : vector<16x512xf32> to vector<16x512xbf16>
    %c0_9 = arith.constant 0 : index
    %c0_10 = arith.constant 0 : index
    %20 = vector.load %arg4[%c0_9, %c0_10] : memref<512x128xbf16, #tpu.memory_space<vmem>>, vector<512x128xbf16>
    %cst_11 = arith.constant dense<0.000000e+00> : vector<16x128xf32>
    %21 = tpu.matmul %19, %20, %cst_11 {dimension_numbers = #tpu.dot_dimension_numbers<[1], [0], [0], [1], [0, 0, 1, 1], [], []>} : vector<16x512xbf16>, vector<512x128xbf16>, vector<16x128xf32> -> vector<16x128xf32>
    %c0_12 = arith.constant 0 : index
    %c0_13 = arith.constant 0 : index
    %22 = vector.load %arg5[%c0_12, %c0_13] : memref<1x128xf32, #tpu.memory_space<vmem>>, vector<1x128xf32>
    %23 = vector.broadcast %22 : vector<1x128xf32> to vector<16x128xf32>
    %24 = arith.addf %21, %23 : vector<16x128xf32>
    %cst_14 = arith.constant 2.000000e+01 : f32
    %25 = vector.broadcast %cst_14 : f32 to vector<16x128xf32>
    %26 = arith.minimumf %24, %25 : vector<16x128xf32>
    %27 = math.exp %26 : vector<16x128xf32>
    %cst_15 = arith.constant 2.000000e+00 : f32
    %28 = vector.broadcast %cst_15 : f32 to vector<16x128xf32>
    %29 = arith.addf %27, %28 : vector<16x128xf32>
    %30 = arith.mulf %27, %29 : vector<16x128xf32>
    %31 = arith.mulf %24, %30 : vector<16x128xf32>
    %cst_16 = arith.constant 2.000000e+00 : f32
    %32 = vector.broadcast %cst_16 : f32 to vector<16x128xf32>
    %33 = arith.addf %30, %32 : vector<16x128xf32>
    %34 = tpu.reciprocal %33 {approx = true} : vector<16x128xf32> -> vector<16x128xf32>
    %35 = arith.mulf %31, %34 : vector<16x128xf32>
    %36 = arith.truncf %35 : vector<16x128xf32> to vector<16x128xbf16>
    %c0_17 = arith.constant 0 : index
    %c0_18 = arith.constant 0 : index
    %37 = vector.load %arg6[%c0_17, %c0_18] : memref<128x384xbf16, #tpu.memory_space<vmem>>, vector<128x384xbf16>
    %cst_19 = arith.constant dense<0.000000e+00> : vector<16x384xf32>
    %38 = tpu.matmul %36, %37, %cst_19 {dimension_numbers = #tpu.dot_dimension_numbers<[1], [0], [0], [1], [0, 0, 1, 1], [], []>} : vector<16x128xbf16>, vector<128x384xbf16>, vector<16x384xf32> -> vector<16x384xf32>
    %c0_20 = arith.constant 0 : index
    %c0_21 = arith.constant 0 : index
    %39 = vector.load %arg7[%c0_20, %c0_21] : memref<1x384xf32, #tpu.memory_space<vmem>>, vector<1x384xf32>
    %40 = vector.broadcast %39 : vector<1x384xf32> to vector<16x384xf32>
    %41 = arith.addf %38, %40 : vector<16x384xf32>
    %42 = vector.extract_strided_slice %41 {offsets = [0, 0], sizes = [16, 128], strides = [1, 1]} : vector<16x384xf32> to vector<16x128xf32>
    %cst_22 = arith.constant 0.176776692 : f32
    %43 = vector.broadcast %cst_22 : f32 to vector<16x128xf32>
    %44 = arith.mulf %42, %43 : vector<16x128xf32>
    %45 = arith.truncf %44 : vector<16x128xf32> to vector<16x128xbf16>
    %46 = vector.extract_strided_slice %41 {offsets = [0, 128], sizes = [16, 128], strides = [1, 1]} : vector<16x384xf32> to vector<16x128xf32>
    %47 = arith.truncf %46 : vector<16x128xf32> to vector<16x128xbf16>
    %48 = vector.extract_strided_slice %41 {offsets = [0, 256], sizes = [16, 128], strides = [1, 1]} : vector<16x384xf32> to vector<16x128xf32>
    %49 = arith.truncf %48 : vector<16x128xf32> to vector<16x128xbf16>
    %c0_23 = arith.constant 0 : index
    %c0_24 = arith.constant 0 : index
    %50 = vector.load %arg8[%c0_23, %c0_24] : memref<128x128xbf16, #tpu.memory_space<vmem>>, vector<128x128xbf16>
    %51 = vector.extract_strided_slice %45 {offsets = [0, 0], sizes = [16, 32], strides = [1, 1]} : vector<16x128xbf16> to vector<16x32xbf16>
    %52 = vector.shape_cast %51 : vector<16x32xbf16> to vector<2x8x32xbf16>
    %53 = vector.extract_strided_slice %47 {offsets = [0, 0], sizes = [16, 32], strides = [1, 1]} : vector<16x128xbf16> to vector<16x32xbf16>
    %54 = vector.shape_cast %53 : vector<16x32xbf16> to vector<2x8x32xbf16>
    %55 = vector.extract_strided_slice %49 {offsets = [0, 0], sizes = [16, 32], strides = [1, 1]} : vector<16x128xbf16> to vector<16x32xbf16>
    %56 = vector.shape_cast %55 : vector<16x32xbf16> to vector<2x8x32xbf16>
    "tpu.trace_start"() <{level = 10 : i32, message = "bqd,bkd->bqk"}> : () -> ()
    %cst_25 = arith.constant dense<0.000000e+00> : vector<2x8x8xf32>
    %57 = tpu.matmul %52, %54, %cst_25 {dimension_numbers = #tpu.dot_dimension_numbers<[2], [2], [1], [1], [0, 0, 0, 1, 1, 1], [0], [0]>} : vector<2x8x32xbf16>, vector<2x8x32xbf16>, vector<2x8x8xf32> -> vector<2x8x8xf32>
    "tpu.trace_stop"() : () -> ()
    %cst_26 = arith.constant dense<0xFF800000> : vector<2x8xf32>
    %58 = vector.multi_reduction <maximumf>, %57, %cst_26 [2] : vector<2x8x8xf32> to vector<2x8xf32>
    %59 = vector.shape_cast %58 : vector<2x8xf32> to vector<2x8x1xf32>
    %60 = vector.broadcast %59 : vector<2x8x1xf32> to vector<2x8x8xf32>
    %61 = arith.subf %57, %60 : vector<2x8x8xf32>
    %62 = math.exp %61 : vector<2x8x8xf32>
    %cst_27 = arith.constant dense<0.000000e+00> : vector<2x8xf32>
    %63 = vector.multi_reduction <add>, %62, %cst_27 [2] : vector<2x8x8xf32> to vector<2x8xf32>
    %64 = vector.shape_cast %63 : vector<2x8xf32> to vector<2x8x1xf32>
    %65 = tpu.reciprocal %64 {approx = true} : vector<2x8x1xf32> -> vector<2x8x1xf32>
    %66 = vector.broadcast %65 : vector<2x8x1xf32> to vector<2x8x8xf32>
    %67 = arith.mulf %62, %66 : vector<2x8x8xf32>
    %68 = arith.truncf %67 : vector<2x8x8xf32> to vector<2x8x8xbf16>
    "tpu.trace_start"() <{level = 10 : i32, message = "bqk,bkd->bqd"}> : () -> ()
    %cst_28 = arith.constant dense<0.000000e+00> : vector<2x8x32xf32>
    %69 = tpu.matmul %68, %56, %cst_28 {dimension_numbers = #tpu.dot_dimension_numbers<[2], [1], [1], [2], [0, 0, 0, 1, 1, 2], [0], [0]>} : vector<2x8x8xbf16>, vector<2x8x32xbf16>, vector<2x8x32xf32> -> vector<2x8x32xf32>
    "tpu.trace_stop"() : () -> ()
    %70 = vector.shape_cast %69 : vector<2x8x32xf32> to vector<16x32xf32>
    %71 = arith.truncf %70 : vector<16x32xf32> to vector<16x32xbf16>
    %72 = vector.extract_strided_slice %50 {offsets = [0, 0], sizes = [32, 128], strides = [1, 1]} : vector<128x128xbf16> to vector<32x128xbf16>
    %cst_29 = arith.constant dense<0.000000e+00> : vector<16x128xf32>
    %73 = tpu.matmul %71, %72, %cst_29 {dimension_numbers = #tpu.dot_dimension_numbers<[1], [0], [0], [1], [0, 0, 1, 1], [], []>} : vector<16x32xbf16>, vector<32x128xbf16>, vector<16x128xf32> -> vector<16x128xf32>
    %74 = vector.extract_strided_slice %45 {offsets = [0, 32], sizes = [16, 32], strides = [1, 1]} : vector<16x128xbf16> to vector<16x32xbf16>
    %75 = vector.shape_cast %74 : vector<16x32xbf16> to vector<2x8x32xbf16>
    %76 = vector.extract_strided_slice %47 {offsets = [0, 32], sizes = [16, 32], strides = [1, 1]} : vector<16x128xbf16> to vector<16x32xbf16>
    %77 = vector.shape_cast %76 : vector<16x32xbf16> to vector<2x8x32xbf16>
    %78 = vector.extract_strided_slice %49 {offsets = [0, 32], sizes = [16, 32], strides = [1, 1]} : vector<16x128xbf16> to vector<16x32xbf16>
    %79 = vector.shape_cast %78 : vector<16x32xbf16> to vector<2x8x32xbf16>
    "tpu.trace_start"() <{level = 10 : i32, message = "bqd,bkd->bqk"}> : () -> ()
    %cst_30 = arith.constant dense<0.000000e+00> : vector<2x8x8xf32>
    %80 = tpu.matmul %75, %77, %cst_30 {dimension_numbers = #tpu.dot_dimension_numbers<[2], [2], [1], [1], [0, 0, 0, 1, 1, 1], [0], [0]>} : vector<2x8x32xbf16>, vector<2x8x32xbf16>, vector<2x8x8xf32> -> vector<2x8x8xf32>
    "tpu.trace_stop"() : () -> ()
    %cst_31 = arith.constant dense<0xFF800000> : vector<2x8xf32>
    %81 = vector.multi_reduction <maximumf>, %80, %cst_31 [2] : vector<2x8x8xf32> to vector<2x8xf32>
    %82 = vector.shape_cast %81 : vector<2x8xf32> to vector<2x8x1xf32>
    %83 = vector.broadcast %82 : vector<2x8x1xf32> to vector<2x8x8xf32>
    %84 = arith.subf %80, %83 : vector<2x8x8xf32>
    %85 = math.exp %84 : vector<2x8x8xf32>
    %cst_32 = arith.constant dense<0.000000e+00> : vector<2x8xf32>
    %86 = vector.multi_reduction <add>, %85, %cst_32 [2] : vector<2x8x8xf32> to vector<2x8xf32>
    %87 = vector.shape_cast %86 : vector<2x8xf32> to vector<2x8x1xf32>
    %88 = tpu.reciprocal %87 {approx = true} : vector<2x8x1xf32> -> vector<2x8x1xf32>
    %89 = vector.broadcast %88 : vector<2x8x1xf32> to vector<2x8x8xf32>
    %90 = arith.mulf %85, %89 : vector<2x8x8xf32>
    %91 = arith.truncf %90 : vector<2x8x8xf32> to vector<2x8x8xbf16>
    "tpu.trace_start"() <{level = 10 : i32, message = "bqk,bkd->bqd"}> : () -> ()
    %cst_33 = arith.constant dense<0.000000e+00> : vector<2x8x32xf32>
    %92 = tpu.matmul %91, %79, %cst_33 {dimension_numbers = #tpu.dot_dimension_numbers<[2], [1], [1], [2], [0, 0, 0, 1, 1, 2], [0], [0]>} : vector<2x8x8xbf16>, vector<2x8x32xbf16>, vector<2x8x32xf32> -> vector<2x8x32xf32>
    "tpu.trace_stop"() : () -> ()
    %93 = vector.shape_cast %92 : vector<2x8x32xf32> to vector<16x32xf32>
    %94 = arith.truncf %93 : vector<16x32xf32> to vector<16x32xbf16>
    %95 = vector.extract_strided_slice %50 {offsets = [32, 0], sizes = [32, 128], strides = [1, 1]} : vector<128x128xbf16> to vector<32x128xbf16>
    %cst_34 = arith.constant dense<0.000000e+00> : vector<16x128xf32>
    %96 = tpu.matmul %94, %95, %cst_34 {dimension_numbers = #tpu.dot_dimension_numbers<[1], [0], [0], [1], [0, 0, 1, 1], [], []>} : vector<16x32xbf16>, vector<32x128xbf16>, vector<16x128xf32> -> vector<16x128xf32>
    %97 = arith.addf %73, %96 : vector<16x128xf32>
    %98 = vector.extract_strided_slice %45 {offsets = [0, 64], sizes = [16, 32], strides = [1, 1]} : vector<16x128xbf16> to vector<16x32xbf16>
    %99 = vector.shape_cast %98 : vector<16x32xbf16> to vector<2x8x32xbf16>
    %100 = vector.extract_strided_slice %47 {offsets = [0, 64], sizes = [16, 32], strides = [1, 1]} : vector<16x128xbf16> to vector<16x32xbf16>
    %101 = vector.shape_cast %100 : vector<16x32xbf16> to vector<2x8x32xbf16>
    %102 = vector.extract_strided_slice %49 {offsets = [0, 64], sizes = [16, 32], strides = [1, 1]} : vector<16x128xbf16> to vector<16x32xbf16>
    %103 = vector.shape_cast %102 : vector<16x32xbf16> to vector<2x8x32xbf16>
    "tpu.trace_start"() <{level = 10 : i32, message = "bqd,bkd->bqk"}> : () -> ()
    %cst_35 = arith.constant dense<0.000000e+00> : vector<2x8x8xf32>
    %104 = tpu.matmul %99, %101, %cst_35 {dimension_numbers = #tpu.dot_dimension_numbers<[2], [2], [1], [1], [0, 0, 0, 1, 1, 1], [0], [0]>} : vector<2x8x32xbf16>, vector<2x8x32xbf16>, vector<2x8x8xf32> -> vector<2x8x8xf32>
    "tpu.trace_stop"() : () -> ()
    %cst_36 = arith.constant dense<0xFF800000> : vector<2x8xf32>
    %105 = vector.multi_reduction <maximumf>, %104, %cst_36 [2] : vector<2x8x8xf32> to vector<2x8xf32>
    %106 = vector.shape_cast %105 : vector<2x8xf32> to vector<2x8x1xf32>
    %107 = vector.broadcast %106 : vector<2x8x1xf32> to vector<2x8x8xf32>
    %108 = arith.subf %104, %107 : vector<2x8x8xf32>
    %109 = math.exp %108 : vector<2x8x8xf32>
    %cst_37 = arith.constant dense<0.000000e+00> : vector<2x8xf32>
    %110 = vector.multi_reduction <add>, %109, %cst_37 [2] : vector<2x8x8xf32> to vector<2x8xf32>
    %111 = vector.shape_cast %110 : vector<2x8xf32> to vector<2x8x1xf32>
    %112 = tpu.reciprocal %111 {approx = true} : vector<2x8x1xf32> -> vector<2x8x1xf32>
    %113 = vector.broadcast %112 : vector<2x8x1xf32> to vector<2x8x8xf32>
    %114 = arith.mulf %109, %113 : vector<2x8x8xf32>
    %115 = arith.truncf %114 : vector<2x8x8xf32> to vector<2x8x8xbf16>
    "tpu.trace_start"() <{level = 10 : i32, message = "bqk,bkd->bqd"}> : () -> ()
    %cst_38 = arith.constant dense<0.000000e+00> : vector<2x8x32xf32>
    %116 = tpu.matmul %115, %103, %cst_38 {dimension_numbers = #tpu.dot_dimension_numbers<[2], [1], [1], [2], [0, 0, 0, 1, 1, 2], [0], [0]>} : vector<2x8x8xbf16>, vector<2x8x32xbf16>, vector<2x8x32xf32> -> vector<2x8x32xf32>
    "tpu.trace_stop"() : () -> ()
    %117 = vector.shape_cast %116 : vector<2x8x32xf32> to vector<16x32xf32>
    %118 = arith.truncf %117 : vector<16x32xf32> to vector<16x32xbf16>
    %119 = vector.extract_strided_slice %50 {offsets = [64, 0], sizes = [32, 128], strides = [1, 1]} : vector<128x128xbf16> to vector<32x128xbf16>
    %cst_39 = arith.constant dense<0.000000e+00> : vector<16x128xf32>
    %120 = tpu.matmul %118, %119, %cst_39 {dimension_numbers = #tpu.dot_dimension_numbers<[1], [0], [0], [1], [0, 0, 1, 1], [], []>} : vector<16x32xbf16>, vector<32x128xbf16>, vector<16x128xf32> -> vector<16x128xf32>
    %121 = arith.addf %97, %120 : vector<16x128xf32>
    %122 = vector.extract_strided_slice %45 {offsets = [0, 96], sizes = [16, 32], strides = [1, 1]} : vector<16x128xbf16> to vector<16x32xbf16>
    %123 = vector.shape_cast %122 : vector<16x32xbf16> to vector<2x8x32xbf16>
    %124 = vector.extract_strided_slice %47 {offsets = [0, 96], sizes = [16, 32], strides = [1, 1]} : vector<16x128xbf16> to vector<16x32xbf16>
    %125 = vector.shape_cast %124 : vector<16x32xbf16> to vector<2x8x32xbf16>
    %126 = vector.extract_strided_slice %49 {offsets = [0, 96], sizes = [16, 32], strides = [1, 1]} : vector<16x128xbf16> to vector<16x32xbf16>
    %127 = vector.shape_cast %126 : vector<16x32xbf16> to vector<2x8x32xbf16>
    "tpu.trace_start"() <{level = 10 : i32, message = "bqd,bkd->bqk"}> : () -> ()
    %cst_40 = arith.constant dense<0.000000e+00> : vector<2x8x8xf32>
    %128 = tpu.matmul %123, %125, %cst_40 {dimension_numbers = #tpu.dot_dimension_numbers<[2], [2], [1], [1], [0, 0, 0, 1, 1, 1], [0], [0]>} : vector<2x8x32xbf16>, vector<2x8x32xbf16>, vector<2x8x8xf32> -> vector<2x8x8xf32>
    "tpu.trace_stop"() : () -> ()
    %cst_41 = arith.constant dense<0xFF800000> : vector<2x8xf32>
    %129 = vector.multi_reduction <maximumf>, %128, %cst_41 [2] : vector<2x8x8xf32> to vector<2x8xf32>
    %130 = vector.shape_cast %129 : vector<2x8xf32> to vector<2x8x1xf32>
    %131 = vector.broadcast %130 : vector<2x8x1xf32> to vector<2x8x8xf32>
    %132 = arith.subf %128, %131 : vector<2x8x8xf32>
    %133 = math.exp %132 : vector<2x8x8xf32>
    %cst_42 = arith.constant dense<0.000000e+00> : vector<2x8xf32>
    %134 = vector.multi_reduction <add>, %133, %cst_42 [2] : vector<2x8x8xf32> to vector<2x8xf32>
    %135 = vector.shape_cast %134 : vector<2x8xf32> to vector<2x8x1xf32>
    %136 = tpu.reciprocal %135 {approx = true} : vector<2x8x1xf32> -> vector<2x8x1xf32>
    %137 = vector.broadcast %136 : vector<2x8x1xf32> to vector<2x8x8xf32>
    %138 = arith.mulf %133, %137 : vector<2x8x8xf32>
    %139 = arith.truncf %138 : vector<2x8x8xf32> to vector<2x8x8xbf16>
    "tpu.trace_start"() <{level = 10 : i32, message = "bqk,bkd->bqd"}> : () -> ()
    %cst_43 = arith.constant dense<0.000000e+00> : vector<2x8x32xf32>
    %140 = tpu.matmul %139, %127, %cst_43 {dimension_numbers = #tpu.dot_dimension_numbers<[2], [1], [1], [2], [0, 0, 0, 1, 1, 2], [0], [0]>} : vector<2x8x8xbf16>, vector<2x8x32xbf16>, vector<2x8x32xf32> -> vector<2x8x32xf32>
    "tpu.trace_stop"() : () -> ()
    %141 = vector.shape_cast %140 : vector<2x8x32xf32> to vector<16x32xf32>
    %142 = arith.truncf %141 : vector<16x32xf32> to vector<16x32xbf16>
    %143 = vector.extract_strided_slice %50 {offsets = [96, 0], sizes = [32, 128], strides = [1, 1]} : vector<128x128xbf16> to vector<32x128xbf16>
    %cst_44 = arith.constant dense<0.000000e+00> : vector<16x128xf32>
    %144 = tpu.matmul %142, %143, %cst_44 {dimension_numbers = #tpu.dot_dimension_numbers<[1], [0], [0], [1], [0, 0, 1, 1], [], []>} : vector<16x32xbf16>, vector<32x128xbf16>, vector<16x128xf32> -> vector<16x128xf32>
    %145 = arith.addf %121, %144 : vector<16x128xf32>
    %c0_45 = arith.constant 0 : index
    %c0_46 = arith.constant 0 : index
    %146 = vector.load %arg9[%c0_45, %c0_46] : memref<1x128xf32, #tpu.memory_space<vmem>>, vector<1x128xf32>
    %147 = vector.broadcast %146 : vector<1x128xf32> to vector<16x128xf32>
    %148 = arith.addf %145, %147 : vector<16x128xf32>
    %149 = arith.addf %35, %148 : vector<16x128xf32>
    %c0_47 = arith.constant 0 : index
    %c0_48 = arith.constant 0 : index
    %150 = vector.load %arg10[%c0_47, %c0_48] : memref<1x128xf32, #tpu.memory_space<vmem>>, vector<1x128xf32>
    %c0_49 = arith.constant 0 : index
    %c0_50 = arith.constant 0 : index
    %151 = vector.load %arg11[%c0_49, %c0_50] : memref<1x128xf32, #tpu.memory_space<vmem>>, vector<1x128xf32>
    %cst_51 = arith.constant dense<0.000000e+00> : vector<16xf32>
    %152 = vector.multi_reduction <add>, %149, %cst_51 [1] : vector<16x128xf32> to vector<16xf32>
    %153 = vector.shape_cast %152 : vector<16xf32> to vector<16x1xf32>
    %cst_52 = arith.constant 1.280000e+02 : f32
    %154 = vector.broadcast %cst_52 : f32 to vector<16x1xf32>
    %155 = arith.divf %153, %154 : vector<16x1xf32>
    %156 = arith.mulf %149, %149 : vector<16x128xf32>
    %cst_53 = arith.constant dense<0.000000e+00> : vector<16xf32>
    %157 = vector.multi_reduction <add>, %156, %cst_53 [1] : vector<16x128xf32> to vector<16xf32>
    %158 = vector.shape_cast %157 : vector<16xf32> to vector<16x1xf32>
    %cst_54 = arith.constant 1.280000e+02 : f32
    %159 = vector.broadcast %cst_54 : f32 to vector<16x1xf32>
    %160 = arith.divf %158, %159 : vector<16x1xf32>
    %161 = arith.mulf %155, %155 : vector<16x1xf32>
    %162 = arith.subf %160, %161 : vector<16x1xf32>
    %cst_55 = arith.constant 0.000000e+00 : f32
    %163 = vector.broadcast %cst_55 : f32 to vector<16x1xf32>
    %164 = arith.maximumf %162, %163 : vector<16x1xf32>
    %165 = vector.broadcast %155 : vector<16x1xf32> to vector<16x128xf32>
    %166 = arith.subf %149, %165 : vector<16x128xf32>
    %cst_56 = arith.constant 9.99999974E-6 : f32
    %167 = vector.broadcast %cst_56 : f32 to vector<16x1xf32>
    %168 = arith.addf %164, %167 : vector<16x1xf32>
    %169 = math.rsqrt %168 : vector<16x1xf32>
    %170 = vector.broadcast %169 : vector<16x1xf32> to vector<16x128xf32>
    %171 = arith.mulf %166, %170 : vector<16x128xf32>
    %172 = vector.broadcast %150 : vector<1x128xf32> to vector<16x128xf32>
    %173 = arith.mulf %171, %172 : vector<16x128xf32>
    %174 = vector.broadcast %151 : vector<1x128xf32> to vector<16x128xf32>
    %175 = arith.addf %173, %174 : vector<16x128xf32>
    %176 = arith.truncf %175 : vector<16x128xf32> to vector<16x128xbf16>
    %c0_57 = arith.constant 0 : index
    %c0_58 = arith.constant 0 : index
    %177 = vector.load %arg12[%c0_57, %c0_58] : memref<128x2048xbf16, #tpu.memory_space<vmem>>, vector<128x2048xbf16>
    %cst_59 = arith.constant dense<0.000000e+00> : vector<16x2048xf32>
    %178 = tpu.matmul %176, %177, %cst_59 {dimension_numbers = #tpu.dot_dimension_numbers<[1], [0], [0], [1], [0, 0, 1, 1], [], []>} : vector<16x128xbf16>, vector<128x2048xbf16>, vector<16x2048xf32> -> vector<16x2048xf32>
    %c0_60 = arith.constant 0 : index
    %c0_61 = arith.constant 0 : index
    %179 = vector.load %arg13[%c0_60, %c0_61] : memref<1x2048xf32, #tpu.memory_space<vmem>>, vector<1x2048xf32>
    %180 = vector.broadcast %179 : vector<1x2048xf32> to vector<16x2048xf32>
    %181 = arith.addf %178, %180 : vector<16x2048xf32>
    %cst_62 = arith.constant 0.000000e+00 : f32
    %182 = vector.broadcast %cst_62 : f32 to vector<16x2048xf32>
    %183 = arith.maximumf %181, %182 : vector<16x2048xf32>
    %184 = arith.truncf %183 : vector<16x2048xf32> to vector<16x2048xbf16>
    %c0_63 = arith.constant 0 : index
    %c0_64 = arith.constant 0 : index
    %185 = vector.load %arg14[%c0_63, %c0_64] : memref<2048x128xbf16, #tpu.memory_space<vmem>>, vector<2048x128xbf16>
    %cst_65 = arith.constant dense<0.000000e+00> : vector<16x128xf32>
    %186 = tpu.matmul %184, %185, %cst_65 {dimension_numbers = #tpu.dot_dimension_numbers<[1], [0], [0], [1], [0, 0, 1, 1], [], []>} : vector<16x2048xbf16>, vector<2048x128xbf16>, vector<16x128xf32> -> vector<16x128xf32>
    %c0_66 = arith.constant 0 : index
    %c0_67 = arith.constant 0 : index
    %187 = vector.load %arg15[%c0_66, %c0_67] : memref<1x128xf32, #tpu.memory_space<vmem>>, vector<1x128xf32>
    %188 = vector.broadcast %187 : vector<1x128xf32> to vector<16x128xf32>
    %189 = arith.addf %186, %188 : vector<16x128xf32>
    %190 = arith.addf %175, %189 : vector<16x128xf32>
    %c0_68 = arith.constant 0 : index
    %c0_69 = arith.constant 0 : index
    %191 = vector.load %arg16[%c0_68, %c0_69] : memref<1x128xf32, #tpu.memory_space<vmem>>, vector<1x128xf32>
    %c0_70 = arith.constant 0 : index
    %c0_71 = arith.constant 0 : index
    %192 = vector.load %arg17[%c0_70, %c0_71] : memref<1x128xf32, #tpu.memory_space<vmem>>, vector<1x128xf32>
    %cst_72 = arith.constant dense<0.000000e+00> : vector<16xf32>
    %193 = vector.multi_reduction <add>, %190, %cst_72 [1] : vector<16x128xf32> to vector<16xf32>
    %194 = vector.shape_cast %193 : vector<16xf32> to vector<16x1xf32>
    %cst_73 = arith.constant 1.280000e+02 : f32
    %195 = vector.broadcast %cst_73 : f32 to vector<16x1xf32>
    %196 = arith.divf %194, %195 : vector<16x1xf32>
    %197 = arith.mulf %190, %190 : vector<16x128xf32>
    %cst_74 = arith.constant dense<0.000000e+00> : vector<16xf32>
    %198 = vector.multi_reduction <add>, %197, %cst_74 [1] : vector<16x128xf32> to vector<16xf32>
    %199 = vector.shape_cast %198 : vector<16xf32> to vector<16x1xf32>
    %cst_75 = arith.constant 1.280000e+02 : f32
    %200 = vector.broadcast %cst_75 : f32 to vector<16x1xf32>
    %201 = arith.divf %199, %200 : vector<16x1xf32>
    %202 = arith.mulf %196, %196 : vector<16x1xf32>
    %203 = arith.subf %201, %202 : vector<16x1xf32>
    %cst_76 = arith.constant 0.000000e+00 : f32
    %204 = vector.broadcast %cst_76 : f32 to vector<16x1xf32>
    %205 = arith.maximumf %203, %204 : vector<16x1xf32>
    %206 = vector.broadcast %196 : vector<16x1xf32> to vector<16x128xf32>
    %207 = arith.subf %190, %206 : vector<16x128xf32>
    %cst_77 = arith.constant 9.99999974E-6 : f32
    %208 = vector.broadcast %cst_77 : f32 to vector<16x1xf32>
    %209 = arith.addf %205, %208 : vector<16x1xf32>
    %210 = math.rsqrt %209 : vector<16x1xf32>
    %211 = vector.broadcast %210 : vector<16x1xf32> to vector<16x128xf32>
    %212 = arith.mulf %207, %211 : vector<16x128xf32>
    %213 = vector.broadcast %191 : vector<1x128xf32> to vector<16x128xf32>
    %214 = arith.mulf %212, %213 : vector<16x128xf32>
    %215 = vector.broadcast %192 : vector<1x128xf32> to vector<16x128xf32>
    %216 = arith.addf %214, %215 : vector<16x128xf32>
    %217 = arith.truncf %216 : vector<16x128xf32> to vector<16x128xbf16>
    %c0_78 = arith.constant 0 : index
    %c0_79 = arith.constant 0 : index
    %218 = vector.load %arg18[%c0_78, %c0_79] : memref<128x384xbf16, #tpu.memory_space<vmem>>, vector<128x384xbf16>
    %cst_80 = arith.constant dense<0.000000e+00> : vector<16x384xf32>
    %219 = tpu.matmul %217, %218, %cst_80 {dimension_numbers = #tpu.dot_dimension_numbers<[1], [0], [0], [1], [0, 0, 1, 1], [], []>} : vector<16x128xbf16>, vector<128x384xbf16>, vector<16x384xf32> -> vector<16x384xf32>
    %c0_81 = arith.constant 0 : index
    %c0_82 = arith.constant 0 : index
    %220 = vector.load %arg19[%c0_81, %c0_82] : memref<1x384xf32, #tpu.memory_space<vmem>>, vector<1x384xf32>
    %221 = vector.broadcast %220 : vector<1x384xf32> to vector<16x384xf32>
    %222 = arith.addf %219, %221 : vector<16x384xf32>
    %223 = vector.extract_strided_slice %222 {offsets = [0, 0], sizes = [16, 128], strides = [1, 1]} : vector<16x384xf32> to vector<16x128xf32>
    %cst_83 = arith.constant 0.176776692 : f32
    %224 = vector.broadcast %cst_83 : f32 to vector<16x128xf32>
    %225 = arith.mulf %223, %224 : vector<16x128xf32>
    %226 = arith.truncf %225 : vector<16x128xf32> to vector<16x128xbf16>
    %227 = vector.extract_strided_slice %222 {offsets = [0, 128], sizes = [16, 128], strides = [1, 1]} : vector<16x384xf32> to vector<16x128xf32>
    %228 = arith.truncf %227 : vector<16x128xf32> to vector<16x128xbf16>
    %229 = vector.extract_strided_slice %222 {offsets = [0, 256], sizes = [16, 128], strides = [1, 1]} : vector<16x384xf32> to vector<16x128xf32>
    %230 = arith.truncf %229 : vector<16x128xf32> to vector<16x128xbf16>
    %c0_84 = arith.constant 0 : index
    %c0_85 = arith.constant 0 : index
    %231 = vector.load %arg20[%c0_84, %c0_85] : memref<128x128xbf16, #tpu.memory_space<vmem>>, vector<128x128xbf16>
    %232 = vector.extract_strided_slice %226 {offsets = [0, 0], sizes = [16, 32], strides = [1, 1]} : vector<16x128xbf16> to vector<16x32xbf16>
    %233 = vector.shape_cast %232 : vector<16x32xbf16> to vector<2x8x32xbf16>
    %234 = vector.extract_strided_slice %228 {offsets = [0, 0], sizes = [16, 32], strides = [1, 1]} : vector<16x128xbf16> to vector<16x32xbf16>
    %235 = vector.shape_cast %234 : vector<16x32xbf16> to vector<2x8x32xbf16>
    %236 = vector.extract_strided_slice %230 {offsets = [0, 0], sizes = [16, 32], strides = [1, 1]} : vector<16x128xbf16> to vector<16x32xbf16>
    %237 = vector.shape_cast %236 : vector<16x32xbf16> to vector<2x8x32xbf16>
    "tpu.trace_start"() <{level = 10 : i32, message = "bqd,bkd->bqk"}> : () -> ()
    %cst_86 = arith.constant dense<0.000000e+00> : vector<2x8x8xf32>
    %238 = tpu.matmul %233, %235, %cst_86 {dimension_numbers = #tpu.dot_dimension_numbers<[2], [2], [1], [1], [0, 0, 0, 1, 1, 1], [0], [0]>} : vector<2x8x32xbf16>, vector<2x8x32xbf16>, vector<2x8x8xf32> -> vector<2x8x8xf32>
    "tpu.trace_stop"() : () -> ()
    %cst_87 = arith.constant dense<0xFF800000> : vector<2x8xf32>
    %239 = vector.multi_reduction <maximumf>, %238, %cst_87 [2] : vector<2x8x8xf32> to vector<2x8xf32>
    %240 = vector.shape_cast %239 : vector<2x8xf32> to vector<2x8x1xf32>
    %241 = vector.broadcast %240 : vector<2x8x1xf32> to vector<2x8x8xf32>
    %242 = arith.subf %238, %241 : vector<2x8x8xf32>
    %243 = math.exp %242 : vector<2x8x8xf32>
    %cst_88 = arith.constant dense<0.000000e+00> : vector<2x8xf32>
    %244 = vector.multi_reduction <add>, %243, %cst_88 [2] : vector<2x8x8xf32> to vector<2x8xf32>
    %245 = vector.shape_cast %244 : vector<2x8xf32> to vector<2x8x1xf32>
    %246 = tpu.reciprocal %245 {approx = true} : vector<2x8x1xf32> -> vector<2x8x1xf32>
    %247 = vector.broadcast %246 : vector<2x8x1xf32> to vector<2x8x8xf32>
    %248 = arith.mulf %243, %247 : vector<2x8x8xf32>
    %249 = arith.truncf %248 : vector<2x8x8xf32> to vector<2x8x8xbf16>
    "tpu.trace_start"() <{level = 10 : i32, message = "bqk,bkd->bqd"}> : () -> ()
    %cst_89 = arith.constant dense<0.000000e+00> : vector<2x8x32xf32>
    %250 = tpu.matmul %249, %237, %cst_89 {dimension_numbers = #tpu.dot_dimension_numbers<[2], [1], [1], [2], [0, 0, 0, 1, 1, 2], [0], [0]>} : vector<2x8x8xbf16>, vector<2x8x32xbf16>, vector<2x8x32xf32> -> vector<2x8x32xf32>
    "tpu.trace_stop"() : () -> ()
    %251 = vector.shape_cast %250 : vector<2x8x32xf32> to vector<16x32xf32>
    %252 = arith.truncf %251 : vector<16x32xf32> to vector<16x32xbf16>
    %253 = vector.extract_strided_slice %231 {offsets = [0, 0], sizes = [32, 128], strides = [1, 1]} : vector<128x128xbf16> to vector<32x128xbf16>
    %cst_90 = arith.constant dense<0.000000e+00> : vector<16x128xf32>
    %254 = tpu.matmul %252, %253, %cst_90 {dimension_numbers = #tpu.dot_dimension_numbers<[1], [0], [0], [1], [0, 0, 1, 1], [], []>} : vector<16x32xbf16>, vector<32x128xbf16>, vector<16x128xf32> -> vector<16x128xf32>
    %255 = vector.extract_strided_slice %226 {offsets = [0, 32], sizes = [16, 32], strides = [1, 1]} : vector<16x128xbf16> to vector<16x32xbf16>
    %256 = vector.shape_cast %255 : vector<16x32xbf16> to vector<2x8x32xbf16>
    %257 = vector.extract_strided_slice %228 {offsets = [0, 32], sizes = [16, 32], strides = [1, 1]} : vector<16x128xbf16> to vector<16x32xbf16>
    %258 = vector.shape_cast %257 : vector<16x32xbf16> to vector<2x8x32xbf16>
    %259 = vector.extract_strided_slice %230 {offsets = [0, 32], sizes = [16, 32], strides = [1, 1]} : vector<16x128xbf16> to vector<16x32xbf16>
    %260 = vector.shape_cast %259 : vector<16x32xbf16> to vector<2x8x32xbf16>
    "tpu.trace_start"() <{level = 10 : i32, message = "bqd,bkd->bqk"}> : () -> ()
    %cst_91 = arith.constant dense<0.000000e+00> : vector<2x8x8xf32>
    %261 = tpu.matmul %256, %258, %cst_91 {dimension_numbers = #tpu.dot_dimension_numbers<[2], [2], [1], [1], [0, 0, 0, 1, 1, 1], [0], [0]>} : vector<2x8x32xbf16>, vector<2x8x32xbf16>, vector<2x8x8xf32> -> vector<2x8x8xf32>
    "tpu.trace_stop"() : () -> ()
    %cst_92 = arith.constant dense<0xFF800000> : vector<2x8xf32>
    %262 = vector.multi_reduction <maximumf>, %261, %cst_92 [2] : vector<2x8x8xf32> to vector<2x8xf32>
    %263 = vector.shape_cast %262 : vector<2x8xf32> to vector<2x8x1xf32>
    %264 = vector.broadcast %263 : vector<2x8x1xf32> to vector<2x8x8xf32>
    %265 = arith.subf %261, %264 : vector<2x8x8xf32>
    %266 = math.exp %265 : vector<2x8x8xf32>
    %cst_93 = arith.constant dense<0.000000e+00> : vector<2x8xf32>
    %267 = vector.multi_reduction <add>, %266, %cst_93 [2] : vector<2x8x8xf32> to vector<2x8xf32>
    %268 = vector.shape_cast %267 : vector<2x8xf32> to vector<2x8x1xf32>
    %269 = tpu.reciprocal %268 {approx = true} : vector<2x8x1xf32> -> vector<2x8x1xf32>
    %270 = vector.broadcast %269 : vector<2x8x1xf32> to vector<2x8x8xf32>
    %271 = arith.mulf %266, %270 : vector<2x8x8xf32>
    %272 = arith.truncf %271 : vector<2x8x8xf32> to vector<2x8x8xbf16>
    "tpu.trace_start"() <{level = 10 : i32, message = "bqk,bkd->bqd"}> : () -> ()
    %cst_94 = arith.constant dense<0.000000e+00> : vector<2x8x32xf32>
    %273 = tpu.matmul %272, %260, %cst_94 {dimension_numbers = #tpu.dot_dimension_numbers<[2], [1], [1], [2], [0, 0, 0, 1, 1, 2], [0], [0]>} : vector<2x8x8xbf16>, vector<2x8x32xbf16>, vector<2x8x32xf32> -> vector<2x8x32xf32>
    "tpu.trace_stop"() : () -> ()
    %274 = vector.shape_cast %273 : vector<2x8x32xf32> to vector<16x32xf32>
    %275 = arith.truncf %274 : vector<16x32xf32> to vector<16x32xbf16>
    %276 = vector.extract_strided_slice %231 {offsets = [32, 0], sizes = [32, 128], strides = [1, 1]} : vector<128x128xbf16> to vector<32x128xbf16>
    %cst_95 = arith.constant dense<0.000000e+00> : vector<16x128xf32>
    %277 = tpu.matmul %275, %276, %cst_95 {dimension_numbers = #tpu.dot_dimension_numbers<[1], [0], [0], [1], [0, 0, 1, 1], [], []>} : vector<16x32xbf16>, vector<32x128xbf16>, vector<16x128xf32> -> vector<16x128xf32>
    %278 = arith.addf %254, %277 : vector<16x128xf32>
    %279 = vector.extract_strided_slice %226 {offsets = [0, 64], sizes = [16, 32], strides = [1, 1]} : vector<16x128xbf16> to vector<16x32xbf16>
    %280 = vector.shape_cast %279 : vector<16x32xbf16> to vector<2x8x32xbf16>
    %281 = vector.extract_strided_slice %228 {offsets = [0, 64], sizes = [16, 32], strides = [1, 1]} : vector<16x128xbf16> to vector<16x32xbf16>
    %282 = vector.shape_cast %281 : vector<16x32xbf16> to vector<2x8x32xbf16>
    %283 = vector.extract_strided_slice %230 {offsets = [0, 64], sizes = [16, 32], strides = [1, 1]} : vector<16x128xbf16> to vector<16x32xbf16>
    %284 = vector.shape_cast %283 : vector<16x32xbf16> to vector<2x8x32xbf16>
    "tpu.trace_start"() <{level = 10 : i32, message = "bqd,bkd->bqk"}> : () -> ()
    %cst_96 = arith.constant dense<0.000000e+00> : vector<2x8x8xf32>
    %285 = tpu.matmul %280, %282, %cst_96 {dimension_numbers = #tpu.dot_dimension_numbers<[2], [2], [1], [1], [0, 0, 0, 1, 1, 1], [0], [0]>} : vector<2x8x32xbf16>, vector<2x8x32xbf16>, vector<2x8x8xf32> -> vector<2x8x8xf32>
    "tpu.trace_stop"() : () -> ()
    %cst_97 = arith.constant dense<0xFF800000> : vector<2x8xf32>
    %286 = vector.multi_reduction <maximumf>, %285, %cst_97 [2] : vector<2x8x8xf32> to vector<2x8xf32>
    %287 = vector.shape_cast %286 : vector<2x8xf32> to vector<2x8x1xf32>
    %288 = vector.broadcast %287 : vector<2x8x1xf32> to vector<2x8x8xf32>
    %289 = arith.subf %285, %288 : vector<2x8x8xf32>
    %290 = math.exp %289 : vector<2x8x8xf32>
    %cst_98 = arith.constant dense<0.000000e+00> : vector<2x8xf32>
    %291 = vector.multi_reduction <add>, %290, %cst_98 [2] : vector<2x8x8xf32> to vector<2x8xf32>
    %292 = vector.shape_cast %291 : vector<2x8xf32> to vector<2x8x1xf32>
    %293 = tpu.reciprocal %292 {approx = true} : vector<2x8x1xf32> -> vector<2x8x1xf32>
    %294 = vector.broadcast %293 : vector<2x8x1xf32> to vector<2x8x8xf32>
    %295 = arith.mulf %290, %294 : vector<2x8x8xf32>
    %296 = arith.truncf %295 : vector<2x8x8xf32> to vector<2x8x8xbf16>
    "tpu.trace_start"() <{level = 10 : i32, message = "bqk,bkd->bqd"}> : () -> ()
    %cst_99 = arith.constant dense<0.000000e+00> : vector<2x8x32xf32>
    %297 = tpu.matmul %296, %284, %cst_99 {dimension_numbers = #tpu.dot_dimension_numbers<[2], [1], [1], [2], [0, 0, 0, 1, 1, 2], [0], [0]>} : vector<2x8x8xbf16>, vector<2x8x32xbf16>, vector<2x8x32xf32> -> vector<2x8x32xf32>
    "tpu.trace_stop"() : () -> ()
    %298 = vector.shape_cast %297 : vector<2x8x32xf32> to vector<16x32xf32>
    %299 = arith.truncf %298 : vector<16x32xf32> to vector<16x32xbf16>
    %300 = vector.extract_strided_slice %231 {offsets = [64, 0], sizes = [32, 128], strides = [1, 1]} : vector<128x128xbf16> to vector<32x128xbf16>
    %cst_100 = arith.constant dense<0.000000e+00> : vector<16x128xf32>
    %301 = tpu.matmul %299, %300, %cst_100 {dimension_numbers = #tpu.dot_dimension_numbers<[1], [0], [0], [1], [0, 0, 1, 1], [], []>} : vector<16x32xbf16>, vector<32x128xbf16>, vector<16x128xf32> -> vector<16x128xf32>
    %302 = arith.addf %278, %301 : vector<16x128xf32>
    %303 = vector.extract_strided_slice %226 {offsets = [0, 96], sizes = [16, 32], strides = [1, 1]} : vector<16x128xbf16> to vector<16x32xbf16>
    %304 = vector.shape_cast %303 : vector<16x32xbf16> to vector<2x8x32xbf16>
    %305 = vector.extract_strided_slice %228 {offsets = [0, 96], sizes = [16, 32], strides = [1, 1]} : vector<16x128xbf16> to vector<16x32xbf16>
    %306 = vector.shape_cast %305 : vector<16x32xbf16> to vector<2x8x32xbf16>
    %307 = vector.extract_strided_slice %230 {offsets = [0, 96], sizes = [16, 32], strides = [1, 1]} : vector<16x128xbf16> to vector<16x32xbf16>
    %308 = vector.shape_cast %307 : vector<16x32xbf16> to vector<2x8x32xbf16>
    "tpu.trace_start"() <{level = 10 : i32, message = "bqd,bkd->bqk"}> : () -> ()
    %cst_101 = arith.constant dense<0.000000e+00> : vector<2x8x8xf32>
    %309 = tpu.matmul %304, %306, %cst_101 {dimension_numbers = #tpu.dot_dimension_numbers<[2], [2], [1], [1], [0, 0, 0, 1, 1, 1], [0], [0]>} : vector<2x8x32xbf16>, vector<2x8x32xbf16>, vector<2x8x8xf32> -> vector<2x8x8xf32>
    "tpu.trace_stop"() : () -> ()
    %cst_102 = arith.constant dense<0xFF800000> : vector<2x8xf32>
    %310 = vector.multi_reduction <maximumf>, %309, %cst_102 [2] : vector<2x8x8xf32> to vector<2x8xf32>
    %311 = vector.shape_cast %310 : vector<2x8xf32> to vector<2x8x1xf32>
    %312 = vector.broadcast %311 : vector<2x8x1xf32> to vector<2x8x8xf32>
    %313 = arith.subf %309, %312 : vector<2x8x8xf32>
    %314 = math.exp %313 : vector<2x8x8xf32>
    %cst_103 = arith.constant dense<0.000000e+00> : vector<2x8xf32>
    %315 = vector.multi_reduction <add>, %314, %cst_103 [2] : vector<2x8x8xf32> to vector<2x8xf32>
    %316 = vector.shape_cast %315 : vector<2x8xf32> to vector<2x8x1xf32>
    %317 = tpu.reciprocal %316 {approx = true} : vector<2x8x1xf32> -> vector<2x8x1xf32>
    %318 = vector.broadcast %317 : vector<2x8x1xf32> to vector<2x8x8xf32>
    %319 = arith.mulf %314, %318 : vector<2x8x8xf32>
    %320 = arith.truncf %319 : vector<2x8x8xf32> to vector<2x8x8xbf16>
    "tpu.trace_start"() <{level = 10 : i32, message = "bqk,bkd->bqd"}> : () -> ()
    %cst_104 = arith.constant dense<0.000000e+00> : vector<2x8x32xf32>
    %321 = tpu.matmul %320, %308, %cst_104 {dimension_numbers = #tpu.dot_dimension_numbers<[2], [1], [1], [2], [0, 0, 0, 1, 1, 2], [0], [0]>} : vector<2x8x8xbf16>, vector<2x8x32xbf16>, vector<2x8x32xf32> -> vector<2x8x32xf32>
    "tpu.trace_stop"() : () -> ()
    %322 = vector.shape_cast %321 : vector<2x8x32xf32> to vector<16x32xf32>
    %323 = arith.truncf %322 : vector<16x32xf32> to vector<16x32xbf16>
    %324 = vector.extract_strided_slice %231 {offsets = [96, 0], sizes = [32, 128], strides = [1, 1]} : vector<128x128xbf16> to vector<32x128xbf16>
    %cst_105 = arith.constant dense<0.000000e+00> : vector<16x128xf32>
    %325 = tpu.matmul %323, %324, %cst_105 {dimension_numbers = #tpu.dot_dimension_numbers<[1], [0], [0], [1], [0, 0, 1, 1], [], []>} : vector<16x32xbf16>, vector<32x128xbf16>, vector<16x128xf32> -> vector<16x128xf32>
    %326 = arith.addf %302, %325 : vector<16x128xf32>
    %c0_106 = arith.constant 0 : index
    %c0_107 = arith.constant 0 : index
    %327 = vector.load %arg21[%c0_106, %c0_107] : memref<1x128xf32, #tpu.memory_space<vmem>>, vector<1x128xf32>
    %328 = vector.broadcast %327 : vector<1x128xf32> to vector<16x128xf32>
    %329 = arith.addf %326, %328 : vector<16x128xf32>
    %330 = arith.addf %216, %329 : vector<16x128xf32>
    %c0_108 = arith.constant 0 : index
    %c0_109 = arith.constant 0 : index
    %331 = vector.load %arg22[%c0_108, %c0_109] : memref<1x128xf32, #tpu.memory_space<vmem>>, vector<1x128xf32>
    %c0_110 = arith.constant 0 : index
    %c0_111 = arith.constant 0 : index
    %332 = vector.load %arg23[%c0_110, %c0_111] : memref<1x128xf32, #tpu.memory_space<vmem>>, vector<1x128xf32>
    %cst_112 = arith.constant dense<0.000000e+00> : vector<16xf32>
    %333 = vector.multi_reduction <add>, %330, %cst_112 [1] : vector<16x128xf32> to vector<16xf32>
    %334 = vector.shape_cast %333 : vector<16xf32> to vector<16x1xf32>
    %cst_113 = arith.constant 1.280000e+02 : f32
    %335 = vector.broadcast %cst_113 : f32 to vector<16x1xf32>
    %336 = arith.divf %334, %335 : vector<16x1xf32>
    %337 = arith.mulf %330, %330 : vector<16x128xf32>
    %cst_114 = arith.constant dense<0.000000e+00> : vector<16xf32>
    %338 = vector.multi_reduction <add>, %337, %cst_114 [1] : vector<16x128xf32> to vector<16xf32>
    %339 = vector.shape_cast %338 : vector<16xf32> to vector<16x1xf32>
    %cst_115 = arith.constant 1.280000e+02 : f32
    %340 = vector.broadcast %cst_115 : f32 to vector<16x1xf32>
    %341 = arith.divf %339, %340 : vector<16x1xf32>
    %342 = arith.mulf %336, %336 : vector<16x1xf32>
    %343 = arith.subf %341, %342 : vector<16x1xf32>
    %cst_116 = arith.constant 0.000000e+00 : f32
    %344 = vector.broadcast %cst_116 : f32 to vector<16x1xf32>
    %345 = arith.maximumf %343, %344 : vector<16x1xf32>
    %346 = vector.broadcast %336 : vector<16x1xf32> to vector<16x128xf32>
    %347 = arith.subf %330, %346 : vector<16x128xf32>
    %cst_117 = arith.constant 9.99999974E-6 : f32
    %348 = vector.broadcast %cst_117 : f32 to vector<16x1xf32>
    %349 = arith.addf %345, %348 : vector<16x1xf32>
    %350 = math.rsqrt %349 : vector<16x1xf32>
    %351 = vector.broadcast %350 : vector<16x1xf32> to vector<16x128xf32>
    %352 = arith.mulf %347, %351 : vector<16x128xf32>
    %353 = vector.broadcast %331 : vector<1x128xf32> to vector<16x128xf32>
    %354 = arith.mulf %352, %353 : vector<16x128xf32>
    %355 = vector.broadcast %332 : vector<1x128xf32> to vector<16x128xf32>
    %356 = arith.addf %354, %355 : vector<16x128xf32>
    %357 = arith.truncf %356 : vector<16x128xf32> to vector<16x128xbf16>
    %c0_118 = arith.constant 0 : index
    %c0_119 = arith.constant 0 : index
    %358 = vector.load %arg24[%c0_118, %c0_119] : memref<128x2048xbf16, #tpu.memory_space<vmem>>, vector<128x2048xbf16>
    %cst_120 = arith.constant dense<0.000000e+00> : vector<16x2048xf32>
    %359 = tpu.matmul %357, %358, %cst_120 {dimension_numbers = #tpu.dot_dimension_numbers<[1], [0], [0], [1], [0, 0, 1, 1], [], []>} : vector<16x128xbf16>, vector<128x2048xbf16>, vector<16x2048xf32> -> vector<16x2048xf32>
    %c0_121 = arith.constant 0 : index
    %c0_122 = arith.constant 0 : index
    %360 = vector.load %arg25[%c0_121, %c0_122] : memref<1x2048xf32, #tpu.memory_space<vmem>>, vector<1x2048xf32>
    %361 = vector.broadcast %360 : vector<1x2048xf32> to vector<16x2048xf32>
    %362 = arith.addf %359, %361 : vector<16x2048xf32>
    %cst_123 = arith.constant 0.000000e+00 : f32
    %363 = vector.broadcast %cst_123 : f32 to vector<16x2048xf32>
    %364 = arith.maximumf %362, %363 : vector<16x2048xf32>
    %365 = arith.truncf %364 : vector<16x2048xf32> to vector<16x2048xbf16>
    %c0_124 = arith.constant 0 : index
    %c0_125 = arith.constant 0 : index
    %366 = vector.load %arg26[%c0_124, %c0_125] : memref<2048x128xbf16, #tpu.memory_space<vmem>>, vector<2048x128xbf16>
    %cst_126 = arith.constant dense<0.000000e+00> : vector<16x128xf32>
    %367 = tpu.matmul %365, %366, %cst_126 {dimension_numbers = #tpu.dot_dimension_numbers<[1], [0], [0], [1], [0, 0, 1, 1], [], []>} : vector<16x2048xbf16>, vector<2048x128xbf16>, vector<16x128xf32> -> vector<16x128xf32>
    %c0_127 = arith.constant 0 : index
    %c0_128 = arith.constant 0 : index
    %368 = vector.load %arg27[%c0_127, %c0_128] : memref<1x128xf32, #tpu.memory_space<vmem>>, vector<1x128xf32>
    %369 = vector.broadcast %368 : vector<1x128xf32> to vector<16x128xf32>
    %370 = arith.addf %367, %369 : vector<16x128xf32>
    %371 = arith.addf %356, %370 : vector<16x128xf32>
    %c0_129 = arith.constant 0 : index
    %c0_130 = arith.constant 0 : index
    %372 = vector.load %arg28[%c0_129, %c0_130] : memref<1x128xf32, #tpu.memory_space<vmem>>, vector<1x128xf32>
    %c0_131 = arith.constant 0 : index
    %c0_132 = arith.constant 0 : index
    %373 = vector.load %arg29[%c0_131, %c0_132] : memref<1x128xf32, #tpu.memory_space<vmem>>, vector<1x128xf32>
    %cst_133 = arith.constant dense<0.000000e+00> : vector<16xf32>
    %374 = vector.multi_reduction <add>, %371, %cst_133 [1] : vector<16x128xf32> to vector<16xf32>
    %375 = vector.shape_cast %374 : vector<16xf32> to vector<16x1xf32>
    %cst_134 = arith.constant 1.280000e+02 : f32
    %376 = vector.broadcast %cst_134 : f32 to vector<16x1xf32>
    %377 = arith.divf %375, %376 : vector<16x1xf32>
    %378 = arith.mulf %371, %371 : vector<16x128xf32>
    %cst_135 = arith.constant dense<0.000000e+00> : vector<16xf32>
    %379 = vector.multi_reduction <add>, %378, %cst_135 [1] : vector<16x128xf32> to vector<16xf32>
    %380 = vector.shape_cast %379 : vector<16xf32> to vector<16x1xf32>
    %cst_136 = arith.constant 1.280000e+02 : f32
    %381 = vector.broadcast %cst_136 : f32 to vector<16x1xf32>
    %382 = arith.divf %380, %381 : vector<16x1xf32>
    %383 = arith.mulf %377, %377 : vector<16x1xf32>
    %384 = arith.subf %382, %383 : vector<16x1xf32>
    %cst_137 = arith.constant 0.000000e+00 : f32
    %385 = vector.broadcast %cst_137 : f32 to vector<16x1xf32>
    %386 = arith.maximumf %384, %385 : vector<16x1xf32>
    %387 = vector.broadcast %377 : vector<16x1xf32> to vector<16x128xf32>
    %388 = arith.subf %371, %387 : vector<16x128xf32>
    %cst_138 = arith.constant 9.99999974E-6 : f32
    %389 = vector.broadcast %cst_138 : f32 to vector<16x1xf32>
    %390 = arith.addf %386, %389 : vector<16x1xf32>
    %391 = math.rsqrt %390 : vector<16x1xf32>
    %392 = vector.broadcast %391 : vector<16x1xf32> to vector<16x128xf32>
    %393 = arith.mulf %388, %392 : vector<16x128xf32>
    %394 = vector.broadcast %372 : vector<1x128xf32> to vector<16x128xf32>
    %395 = arith.mulf %393, %394 : vector<16x128xf32>
    %396 = vector.broadcast %373 : vector<1x128xf32> to vector<16x128xf32>
    %397 = arith.addf %395, %396 : vector<16x128xf32>
    %398 = arith.truncf %397 : vector<16x128xf32> to vector<16x128xbf16>
    %c0_139 = arith.constant 0 : index
    %c0_140 = arith.constant 0 : index
    %399 = vector.load %arg30[%c0_139, %c0_140] : memref<128x384xbf16, #tpu.memory_space<vmem>>, vector<128x384xbf16>
    %cst_141 = arith.constant dense<0.000000e+00> : vector<16x384xf32>
    %400 = tpu.matmul %398, %399, %cst_141 {dimension_numbers = #tpu.dot_dimension_numbers<[1], [0], [0], [1], [0, 0, 1, 1], [], []>} : vector<16x128xbf16>, vector<128x384xbf16>, vector<16x384xf32> -> vector<16x384xf32>
    %c0_142 = arith.constant 0 : index
    %c0_143 = arith.constant 0 : index
    %401 = vector.load %arg31[%c0_142, %c0_143] : memref<1x384xf32, #tpu.memory_space<vmem>>, vector<1x384xf32>
    %402 = vector.broadcast %401 : vector<1x384xf32> to vector<16x384xf32>
    %403 = arith.addf %400, %402 : vector<16x384xf32>
    %404 = vector.extract_strided_slice %403 {offsets = [0, 0], sizes = [16, 128], strides = [1, 1]} : vector<16x384xf32> to vector<16x128xf32>
    %cst_144 = arith.constant 0.176776692 : f32
    %405 = vector.broadcast %cst_144 : f32 to vector<16x128xf32>
    %406 = arith.mulf %404, %405 : vector<16x128xf32>
    %407 = arith.truncf %406 : vector<16x128xf32> to vector<16x128xbf16>
    %408 = vector.extract_strided_slice %403 {offsets = [0, 128], sizes = [16, 128], strides = [1, 1]} : vector<16x384xf32> to vector<16x128xf32>
    %409 = arith.truncf %408 : vector<16x128xf32> to vector<16x128xbf16>
    %410 = vector.extract_strided_slice %403 {offsets = [0, 256], sizes = [16, 128], strides = [1, 1]} : vector<16x384xf32> to vector<16x128xf32>
    %411 = arith.truncf %410 : vector<16x128xf32> to vector<16x128xbf16>
    %c0_145 = arith.constant 0 : index
    %c0_146 = arith.constant 0 : index
    %412 = vector.load %arg32[%c0_145, %c0_146] : memref<128x128xbf16, #tpu.memory_space<vmem>>, vector<128x128xbf16>
    %413 = vector.extract_strided_slice %407 {offsets = [0, 0], sizes = [16, 32], strides = [1, 1]} : vector<16x128xbf16> to vector<16x32xbf16>
    %414 = vector.shape_cast %413 : vector<16x32xbf16> to vector<2x8x32xbf16>
    %415 = vector.extract_strided_slice %409 {offsets = [0, 0], sizes = [16, 32], strides = [1, 1]} : vector<16x128xbf16> to vector<16x32xbf16>
    %416 = vector.shape_cast %415 : vector<16x32xbf16> to vector<2x8x32xbf16>
    %417 = vector.extract_strided_slice %411 {offsets = [0, 0], sizes = [16, 32], strides = [1, 1]} : vector<16x128xbf16> to vector<16x32xbf16>
    %418 = vector.shape_cast %417 : vector<16x32xbf16> to vector<2x8x32xbf16>
    "tpu.trace_start"() <{level = 10 : i32, message = "bqd,bkd->bqk"}> : () -> ()
    %cst_147 = arith.constant dense<0.000000e+00> : vector<2x8x8xf32>
    %419 = tpu.matmul %414, %416, %cst_147 {dimension_numbers = #tpu.dot_dimension_numbers<[2], [2], [1], [1], [0, 0, 0, 1, 1, 1], [0], [0]>} : vector<2x8x32xbf16>, vector<2x8x32xbf16>, vector<2x8x8xf32> -> vector<2x8x8xf32>
    "tpu.trace_stop"() : () -> ()
    %cst_148 = arith.constant dense<0xFF800000> : vector<2x8xf32>
    %420 = vector.multi_reduction <maximumf>, %419, %cst_148 [2] : vector<2x8x8xf32> to vector<2x8xf32>
    %421 = vector.shape_cast %420 : vector<2x8xf32> to vector<2x8x1xf32>
    %422 = vector.broadcast %421 : vector<2x8x1xf32> to vector<2x8x8xf32>
    %423 = arith.subf %419, %422 : vector<2x8x8xf32>
    %424 = math.exp %423 : vector<2x8x8xf32>
    %cst_149 = arith.constant dense<0.000000e+00> : vector<2x8xf32>
    %425 = vector.multi_reduction <add>, %424, %cst_149 [2] : vector<2x8x8xf32> to vector<2x8xf32>
    %426 = vector.shape_cast %425 : vector<2x8xf32> to vector<2x8x1xf32>
    %427 = tpu.reciprocal %426 {approx = true} : vector<2x8x1xf32> -> vector<2x8x1xf32>
    %428 = vector.broadcast %427 : vector<2x8x1xf32> to vector<2x8x8xf32>
    %429 = arith.mulf %424, %428 : vector<2x8x8xf32>
    %430 = arith.truncf %429 : vector<2x8x8xf32> to vector<2x8x8xbf16>
    "tpu.trace_start"() <{level = 10 : i32, message = "bqk,bkd->bqd"}> : () -> ()
    %cst_150 = arith.constant dense<0.000000e+00> : vector<2x8x32xf32>
    %431 = tpu.matmul %430, %418, %cst_150 {dimension_numbers = #tpu.dot_dimension_numbers<[2], [1], [1], [2], [0, 0, 0, 1, 1, 2], [0], [0]>} : vector<2x8x8xbf16>, vector<2x8x32xbf16>, vector<2x8x32xf32> -> vector<2x8x32xf32>
    "tpu.trace_stop"() : () -> ()
    %432 = vector.shape_cast %431 : vector<2x8x32xf32> to vector<16x32xf32>
    %433 = arith.truncf %432 : vector<16x32xf32> to vector<16x32xbf16>
    %434 = vector.extract_strided_slice %412 {offsets = [0, 0], sizes = [32, 128], strides = [1, 1]} : vector<128x128xbf16> to vector<32x128xbf16>
    %cst_151 = arith.constant dense<0.000000e+00> : vector<16x128xf32>
    %435 = tpu.matmul %433, %434, %cst_151 {dimension_numbers = #tpu.dot_dimension_numbers<[1], [0], [0], [1], [0, 0, 1, 1], [], []>} : vector<16x32xbf16>, vector<32x128xbf16>, vector<16x128xf32> -> vector<16x128xf32>
    %436 = vector.extract_strided_slice %407 {offsets = [0, 32], sizes = [16, 32], strides = [1, 1]} : vector<16x128xbf16> to vector<16x32xbf16>
    %437 = vector.shape_cast %436 : vector<16x32xbf16> to vector<2x8x32xbf16>
    %438 = vector.extract_strided_slice %409 {offsets = [0, 32], sizes = [16, 32], strides = [1, 1]} : vector<16x128xbf16> to vector<16x32xbf16>
    %439 = vector.shape_cast %438 : vector<16x32xbf16> to vector<2x8x32xbf16>
    %440 = vector.extract_strided_slice %411 {offsets = [0, 32], sizes = [16, 32], strides = [1, 1]} : vector<16x128xbf16> to vector<16x32xbf16>
    %441 = vector.shape_cast %440 : vector<16x32xbf16> to vector<2x8x32xbf16>
    "tpu.trace_start"() <{level = 10 : i32, message = "bqd,bkd->bqk"}> : () -> ()
    %cst_152 = arith.constant dense<0.000000e+00> : vector<2x8x8xf32>
    %442 = tpu.matmul %437, %439, %cst_152 {dimension_numbers = #tpu.dot_dimension_numbers<[2], [2], [1], [1], [0, 0, 0, 1, 1, 1], [0], [0]>} : vector<2x8x32xbf16>, vector<2x8x32xbf16>, vector<2x8x8xf32> -> vector<2x8x8xf32>
    "tpu.trace_stop"() : () -> ()
    %cst_153 = arith.constant dense<0xFF800000> : vector<2x8xf32>
    %443 = vector.multi_reduction <maximumf>, %442, %cst_153 [2] : vector<2x8x8xf32> to vector<2x8xf32>
    %444 = vector.shape_cast %443 : vector<2x8xf32> to vector<2x8x1xf32>
    %445 = vector.broadcast %444 : vector<2x8x1xf32> to vector<2x8x8xf32>
    %446 = arith.subf %442, %445 : vector<2x8x8xf32>
    %447 = math.exp %446 : vector<2x8x8xf32>
    %cst_154 = arith.constant dense<0.000000e+00> : vector<2x8xf32>
    %448 = vector.multi_reduction <add>, %447, %cst_154 [2] : vector<2x8x8xf32> to vector<2x8xf32>
    %449 = vector.shape_cast %448 : vector<2x8xf32> to vector<2x8x1xf32>
    %450 = tpu.reciprocal %449 {approx = true} : vector<2x8x1xf32> -> vector<2x8x1xf32>
    %451 = vector.broadcast %450 : vector<2x8x1xf32> to vector<2x8x8xf32>
    %452 = arith.mulf %447, %451 : vector<2x8x8xf32>
    %453 = arith.truncf %452 : vector<2x8x8xf32> to vector<2x8x8xbf16>
    "tpu.trace_start"() <{level = 10 : i32, message = "bqk,bkd->bqd"}> : () -> ()
    %cst_155 = arith.constant dense<0.000000e+00> : vector<2x8x32xf32>
    %454 = tpu.matmul %453, %441, %cst_155 {dimension_numbers = #tpu.dot_dimension_numbers<[2], [1], [1], [2], [0, 0, 0, 1, 1, 2], [0], [0]>} : vector<2x8x8xbf16>, vector<2x8x32xbf16>, vector<2x8x32xf32> -> vector<2x8x32xf32>
    "tpu.trace_stop"() : () -> ()
    %455 = vector.shape_cast %454 : vector<2x8x32xf32> to vector<16x32xf32>
    %456 = arith.truncf %455 : vector<16x32xf32> to vector<16x32xbf16>
    %457 = vector.extract_strided_slice %412 {offsets = [32, 0], sizes = [32, 128], strides = [1, 1]} : vector<128x128xbf16> to vector<32x128xbf16>
    %cst_156 = arith.constant dense<0.000000e+00> : vector<16x128xf32>
    %458 = tpu.matmul %456, %457, %cst_156 {dimension_numbers = #tpu.dot_dimension_numbers<[1], [0], [0], [1], [0, 0, 1, 1], [], []>} : vector<16x32xbf16>, vector<32x128xbf16>, vector<16x128xf32> -> vector<16x128xf32>
    %459 = arith.addf %435, %458 : vector<16x128xf32>
    %460 = vector.extract_strided_slice %407 {offsets = [0, 64], sizes = [16, 32], strides = [1, 1]} : vector<16x128xbf16> to vector<16x32xbf16>
    %461 = vector.shape_cast %460 : vector<16x32xbf16> to vector<2x8x32xbf16>
    %462 = vector.extract_strided_slice %409 {offsets = [0, 64], sizes = [16, 32], strides = [1, 1]} : vector<16x128xbf16> to vector<16x32xbf16>
    %463 = vector.shape_cast %462 : vector<16x32xbf16> to vector<2x8x32xbf16>
    %464 = vector.extract_strided_slice %411 {offsets = [0, 64], sizes = [16, 32], strides = [1, 1]} : vector<16x128xbf16> to vector<16x32xbf16>
    %465 = vector.shape_cast %464 : vector<16x32xbf16> to vector<2x8x32xbf16>
    "tpu.trace_start"() <{level = 10 : i32, message = "bqd,bkd->bqk"}> : () -> ()
    %cst_157 = arith.constant dense<0.000000e+00> : vector<2x8x8xf32>
    %466 = tpu.matmul %461, %463, %cst_157 {dimension_numbers = #tpu.dot_dimension_numbers<[2], [2], [1], [1], [0, 0, 0, 1, 1, 1], [0], [0]>} : vector<2x8x32xbf16>, vector<2x8x32xbf16>, vector<2x8x8xf32> -> vector<2x8x8xf32>
    "tpu.trace_stop"() : () -> ()
    %cst_158 = arith.constant dense<0xFF800000> : vector<2x8xf32>
    %467 = vector.multi_reduction <maximumf>, %466, %cst_158 [2] : vector<2x8x8xf32> to vector<2x8xf32>
    %468 = vector.shape_cast %467 : vector<2x8xf32> to vector<2x8x1xf32>
    %469 = vector.broadcast %468 : vector<2x8x1xf32> to vector<2x8x8xf32>
    %470 = arith.subf %466, %469 : vector<2x8x8xf32>
    %471 = math.exp %470 : vector<2x8x8xf32>
    %cst_159 = arith.constant dense<0.000000e+00> : vector<2x8xf32>
    %472 = vector.multi_reduction <add>, %471, %cst_159 [2] : vector<2x8x8xf32> to vector<2x8xf32>
    %473 = vector.shape_cast %472 : vector<2x8xf32> to vector<2x8x1xf32>
    %474 = tpu.reciprocal %473 {approx = true} : vector<2x8x1xf32> -> vector<2x8x1xf32>
    %475 = vector.broadcast %474 : vector<2x8x1xf32> to vector<2x8x8xf32>
    %476 = arith.mulf %471, %475 : vector<2x8x8xf32>
    %477 = arith.truncf %476 : vector<2x8x8xf32> to vector<2x8x8xbf16>
    "tpu.trace_start"() <{level = 10 : i32, message = "bqk,bkd->bqd"}> : () -> ()
    %cst_160 = arith.constant dense<0.000000e+00> : vector<2x8x32xf32>
    %478 = tpu.matmul %477, %465, %cst_160 {dimension_numbers = #tpu.dot_dimension_numbers<[2], [1], [1], [2], [0, 0, 0, 1, 1, 2], [0], [0]>} : vector<2x8x8xbf16>, vector<2x8x32xbf16>, vector<2x8x32xf32> -> vector<2x8x32xf32>
    "tpu.trace_stop"() : () -> ()
    %479 = vector.shape_cast %478 : vector<2x8x32xf32> to vector<16x32xf32>
    %480 = arith.truncf %479 : vector<16x32xf32> to vector<16x32xbf16>
    %481 = vector.extract_strided_slice %412 {offsets = [64, 0], sizes = [32, 128], strides = [1, 1]} : vector<128x128xbf16> to vector<32x128xbf16>
    %cst_161 = arith.constant dense<0.000000e+00> : vector<16x128xf32>
    %482 = tpu.matmul %480, %481, %cst_161 {dimension_numbers = #tpu.dot_dimension_numbers<[1], [0], [0], [1], [0, 0, 1, 1], [], []>} : vector<16x32xbf16>, vector<32x128xbf16>, vector<16x128xf32> -> vector<16x128xf32>
    %483 = arith.addf %459, %482 : vector<16x128xf32>
    %484 = vector.extract_strided_slice %407 {offsets = [0, 96], sizes = [16, 32], strides = [1, 1]} : vector<16x128xbf16> to vector<16x32xbf16>
    %485 = vector.shape_cast %484 : vector<16x32xbf16> to vector<2x8x32xbf16>
    %486 = vector.extract_strided_slice %409 {offsets = [0, 96], sizes = [16, 32], strides = [1, 1]} : vector<16x128xbf16> to vector<16x32xbf16>
    %487 = vector.shape_cast %486 : vector<16x32xbf16> to vector<2x8x32xbf16>
    %488 = vector.extract_strided_slice %411 {offsets = [0, 96], sizes = [16, 32], strides = [1, 1]} : vector<16x128xbf16> to vector<16x32xbf16>
    %489 = vector.shape_cast %488 : vector<16x32xbf16> to vector<2x8x32xbf16>
    "tpu.trace_start"() <{level = 10 : i32, message = "bqd,bkd->bqk"}> : () -> ()
    %cst_162 = arith.constant dense<0.000000e+00> : vector<2x8x8xf32>
    %490 = tpu.matmul %485, %487, %cst_162 {dimension_numbers = #tpu.dot_dimension_numbers<[2], [2], [1], [1], [0, 0, 0, 1, 1, 1], [0], [0]>} : vector<2x8x32xbf16>, vector<2x8x32xbf16>, vector<2x8x8xf32> -> vector<2x8x8xf32>
    "tpu.trace_stop"() : () -> ()
    %cst_163 = arith.constant dense<0xFF800000> : vector<2x8xf32>
    %491 = vector.multi_reduction <maximumf>, %490, %cst_163 [2] : vector<2x8x8xf32> to vector<2x8xf32>
    %492 = vector.shape_cast %491 : vector<2x8xf32> to vector<2x8x1xf32>
    %493 = vector.broadcast %492 : vector<2x8x1xf32> to vector<2x8x8xf32>
    %494 = arith.subf %490, %493 : vector<2x8x8xf32>
    %495 = math.exp %494 : vector<2x8x8xf32>
    %cst_164 = arith.constant dense<0.000000e+00> : vector<2x8xf32>
    %496 = vector.multi_reduction <add>, %495, %cst_164 [2] : vector<2x8x8xf32> to vector<2x8xf32>
    %497 = vector.shape_cast %496 : vector<2x8xf32> to vector<2x8x1xf32>
    %498 = tpu.reciprocal %497 {approx = true} : vector<2x8x1xf32> -> vector<2x8x1xf32>
    %499 = vector.broadcast %498 : vector<2x8x1xf32> to vector<2x8x8xf32>
    %500 = arith.mulf %495, %499 : vector<2x8x8xf32>
    %501 = arith.truncf %500 : vector<2x8x8xf32> to vector<2x8x8xbf16>
    "tpu.trace_start"() <{level = 10 : i32, message = "bqk,bkd->bqd"}> : () -> ()
    %cst_165 = arith.constant dense<0.000000e+00> : vector<2x8x32xf32>
    %502 = tpu.matmul %501, %489, %cst_165 {dimension_numbers = #tpu.dot_dimension_numbers<[2], [1], [1], [2], [0, 0, 0, 1, 1, 2], [0], [0]>} : vector<2x8x8xbf16>, vector<2x8x32xbf16>, vector<2x8x32xf32> -> vector<2x8x32xf32>
    "tpu.trace_stop"() : () -> ()
    %503 = vector.shape_cast %502 : vector<2x8x32xf32> to vector<16x32xf32>
    %504 = arith.truncf %503 : vector<16x32xf32> to vector<16x32xbf16>
    %505 = vector.extract_strided_slice %412 {offsets = [96, 0], sizes = [32, 128], strides = [1, 1]} : vector<128x128xbf16> to vector<32x128xbf16>
    %cst_166 = arith.constant dense<0.000000e+00> : vector<16x128xf32>
    %506 = tpu.matmul %504, %505, %cst_166 {dimension_numbers = #tpu.dot_dimension_numbers<[1], [0], [0], [1], [0, 0, 1, 1], [], []>} : vector<16x32xbf16>, vector<32x128xbf16>, vector<16x128xf32> -> vector<16x128xf32>
    %507 = arith.addf %483, %506 : vector<16x128xf32>
    %c0_167 = arith.constant 0 : index
    %c0_168 = arith.constant 0 : index
    %508 = vector.load %arg33[%c0_167, %c0_168] : memref<1x128xf32, #tpu.memory_space<vmem>>, vector<1x128xf32>
    %509 = vector.broadcast %508 : vector<1x128xf32> to vector<16x128xf32>
    %510 = arith.addf %507, %509 : vector<16x128xf32>
    %511 = arith.addf %397, %510 : vector<16x128xf32>
    %c0_169 = arith.constant 0 : index
    %c0_170 = arith.constant 0 : index
    %512 = vector.load %arg34[%c0_169, %c0_170] : memref<1x128xf32, #tpu.memory_space<vmem>>, vector<1x128xf32>
    %c0_171 = arith.constant 0 : index
    %c0_172 = arith.constant 0 : index
    %513 = vector.load %arg35[%c0_171, %c0_172] : memref<1x128xf32, #tpu.memory_space<vmem>>, vector<1x128xf32>
    %cst_173 = arith.constant dense<0.000000e+00> : vector<16xf32>
    %514 = vector.multi_reduction <add>, %511, %cst_173 [1] : vector<16x128xf32> to vector<16xf32>
    %515 = vector.shape_cast %514 : vector<16xf32> to vector<16x1xf32>
    %cst_174 = arith.constant 1.280000e+02 : f32
    %516 = vector.broadcast %cst_174 : f32 to vector<16x1xf32>
    %517 = arith.divf %515, %516 : vector<16x1xf32>
    %518 = arith.mulf %511, %511 : vector<16x128xf32>
    %cst_175 = arith.constant dense<0.000000e+00> : vector<16xf32>
    %519 = vector.multi_reduction <add>, %518, %cst_175 [1] : vector<16x128xf32> to vector<16xf32>
    %520 = vector.shape_cast %519 : vector<16xf32> to vector<16x1xf32>
    %cst_176 = arith.constant 1.280000e+02 : f32
    %521 = vector.broadcast %cst_176 : f32 to vector<16x1xf32>
    %522 = arith.divf %520, %521 : vector<16x1xf32>
    %523 = arith.mulf %517, %517 : vector<16x1xf32>
    %524 = arith.subf %522, %523 : vector<16x1xf32>
    %cst_177 = arith.constant 0.000000e+00 : f32
    %525 = vector.broadcast %cst_177 : f32 to vector<16x1xf32>
    %526 = arith.maximumf %524, %525 : vector<16x1xf32>
    %527 = vector.broadcast %517 : vector<16x1xf32> to vector<16x128xf32>
    %528 = arith.subf %511, %527 : vector<16x128xf32>
    %cst_178 = arith.constant 9.99999974E-6 : f32
    %529 = vector.broadcast %cst_178 : f32 to vector<16x1xf32>
    %530 = arith.addf %526, %529 : vector<16x1xf32>
    %531 = math.rsqrt %530 : vector<16x1xf32>
    %532 = vector.broadcast %531 : vector<16x1xf32> to vector<16x128xf32>
    %533 = arith.mulf %528, %532 : vector<16x128xf32>
    %534 = vector.broadcast %512 : vector<1x128xf32> to vector<16x128xf32>
    %535 = arith.mulf %533, %534 : vector<16x128xf32>
    %536 = vector.broadcast %513 : vector<1x128xf32> to vector<16x128xf32>
    %537 = arith.addf %535, %536 : vector<16x128xf32>
    %538 = arith.truncf %537 : vector<16x128xf32> to vector<16x128xbf16>
    %c0_179 = arith.constant 0 : index
    %c0_180 = arith.constant 0 : index
    %539 = vector.load %arg36[%c0_179, %c0_180] : memref<128x2048xbf16, #tpu.memory_space<vmem>>, vector<128x2048xbf16>
    %cst_181 = arith.constant dense<0.000000e+00> : vector<16x2048xf32>
    %540 = tpu.matmul %538, %539, %cst_181 {dimension_numbers = #tpu.dot_dimension_numbers<[1], [0], [0], [1], [0, 0, 1, 1], [], []>} : vector<16x128xbf16>, vector<128x2048xbf16>, vector<16x2048xf32> -> vector<16x2048xf32>
    %c0_182 = arith.constant 0 : index
    %c0_183 = arith.constant 0 : index
    %541 = vector.load %arg37[%c0_182, %c0_183] : memref<1x2048xf32, #tpu.memory_space<vmem>>, vector<1x2048xf32>
    %542 = vector.broadcast %541 : vector<1x2048xf32> to vector<16x2048xf32>
    %543 = arith.addf %540, %542 : vector<16x2048xf32>
    %cst_184 = arith.constant 0.000000e+00 : f32
    %544 = vector.broadcast %cst_184 : f32 to vector<16x2048xf32>
    %545 = arith.maximumf %543, %544 : vector<16x2048xf32>
    %546 = arith.truncf %545 : vector<16x2048xf32> to vector<16x2048xbf16>
    %c0_185 = arith.constant 0 : index
    %c0_186 = arith.constant 0 : index
    %547 = vector.load %arg38[%c0_185, %c0_186] : memref<2048x128xbf16, #tpu.memory_space<vmem>>, vector<2048x128xbf16>
    %cst_187 = arith.constant dense<0.000000e+00> : vector<16x128xf32>
    %548 = tpu.matmul %546, %547, %cst_187 {dimension_numbers = #tpu.dot_dimension_numbers<[1], [0], [0], [1], [0, 0, 1, 1], [], []>} : vector<16x2048xbf16>, vector<2048x128xbf16>, vector<16x128xf32> -> vector<16x128xf32>
    %c0_188 = arith.constant 0 : index
    %c0_189 = arith.constant 0 : index
    %549 = vector.load %arg39[%c0_188, %c0_189] : memref<1x128xf32, #tpu.memory_space<vmem>>, vector<1x128xf32>
    %550 = vector.broadcast %549 : vector<1x128xf32> to vector<16x128xf32>
    %551 = arith.addf %548, %550 : vector<16x128xf32>
    %552 = arith.addf %537, %551 : vector<16x128xf32>
    %c0_190 = arith.constant 0 : index
    %c0_191 = arith.constant 0 : index
    %553 = vector.load %arg40[%c0_190, %c0_191] : memref<1x128xf32, #tpu.memory_space<vmem>>, vector<1x128xf32>
    %c0_192 = arith.constant 0 : index
    %c0_193 = arith.constant 0 : index
    %554 = vector.load %arg41[%c0_192, %c0_193] : memref<1x128xf32, #tpu.memory_space<vmem>>, vector<1x128xf32>
    %cst_194 = arith.constant dense<0.000000e+00> : vector<16xf32>
    %555 = vector.multi_reduction <add>, %552, %cst_194 [1] : vector<16x128xf32> to vector<16xf32>
    %556 = vector.shape_cast %555 : vector<16xf32> to vector<16x1xf32>
    %cst_195 = arith.constant 1.280000e+02 : f32
    %557 = vector.broadcast %cst_195 : f32 to vector<16x1xf32>
    %558 = arith.divf %556, %557 : vector<16x1xf32>
    %559 = arith.mulf %552, %552 : vector<16x128xf32>
    %cst_196 = arith.constant dense<0.000000e+00> : vector<16xf32>
    %560 = vector.multi_reduction <add>, %559, %cst_196 [1] : vector<16x128xf32> to vector<16xf32>
    %561 = vector.shape_cast %560 : vector<16xf32> to vector<16x1xf32>
    %cst_197 = arith.constant 1.280000e+02 : f32
    %562 = vector.broadcast %cst_197 : f32 to vector<16x1xf32>
    %563 = arith.divf %561, %562 : vector<16x1xf32>
    %564 = arith.mulf %558, %558 : vector<16x1xf32>
    %565 = arith.subf %563, %564 : vector<16x1xf32>
    %cst_198 = arith.constant 0.000000e+00 : f32
    %566 = vector.broadcast %cst_198 : f32 to vector<16x1xf32>
    %567 = arith.maximumf %565, %566 : vector<16x1xf32>
    %568 = vector.broadcast %558 : vector<16x1xf32> to vector<16x128xf32>
    %569 = arith.subf %552, %568 : vector<16x128xf32>
    %cst_199 = arith.constant 9.99999974E-6 : f32
    %570 = vector.broadcast %cst_199 : f32 to vector<16x1xf32>
    %571 = arith.addf %567, %570 : vector<16x1xf32>
    %572 = math.rsqrt %571 : vector<16x1xf32>
    %573 = vector.broadcast %572 : vector<16x1xf32> to vector<16x128xf32>
    %574 = arith.mulf %569, %573 : vector<16x128xf32>
    %575 = vector.broadcast %553 : vector<1x128xf32> to vector<16x128xf32>
    %576 = arith.mulf %574, %575 : vector<16x128xf32>
    %577 = vector.broadcast %554 : vector<1x128xf32> to vector<16x128xf32>
    %578 = arith.addf %576, %577 : vector<16x128xf32>
    %579 = vector.shape_cast %578 : vector<16x128xf32> to vector<2x8x128xf32>
    %c0_200 = arith.constant 0 : index
    %c0_201 = arith.constant 0 : index
    %c0_202 = arith.constant 0 : index
    %580 = vector.load %arg42[%c0_200, %c0_201, %c0_202] : memref<2x8x128xf32, #tpu.memory_space<vmem>>, vector<2x8x128xf32>
    tpu.vector_store %arg42[%c0_200, %c0_201, %c0_202], %579 {strides = array<i32>} : memref<2x8x128xf32, #tpu.memory_space<vmem>>, vector<2x8x128xf32>,
    return
  }
  func.func @transform_0(%arg0: i32) -> (i32, i32, i32) {
    %c0_i32 = arith.constant 0 : i32
    %c0_i32_0 = arith.constant 0 : i32
    %c0_i32_1 = arith.constant 0 : i32
    return %arg0, %c0_i32, %c0_i32_0 : i32, i32, i32
  }
  func.func @transform_1(%arg0: i32) -> (i32, i32) {
    %c0_i32 = arith.constant 0 : i32
    %c0_i32_0 = arith.constant 0 : i32
    %c0_i32_1 = arith.constant 0 : i32
    return %c0_i32, %c0_i32_0 : i32, i32
  }
  func.func @transform_2(%arg0: i32) -> (i32, i32) {
    %c0_i32 = arith.constant 0 : i32
    %c0_i32_0 = arith.constant 0 : i32
    %c0_i32_1 = arith.constant 0 : i32
    return %c0_i32, %c0_i32_0 : i32, i32
  }
  func.func @transform_3(%arg0: i32) -> (i32, i32) {
    %c0_i32 = arith.constant 0 : i32
    %c0_i32_0 = arith.constant 0 : i32
    %c0_i32_1 = arith.constant 0 : i32
    return %c0_i32, %c0_i32_0 : i32, i32
  }
  func.func @transform_4(%arg0: i32) -> (i32, i32) {
    %c0_i32 = arith.constant 0 : i32
    %c0_i32_0 = arith.constant 0 : i32
    %c0_i32_1 = arith.constant 0 : i32
    return %c0_i32, %c0_i32_0 : i32, i32
  }
  func.func @transform_5(%arg0: i32) -> (i32, i32) {
    %c0_i32 = arith.constant 0 : i32
    %c0_i32_0 = arith.constant 0 : i32
    %c0_i32_1 = arith.constant 0 : i32
    return %c0_i32, %c0_i32_0 : i32, i32
  }
  func.func @transform_6(%arg0: i32) -> (i32, i32) {
    %c0_i32 = arith.constant 0 : i32
    %c0_i32_0 = arith.constant 0 : i32
    %c0_i32_1 = arith.constant 0 : i32
    return %c0_i32, %c0_i32_0 : i32, i32
  }
  func.func @transform_7(%arg0: i32) -> (i32, i32) {
    %c0_i32 = arith.constant 0 : i32
    %c0_i32_0 = arith.constant 0 : i32
    %c0_i32_1 = arith.constant 0 : i32
    return %c0_i32, %c0_i32_0 : i32, i32
  }
  func.func @transform_8(%arg0: i32) -> (i32, i32) {
    %c0_i32 = arith.constant 0 : i32
    %c0_i32_0 = arith.constant 0 : i32
    %c0_i32_1 = arith.constant 0 : i32
    return %c0_i32, %c0_i32_0 : i32, i32
  }
  func.func @transform_9(%arg0: i32) -> (i32, i32) {
    %c0_i32 = arith.constant 0 : i32
    %c0_i32_0 = arith.constant 0 : i32
    %c0_i32_1 = arith.constant 0 : i32
    return %c0_i32, %c0_i32_0 : i32, i32
  }
  func.func @transform_10(%arg0: i32) -> (i32, i32) {
    %c0_i32 = arith.constant 0 : i32
    %c0_i32_0 = arith.constant 0 : i32
    %c0_i32_1 = arith.constant 0 : i32
    return %c0_i32, %c0_i32_0 : i32, i32
  }
  func.func @transform_11(%arg0: i32) -> (i32, i32) {
    %c0_i32 = arith.constant 0 : i32
    %c0_i32_0 = arith.constant 0 : i32
    %c0_i32_1 = arith.constant 0 : i32
    return %c0_i32, %c0_i32_0 : i32, i32
  }
  func.func @transform_12(%arg0: i32) -> (i32, i32) {
    %c0_i32 = arith.constant 0 : i32
    %c0_i32_0 = arith.constant 0 : i32
    %c0_i32_1 = arith.constant 0 : i32
    return %c0_i32, %c0_i32_0 : i32, i32
  }
  func.func @transform_13(%arg0: i32) -> (i32, i32) {
    %c0_i32 = arith.constant 0 : i32
    %c0_i32_0 = arith.constant 0 : i32
    %c0_i32_1 = arith.constant 0 : i32
    return %c0_i32, %c0_i32_0 : i32, i32
  }
  func.func @transform_14(%arg0: i32) -> (i32, i32) {
    %c0_i32 = arith.constant 0 : i32
    %c0_i32_0 = arith.constant 0 : i32
    %c0_i32_1 = arith.constant 0 : i32
    return %c0_i32, %c0_i32_0 : i32, i32
  }
  func.func @transform_15(%arg0: i32) -> (i32, i32) {
    %c0_i32 = arith.constant 0 : i32
    %c0_i32_0 = arith.constant 0 : i32
    %c0_i32_1 = arith.constant 0 : i32
    return %c0_i32, %c0_i32_0 : i32, i32
  }
  func.func @transform_16(%arg0: i32) -> (i32, i32) {
    %c0_i32 = arith.constant 0 : i32
    %c0_i32_0 = arith.constant 0 : i32
    %c0_i32_1 = arith.constant 0 : i32
    return %c0_i32, %c0_i32_0 : i32, i32
  }
  func.func @transform_17(%arg0: i32) -> (i32, i32) {
    %c0_i32 = arith.constant 0 : i32
    %c0_i32_0 = arith.constant 0 : i32
    %c0_i32_1 = arith.constant 0 : i32
    return %c0_i32, %c0_i32_0 : i32, i32
  }
  func.func @transform_18(%arg0: i32) -> (i32, i32) {
    %c0_i32 = arith.constant 0 : i32
    %c0_i32_0 = arith.constant 0 : i32
    %c0_i32_1 = arith.constant 0 : i32
    return %c0_i32, %c0_i32_0 : i32, i32
  }
  func.func @transform_19(%arg0: i32) -> (i32, i32) {
    %c0_i32 = arith.constant 0 : i32
    %c0_i32_0 = arith.constant 0 : i32
    %c0_i32_1 = arith.constant 0 : i32
    return %c0_i32, %c0_i32_0 : i32, i32
  }
  func.func @transform_20(%arg0: i32) -> (i32, i32) {
    %c0_i32 = arith.constant 0 : i32
    %c0_i32_0 = arith.constant 0 : i32
    %c0_i32_1 = arith.constant 0 : i32
    return %c0_i32, %c0_i32_0 : i32, i32
  }
  func.func @transform_21(%arg0: i32) -> (i32, i32) {
    %c0_i32 = arith.constant 0 : i32
    %c0_i32_0 = arith.constant 0 : i32
    %c0_i32_1 = arith.constant 0 : i32
    return %c0_i32, %c0_i32_0 : i32, i32
  }
  func.func @transform_22(%arg0: i32) -> (i32, i32) {
    %c0_i32 = arith.constant 0 : i32
    %c0_i32_0 = arith.constant 0 : i32
    %c0_i32_1 = arith.constant 0 : i32
    return %c0_i32, %c0_i32_0 : i32, i32
  }
  func.func @transform_23(%arg0: i32) -> (i32, i32) {
    %c0_i32 = arith.constant 0 : i32
    %c0_i32_0 = arith.constant 0 : i32
    %c0_i32_1 = arith.constant 0 : i32
    return %c0_i32, %c0_i32_0 : i32, i32
  }
  func.func @transform_24(%arg0: i32) -> (i32, i32) {
    %c0_i32 = arith.constant 0 : i32
    %c0_i32_0 = arith.constant 0 : i32
    %c0_i32_1 = arith.constant 0 : i32
    return %c0_i32, %c0_i32_0 : i32, i32
  }
  func.func @transform_25(%arg0: i32) -> (i32, i32) {
    %c0_i32 = arith.constant 0 : i32
    %c0_i32_0 = arith.constant 0 : i32
    %c0_i32_1 = arith.constant 0 : i32
    return %c0_i32, %c0_i32_0 : i32, i32
  }
  func.func @transform_26(%arg0: i32) -> (i32, i32) {
    %c0_i32 = arith.constant 0 : i32
    %c0_i32_0 = arith.constant 0 : i32
    %c0_i32_1 = arith.constant 0 : i32
    return %c0_i32, %c0_i32_0 : i32, i32
  }
  func.func @transform_27(%arg0: i32) -> (i32, i32) {
    %c0_i32 = arith.constant 0 : i32
    %c0_i32_0 = arith.constant 0 : i32
    %c0_i32_1 = arith.constant 0 : i32
    return %c0_i32, %c0_i32_0 : i32, i32
  }
  func.func @transform_28(%arg0: i32) -> (i32, i32) {
    %c0_i32 = arith.constant 0 : i32
    %c0_i32_0 = arith.constant 0 : i32
    %c0_i32_1 = arith.constant 0 : i32
    return %c0_i32, %c0_i32_0 : i32, i32
  }
  func.func @transform_29(%arg0: i32) -> (i32, i32) {
    %c0_i32 = arith.constant 0 : i32
    %c0_i32_0 = arith.constant 0 : i32
    %c0_i32_1 = arith.constant 0 : i32
    return %c0_i32, %c0_i32_0 : i32, i32
  }
  func.func @transform_30(%arg0: i32) -> (i32, i32) {
    %c0_i32 = arith.constant 0 : i32
    %c0_i32_0 = arith.constant 0 : i32
    %c0_i32_1 = arith.constant 0 : i32
    return %c0_i32, %c0_i32_0 : i32, i32
  }
  func.func @transform_31(%arg0: i32) -> (i32, i32) {
    %c0_i32 = arith.constant 0 : i32
    %c0_i32_0 = arith.constant 0 : i32
    %c0_i32_1 = arith.constant 0 : i32
    return %c0_i32, %c0_i32_0 : i32, i32
  }
  func.func @transform_32(%arg0: i32) -> (i32, i32) {
    %c0_i32 = arith.constant 0 : i32
    %c0_i32_0 = arith.constant 0 : i32
    %c0_i32_1 = arith.constant 0 : i32
    return %c0_i32, %c0_i32_0 : i32, i32
  }
  func.func @transform_33(%arg0: i32) -> (i32, i32) {
    %c0_i32 = arith.constant 0 : i32
    %c0_i32_0 = arith.constant 0 : i32
    %c0_i32_1 = arith.constant 0 : i32
    return %c0_i32, %c0_i32_0 : i32, i32
  }
  func.func @transform_34(%arg0: i32) -> (i32, i32) {
    %c0_i32 = arith.constant 0 : i32
    %c0_i32_0 = arith.constant 0 : i32
    %c0_i32_1 = arith.constant 0 : i32
    return %c0_i32, %c0_i32_0 : i32, i32
  }
  func.func @transform_35(%arg0: i32) -> (i32, i32) {
    %c0_i32 = arith.constant 0 : i32
    %c0_i32_0 = arith.constant 0 : i32
    %c0_i32_1 = arith.constant 0 : i32
    return %c0_i32, %c0_i32_0 : i32, i32
  }
  func.func @transform_36(%arg0: i32) -> (i32, i32) {
    %c0_i32 = arith.constant 0 : i32
    %c0_i32_0 = arith.constant 0 : i32
    %c0_i32_1 = arith.constant 0 : i32
    return %c0_i32, %c0_i32_0 : i32, i32
  }
  func.func @transform_37(%arg0: i32) -> (i32, i32) {
    %c0_i32 = arith.constant 0 : i32
    %c0_i32_0 = arith.constant 0 : i32
    %c0_i32_1 = arith.constant 0 : i32
    return %c0_i32, %c0_i32_0 : i32, i32
  }
  func.func @transform_38(%arg0: i32) -> (i32, i32) {
    %c0_i32 = arith.constant 0 : i32
    %c0_i32_0 = arith.constant 0 : i32
    %c0_i32_1 = arith.constant 0 : i32
    return %c0_i32, %c0_i32_0 : i32, i32
  }
  func.func @transform_39(%arg0: i32) -> (i32, i32) {
    %c0_i32 = arith.constant 0 : i32
    %c0_i32_0 = arith.constant 0 : i32
    %c0_i32_1 = arith.constant 0 : i32
    return %c0_i32, %c0_i32_0 : i32, i32
  }
  func.func @transform_40(%arg0: i32) -> (i32, i32) {
    %c0_i32 = arith.constant 0 : i32
    %c0_i32_0 = arith.constant 0 : i32
    %c0_i32_1 = arith.constant 0 : i32
    return %c0_i32, %c0_i32_0 : i32, i32
  }
  func.func @transform_41(%arg0: i32) -> (i32, i32, i32) {
    %c0_i32 = arith.constant 0 : i32
    %c0_i32_0 = arith.constant 0 : i32
    %c0_i32_1 = arith.constant 0 : i32
    return %arg0, %c0_i32, %c0_i32_0 : i32, i32, i32
  }
}

</mosaic_0001>

<bundles_post_ra>
// kernel: tpu_custom_call.1
= control target key start
LH: loop header
LB: loop body
LE: loop exit
PB: predicated region body
PF: predicated region fallthrough
CT: control target
= control target key end

     0   :  { %s19557_s6 = smov 1   ;;  %s19558_s10 = smov 2   ;;  %s20994_s0 = inlined_call_operand.smem [shape: u32[42], index: -1, kind: input, shape index: {}] }
   0x1   :  { %s19648_s5 = sld [smem:[%s20994_s0]]   ;;  %s19559_s14 = smov 3  }
   0x2   :  { %s19653_s9 = sld [smem:[%s20994_s0 + %s19557_s6]]   ;;  %s19560_s18 = smov 4  }
   0x3   :  { %s19658_s13 = sld [smem:[%s20994_s0 + %s19558_s10]]   ;;  %s19561_s22 = smov 5  }
   0x4   :  { %s19663_s17 = sld [smem:[%s20994_s0 + %s19559_s14]]   ;;  %s19562_s26 = smov 6  }
   0x5   :  { %s19668_s21 = sld [smem:[%s20994_s0 + %s19560_s18]]   ;;  %s19563_s30 = smov 7  }
   0x6   :  { %s19673_s25 = sld [smem:[%s20994_s0 + %s19561_s22]]   ;;  %s19564_s4 = smov 8  }
   0x7   :  { %s19678_s29 = sld [smem:[%s20994_s0 + %s19562_s26]]   ;;  %s19565_s10 = smov 9  }
   0x8   :  { %s19683_s3 = sld [smem:[%s20994_s0 + %s19563_s30]]   ;;  %s19566_s15 = smov 10  }
   0x9   :  { %21011 = sst [smem:[#allocation60_spill]] %s19658_s13  ;;  %s19567_s20 = smov 11  }
   0xa   :  { %s19688_s8 = sld [smem:[%s20994_s0 + %s19564_s4]]   ;;  %s19568_s26 = smov 12  }
   0xb   :  { %21012 = sst [smem:[#allocation61_spill]] %s19668_s21  ;;  %s19569_s1 = smov 13  }
   0xc   :  { %21013 = sst [smem:[#allocation62_spill]] %s19673_s25  ;;  %s19570_s7 = smov 14  }
   0xd   :  { %s19693_s14 = sld [smem:[%s20994_s0 + %s19565_s10]]   ;;  %s19572_s22 = smov 16  }
   0xe   :  { %21014 = sst [smem:[#allocation63_spill]] %s19683_s3  ;;  %s19573_s28 = smov 17  }
   0xf   :  { %s19698_s19 = sld [smem:[%s20994_s0 + %s19566_s15]]   ;;  %s19571_s15 = smov 15  }
  0x10   :  { %21015 = sst [smem:[#allocation64_spill]] %s19688_s8 }
  0x11   :  { %s19703_s24 = sld [smem:[%s20994_s0 + %s19567_s20]]  }
  0x12   :  { %s19708_s30 = sld [smem:[%s20994_s0 + %s19568_s26]]  }
  0x13   :  { %s19713_s6 = sld [smem:[%s20994_s0 + %s19569_s1]]  }
  0x14   :  { %s19718_s12 = sld [smem:[%s20994_s0 + %s19570_s7]]   ;;  %s19574_s7 = smov 18  }
  0x15   :  { %21016 = sst [smem:[#allocation65_spill]] %s19698_s19 }
  0x16   :  { %s19723_s20 = sld [smem:[%s20994_s0 + %s19571_s15]]   ;;  %s19575_s15 = smov 19  }
  0x17   :  { %s19728_s27 = sld [smem:[%s20994_s0 + %s19572_s22]]   ;;  %s19576_s22 = smov 20  }
  0x18   :  { %21017 = sst [smem:[#allocation66_spill]] %s19708_s30 }
  0x19   :  { %s19733_s4 = sld [smem:[%s20994_s0 + %s19573_s28]]   ;;  %s19577_s28 = smov 21  }
  0x1a   :  { %21018 = sst [smem:[#allocation67_spill]] %s19718_s12 }
  0x1b   :  { %s19738_s8 = sld [smem:[%s20994_s0 + %s19574_s7]]   ;;  %s19578_s7 = smov 22  }
  0x1c   :  { %s19743_s21 = sld [smem:[%s20994_s0 + %s19575_s15]]   ;;  %s19579_s15 = smov 23  }
  0x1d   :  { %21019 = sst [smem:[#allocation68_spill]] %s19728_s27 }
  0x1e   :  { %s19748_s27 = sld [smem:[%s20994_s0 + %s19576_s22]]   ;;  %s19580_s22 = smov 24  }
  0x1f   :  { %s19753_s12 = sld [smem:[%s20994_s0 + %s19577_s28]]   ;;  %s19581_s28 = smov 25  }
  0x20   :  { %s19768_s30 = sld [smem:[%s20994_s0 + %s19580_s22]]   ;;  %s19584_s22 = smov 28  }
  0x21   :  { %21020 = sst [smem:[#allocation69_spill]] %s19738_s8 }
  0x22   :  { %21021 = sst [smem:[#allocation70_spill]] %s19743_s21 }
  0x23   :  { %s19758_s8 = sld [smem:[%s20994_s0 + %s19578_s7]]   ;;  %s19582_s7 = smov 26  }
  0x24   :  { %s19763_s21 = sld [smem:[%s20994_s0 + %s19579_s15]]   ;;  %s19583_s15 = smov 27  }
  0x25   :  { %21022 = sst [smem:[#allocation71_spill]] %s19753_s12 }
  0x26   :  { %21024 = sst [smem:[#allocation73_spill]] %s19768_s30 }
  0x27   :  { %s19773_s12 = sld [smem:[%s20994_s0 + %s19581_s28]]   ;;  %s19585_s28 = smov 29  }
  0x28   :  { %s19778_s19 = sld [smem:[%s20994_s0 + %s19582_s7]]   ;;  %s19586_s7 = smov 30  }
  0x29   :  { %s19788_s30 = sld [smem:[%s20994_s0 + %s19584_s22]]   ;;  %s19588_s22 = smov 32  }
  0x2a   :  { %21023 = sst [smem:[#allocation72_spill]] %s19763_s21 }
  0x2b   :  { %s19783_s21 = sld [smem:[%s20994_s0 + %s19583_s15]]   ;;  %s19587_s15 = smov 31  }
  0x2c   :  { %s19793_s3 = sld [smem:[%s20994_s0 + %s19585_s28]]   ;;  %s19589_s28 = smov 33  }
  0x2d   :  { %s19813_s25 = sld [smem:[%s20994_s0 + %s19589_s28]]   ;;  %s19593_s28 = smov 37  }
  0x2e   :  { %21025 = sst [smem:[#allocation74_spill]] %s19778_s19 }
  0x2f   :  { %21027 = sst [smem:[#allocation76_spill]] %s19788_s30 }
  0x30   :  { %s19798_s19 = sld [smem:[%s20994_s0 + %s19586_s7]]   ;;  %s19590_s7 = smov 34  }
  0x31   :  { %21026 = sst [smem:[#allocation75_spill]] %s19783_s21 }
  0x32   :  { %s19803_s21 = sld [smem:[%s20994_s0 + %s19587_s15]]   ;;  %s19591_s15 = smov 35  }
  0x33   :  { %s19808_s30 = sld [smem:[%s20994_s0 + %s19588_s22]]   ;;  %s19592_s22 = smov 36  }
  0x34   :  { %21031 = sst [smem:[#allocation80_spill]] %s19813_s25 }
  0x35   :  { %s19833_s25 = sld [smem:[%s20994_s0 + %s19593_s28]]   ;;  %s19597_s28 = smov 41  }
  0x36   :  { %21028 = sst [smem:[#allocation77_spill]] %s19798_s19 }
  0x37   :  { %s19818_s19 = sld [smem:[%s20994_s0 + %s19590_s7]]   ;;  %s19594_s7 = smov 38  }
  0x38   :  { %21029 = sst [smem:[#allocation78_spill]] %s19803_s21 }
  0x39   :  { %21030 = sst [smem:[#allocation79_spill]] %s19808_s30 }
  0x3a   :  { %s19823_s21 = sld [smem:[%s20994_s0 + %s19591_s15]]   ;;  %s19595_s15 = smov 39  }
  0x3b   :  { %s19828_s30 = sld [smem:[%s20994_s0 + %s19592_s22]]   ;;  %s19596_s22 = smov 40  }
  0x3c   :  { %21034 = sst [smem:[#allocation83_spill]] %s19833_s25 }
  0x3d   :  { %21032 = sst [smem:[#allocation81_spill]] %s19818_s19 }
  0x3e   :  { %s19838_s19 = sld [smem:[%s20994_s0 + %s19594_s7]]  }
  0x3f   :  { %s19843_s13 = sld [smem:[%s20994_s0 + %s19595_s15]]  }
  0x40   :  { %s19853_s25 = sld [smem:[%s20994_s0 + %s19597_s28]]  }
  0x41   :  { %21033 = sst [smem:[#allocation82_spill]] %s19828_s30 }
  0x42   :  { %s19848_s30 = sld [smem:[%s20994_s0 + %s19596_s22]]  }
  0x43   :  { %88 = vsyncpa [#allocation3], 0 }
  0x44   :  { %89 = vsyncpa [#allocation6], 0 }
  0x45   :  { %90 = vsyncpa [#allocation9], 0 }
  0x46   :  { %91 = vsyncpa [#allocation12], 0 }
  0x47   :  { %92 = vsyncpa [#allocation15], 0 }
  0x48   :  { %93 = vsyncpa [#allocation18], 0 }
  0x49   :  { %94 = vsyncpa [#allocation21], 0 }
  0x4a   :  { %95 = vsyncpa [#allocation24], 0 }
  0x4b   :  { %96 = vsyncpa [#allocation27], 0 }
  0x4c   :  { %97 = vsyncpa [#allocation30], 0 }
  0x4d   :  { %98 = vsyncpa [#allocation33], 0 }
  0x4e   :  { %99 = vsyncpa [#allocation36], 0 }
  0x4f   :  { %100 = vsyncpa [#allocation39], 0 }
  0x50   :  { %101 = vsyncpa [#allocation42], 0 }
  0x51   :  { %102 = vsyncpa [#allocation4], 0  ;;  %s19598_s0 = smov [#allocation5]   ;;  %s18911_s10 = scalar_lea.hbm %s19653_s9, 32768 }
  0x52   :  { %s120_s7 = sshll.u32 %s19598_s0, 4  ;;  %p18912_p0 = scmp.ne.s32.totalorder %s19653_s9, %s18911_s10  ;;  %s121_s7 = int_to_ptr.vmem [resolvable:$true] %s120_s7 }
  0x53   :  { %p18915_p1 = scmp.lt.u32.totalorder %s18911_s10, %s19653_s9 }
  0x55   :  { %p18917_p2 = pnand %p18915_p1, %p18912_p0 }
  0x57   :  { %18920 = shalt.err (!%p18917_p2)
}
  0x58   :  { %s18921_s11 = scalar_lea.vmem %s121_s7, 32768  ;;  %p18926_p4 = scmp.lt.s32.totalorder %s121_s7, %s121_s7 }
  0x59   :  { %p18922_p3 = scmp.ne.s32.totalorder %s121_s7, %s18921_s11  ;;  %p18927_p5 = scmp.lt.s32.totalorder %s18921_s11, %s18921_s11 }
  0x5b   :  { %p18928_p6 = por %p18927_p5, %p18926_p4 }
  0x5d   :  { %p18929_p7 = pnand %p18928_p6, %p18922_p3 }
  0x5f   :  { %18932 = shalt.err (!%p18929_p7)
}
  0x60   :  { %s19599_s15 = smov 256   ;;  %s19600_s16 = smov 16  }
  0x61   :  { %126 = dma.hbm_to_vmem [thread:$0]  %s19653_s9, 32768, %s121_s7, [#allocation6], %s19599_s15, %s19599_s15, %s19600_s16  }
  0x62   :  { %s19601_s18 = smov [#allocation8]   ;;  %s19602_s23 = smov [#allocation11]  }
  0x63   :  { %s142_s22 = sshll.u32 %s19601_s18, 4  ;;  %s169_s26 = sshll.u32 %s19602_s23, 4  ;;  %s143_s22 = int_to_ptr.vmem [resolvable:$true] %s142_s22  ;;  %s170_s26 = int_to_ptr.vmem [resolvable:$true] %s169_s26 }
  0x64   :  { %s18933_s28 = scalar_lea.hbm %s19663_s17, 4096 }
  0x65   :  { %p18934_p8 = scmp.ne.s32.totalorder %s19663_s17, %s18933_s28  ;;  %p18937_p9 = scmp.lt.u32.totalorder %s18933_s28, %s19663_s17 }
  0x67   :  { %p18939_p10 = pnand %p18937_p9, %p18934_p8 }
  0x69   :  { %18942 = shalt.err (!%p18939_p10)
}
  0x6a   :  { %s18943_s1 = scalar_lea.vmem %s143_s22, 4096  ;;  %p18948_p12 = scmp.lt.s32.totalorder %s143_s22, %s143_s22 }
  0x6b   :  { %p18944_p11 = scmp.ne.s32.totalorder %s143_s22, %s18943_s1  ;;  %p18949_p13 = scmp.lt.s32.totalorder %s18943_s1, %s18943_s1 }
  0x6d   :  { %p18950_p0 = por %p18949_p13, %p18948_p12 }
  0x6f   :  { %p18951_p1 = pnand %p18950_p0, %p18944_p11 }
  0x71   :  { %18954 = shalt.err (!%p18951_p1)
}
  0x72   :  { %s19603_s2 = smov 64   ;;  %s19604_s9 = smov 4  }
  0x73   :  { %148 = dma.hbm_to_vmem [thread:$0]  %s19663_s17, 4096, %s143_s22, [#allocation9], %s19603_s2, %s19603_s2, %s19604_s9  }
  0x74   :  { %s18955_s0 = scalar_lea.hbm %s19678_s29, 48 }
  0x75   :  { %p18956_p2 = scmp.ne.s32.totalorder %s19678_s29, %s18955_s0  ;;  %p18959_p3 = scmp.lt.u32.totalorder %s18955_s0, %s19678_s29 }
  0x77   :  { %p18961_p4 = pnand %p18959_p3, %p18956_p2 }
  0x79   :  { %18964 = shalt.err (!%p18961_p4)
}
  0x7a   :  { %s18965_s7 = scalar_lea.vmem %s170_s26, 48  ;;  %s18969_s10 = scalar_lea.vmem %s170_s26, 64 }
  0x7b   :  { %p18966_p5 = scmp.ne.s32.totalorder %s170_s26, %s18965_s7  ;;  %p18970_p6 = scmp.lt.s32.totalorder %s170_s26, %s170_s26 }
  0x7c   :  { %p18971_p7 = scmp.lt.s32.totalorder %s18969_s10, %s18965_s7 }
  0x7e   :  { %p18972_p8 = por %p18971_p7, %p18970_p6 }
  0x80   :  { %p18973_p9 = pnand %p18972_p8, %p18966_p5 }
  0x82   :  { %18976 = shalt.err (!%p18973_p9)
}
  0x83   :  { %172 = dma.hbm_to_vmem [thread:$0]  %s19678_s29, 48, %s170_s26, [#allocation12]  }
  0x84   :  { %s19605_s17 = smov [#allocation14]   ;;  %s18977_s15 = scalar_lea.hbm %s19693_s14, 16 }
  0x85   :  { %s193_s11 = sshll.u32 %s19605_s17, 4  ;;  %p18978_p10 = scmp.ne.s32.totalorder %s19693_s14, %s18977_s15  ;;  %s194_s11 = int_to_ptr.vmem [resolvable:$true] %s193_s11 }
  0x86   :  { %p18981_p11 = scmp.lt.u32.totalorder %s18977_s15, %s19693_s14 }
  0x88   :  { %p18983_p12 = pnand %p18981_p11, %p18978_p10 }
  0x8a   :  { %18986 = shalt.err (!%p18983_p12)
}
  0x8b   :  { %s18987_s16 = scalar_lea.vmem %s194_s11, 16  ;;  %s18991_s18 = scalar_lea.vmem %s194_s11, 32 }
  0x8c   :  { %p18988_p13 = scmp.ne.s32.totalorder %s194_s11, %s18987_s16  ;;  %p18992_p0 = scmp.lt.s32.totalorder %s194_s11, %s194_s11 }
  0x8d   :  { %p18993_p1 = scmp.lt.s32.totalorder %s18991_s18, %s18987_s16 }
  0x8f   :  { %p18994_p2 = por %p18993_p1, %p18992_p0 }
  0x91   :  { %p18995_p3 = pnand %p18994_p2, %p18988_p13 }
  0x93   :  { %18998 = shalt.err (!%p18995_p3)
}
  0x94   :  { %196 = dma.hbm_to_vmem [thread:$0]  %s19693_s14, 16, %s194_s11, [#allocation15]  }
  0x95   :  { %s19606_s29 = smov [#allocation17]   ;;  %s19607_s23 = smov [#allocation20]  }
  0x96   :  { %s212_s22 = sshll.u32 %s19606_s29, 4  ;;  %s234_s26 = sshll.u32 %s19607_s23, 4  ;;  %s213_s22 = int_to_ptr.vmem [resolvable:$true] %s212_s22  ;;  %s235_s26 = int_to_ptr.vmem [resolvable:$true] %s234_s26 }
  0x97   :  { %s18999_s28 = scalar_lea.hbm %s19703_s24, 16384 }
  0x98   :  { %p19000_p4 = scmp.ne.s32.totalorder %s19703_s24, %s18999_s28  ;;  %p19003_p5 = scmp.lt.u32.totalorder %s18999_s28, %s19703_s24 }
  0x9a   :  { %p19005_p6 = pnand %p19003_p5, %p19000_p4 }
  0x9c   :  { %19008 = shalt.err (!%p19005_p6)
}
  0x9d   :  { %s19009_s1 = scalar_lea.vmem %s213_s22, 16384  ;;  %p19014_p8 = scmp.lt.s32.totalorder %s213_s22, %s213_s22 }
  0x9e   :  { %p19010_p7 = scmp.ne.s32.totalorder %s213_s22, %s19009_s1  ;;  %p19015_p9 = scmp.lt.s32.totalorder %s19009_s1, %s19009_s1 }
  0xa0   :  { %p19016_p10 = por %p19015_p9, %p19014_p8 }
  0xa2   :  { %p19017_p11 = pnand %p19016_p10, %p19010_p7 }
  0xa4   :  { %19020 = shalt.err (!%p19017_p11)
}
  0xa5   :  { %s19608_s0 = smov 1024   ;;  %s19021_s14 = scalar_lea.hbm %s19713_s6, 16384 }
  0xa6   :  { %218 = dma.hbm_to_vmem [thread:$0]  %s19703_s24, 16384, %s213_s22, [#allocation18], %s19608_s0, %s19608_s0, %s19603_s2  }
  0xa7   :  { %p19022_p12 = scmp.ne.s32.totalorder %s19713_s6, %s19021_s14  ;;  %p19025_p13 = scmp.lt.u32.totalorder %s19021_s14, %s19713_s6 }
  0xa9   :  { %p19027_p0 = pnand %p19025_p13, %p19022_p12 }
  0xab   :  { %19030 = shalt.err (!%p19027_p0)
}
  0xac   :  { %s19031_s7 = scalar_lea.vmem %s235_s26, 16384  ;;  %p19036_p2 = scmp.lt.s32.totalorder %s235_s26, %s235_s26 }
  0xad   :  { %p19032_p1 = scmp.ne.s32.totalorder %s235_s26, %s19031_s7  ;;  %p19037_p3 = scmp.lt.s32.totalorder %s19031_s7, %s19031_s7 }
  0xaf   :  { %p19038_p4 = por %p19037_p3, %p19036_p2 }
  0xb1   :  { %p19039_p5 = pnand %p19038_p4, %p19032_p1 }
  0xb3   :  { %19042 = shalt.err (!%p19039_p5)
}
  0xb4   :  { %240 = dma.hbm_to_vmem [thread:$0]  %s19713_s6, 16384, %s235_s26, [#allocation21], %s19603_s2, %s19603_s2, %s19604_s9  }
  0xb5   :  { %s19609_s24 = smov [#allocation23]   ;;  %s19043_s17 = scalar_lea.hbm %s19723_s20, 16 }
  0xb6   :  { %s257_s10 = sshll.u32 %s19609_s24, 4  ;;  %p19044_p6 = scmp.ne.s32.totalorder %s19723_s20, %s19043_s17  ;;  %s258_s10 = int_to_ptr.vmem [resolvable:$true] %s257_s10 }
  0xb7   :  { %p19047_p7 = scmp.lt.u32.totalorder %s19043_s17, %s19723_s20 }
  0xb9   :  { %p19049_p8 = pnand %p19047_p7, %p19044_p6 }
  0xbb   :  { %19052 = shalt.err (!%p19049_p8)
}
  0xbc   :  { %s19053_s11 = scalar_lea.vmem %s258_s10, 16  ;;  %s19057_s15 = scalar_lea.vmem %s258_s10, 32 }
  0xbd   :  { %p19054_p9 = scmp.ne.s32.totalorder %s258_s10, %s19053_s11  ;;  %p19058_p10 = scmp.lt.s32.totalorder %s258_s10, %s258_s10 }
  0xbe   :  { %p19059_p11 = scmp.lt.s32.totalorder %s19057_s15, %s19053_s11 }
  0xc0   :  { %p19060_p12 = por %p19059_p11, %p19058_p10 }
  0xc2   :  { %p19061_p13 = pnand %p19060_p12, %p19054_p9 }
  0xc4   :  { %19064 = shalt.err (!%p19061_p13)
}
  0xc5   :  { %260 = dma.hbm_to_vmem [thread:$0]  %s19723_s20, 16, %s258_s10, [#allocation24]  }
  0xc6   :  { %s19610_s6 = smov [#allocation26]   ;;  %s19611_s18 = smov [#allocation29]  }
  0xc7   :  { %s276_s16 = sshll.u32 %s19610_s6, 4  ;;  %s301_s29 = sshll.u32 %s19611_s18, 4  ;;  %s277_s16 = int_to_ptr.vmem [resolvable:$true] %s276_s16  ;;  %s19892_s29 = int_to_ptr.vmem [resolvable:$true] %s301_s29 }
  0xc8   :  { %s19065_s22 = scalar_lea.hbm %s19733_s4, 3072 }
  0xc9   :  { %p19066_p0 = scmp.ne.s32.totalorder %s19733_s4, %s19065_s22  ;;  %p19069_p1 = scmp.lt.u32.totalorder %s19065_s22, %s19733_s4 }
  0xcb   :  { %p19071_p2 = pnand %p19069_p1, %p19066_p0 }
  0xcd   :  { %19074 = shalt.err (!%p19071_p2)
}
  0xce   :  { %s19075_s23 = scalar_lea.vmem %s277_s16, 3072  ;;  %p19080_p4 = scmp.lt.s32.totalorder %s277_s16, %s277_s16 }
  0xcf   :  { %p19076_p3 = scmp.ne.s32.totalorder %s277_s16, %s19075_s23  ;;  %p19081_p5 = scmp.lt.s32.totalorder %s19075_s23, %s19075_s23 }
  0xd1   :  { %p19082_p6 = por %p19081_p5, %p19080_p4 }
  0xd3   :  { %p19083_p7 = pnand %p19082_p6, %p19076_p3 }
  0xd5   :  { %19086 = shalt.err (!%p19083_p7)
}
  0xd6   :  { %s19612_s20 = smov 192   ;;  %s19613_s26 = smov 12  }
  0xd7   :  { %282 = dma.hbm_to_vmem [thread:$0]  %s19733_s4, 3072, %s277_s16, [#allocation27], %s19612_s20, %s19612_s20, %s19613_s26  }
  0xd8   :  { %s19087_s28 = scalar_lea.hbm %s19748_s27, 16 }
  0xd9   :  { %p19088_p8 = scmp.ne.s32.totalorder %s19748_s27, %s19087_s28  ;;  %p19091_p9 = scmp.lt.u32.totalorder %s19087_s28, %s19748_s27 }
  0xdb   :  { %p19093_p10 = pnand %p19091_p9, %p19088_p8 }
  0xdd   :  { %19096 = shalt.err (!%p19093_p10)
}
  0xde   :  { %s19097_s1 = scalar_lea.vmem %s19892_s29, 16  ;;  %s19101_s14 = scalar_lea.vmem %s19892_s29, 32 }
  0xdf   :  { %p19098_p11 = scmp.ne.s32.totalorder %s19892_s29, %s19097_s1  ;;  %p19102_p12 = scmp.lt.s32.totalorder %s19892_s29, %s19892_s29 }
  0xe0   :  { %p19103_p13 = scmp.lt.s32.totalorder %s19101_s14, %s19097_s1 }
  0xe2   :  { %p19104_p0 = por %p19103_p13, %p19102_p12 }
  0xe4   :  { %p19105_p1 = pnand %p19104_p0, %p19098_p11 }
  0xe6   :  { %19108 = shalt.err (!%p19105_p1)
}
  0xe7   :  { %304 = dma.hbm_to_vmem [thread:$0]  %s19748_s27, 16, %s19892_s29, [#allocation30]  }
  0xe8   :  { %s19614_s4 = smov [#allocation32]   ;;  %s19615_s24 = smov [#allocation35]  }
  0xe9   :  { %s321_s7 = sshll.u32 %s19614_s4, 4  ;;  %s344_s10 = sshll.u32 %s19615_s24, 4  ;;  %s322_s7 = int_to_ptr.vmem [resolvable:$true] %s321_s7  ;;  %s19911_s10 = int_to_ptr.vmem [resolvable:$true] %s344_s10 }
  0xea   :  { %s19109_s17 = scalar_lea.hbm %s19758_s8, 16 }
  0xeb   :  { %p19110_p2 = scmp.ne.s32.totalorder %s19758_s8, %s19109_s17  ;;  %p19113_p3 = scmp.lt.u32.totalorder %s19109_s17, %s19758_s8 }
  0xed   :  { %p19115_p4 = pnand %p19113_p3, %p19110_p2 }
  0xef   :  { %19118 = shalt.err (!%p19115_p4)
}
  0xf0   :  { %s19119_s11 = scalar_lea.vmem %s322_s7, 16  ;;  %s19123_s15 = scalar_lea.vmem %s322_s7, 32 }
  0xf1   :  { %p19120_p5 = scmp.ne.s32.totalorder %s322_s7, %s19119_s11  ;;  %p19124_p6 = scmp.lt.s32.totalorder %s322_s7, %s322_s7 }
  0xf2   :  { %p19125_p7 = scmp.lt.s32.totalorder %s19123_s15, %s19119_s11 }
  0xf4   :  { %p19126_p8 = por %p19125_p7, %p19124_p6 }
  0xf6   :  { %p19127_p9 = pnand %p19126_p8, %p19120_p5 }
  0xf8   :  { %19130 = shalt.err (!%p19127_p9)
}
  0xf9   :  { %324 = dma.hbm_to_vmem [thread:$0]  %s19758_s8, 16, %s322_s7, [#allocation33]  }
  0xfa   :  { %s19131_s27 = scalar_lea.hbm %s19773_s12, 16384 }
  0xfb   :  { %p19132_p10 = scmp.ne.s32.totalorder %s19773_s12, %s19131_s27  ;;  %p19135_p11 = scmp.lt.u32.totalorder %s19131_s27, %s19773_s12 }
  0xfd   :  { %p19137_p12 = pnand %p19135_p11, %p19132_p10 }
  0xff   :  { %19140 = shalt.err (!%p19137_p12)
}
 0x100   :  { %s19141_s6 = scalar_lea.vmem %s19911_s10, 16384  ;;  %p19146_p0 = scmp.lt.s32.totalorder %s19911_s10, %s19911_s10 }
 0x101   :  { %p19142_p13 = scmp.ne.s32.totalorder %s19911_s10, %s19141_s6  ;;  %p19147_p1 = scmp.lt.s32.totalorder %s19141_s6, %s19141_s6 }
 0x103   :  { %p19148_p2 = por %p19147_p1, %p19146_p0 }
 0x105   :  { %p19149_p3 = pnand %p19148_p2, %p19142_p13 }
 0x107   :  { %19152 = shalt.err (!%p19149_p3)
}
 0x108   :  { %350 = dma.hbm_to_vmem [thread:$0]  %s19773_s12, 16384, %s19911_s10, [#allocation36], %s19603_s2, %s19603_s2, %s19604_s9  }
 0x109   :  { %s19616_s8 = smov [#allocation38]   ;;  %s19617_s18 = smov [#allocation41]  }
 0x10a   :  { %s370_s16 = sshll.u32 %s19616_s8, 4  ;;  %s402_s29 = sshll.u32 %s19617_s18, 4  ;;  %s371_s16 = int_to_ptr.vmem [resolvable:$true] %s370_s16  ;;  %s19929_s29 = int_to_ptr.vmem [resolvable:$true] %s402_s29 }
 0x10b   :  { %s19153_s22 = scalar_lea.hbm %s19793_s3, 3072 }
 0x10c   :  { %p19154_p4 = scmp.ne.s32.totalorder %s19793_s3, %s19153_s22  ;;  %p19157_p5 = scmp.lt.u32.totalorder %s19153_s22, %s19793_s3 }
 0x10e   :  { %p19159_p6 = pnand %p19157_p5, %p19154_p4 }
 0x110   :  { %19162 = shalt.err (!%p19159_p6)
}
 0x111   :  { %s19163_s23 = scalar_lea.vmem %s371_s16, 3072  ;;  %p19168_p8 = scmp.lt.s32.totalorder %s371_s16, %s371_s16 }
 0x112   :  { %p19164_p7 = scmp.ne.s32.totalorder %s371_s16, %s19163_s23  ;;  %p19169_p9 = scmp.lt.s32.totalorder %s19163_s23, %s19163_s23 }
 0x114   :  { %p19170_p10 = por %p19169_p9, %p19168_p8 }
 0x116   :  { %p19171_p11 = pnand %p19170_p10, %p19164_p7 }
 0x118   :  { %19174 = shalt.err (!%p19171_p11)
}
 0x119   :  { %376 = dma.hbm_to_vmem [thread:$0]  %s19793_s3, 3072, %s371_s16, [#allocation39], %s19612_s20, %s19612_s20, %s19613_s26  }
 0x11a   :  { %s19175_s12 = scalar_lea.hbm %s19823_s21, 16384 }
 0x11b   :  { %p19176_p12 = scmp.ne.s32.totalorder %s19823_s21, %s19175_s12  ;;  %p19179_p13 = scmp.lt.u32.totalorder %s19175_s12, %s19823_s21 }
 0x11d   :  { %p19181_p0 = pnand %p19179_p13, %p19176_p12 }
 0x11f   :  { %19184 = shalt.err (!%p19181_p0)
}
 0x120   :  { %s19185_s28 = scalar_lea.vmem %s19929_s29, 16384  ;;  %p19190_p2 = scmp.lt.s32.totalorder %s19929_s29, %s19929_s29 }
 0x121   :  { %p19186_p1 = scmp.ne.s32.totalorder %s19929_s29, %s19185_s28  ;;  %p19191_p3 = scmp.lt.s32.totalorder %s19185_s28, %s19185_s28 }
 0x123   :  { %p19192_p4 = por %p19191_p3, %p19190_p2 }
 0x125   :  { %p19193_p5 = pnand %p19192_p4, %p19186_p1 }
 0x127   :  { %19196 = shalt.err (!%p19193_p5)
}
 0x128   :  { %408 = dma.hbm_to_vmem [thread:$0]  %s19823_s21, 16384, %s19929_s29, [#allocation42], %s19608_s0, %s19608_s0, %s19603_s2  }
 0x129   :  { %s19618_s3 = smov [#allocation2]   ;;  %s19619_s14 = smov [#allocation7]  }
 0x12a   :  { %s108_s1 = sshll.u32 %s19618_s3, 4  ;;  %s133_s4 = sshll.u32 %s19619_s14, 4  ;;  %s109_s1 = int_to_ptr.vmem [resolvable:$true] %s108_s1  ;;  %s134_s4 = int_to_ptr.vmem [resolvable:$true] %s133_s4 }
 0x12b   :  { %s19197_s7 = scalar_lea.hbm %s19648_s5, 2048 }
 0x12c   :  { %p19198_p6 = scmp.ne.s32.totalorder %s19648_s5, %s19197_s7  ;;  %p19201_p7 = scmp.lt.u32.totalorder %s19197_s7, %s19648_s5 }
 0x12e   :  { %p19203_p8 = pnand %p19201_p7, %p19198_p6 }
 0x130   :  { %19206 = shalt.err (!%p19203_p8)
}
 0x131   :  { %s19207_s24 = scalar_lea.vmem %s109_s1, 2048  ;;  %p19212_p10 = scmp.lt.s32.totalorder %s109_s1, %s109_s1 }
 0x132   :  { %p19208_p9 = scmp.ne.s32.totalorder %s109_s1, %s19207_s24  ;;  %p19213_p11 = scmp.lt.s32.totalorder %s19207_s24, %s19207_s24 }
 0x134   :  { %p19214_p12 = por %p19213_p11, %p19212_p10 }
 0x136   :  { %p19215_p13 = pnand %p19214_p12, %p19208_p9 }
 0x138   :  { %19218 = shalt.err (!%p19215_p13)
}
 0x139   :  { %s21035_s21 = sld [smem:[#allocation60_spill]] }
 0x13a   :  { %114 = dma.hbm_to_vmem [thread:$0]  %s19648_s5, 2048, %s109_s1, [#allocation3], %s19608_s0, %s19608_s0, %s19603_s2  }
 0x13f   :  { %s19219_s10 = scalar_lea.hbm %s21035_s21, 64 }
 0x140   :  { %p19220_p0 = scmp.ne.s32.totalorder %s21035_s21, %s19219_s10  ;;  %p19223_p1 = scmp.lt.u32.totalorder %s19219_s10, %s21035_s21 }
 0x142   :  { %p19225_p2 = pnand %p19223_p1, %p19220_p0 }
 0x144   :  { %19228 = shalt.err (!%p19225_p2)
}
 0x145   :  { %s19229_s17 = scalar_lea.vmem %s134_s4, 64  ;;  %p19234_p4 = scmp.lt.s32.totalorder %s134_s4, %s134_s4 }
 0x146   :  { %p19230_p3 = scmp.ne.s32.totalorder %s134_s4, %s19229_s17  ;;  %p19235_p5 = scmp.lt.s32.totalorder %s19229_s17, %s19229_s17 }
 0x148   :  { %p19236_p6 = por %p19235_p5, %p19234_p4 }
 0x14a   :  { %p19237_p7 = pnand %p19236_p6, %p19230_p3 }
 0x14c   :  { %19240 = shalt.err (!%p19237_p7)
}
 0x14d   :  { %s21036_s11 = sld [smem:[#allocation62_spill]]  ;;  %s19620_s15 = smov [#allocation10]  }
 0x14e   :  { %136 = dma.hbm_to_vmem [thread:$0]  %s21035_s21, 64, %s134_s4, [#allocation6]  }
 0x14f   :  { %s156_s27 = sshll.u32 %s19620_s15, 4  ;;  %s19621_s5 = smov [#allocation13]   ;;  %s157_s27 = int_to_ptr.vmem [resolvable:$true] %s156_s27 }
 0x150   :  { %s178_s6 = sshll.u32 %s19621_s5, 4  ;;  %s19961_s6 = int_to_ptr.vmem [resolvable:$true] %s178_s6 }
 0x153   :  { %s19241_s8 = scalar_lea.hbm %s21036_s11, 3072 }
 0x154   :  { %p19242_p8 = scmp.ne.s32.totalorder %s21036_s11, %s19241_s8  ;;  %p19245_p9 = scmp.lt.u32.totalorder %s19241_s8, %s21036_s11 }
 0x156   :  { %p19247_p10 = pnand %p19245_p9, %p19242_p8 }
 0x158   :  { %19250 = shalt.err (!%p19247_p10)
}
 0x159   :  { %s19251_s16 = scalar_lea.vmem %s157_s27, 3072  ;;  %p19256_p12 = scmp.lt.s32.totalorder %s157_s27, %s157_s27 }
 0x15a   :  { %p19252_p11 = scmp.ne.s32.totalorder %s157_s27, %s19251_s16  ;;  %p19257_p13 = scmp.lt.s32.totalorder %s19251_s16, %s19251_s16 }
 0x15c   :  { %p19258_p0 = por %p19257_p13, %p19256_p12 }
 0x15e   :  { %p19259_p1 = pnand %p19258_p0, %p19252_p11 }
 0x160   :  { %19262 = shalt.err (!%p19259_p1)
}
 0x161   :  { %s21037_s18 = sld [smem:[#allocation63_spill]] }
 0x162   :  { %162 = dma.hbm_to_vmem [thread:$0]  %s21036_s11, 3072, %s157_s27, [#allocation9], %s19612_s20, %s19612_s20, %s19613_s26  }
 0x167   :  { %s19263_s29 = scalar_lea.hbm %s21037_s18, 1024 }
 0x168   :  { %p19264_p2 = scmp.ne.s32.totalorder %s21037_s18, %s19263_s29  ;;  %p19267_p3 = scmp.lt.u32.totalorder %s19263_s29, %s21037_s18 }
 0x16a   :  { %p19269_p4 = pnand %p19267_p3, %p19264_p2 }
 0x16c   :  { %19272 = shalt.err (!%p19269_p4)
}
 0x16d   :  { %s19273_s22 = scalar_lea.vmem %s19961_s6, 1024  ;;  %p19278_p6 = scmp.lt.s32.totalorder %s19961_s6, %s19961_s6 }
 0x16e   :  { %p19274_p5 = scmp.ne.s32.totalorder %s19961_s6, %s19273_s22  ;;  %p19279_p7 = scmp.lt.s32.totalorder %s19273_s22, %s19273_s22 }
 0x170   :  { %p19280_p8 = por %p19279_p7, %p19278_p6 }
 0x172   :  { %p19281_p9 = pnand %p19280_p8, %p19274_p5 }
 0x174   :  { %19284 = shalt.err (!%p19281_p9)
}
 0x175   :  { %s21038_s20 = sld [smem:[#allocation65_spill]]  ;;  %s19622_s26 = smov [#allocation16]  }
 0x176   :  { %184 = dma.hbm_to_vmem [thread:$0]  %s21037_s18, 1024, %s19961_s6, [#allocation12], %s19603_s2, %s19603_s2, %s19604_s9  }
 0x177   :  { %s203_s23 = sshll.u32 %s19622_s26, 4  ;;  %s19623_s12 = smov [#allocation19]   ;;  %s204_s23 = int_to_ptr.vmem [resolvable:$true] %s203_s23 }
 0x178   :  { %s225_s28 = sshll.u32 %s19623_s12, 4  ;;  %s226_s28 = int_to_ptr.vmem [resolvable:$true] %s225_s28 }
 0x17b   :  { %s19285_s3 = scalar_lea.hbm %s21038_s20, 16 }
 0x17c   :  { %p19286_p10 = scmp.ne.s32.totalorder %s21038_s20, %s19285_s3  ;;  %p19289_p11 = scmp.lt.u32.totalorder %s19285_s3, %s21038_s20 }
 0x17e   :  { %p19291_p12 = pnand %p19289_p11, %p19286_p10 }
 0x180   :  { %19294 = shalt.err (!%p19291_p12)
}
 0x181   :  { %s19295_s1 = scalar_lea.vmem %s204_s23, 16  ;;  %s19299_s14 = scalar_lea.vmem %s204_s23, 32 }
 0x182   :  { %p19296_p13 = scmp.ne.s32.totalorder %s204_s23, %s19295_s1  ;;  %p19300_p0 = scmp.lt.s32.totalorder %s204_s23, %s204_s23 }
 0x183   :  { %p19301_p1 = scmp.lt.s32.totalorder %s19299_s14, %s19295_s1 }
 0x185   :  { %p19302_p2 = por %p19301_p1, %p19300_p0 }
 0x187   :  { %p19303_p3 = pnand %p19302_p2, %p19296_p13 }
 0x189   :  { %19306 = shalt.err (!%p19303_p3)
}
 0x18a   :  { %s21039_s4 = sld [smem:[#allocation66_spill]] }
 0x18b   :  { %206 = dma.hbm_to_vmem [thread:$0]  %s21038_s20, 16, %s204_s23, [#allocation15]  }
 0x190   :  { %s19307_s7 = scalar_lea.hbm %s21039_s4, 256 }
 0x191   :  { %p19308_p4 = scmp.ne.s32.totalorder %s21039_s4, %s19307_s7  ;;  %p19311_p5 = scmp.lt.u32.totalorder %s19307_s7, %s21039_s4 }
 0x193   :  { %p19313_p6 = pnand %p19311_p5, %p19308_p4 }
 0x195   :  { %19316 = shalt.err (!%p19313_p6)
}
 0x196   :  { %s19317_s24 = scalar_lea.vmem %s226_s28, 256  ;;  %p19322_p8 = scmp.lt.s32.totalorder %s226_s28, %s226_s28 }
 0x197   :  { %p19318_p7 = scmp.ne.s32.totalorder %s226_s28, %s19317_s24  ;;  %p19323_p9 = scmp.lt.s32.totalorder %s19317_s24, %s19317_s24 }
 0x199   :  { %p19324_p10 = por %p19323_p9, %p19322_p8 }
 0x19b   :  { %p19325_p11 = pnand %p19324_p10, %p19318_p7 }
 0x19d   :  { %19328 = shalt.err (!%p19325_p11)
}
 0x19e   :  { %s21040_s21 = sld [smem:[#allocation67_spill]]  ;;  %s19624_s10 = smov [#allocation22]  }
 0x19f   :  { %228 = dma.hbm_to_vmem [thread:$0]  %s21039_s4, 256, %s226_s28, [#allocation18]  }
 0x1a0   :  { %s247_s17 = sshll.u32 %s19624_s10, 4  ;;  %s19625_s11 = smov [#allocation25]   ;;  %s248_s17 = int_to_ptr.vmem [resolvable:$true] %s247_s17 }
 0x1a1   :  { %s267_s15 = sshll.u32 %s19625_s11, 4  ;;  %s268_s15 = int_to_ptr.vmem [resolvable:$true] %s267_s15 }
 0x1a4   :  { %s19329_s27 = scalar_lea.hbm %s21040_s21, 16 }
 0x1a5   :  { %p19330_p12 = scmp.ne.s32.totalorder %s21040_s21, %s19329_s27  ;;  %p19333_p13 = scmp.lt.u32.totalorder %s19329_s27, %s21040_s21 }
 0x1a7   :  { %p19335_p0 = pnand %p19333_p13, %p19330_p12 }
 0x1a9   :  { %19338 = shalt.err (!%p19335_p0)
}
 0x1aa   :  { %s19339_s5 = scalar_lea.vmem %s248_s17, 16  ;;  %s19343_s6 = scalar_lea.vmem %s248_s17, 32 }
 0x1ab   :  { %p19340_p1 = scmp.ne.s32.totalorder %s248_s17, %s19339_s5  ;;  %p19344_p2 = scmp.lt.s32.totalorder %s248_s17, %s248_s17 }
 0x1ac   :  { %p19345_p3 = scmp.lt.s32.totalorder %s19343_s6, %s19339_s5 }
 0x1ae   :  { %p19346_p4 = por %p19345_p3, %p19344_p2 }
 0x1b0   :  { %p19347_p5 = pnand %p19346_p4, %p19340_p1 }
 0x1b2   :  { %19350 = shalt.err (!%p19347_p5)
}
 0x1b3   :  { %s21041_s8 = sld [smem:[#allocation68_spill]] }
 0x1b4   :  { %250 = dma.hbm_to_vmem [thread:$0]  %s21040_s21, 16, %s248_s17, [#allocation21]  }
 0x1b9   :  { %s19351_s16 = scalar_lea.hbm %s21041_s8, 16 }
 0x1ba   :  { %p19352_p6 = scmp.ne.s32.totalorder %s21041_s8, %s19351_s16  ;;  %p19355_p7 = scmp.lt.u32.totalorder %s19351_s16, %s21041_s8 }
 0x1bc   :  { %p19357_p8 = pnand %p19355_p7, %p19352_p6 }
 0x1be   :  { %19360 = shalt.err (!%p19357_p8)
}
 0x1bf   :  { %s19361_s18 = scalar_lea.vmem %s268_s15, 16  ;;  %s19365_s29 = scalar_lea.vmem %s268_s15, 32 }
 0x1c0   :  { %p19362_p9 = scmp.ne.s32.totalorder %s268_s15, %s19361_s18  ;;  %p19366_p10 = scmp.lt.s32.totalorder %s268_s15, %s268_s15 }
 0x1c1   :  { %p19367_p11 = scmp.lt.s32.totalorder %s19365_s29, %s19361_s18 }
 0x1c3   :  { %p19368_p12 = por %p19367_p11, %p19366_p10 }
 0x1c5   :  { %p19369_p13 = pnand %p19368_p12, %p19362_p9 }
 0x1c7   :  { %19372 = shalt.err (!%p19369_p13)
}
 0x1c8   :  { %s21042_s22 = sld [smem:[#allocation69_spill]]  ;;  %s19626_s20 = smov [#allocation28]  }
 0x1c9   :  { %270 = dma.hbm_to_vmem [thread:$0]  %s21041_s8, 16, %s268_s15, [#allocation24]  }
 0x1ca   :  { %s289_s26 = sshll.u32 %s19626_s20, 4  ;;  %s19627_s23 = smov [#allocation31]   ;;  %s290_s26 = int_to_ptr.vmem [resolvable:$true] %s289_s26 }
 0x1cb   :  { %s311_s12 = sshll.u32 %s19627_s23, 4  ;;  %s312_s12 = int_to_ptr.vmem [resolvable:$true] %s311_s12 }
 0x1ce   :  { %s19373_s28 = scalar_lea.hbm %s21042_s22, 48 }
 0x1cf   :  { %p19374_p0 = scmp.ne.s32.totalorder %s21042_s22, %s19373_s28  ;;  %p19377_p1 = scmp.lt.u32.totalorder %s19373_s28, %s21042_s22 }
 0x1d1   :  { %p19379_p2 = pnand %p19377_p1, %p19374_p0 }
 0x1d3   :  { %19382 = shalt.err (!%p19379_p2)
}
 0x1d4   :  { %s19383_s3 = scalar_lea.vmem %s290_s26, 48  ;;  %s19387_s1 = scalar_lea.vmem %s290_s26, 64 }
 0x1d5   :  { %p19384_p3 = scmp.ne.s32.totalorder %s290_s26, %s19383_s3  ;;  %p19388_p4 = scmp.lt.s32.totalorder %s290_s26, %s290_s26 }
 0x1d6   :  { %p19389_p5 = scmp.lt.s32.totalorder %s19387_s1, %s19383_s3 }
 0x1d8   :  { %p19390_p6 = por %p19389_p5, %p19388_p4 }
 0x1da   :  { %p19391_p7 = pnand %p19390_p6, %p19384_p3 }
 0x1dc   :  { %19394 = shalt.err (!%p19391_p7)
}
 0x1dd   :  { %s21043_s14 = sld [smem:[#allocation71_spill]] }
 0x1de   :  { %292 = dma.hbm_to_vmem [thread:$0]  %s21042_s22, 48, %s290_s26, [#allocation27]  }
 0x1e3   :  { %s19395_s4 = scalar_lea.hbm %s21043_s14, 16 }
 0x1e4   :  { %p19396_p8 = scmp.ne.s32.totalorder %s21043_s14, %s19395_s4  ;;  %p19399_p9 = scmp.lt.u32.totalorder %s19395_s4, %s21043_s14 }
 0x1e6   :  { %p19401_p10 = pnand %p19399_p9, %p19396_p8 }
 0x1e8   :  { %19404 = shalt.err (!%p19401_p10)
}
 0x1e9   :  { %s19405_s7 = scalar_lea.vmem %s312_s12, 16  ;;  %s19409_s24 = scalar_lea.vmem %s312_s12, 32 }
 0x1ea   :  { %p19406_p11 = scmp.ne.s32.totalorder %s312_s12, %s19405_s7  ;;  %p19410_p12 = scmp.lt.s32.totalorder %s312_s12, %s312_s12 }
 0x1eb   :  { %p19411_p13 = scmp.lt.s32.totalorder %s19409_s24, %s19405_s7 }
 0x1ed   :  { %p19412_p0 = por %p19411_p13, %p19410_p12 }
 0x1ef   :  { %p19413_p1 = pnand %p19412_p0, %p19406_p11 }
 0x1f1   :  { %19416 = shalt.err (!%p19413_p1)
}
 0x1f2   :  { %s21044_s21 = sld [smem:[#allocation72_spill]]  ;;  %s19628_s10 = smov [#allocation34]  }
 0x1f3   :  { %314 = dma.hbm_to_vmem [thread:$0]  %s21043_s14, 16, %s312_s12, [#allocation30]  }
 0x1f4   :  { %s330_s17 = sshll.u32 %s19628_s10, 4  ;;  %s19629_s11 = smov [#allocation37]   ;;  %s331_s17 = int_to_ptr.vmem [resolvable:$true] %s330_s17 }
 0x1f5   :  { %s357_s15 = sshll.u32 %s19629_s11, 4  ;;  %s358_s15 = int_to_ptr.vmem [resolvable:$true] %s357_s15 }
 0x1f8   :  { %s19417_s27 = scalar_lea.hbm %s21044_s21, 16384 }
 0x1f9   :  { %p19418_p2 = scmp.ne.s32.totalorder %s21044_s21, %s19417_s27  ;;  %p19421_p3 = scmp.lt.u32.totalorder %s19417_s27, %s21044_s21 }
 0x1fb   :  { %p19423_p4 = pnand %p19421_p3, %p19418_p2 }
 0x1fd   :  { %19426 = shalt.err (!%p19423_p4)
}
 0x1fe   :  { %s19427_s5 = scalar_lea.vmem %s331_s17, 16384  ;;  %p19432_p6 = scmp.lt.s32.totalorder %s331_s17, %s331_s17 }
 0x1ff   :  { %p19428_p5 = scmp.ne.s32.totalorder %s331_s17, %s19427_s5  ;;  %p19433_p7 = scmp.lt.s32.totalorder %s19427_s5, %s19427_s5 }
 0x201   :  { %p19434_p8 = por %p19433_p7, %p19432_p6 }
 0x203   :  { %p19435_p9 = pnand %p19434_p8, %p19428_p5 }
 0x205   :  { %19438 = shalt.err (!%p19435_p9)
}
 0x206   :  { %s21045_s6 = sld [smem:[#allocation74_spill]] }
 0x207   :  { %336 = dma.hbm_to_vmem [thread:$0]  %s21044_s21, 16384, %s331_s17, [#allocation33], %s19608_s0, %s19608_s0, %s19603_s2  }
 0x20c   :  { %s19439_s8 = scalar_lea.hbm %s21045_s6, 16 }
 0x20d   :  { %p19440_p10 = scmp.ne.s32.totalorder %s21045_s6, %s19439_s8  ;;  %p19443_p11 = scmp.lt.u32.totalorder %s19439_s8, %s21045_s6 }
 0x20f   :  { %p19445_p12 = pnand %p19443_p11, %p19440_p10 }
 0x211   :  { %19448 = shalt.err (!%p19445_p12)
}
 0x212   :  { %s19449_s16 = scalar_lea.vmem %s358_s15, 16  ;;  %s19453_s18 = scalar_lea.vmem %s358_s15, 32 }
 0x213   :  { %p19450_p13 = scmp.ne.s32.totalorder %s358_s15, %s19449_s16  ;;  %p19454_p0 = scmp.lt.s32.totalorder %s358_s15, %s358_s15 }
 0x214   :  { %p19455_p1 = scmp.lt.s32.totalorder %s19453_s18, %s19449_s16 }
 0x216   :  { %p19456_p2 = por %p19455_p1, %p19454_p0 }
 0x218   :  { %p19457_p3 = pnand %p19456_p2, %p19450_p13 }
 0x21a   :  { %19460 = shalt.err (!%p19457_p3)
}
 0x21b   :  { %s21046_s29 = sld [smem:[#allocation78_spill]]  ;;  %s19630_s22 = smov [#allocation40]  }
 0x21c   :  { %360 = dma.hbm_to_vmem [thread:$0]  %s21045_s6, 16, %s358_s15, [#allocation36]  }
 0x21d   :  { %s384_s0 = sshll.u32 %s19630_s22, 4  ;;  %s19631_s20 = smov [#allocation43]   ;;  %s385_s0 = int_to_ptr.vmem [resolvable:$true] %s384_s0 }
 0x21e   :  { %s416_s26 = sshll.u32 %s19631_s20, 4  ;;  %s20017_s26 = int_to_ptr.vmem [resolvable:$true] %s416_s26 }
 0x221   :  { %s19461_s23 = scalar_lea.hbm %s21046_s29, 1024 }
 0x222   :  { %p19462_p4 = scmp.ne.s32.totalorder %s21046_s29, %s19461_s23  ;;  %p19465_p5 = scmp.lt.u32.totalorder %s19461_s23, %s21046_s29 }
 0x224   :  { %p19467_p6 = pnand %p19465_p5, %p19462_p4 }
 0x226   :  { %19470 = shalt.err (!%p19467_p6)
}
 0x227   :  { %s19471_s12 = scalar_lea.vmem %s385_s0, 1024  ;;  %p19476_p8 = scmp.lt.s32.totalorder %s385_s0, %s385_s0 }
 0x228   :  { %p19472_p7 = scmp.ne.s32.totalorder %s385_s0, %s19471_s12  ;;  %p19477_p9 = scmp.lt.s32.totalorder %s19471_s12, %s19471_s12 }
 0x22a   :  { %p19478_p10 = por %p19477_p9, %p19476_p8 }
 0x22c   :  { %p19479_p11 = pnand %p19478_p10, %p19472_p7 }
 0x22e   :  { %19482 = shalt.err (!%p19479_p11)
}
 0x22f   :  { %s21047_s28 = sld [smem:[#allocation83_spill]] }
 0x230   :  { %390 = dma.hbm_to_vmem [thread:$0]  %s21046_s29, 1024, %s385_s0, [#allocation39], %s19603_s2, %s19603_s2, %s19604_s9  }
 0x235   :  { %s19483_s3 = scalar_lea.hbm %s21047_s28, 16384 }
 0x236   :  { %p19484_p12 = scmp.ne.s32.totalorder %s21047_s28, %s19483_s3  ;;  %p19487_p13 = scmp.lt.u32.totalorder %s19483_s3, %s21047_s28 }
 0x238   :  { %p19489_p0 = pnand %p19487_p13, %p19484_p12 }
 0x23a   :  { %19492 = shalt.err (!%p19489_p0)
}
 0x23b   :  { %s19493_s1 = scalar_lea.vmem %s20017_s26, 16384  ;;  %p19498_p2 = scmp.lt.s32.totalorder %s20017_s26, %s20017_s26 }
 0x23c   :  { %p19494_p1 = scmp.ne.s32.totalorder %s20017_s26, %s19493_s1  ;;  %p19499_p3 = scmp.lt.s32.totalorder %s19493_s1, %s19493_s1 }
 0x23e   :  { %p19500_p4 = por %p19499_p3, %p19498_p2 }
 0x240   :  { %p19501_p5 = pnand %p19500_p4, %p19494_p1 }
 0x242   :  { %19504 = shalt.err (!%p19501_p5)
}
 0x243   :  { %422 = dma.hbm_to_vmem [thread:$0]  %s21047_s28, 16384, %s20017_s26, [#allocation42], %s19603_s2, %s19603_s2, %s19604_s9  }
 0x244   :  { %19527 = dma.done.wait [#allocation3], 2048  }
 0x245   :  { %19528 = vsyncadd [#allocation3], 4294965248 }
 0x246   :  { %19529 = dma.done.wait [#allocation6], 32832  }
 0x247   :  { %19530 = vsyncadd [#allocation6], 4294934464 }
 0x248   :  { %19531 = dma.done.wait [#allocation9], 7168  }
 0x249   :  { %19532 = vsyncadd [#allocation9], 4294960128 }
 0x24a   :  { %19533 = dma.done.wait [#allocation12], 1072  }
 0x24b   :  { %19534 = vsyncadd [#allocation12], 4294966224 }
 0x24c   :  { %19535 = dma.done.wait [#allocation15], 32  }
 0x24d   :  { %19536 = vsyncadd [#allocation15], 4294967264 }
 0x24e   :  { %19537 = dma.done.wait [#allocation18], 16640  }
 0x24f   :  { %19538 = vsyncadd [#allocation18], 4294950656 }
 0x250   :  { %19539 = dma.done.wait [#allocation21], 16400  }
 0x251   :  { %19540 = vsyncadd [#allocation21], 4294950896 }
 0x252   :  { %19541 = dma.done.wait [#allocation24], 32  }
 0x253   :  { %19542 = vsyncadd [#allocation24], 4294967264 }
 0x254   :  { %19543 = dma.done.wait [#allocation27], 3120  }
 0x255   :  { %19544 = vsyncadd [#allocation27], 4294964176 }
 0x256   :  { %19545 = dma.done.wait [#allocation30], 32  }
 0x257   :  { %19546 = vsyncadd [#allocation30], 4294967264 }
 0x258   :  { %19547 = dma.done.wait [#allocation33], 16400  }
 0x259   :  { %19548 = vsyncadd [#allocation33], 4294950896 }
 0x25a   :  { %19549 = dma.done.wait [#allocation36], 16400  }
 0x25b   :  { %19550 = vsyncadd [#allocation36], 4294950896 }
 0x25c   :  { %19551 = dma.done.wait [#allocation39], 4096  }
 0x25d   :  { %19552 = vsyncadd [#allocation39], 4294963200 }
 0x25e   :  { %19553 = dma.done.wait [#allocation42], 32768  }
 0x25f   :  { %19554 = vsyncadd [#allocation42], 4294934528  ;;  %v17831_v0 = vld [vmem:[#allocation5 + $0x4] ss:$16 sps:$4 sm:$0xff]   ;;  %v17833_v1 = vld [vmem:[#allocation5 + $0xc] ss:$16 sps:$4 sm:$0xff]  }
 0x260   :  { %2093 = vmatprep.subr.bf16.mxu0 %v17831_v0  ;;  %v17835_v2 = vld [vmem:[#allocation5] ss:$16 sps:$4 sm:$0xff]   ;;  %v17836_v3 = vld [vmem:[#allocation5 + $0x8] ss:$16 sps:$4 sm:$0xff]   ;;  %2265 = vmatprep.subr.bf16.mxu1 %v17833_v1  ;;  %v17837_v4 = vld [vmem:[#allocation5 + $0x24] ss:$16 sps:$4 sm:$0xff]  }
 0x261   :  { %2094 = vmatpush1.bf16.msra.mxu0 %v17835_v2  ;;  %2266 = vmatpush1.bf16.msra.mxu1 %v17836_v3  ;;  %v17839_v5 = vld [vmem:[#allocation5 + $0x2c] ss:$16 sps:$4 sm:$0xff]   ;;  %v17841_v6 = vld [vmem:[#allocation5 + $0x20] ss:$16 sps:$4 sm:$0xff]   ;;  %v17842_v7 = vld [vmem:[#allocation5 + $0x28] ss:$16 sps:$4 sm:$0xff]  }
 0x262   :  { %2095 = vmatprep.subr.bf16.mxu0 %v17837_v4  ;;  %2267 = vmatprep.subr.bf16.mxu1 %v17839_v5  ;;  %v17843_v8 = vld [vmem:[#allocation5 + $0x44] ss:$16 sps:$4 sm:$0xff]   ;;  %v17845_v9 = vld [vmem:[#allocation5 + $0x4c] ss:$16 sps:$4 sm:$0xff]   ;;  %v17847_v10 = vld [vmem:[#allocation5 + $0x40] ss:$16 sps:$4 sm:$0xff]  }
 0x263   :  { %v17848_v11 = vld [vmem:[#allocation5 + $0x48] ss:$16 sps:$4 sm:$0xff]   ;;  %v17849_v12 = vld [vmem:[#allocation5 + $0x64] ss:$16 sps:$4 sm:$0xff]   ;;  %v17851_v13 = vld [vmem:[#allocation5 + $0x6c] ss:$16 sps:$4 sm:$0xff]  }
 0x264   :  { %v17853_v14 = vld [vmem:[#allocation5 + $0x60] ss:$16 sps:$4 sm:$0xff]   ;;  %v17854_v15 = vld [vmem:[#allocation5 + $0x68] ss:$16 sps:$4 sm:$0xff]   ;;  %v17855_v16 = vld [vmem:[#allocation5 + $0x84] ss:$16 sps:$4 sm:$0xff]  }
 0x265   :  { %2096 = vmatpush1.bf16.msra.mxu0 %v17841_v6  ;;  %2268 = vmatpush1.bf16.msra.mxu1 %v17842_v7  ;;  %v17857_v17 = vld [vmem:[#allocation5 + $0x8c] ss:$16 sps:$4 sm:$0xff]   ;;  %v17859_v18 = vld [vmem:[#allocation5 + $0x80] ss:$16 sps:$4 sm:$0xff]   ;;  %v17860_v19 = vld [vmem:[#allocation5 + $0x88] ss:$16 sps:$4 sm:$0xff]  }
 0x266   :  { %2097 = vmatprep.subr.bf16.mxu0 %v17843_v8  ;;  %2269 = vmatprep.subr.bf16.mxu1 %v17845_v9  ;;  %v17861_v20 = vld [vmem:[#allocation5 + $0xa4] ss:$16 sps:$4 sm:$0xff]   ;;  %v17863_v21 = vld [vmem:[#allocation5 + $0xac] ss:$16 sps:$4 sm:$0xff]   ;;  %v17865_v22 = vld [vmem:[#allocation5 + $0xa0] ss:$16 sps:$4 sm:$0xff]  }
 0x267   :  { %v17866_v23 = vld [vmem:[#allocation5 + $0xa8] ss:$16 sps:$4 sm:$0xff]   ;;  %v17867_v24 = vld [vmem:[#allocation5 + $0xc4] ss:$16 sps:$4 sm:$0xff]   ;;  %v17869_v25 = vld [vmem:[#allocation5 + $0xcc] ss:$16 sps:$4 sm:$0xff]  }
 0x268   :  { %v17871_v26 = vld [vmem:[#allocation5 + $0xc0] ss:$16 sps:$4 sm:$0xff]   ;;  %v17872_v27 = vld [vmem:[#allocation5 + $0xc8] ss:$16 sps:$4 sm:$0xff]   ;;  %v17873_v28 = vld [vmem:[#allocation5 + $0xe4] ss:$16 sps:$4 sm:$0xff]  }
 0x269   :  { %2098 = vmatpush1.bf16.msra.mxu0 %v17847_v10  ;;  %2270 = vmatpush1.bf16.msra.mxu1 %v17848_v11  ;;  %v17875_v29 = vld [vmem:[#allocation5 + $0xec] ss:$16 sps:$4 sm:$0xff]   ;;  %v17877_v30 = vld [vmem:[#allocation5 + $0xe0] ss:$16 sps:$4 sm:$0xff]   ;;  %v17878_v31 = vld [vmem:[#allocation5 + $0xe8] ss:$16 sps:$4 sm:$0xff]  }
 0x26a   :  { %2099 = vmatprep.subr.bf16.mxu0 %v17849_v12  ;;  %2271 = vmatprep.subr.bf16.mxu1 %v17851_v13  ;;  %v17879_v32 = vld [vmem:[#allocation5 + $0x104] ss:$16 sps:$4 sm:$0xff]   ;;  %v17881_v33 = vld [vmem:[#allocation5 + $0x10c] ss:$16 sps:$4 sm:$0xff]   ;;  %v17883_v34 = vld [vmem:[#allocation5 + $0x100] ss:$16 sps:$4 sm:$0xff]  }
 0x26b   :  { %v17884_v35 = vld [vmem:[#allocation5 + $0x108] ss:$16 sps:$4 sm:$0xff]   ;;  %v17885_v36 = vld [vmem:[#allocation5 + $0x124] ss:$16 sps:$4 sm:$0xff]   ;;  %v17887_v37 = vld [vmem:[#allocation5 + $0x12c] ss:$16 sps:$4 sm:$0xff]  }
 0x26c   :  { %v17889_v38 = vld [vmem:[#allocation5 + $0x120] ss:$16 sps:$4 sm:$0xff]   ;;  %v17890_v39 = vld [vmem:[#allocation5 + $0x128] ss:$16 sps:$4 sm:$0xff]   ;;  %v17891_v40 = vld [vmem:[#allocation5 + $0x144] ss:$16 sps:$4 sm:$0xff]  }
 0x26d   :  { %2100 = vmatpush1.bf16.msra.mxu0 %v17853_v14  ;;  %2272 = vmatpush1.bf16.msra.mxu1 %v17854_v15  ;;  %v17893_v41 = vld [vmem:[#allocation5 + $0x14c] ss:$16 sps:$4 sm:$0xff]   ;;  %v17895_v42 = vld [vmem:[#allocation5 + $0x140] ss:$16 sps:$4 sm:$0xff]   ;;  %v17896_v43 = vld [vmem:[#allocation5 + $0x148] ss:$16 sps:$4 sm:$0xff]  }
 0x26e   :  { %2101 = vmatprep.subr.bf16.mxu0 %v17855_v16  ;;  %2273 = vmatprep.subr.bf16.mxu1 %v17857_v17  ;;  %v17897_v44 = vld [vmem:[#allocation5 + $0x164] ss:$16 sps:$4 sm:$0xff]   ;;  %v17899_v45 = vld [vmem:[#allocation5 + $0x16c] ss:$16 sps:$4 sm:$0xff]   ;;  %v17901_v48 = vld [vmem:[#allocation5 + $0x160] ss:$16 sps:$4 sm:$0xff]  }
 0x26f   :  { %v512_v46 = vld [vmem:[#allocation2 + $0x8] sm:$0xff]  ;;  %v17903_v51 = vld [vmem:[#allocation5 + $0x184] ss:$16 sps:$4 sm:$0xff]   ;;  %v17907_v53 = vld [vmem:[#allocation5 + $0x180] ss:$16 sps:$4 sm:$0xff]   ;;  %s21048_s9 = sld [smem:[#allocation61_spill]] }
 0x270   :  { %v520_v47 = vld [vmem:[#allocation2 + $0x48] sm:$0xff]  ;;  %v17909_v55 = vld [vmem:[#allocation5 + $0x1a4] ss:$16 sps:$4 sm:$0xff]   ;;  %v17913_v57 = vld [vmem:[#allocation5 + $0x1a0] ss:$16 sps:$4 sm:$0xff]   ;;  %vm19634_vm0 = vmmov 0  }
 0x271   :  { %2102 = vmatpush1.bf16.msra.mxu0 %v17859_v18  ;;  %2274 = vmatpush1.bf16.msra.mxu1 %v17860_v19  ;;  %v17902_v49 = vld [vmem:[#allocation5 + $0x168] ss:$16 sps:$4 sm:$0xff]   ;;  %v528_v50 = vpack.c.bf16 %v520_v47, %v512_v46  ;;  %v17905_v52 = vld [vmem:[#allocation5 + $0x18c] ss:$16 sps:$4 sm:$0xff]   ;;  %v17915_v59 = vld [vmem:[#allocation5 + $0x1c4] ss:$16 sps:$4 sm:$0xff]  }
 0x272   :  { %2103 = vmatprep.subr.bf16.mxu0 %v17861_v20  ;;  %2275 = vmatprep.subr.bf16.mxu1 %v17863_v21  ;;  %v17908_v54 = vld [vmem:[#allocation5 + $0x188] ss:$16 sps:$4 sm:$0xff]   ;;  %v17911_v56 = vld [vmem:[#allocation5 + $0x1ac] ss:$16 sps:$4 sm:$0xff]   ;;  %v17919_v61 = vld [vmem:[#allocation5 + $0x1c0] ss:$16 sps:$4 sm:$0xff]  }
 0x273   :  { %2125 = vmatprep.mubr.bf16.mxu0 %v528_v50  ;;  %2297 = vmatprep.mubr.bf16.mxu1 %v528_v50  ;;  %v17914_v58 = vld [vmem:[#allocation5 + $0x1a8] ss:$16 sps:$4 sm:$0xff]   ;;  %v17917_v60 = vld [vmem:[#allocation5 + $0x1cc] ss:$16 sps:$4 sm:$0xff]   ;;  %v17921_v63 = vld [vmem:[#allocation5 + $0x1e4] ss:$16 sps:$4 sm:$0xff]  }
 0x274   :  { %v17920_v62 = vld [vmem:[#allocation5 + $0x1c8] ss:$16 sps:$4 sm:$0xff]   ;;  %v17923_v0 = vld [vmem:[#allocation5 + $0x1ec] ss:$16 sps:$4 sm:$0xff]   ;;  %v17925_v1 = vld [vmem:[#allocation5 + $0x1e0] ss:$16 sps:$4 sm:$0xff]  }
 0x275   :  { %2104 = vmatpush1.bf16.msra.mxu0 %v17865_v22  ;;  %2276 = vmatpush1.bf16.msra.mxu1 %v17866_v23  ;;  %v17926_v2 = vld [vmem:[#allocation5 + $0x1e8] ss:$16 sps:$4 sm:$0xff]   ;;  %v17929_v3 = vld [vmem:[#allocation5 + $0x204] ss:$16 sps:$4 sm:$0xff]   ;;  %v17932_v6 = vld [vmem:[#allocation5 + $0x20c] ss:$16 sps:$4 sm:$0xff]  }
 0x276   :  { %2105 = vmatprep.subr.bf16.mxu0 %v17867_v24  ;;  %2277 = vmatprep.subr.bf16.mxu1 %v17869_v25  ;;  %v511_v4 = vld [vmem:[#allocation2] sm:$0xff]  ;;  %v17930_v8 = vld [vmem:[#allocation5 + $0x208] ss:$16 sps:$4 sm:$0xff]   ;;  %v17938_v11 = vld [vmem:[#allocation5 + $0x22c] ss:$16 sps:$4 sm:$0xff]   ;;  %vm3174_vm1 = vcmask 261120  }
 0x277   :  { %v519_v5 = vld [vmem:[#allocation2 + $0x40] sm:$0xff]  ;;  %v17936_v13 = vld [vmem:[#allocation5 + $0x228] ss:$16 sps:$4 sm:$0xff]   ;;  %v17944_v15 = vld [vmem:[#allocation5 + $0x24c] ss:$16 sps:$4 sm:$0xff]   ;;  %s19635_s14 = smov 96  }
 0x278   :  { %v17927_v7 = vld [vmem:[#allocation5 + $0x200] ss:$16 sps:$4 sm:$0xff]   ;;  %v527_v9 = vpack.c.bf16 %v519_v5, %v511_v4  ;;  %v17935_v10 = vld [vmem:[#allocation5 + $0x224] ss:$16 sps:$4 sm:$0xff]   ;;  %v17942_v17 = vld [vmem:[#allocation5 + $0x248] ss:$16 sps:$4 sm:$0xff]  }
 0x279   :  { %2106 = vmatpush1.bf16.msra.mxu0 %v17871_v26  ;;  %2278 = vmatpush1.bf16.msra.mxu1 %v17872_v27  ;;  %v17933_v12 = vld [vmem:[#allocation5 + $0x220] ss:$16 sps:$4 sm:$0xff]   ;;  %v17941_v14 = vld [vmem:[#allocation5 + $0x244] ss:$16 sps:$4 sm:$0xff]   ;;  %v17950_v19 = vld [vmem:[#allocation5 + $0x26c] ss:$16 sps:$4 sm:$0xff]  }
 0x27a   :  { %2107 = vmatprep.subr.bf16.mxu0 %v17873_v28  ;;  %2279 = vmatprep.subr.bf16.mxu1 %v17875_v29  ;;  %v17939_v16 = vld [vmem:[#allocation5 + $0x240] ss:$16 sps:$4 sm:$0xff]   ;;  %v17947_v18 = vld [vmem:[#allocation5 + $0x264] ss:$16 sps:$4 sm:$0xff]   ;;  %v17948_v21 = vld [vmem:[#allocation5 + $0x268] ss:$16 sps:$4 sm:$0xff]  }
 0x27b   :  { %v17945_v20 = vld [vmem:[#allocation5 + $0x260] ss:$16 sps:$4 sm:$0xff]   ;;  %v17953_v22 = vld [vmem:[#allocation5 + $0x284] ss:$16 sps:$4 sm:$0xff]   ;;  %v17956_v23 = vld [vmem:[#allocation5 + $0x28c] ss:$16 sps:$4 sm:$0xff]  }
 0x27c   :  { %v17951_v24 = vld [vmem:[#allocation5 + $0x280] ss:$16 sps:$4 sm:$0xff]   ;;  %v17954_v25 = vld [vmem:[#allocation5 + $0x288] ss:$16 sps:$4 sm:$0xff]   ;;  %v17959_v26 = vld [vmem:[#allocation5 + $0x2a4] ss:$16 sps:$4 sm:$0xff]  }
 0x27d   :  { %2108 = vmatpush1.bf16.msra.mxu0 %v17877_v30  ;;  %2280 = vmatpush1.bf16.msra.mxu1 %v17878_v31  ;;  %v17962_v27 = vld [vmem:[#allocation5 + $0x2ac] ss:$16 sps:$4 sm:$0xff]   ;;  %v17957_v28 = vld [vmem:[#allocation5 + $0x2a0] ss:$16 sps:$4 sm:$0xff]   ;;  %v17960_v29 = vld [vmem:[#allocation5 + $0x2a8] ss:$16 sps:$4 sm:$0xff]  }
 0x27e   :  { %2109 = vmatprep.subr.bf16.mxu0 %v17879_v32  ;;  %2281 = vmatprep.subr.bf16.mxu1 %v17881_v33  ;;  %v17965_v30 = vld [vmem:[#allocation5 + $0x2c4] ss:$16 sps:$4 sm:$0xff]   ;;  %v17968_v31 = vld [vmem:[#allocation5 + $0x2cc] ss:$16 sps:$4 sm:$0xff]   ;;  %v17981_v47 = vld [vmem:[#allocation5 + $0x320] ss:$16 sps:$4 sm:$0xff]  }
 0x27f   :  { %v514_v32 = vld [vmem:[#allocation2 + $0x18] sm:$0xff]  ;;  %v18019_v5 = vld [vmem:[#allocation5 + $0x3e4] ss:$16 sps:$4 sm:$0xff]   ;;  %vm3295_vm2 = vcmask 1043456   ;;  %vm3267_vm3 = vcmask 64512   ;;  %s19636_s4 = smov 32  }
 0x280   :  { %v522_v33 = vld [vmem:[#allocation2 + $0x58] sm:$0xff]  ;;  %s21049_s7 = sld [smem:[#allocation64_spill]]  ;;  %s21050_s24 = sld [smem:[#allocation70_spill]] }
 0x281   :  { %2110 = vmatpush1.bf16.msra.mxu0 %v17883_v34  ;;  %2282 = vmatpush1.bf16.msra.mxu1 %v17884_v35  ;;  %v17963_v34 = vld [vmem:[#allocation5 + $0x2c0] ss:$16 sps:$4 sm:$0xff]   ;;  %v17966_v35 = vld [vmem:[#allocation5 + $0x2c8] ss:$16 sps:$4 sm:$0xff]   ;;  %v17986_v46 = vld [vmem:[#allocation5 + $0x32c] ss:$16 sps:$4 sm:$0xff]  }
 0x282   :  { %2111 = vmatprep.subr.bf16.mxu0 %v17885_v36  ;;  %2283 = vmatprep.subr.bf16.mxu1 %v17887_v37  ;;  %v530_v36 = vpack.c.bf16 %v522_v33, %v514_v32  ;;  %v17971_v37 = vld [vmem:[#allocation5 + $0x2e4] ss:$16 sps:$4 sm:$0xff]   ;;  %v17992_v50 = vld [vmem:[#allocation5 + $0x34c] ss:$16 sps:$4 sm:$0xff]   ;;  %v18014_v4 = vld [vmem:[#allocation5 + $0x3c8] ss:$16 sps:$4 sm:$0xff]  }
 0x283   :  { %v18052_v32 = vld [vmem:[#allocation5 + $0x48c] ss:$16 sps:$4 sm:$0xff]   ;;  %v18047_v33 = vld [vmem:[#allocation5 + $0x480] ss:$16 sps:$4 sm:$0xff]   ;;  %s21051_s21 = sld [smem:[#allocation73_spill]]  ;;  %s21052_s10 = sld [smem:[#allocation75_spill]] }
 0x284   :  { %s21053_s17 = sld [smem:[#allocation76_spill]]  ;;  %s21054_s11 = sld [smem:[#allocation77_spill]] }
 0x285   :  { %2112 = vmatpush1.bf16.msra.mxu0 %v17889_v38  ;;  %2284 = vmatpush1.bf16.msra.mxu1 %v17890_v39  ;;  %v17974_v38 = vld [vmem:[#allocation5 + $0x2ec] ss:$16 sps:$4 sm:$0xff]   ;;  %v17969_v39 = vld [vmem:[#allocation5 + $0x2e0] ss:$16 sps:$4 sm:$0xff]   ;;  %s21056_s15 = sld [smem:[#allocation80_spill]]  ;;  %s21057_s27 = sld [smem:[#allocation81_spill]] }
 0x286   :  { %2113 = vmatprep.subr.bf16.mxu0 %v17891_v40  ;;  %2285 = vmatprep.subr.bf16.mxu1 %v17893_v41  ;;  %v17972_v40 = vld [vmem:[#allocation5 + $0x2e8] ss:$16 sps:$4 sm:$0xff]   ;;  %v17977_v41 = vld [vmem:[#allocation5 + $0x304] ss:$16 sps:$4 sm:$0xff]   ;;  %s21058_s5 = sld [smem:[#allocation82_spill]] }
 0x289   :  { %2114 = vmatpush1.bf16.msra.mxu0 %v17895_v42  ;;  %2286 = vmatpush1.bf16.msra.mxu1 %v17896_v43  ;;  %v17980_v42 = vld [vmem:[#allocation5 + $0x30c] ss:$16 sps:$4 sm:$0xff]   ;;  %v17975_v43 = vld [vmem:[#allocation5 + $0x300] ss:$16 sps:$4 sm:$0xff]  }
 0x28a   :  { %2115 = vmatprep.subr.bf16.mxu0 %v17897_v44  ;;  %2287 = vmatprep.subr.bf16.mxu1 %v17899_v45  ;;  %v17978_v44 = vld [vmem:[#allocation5 + $0x308] ss:$16 sps:$4 sm:$0xff]   ;;  %v17983_v45 = vld [vmem:[#allocation5 + $0x324] ss:$16 sps:$4 sm:$0xff]  }
 0x28d   :  { %2116 = vmatpush1.bf16.msra.mxu0 %v17901_v48  ;;  %2288 = vmatpush1.bf16.msra.mxu1 %v17902_v49  ;;  %v17984_v48 = vld [vmem:[#allocation5 + $0x328] ss:$16 sps:$4 sm:$0xff]   ;;  %v17989_v49 = vld [vmem:[#allocation5 + $0x344] ss:$16 sps:$4 sm:$0xff]  }
 0x28e   :  { %2117 = vmatprep.subr.bf16.mxu0 %v17903_v51  ;;  %2289 = vmatprep.subr.bf16.mxu1 %v17905_v52  ;;  %v17987_v51 = vld [vmem:[#allocation5 + $0x340] ss:$16 sps:$4 sm:$0xff]   ;;  %v17990_v52 = vld [vmem:[#allocation5 + $0x348] ss:$16 sps:$4 sm:$0xff]  }
 0x291   :  { %2118 = vmatpush1.bf16.msra.mxu0 %v17907_v53  ;;  %2290 = vmatpush1.bf16.msra.mxu1 %v17908_v54  ;;  %v17995_v53 = vld [vmem:[#allocation5 + $0x364] ss:$16 sps:$4 sm:$0xff]   ;;  %v17998_v54 = vld [vmem:[#allocation5 + $0x36c] ss:$16 sps:$4 sm:$0xff]  }
 0x292   :  { %2119 = vmatprep.subr.bf16.mxu0 %v17909_v55  ;;  %2291 = vmatprep.subr.bf16.mxu1 %v17911_v56  ;;  %v17993_v55 = vld [vmem:[#allocation5 + $0x360] ss:$16 sps:$4 sm:$0xff]   ;;  %v17996_v56 = vld [vmem:[#allocation5 + $0x368] ss:$16 sps:$4 sm:$0xff]  }
 0x295   :  { %2120 = vmatpush1.bf16.msra.mxu0 %v17913_v57  ;;  %2292 = vmatpush1.bf16.msra.mxu1 %v17914_v58  ;;  %v18001_v57 = vld [vmem:[#allocation5 + $0x384] ss:$16 sps:$4 sm:$0xff]   ;;  %v18004_v58 = vld [vmem:[#allocation5 + $0x38c] ss:$16 sps:$4 sm:$0xff]  }
 0x296   :  { %2121 = vmatprep.subr.bf16.mxu0 %v17915_v59  ;;  %2293 = vmatprep.subr.bf16.mxu1 %v17917_v60  ;;  %v17999_v59 = vld [vmem:[#allocation5 + $0x380] ss:$16 sps:$4 sm:$0xff]   ;;  %v18002_v60 = vld [vmem:[#allocation5 + $0x388] ss:$16 sps:$4 sm:$0xff]  }
 0x299   :  { %2122 = vmatpush1.bf16.msra.mxu0 %v17919_v61  ;;  %2294 = vmatpush1.bf16.msra.mxu1 %v17920_v62  ;;  %v18007_v61 = vld [vmem:[#allocation5 + $0x3a4] ss:$16 sps:$4 sm:$0xff]   ;;  %v18010_v62 = vld [vmem:[#allocation5 + $0x3ac] ss:$16 sps:$4 sm:$0xff]  }
 0x29a   :  { %2123 = vmatprep.subr.bf16.mxu0 %v17921_v63  ;;  %2295 = vmatprep.subr.bf16.mxu1 %v17923_v0  ;;  %v18005_v63 = vld [vmem:[#allocation5 + $0x3a0] ss:$16 sps:$4 sm:$0xff]   ;;  %v18008_v0 = vld [vmem:[#allocation5 + $0x3a8] ss:$16 sps:$4 sm:$0xff]  }
 0x29d   :  { %2124 = vmatpush1.bf16.msra.mxu0 %v17925_v1  ;;  %2296 = vmatpush1.bf16.msra.mxu1 %v17926_v2  ;;  %v18013_v1 = vld [vmem:[#allocation5 + $0x3c4] ss:$16 sps:$4 sm:$0xff]   ;;  %v18016_v2 = vld [vmem:[#allocation5 + $0x3cc] ss:$16 sps:$4 sm:$0xff]  }
 0x29e   :  { %2136 = vmatprep.subr.bf16.mxu0 %v17929_v3  ;;  %2308 = vmatprep.subr.bf16.mxu1 %v17932_v6  ;;  %v18011_v3 = vld [vmem:[#allocation5 + $0x3c0] ss:$16 sps:$4 sm:$0xff]   ;;  %v18022_v6 = vld [vmem:[#allocation5 + $0x3ec] ss:$16 sps:$4 sm:$0xff]  }
 0x2a0   :  { %2126 = vmatmul.mubr.bf16.vlgmr.msra.gmra.mrb[0].mxu0 %v527_v9  ;;  %2298 = vmatmul.mubr.bf16.vlgmr.msra.gmra.mrb[0].mxu1 %v527_v9  ;;  %v18025_v9 = vld [vmem:[#allocation5 + $0x404] ss:$16 sps:$4 sm:$0xff]  }
 0x2a1   :  { %2137 = vmatpush1.bf16.msra.mxu0 %v17927_v7  ;;  %2309 = vmatpush1.bf16.msra.mxu1 %v17930_v8  ;;  %v18017_v7 = vld [vmem:[#allocation5 + $0x3e0] ss:$16 sps:$4 sm:$0xff]   ;;  %v18020_v8 = vld [vmem:[#allocation5 + $0x3e8] ss:$16 sps:$4 sm:$0xff]  }
 0x2a2   :  { %2138 = vmatprep.subr.bf16.mxu0 %v17935_v10  ;;  %2310 = vmatprep.subr.bf16.mxu1 %v17938_v11  ;;  %v513_v10 = vld [vmem:[#allocation2 + $0x10] sm:$0xff] }
 0x2a3   :  { %2168 = vmatprep.mubr.bf16.mxu0 %v530_v36  ;;  %2340 = vmatprep.mubr.bf16.mxu1 %v530_v36  ;;  %v521_v11 = vld [vmem:[#allocation2 + $0x50] sm:$0xff]  ;;  %v18058_v36 = vld [vmem:[#allocation5 + $0x4ac] ss:$16 sps:$4 sm:$0xff]  }
 0x2a5   :  { %2139 = vmatpush1.bf16.msra.mxu0 %v17933_v12  ;;  %2311 = vmatpush1.bf16.msra.mxu1 %v17936_v13  ;;  %v18028_v12 = vld [vmem:[#allocation5 + $0x40c] ss:$16 sps:$4 sm:$0xff]   ;;  %v18023_v13 = vld [vmem:[#allocation5 + $0x400] ss:$16 sps:$4 sm:$0xff]  }
 0x2a6   :  { %2140 = vmatprep.subr.bf16.mxu0 %v17941_v14  ;;  %2312 = vmatprep.subr.bf16.mxu1 %v17944_v15  ;;  %v18026_v14 = vld [vmem:[#allocation5 + $0x408] ss:$16 sps:$4 sm:$0xff]   ;;  %v529_v15 = vpack.c.bf16 %v521_v11, %v513_v10  ;;  %v18115_v11 = vld [vmem:[#allocation5 + $0x5e4] ss:$16 sps:$4 sm:$0xff]  }
 0x2a7   :  { %v18110_v10 = vld [vmem:[#allocation5 + $0x5c8] ss:$16 sps:$4 sm:$0xff]  }
 0x2a9   :  { %2141 = vmatpush1.bf16.msra.mxu0 %v17939_v16  ;;  %2313 = vmatpush1.bf16.msra.mxu1 %v17942_v17  ;;  %v18031_v16 = vld [vmem:[#allocation5 + $0x424] ss:$16 sps:$4 sm:$0xff]   ;;  %v18034_v17 = vld [vmem:[#allocation5 + $0x42c] ss:$16 sps:$4 sm:$0xff]  }
 0x2aa   :  { %2142 = vmatprep.subr.bf16.mxu0 %v17947_v18  ;;  %2314 = vmatprep.subr.bf16.mxu1 %v17950_v19  ;;  %v516_v18 = vld [vmem:[#allocation2 + $0x28] sm:$0xff] }
 0x2ab   :  { %v524_v19 = vld [vmem:[#allocation2 + $0x68] sm:$0xff] }
 0x2ad   :  { %2143 = vmatpush1.bf16.msra.mxu0 %v17945_v20  ;;  %2315 = vmatpush1.bf16.msra.mxu1 %v17948_v21  ;;  %v18029_v20 = vld [vmem:[#allocation5 + $0x420] ss:$16 sps:$4 sm:$0xff]   ;;  %v18032_v21 = vld [vmem:[#allocation5 + $0x428] ss:$16 sps:$4 sm:$0xff]  }
 0x2ae   :  { %2144 = vmatprep.subr.bf16.mxu0 %v17953_v22  ;;  %2316 = vmatprep.subr.bf16.mxu1 %v17956_v23  ;;  %v532_v22 = vpack.c.bf16 %v524_v19, %v516_v18  ;;  %v18037_v23 = vld [vmem:[#allocation5 + $0x444] ss:$16 sps:$4 sm:$0xff]   ;;  %v18124_v18 = vld [vmem:[#allocation5 + $0x60c] ss:$16 sps:$4 sm:$0xff]  }
 0x2af   :  { %v518_v19 = vld [vmem:[#allocation2 + $0x38] sm:$0xff] }
 0x2b1   :  { %2145 = vmatpush1.bf16.msra.mxu0 %v17951_v24  ;;  %2317 = vmatpush1.bf16.msra.mxu1 %v17954_v25  ;;  %v18040_v24 = vld [vmem:[#allocation5 + $0x44c] ss:$16 sps:$4 sm:$0xff]   ;;  %v18035_v25 = vld [vmem:[#allocation5 + $0x440] ss:$16 sps:$4 sm:$0xff]  }
 0x2b2   :  { %2146 = vmatprep.subr.bf16.mxu0 %v17959_v26  ;;  %2318 = vmatprep.subr.bf16.mxu1 %v17962_v27  ;;  %v18038_v26 = vld [vmem:[#allocation5 + $0x448] ss:$16 sps:$4 sm:$0xff]   ;;  %v18043_v27 = vld [vmem:[#allocation5 + $0x464] ss:$16 sps:$4 sm:$0xff]  }
 0x2b5   :  { %2147 = vmatpush1.bf16.msra.mxu0 %v17957_v28  ;;  %2319 = vmatpush1.bf16.msra.mxu1 %v17960_v29  ;;  %v18046_v28 = vld [vmem:[#allocation5 + $0x46c] ss:$16 sps:$4 sm:$0xff]   ;;  %v18041_v29 = vld [vmem:[#allocation5 + $0x460] ss:$16 sps:$4 sm:$0xff]  }
 0x2b6   :  { %2148 = vmatprep.subr.bf16.mxu0 %v17965_v30  ;;  %2320 = vmatprep.subr.bf16.mxu1 %v17968_v31  ;;  %v18044_v30 = vld [vmem:[#allocation5 + $0x468] ss:$16 sps:$4 sm:$0xff]   ;;  %v18049_v31 = vld [vmem:[#allocation5 + $0x484] ss:$16 sps:$4 sm:$0xff]  }
 0x2b9   :  { %2149 = vmatpush1.bf16.msra.mxu0 %v17963_v34  ;;  %2321 = vmatpush1.bf16.msra.mxu1 %v17966_v35  ;;  %v18050_v34 = vld [vmem:[#allocation5 + $0x488] ss:$16 sps:$4 sm:$0xff]   ;;  %v18055_v35 = vld [vmem:[#allocation5 + $0x4a4] ss:$16 sps:$4 sm:$0xff]  }
 0x2ba   :  { %2150 = vmatprep.subr.bf16.mxu0 %v17971_v37  ;;  %2322 = vmatprep.subr.bf16.mxu1 %v17974_v38  ;;  %v18053_v37 = vld [vmem:[#allocation5 + $0x4a0] ss:$16 sps:$4 sm:$0xff]   ;;  %v18056_v38 = vld [vmem:[#allocation5 + $0x4a8] ss:$16 sps:$4 sm:$0xff]  }
 0x2bd   :  { %2151 = vmatpush1.bf16.msra.mxu0 %v17969_v39  ;;  %2323 = vmatpush1.bf16.msra.mxu1 %v17972_v40  ;;  %v18061_v39 = vld [vmem:[#allocation5 + $0x4c4] ss:$16 sps:$4 sm:$0xff]   ;;  %v18064_v40 = vld [vmem:[#allocation5 + $0x4cc] ss:$16 sps:$4 sm:$0xff]  }
 0x2be   :  { %2152 = vmatprep.subr.bf16.mxu0 %v17977_v41  ;;  %2324 = vmatprep.subr.bf16.mxu1 %v17980_v42  ;;  %v18059_v41 = vld [vmem:[#allocation5 + $0x4c0] ss:$16 sps:$4 sm:$0xff]   ;;  %v18062_v42 = vld [vmem:[#allocation5 + $0x4c8] ss:$16 sps:$4 sm:$0xff]  }
 0x2c1   :  { %2153 = vmatpush1.bf16.msra.mxu0 %v17975_v43  ;;  %2325 = vmatpush1.bf16.msra.mxu1 %v17978_v44  ;;  %v18067_v43 = vld [vmem:[#allocation5 + $0x4e4] ss:$16 sps:$4 sm:$0xff]   ;;  %v18070_v44 = vld [vmem:[#allocation5 + $0x4ec] ss:$16 sps:$4 sm:$0xff]  }
 0x2c2   :  { %2154 = vmatprep.subr.bf16.mxu0 %v17983_v45  ;;  %2326 = vmatprep.subr.bf16.mxu1 %v17986_v46  ;;  %v18065_v45 = vld [vmem:[#allocation5 + $0x4e0] ss:$16 sps:$4 sm:$0xff]   ;;  %v18068_v46 = vld [vmem:[#allocation5 + $0x4e8] ss:$16 sps:$4 sm:$0xff]  }
 0x2c5   :  { %2155 = vmatpush1.bf16.msra.mxu0 %v17981_v47  ;;  %2327 = vmatpush1.bf16.msra.mxu1 %v17984_v48  ;;  %v18073_v47 = vld [vmem:[#allocation5 + $0x504] ss:$16 sps:$4 sm:$0xff]   ;;  %v18076_v48 = vld [vmem:[#allocation5 + $0x50c] ss:$16 sps:$4 sm:$0xff]  }
 0x2c6   :  { %2156 = vmatprep.subr.bf16.mxu0 %v17989_v49  ;;  %2328 = vmatprep.subr.bf16.mxu1 %v17992_v50  ;;  %v18071_v49 = vld [vmem:[#allocation5 + $0x500] ss:$16 sps:$4 sm:$0xff]   ;;  %v18074_v50 = vld [vmem:[#allocation5 + $0x508] ss:$16 sps:$4 sm:$0xff]  }
 0x2c9   :  { %2157 = vmatpush1.bf16.msra.mxu0 %v17987_v51  ;;  %2329 = vmatpush1.bf16.msra.mxu1 %v17990_v52  ;;  %v18079_v51 = vld [vmem:[#allocation5 + $0x524] ss:$16 sps:$4 sm:$0xff]   ;;  %v18082_v52 = vld [vmem:[#allocation5 + $0x52c] ss:$16 sps:$4 sm:$0xff]  }
 0x2ca   :  { %2158 = vmatprep.subr.bf16.mxu0 %v17995_v53  ;;  %2330 = vmatprep.subr.bf16.mxu1 %v17998_v54  ;;  %v18077_v53 = vld [vmem:[#allocation5 + $0x520] ss:$16 sps:$4 sm:$0xff]   ;;  %v18080_v54 = vld [vmem:[#allocation5 + $0x528] ss:$16 sps:$4 sm:$0xff]  }
 0x2cd   :  { %2159 = vmatpush1.bf16.msra.mxu0 %v17993_v55  ;;  %2331 = vmatpush1.bf16.msra.mxu1 %v17996_v56  ;;  %v18085_v55 = vld [vmem:[#allocation5 + $0x544] ss:$16 sps:$4 sm:$0xff]   ;;  %v18088_v56 = vld [vmem:[#allocation5 + $0x54c] ss:$16 sps:$4 sm:$0xff]  }
 0x2ce   :  { %2160 = vmatprep.subr.bf16.mxu0 %v18001_v57  ;;  %2332 = vmatprep.subr.bf16.mxu1 %v18004_v58  ;;  %v18083_v57 = vld [vmem:[#allocation5 + $0x540] ss:$16 sps:$4 sm:$0xff]   ;;  %v18086_v58 = vld [vmem:[#allocation5 + $0x548] ss:$16 sps:$4 sm:$0xff]  }
 0x2d1   :  { %2161 = vmatpush1.bf16.msra.mxu0 %v17999_v59  ;;  %2333 = vmatpush1.bf16.msra.mxu1 %v18002_v60  ;;  %v18091_v59 = vld [vmem:[#allocation5 + $0x564] ss:$16 sps:$4 sm:$0xff]   ;;  %v18094_v60 = vld [vmem:[#allocation5 + $0x56c] ss:$16 sps:$4 sm:$0xff]  }
 0x2d2   :  { %2162 = vmatprep.subr.bf16.mxu0 %v18007_v61  ;;  %2334 = vmatprep.subr.bf16.mxu1 %v18010_v62  ;;  %v18089_v61 = vld [vmem:[#allocation5 + $0x560] ss:$16 sps:$4 sm:$0xff]   ;;  %v18092_v62 = vld [vmem:[#allocation5 + $0x568] ss:$16 sps:$4 sm:$0xff]  }
 0x2d5   :  { %2163 = vmatpush1.bf16.msra.mxu0 %v18005_v63  ;;  %2335 = vmatpush1.bf16.msra.mxu1 %v18008_v0  ;;  %v18097_v63 = vld [vmem:[#allocation5 + $0x584] ss:$16 sps:$4 sm:$0xff]   ;;  %v18100_v0 = vld [vmem:[#allocation5 + $0x58c] ss:$16 sps:$4 sm:$0xff]  }
 0x2d6   :  { %2164 = vmatprep.subr.bf16.mxu0 %v18013_v1  ;;  %2336 = vmatprep.subr.bf16.mxu1 %v18016_v2  ;;  %v18095_v1 = vld [vmem:[#allocation5 + $0x580] ss:$16 sps:$4 sm:$0xff]   ;;  %v18098_v2 = vld [vmem:[#allocation5 + $0x588] ss:$16 sps:$4 sm:$0xff]  }
 0x2d9   :  { %2165 = vmatpush1.bf16.msra.mxu0 %v18011_v3  ;;  %2337 = vmatpush1.bf16.msra.mxu1 %v18014_v4  ;;  %v18103_v3 = vld [vmem:[#allocation5 + $0x5a4] ss:$16 sps:$4 sm:$0xff]   ;;  %v18106_v4 = vld [vmem:[#allocation5 + $0x5ac] ss:$16 sps:$4 sm:$0xff]  }
 0x2da   :  { %2166 = vmatprep.subr.bf16.mxu0 %v18019_v5  ;;  %2338 = vmatprep.subr.bf16.mxu1 %v18022_v6  ;;  %v18101_v5 = vld [vmem:[#allocation5 + $0x5a0] ss:$16 sps:$4 sm:$0xff]   ;;  %v18104_v6 = vld [vmem:[#allocation5 + $0x5a8] ss:$16 sps:$4 sm:$0xff]  }
 0x2dd   :  { %2167 = vmatpush1.bf16.msra.mxu0 %v18017_v7  ;;  %2339 = vmatpush1.bf16.msra.mxu1 %v18020_v8  ;;  %v18109_v7 = vld [vmem:[#allocation5 + $0x5c4] ss:$16 sps:$4 sm:$0xff]   ;;  %v18112_v8 = vld [vmem:[#allocation5 + $0x5cc] ss:$16 sps:$4 sm:$0xff]  }
 0x2de   :  { %2179 = vmatprep.subr.bf16.mxu0 %v18025_v9  ;;  %2351 = vmatprep.subr.bf16.mxu1 %v18028_v12  ;;  %v18107_v9 = vld [vmem:[#allocation5 + $0x5c0] ss:$16 sps:$4 sm:$0xff]   ;;  %v18118_v12 = vld [vmem:[#allocation5 + $0x5ec] ss:$16 sps:$4 sm:$0xff]  }
 0x2e0   :  { %2169 = vmatmul.mubr.bf16.vlgmr.msra.gmra.mrb[0].mxu0 %v529_v15  ;;  %2341 = vmatmul.mubr.bf16.vlgmr.msra.gmra.mrb[0].mxu1 %v529_v15  ;;  %v515_v15 = vld [vmem:[#allocation2 + $0x20] sm:$0xff] }
 0x2e1   :  { %2180 = vmatpush1.bf16.msra.mxu0 %v18023_v13  ;;  %2352 = vmatpush1.bf16.msra.mxu1 %v18026_v14  ;;  %v18113_v13 = vld [vmem:[#allocation5 + $0x5e0] ss:$16 sps:$4 sm:$0xff]   ;;  %v18116_v14 = vld [vmem:[#allocation5 + $0x5e8] ss:$16 sps:$4 sm:$0xff]  }
 0x2e2   :  { %2181 = vmatprep.subr.bf16.mxu0 %v18031_v16  ;;  %2353 = vmatprep.subr.bf16.mxu1 %v18034_v17  ;;  %v523_v16 = vld [vmem:[#allocation2 + $0x60] sm:$0xff] }
 0x2e3   :  { %2211 = vmatprep.mubr.bf16.mxu0 %v532_v22  ;;  %2383 = vmatprep.mubr.bf16.mxu1 %v532_v22  ;;  %v18121_v17 = vld [vmem:[#allocation5 + $0x604] ss:$16 sps:$4 sm:$0xff]   ;;  %v18122_v22 = vld [vmem:[#allocation5 + $0x608] ss:$16 sps:$4 sm:$0xff]  }
 0x2e5   :  { %2182 = vmatpush1.bf16.msra.mxu0 %v18029_v20  ;;  %2354 = vmatpush1.bf16.msra.mxu1 %v18032_v21  ;;  %v526_v20 = vld [vmem:[#allocation2 + $0x78] sm:$0xff]  ;;  %v18119_v21 = vld [vmem:[#allocation5 + $0x600] ss:$16 sps:$4 sm:$0xff]  }
 0x2e6   :  { %2183 = vmatprep.subr.bf16.mxu0 %v18037_v23  ;;  %2355 = vmatprep.subr.bf16.mxu1 %v18040_v24  ;;  %v531_v23 = vpack.c.bf16 %v523_v16, %v515_v15  ;;  %v18127_v24 = vld [vmem:[#allocation5 + $0x624] ss:$16 sps:$4 sm:$0xff]   ;;  %v18203_v15 = vld [vmem:[#allocation5 + $0x7c0] ss:$16 sps:$4 sm:$0xff]   ;;  %v18206_v16 = vld [vmem:[#allocation5 + $0x7c8] ss:$16 sps:$4 sm:$0xff]  }
 0x2e9   :  { %2184 = vmatpush1.bf16.msra.mxu0 %v18035_v25  ;;  %2356 = vmatpush1.bf16.msra.mxu1 %v18038_v26  ;;  %v18130_v25 = vld [vmem:[#allocation5 + $0x62c] ss:$16 sps:$4 sm:$0xff]   ;;  %v18125_v26 = vld [vmem:[#allocation5 + $0x620] ss:$16 sps:$4 sm:$0xff]  }
 0x2ea   :  { %2185 = vmatprep.subr.bf16.mxu0 %v18043_v27  ;;  %2357 = vmatprep.subr.bf16.mxu1 %v18046_v28  ;;  %v18128_v27 = vld [vmem:[#allocation5 + $0x628] ss:$16 sps:$4 sm:$0xff]   ;;  %v534_v28 = vpack.c.bf16 %v526_v20, %v518_v19  ;;  %v18209_v19 = vld [vmem:[#allocation5 + $0x7e0] ss:$16 sps:$4 sm:$0xff]  }
 0x2eb   :  { %v18212_v20 = vld [vmem:[#allocation5 + $0x7e8] ss:$16 sps:$4 sm:$0xff]  }
 0x2ed   :  { %2186 = vmatpush1.bf16.msra.mxu0 %v18041_v29  ;;  %2358 = vmatpush1.bf16.msra.mxu1 %v18044_v30  ;;  %v18133_v29 = vld [vmem:[#allocation5 + $0x644] ss:$16 sps:$4 sm:$0xff]   ;;  %v18136_v30 = vld [vmem:[#allocation5 + $0x64c] ss:$16 sps:$4 sm:$0xff]  }
 0x2ee   :  { %2187 = vmatprep.subr.bf16.mxu0 %v18049_v31  ;;  %2359 = vmatprep.subr.bf16.mxu1 %v18052_v32  ;;  %v18131_v31 = vld [vmem:[#allocation5 + $0x640] ss:$16 sps:$4 sm:$0xff]   ;;  %v18134_v32 = vld [vmem:[#allocation5 + $0x648] ss:$16 sps:$4 sm:$0xff]  }
 0x2f1   :  { %2188 = vmatpush1.bf16.msra.mxu0 %v18047_v33  ;;  %2360 = vmatpush1.bf16.msra.mxu1 %v18050_v34  ;;  %v18139_v33 = vld [vmem:[#allocation5 + $0x664] ss:$16 sps:$4 sm:$0xff]   ;;  %v18142_v34 = vld [vmem:[#allocation5 + $0x66c] ss:$16 sps:$4 sm:$0xff]  }
 0x2f2   :  { %2189 = vmatprep.subr.bf16.mxu0 %v18055_v35  ;;  %2361 = vmatprep.subr.bf16.mxu1 %v18058_v36  ;;  %v18137_v35 = vld [vmem:[#allocation5 + $0x660] ss:$16 sps:$4 sm:$0xff]   ;;  %v18140_v36 = vld [vmem:[#allocation5 + $0x668] ss:$16 sps:$4 sm:$0xff]  }
 0x2f5   :  { %2190 = vmatpush1.bf16.msra.mxu0 %v18053_v37  ;;  %2362 = vmatpush1.bf16.msra.mxu1 %v18056_v38  ;;  %v18145_v37 = vld [vmem:[#allocation5 + $0x684] ss:$16 sps:$4 sm:$0xff]   ;;  %v18148_v38 = vld [vmem:[#allocation5 + $0x68c] ss:$16 sps:$4 sm:$0xff]  }
 0x2f6   :  { %2191 = vmatprep.subr.bf16.mxu0 %v18061_v39  ;;  %2363 = vmatprep.subr.bf16.mxu1 %v18064_v40  ;;  %v18143_v39 = vld [vmem:[#allocation5 + $0x680] ss:$16 sps:$4 sm:$0xff]   ;;  %v18146_v40 = vld [vmem:[#allocation5 + $0x688] ss:$16 sps:$4 sm:$0xff]  }
 0x2f9   :  { %2192 = vmatpush1.bf16.msra.mxu0 %v18059_v41  ;;  %2364 = vmatpush1.bf16.msra.mxu1 %v18062_v42  ;;  %v18151_v41 = vld [vmem:[#allocation5 + $0x6a4] ss:$16 sps:$4 sm:$0xff]   ;;  %v18154_v42 = vld [vmem:[#allocation5 + $0x6ac] ss:$16 sps:$4 sm:$0xff]  }
 0x2fa   :  { %2193 = vmatprep.subr.bf16.mxu0 %v18067_v43  ;;  %2365 = vmatprep.subr.bf16.mxu1 %v18070_v44  ;;  %v18149_v43 = vld [vmem:[#allocation5 + $0x6a0] ss:$16 sps:$4 sm:$0xff]   ;;  %v18152_v44 = vld [vmem:[#allocation5 + $0x6a8] ss:$16 sps:$4 sm:$0xff]  }
 0x2fd   :  { %2194 = vmatpush1.bf16.msra.mxu0 %v18065_v45  ;;  %2366 = vmatpush1.bf16.msra.mxu1 %v18068_v46  ;;  %v18157_v45 = vld [vmem:[#allocation5 + $0x6c4] ss:$16 sps:$4 sm:$0xff]   ;;  %v18160_v46 = vld [vmem:[#allocation5 + $0x6cc] ss:$16 sps:$4 sm:$0xff]  }
 0x2fe   :  { %2195 = vmatprep.subr.bf16.mxu0 %v18073_v47  ;;  %2367 = vmatprep.subr.bf16.mxu1 %v18076_v48  ;;  %v18155_v47 = vld [vmem:[#allocation5 + $0x6c0] ss:$16 sps:$4 sm:$0xff]   ;;  %v18158_v48 = vld [vmem:[#allocation5 + $0x6c8] ss:$16 sps:$4 sm:$0xff]  }
 0x301   :  { %2196 = vmatpush1.bf16.msra.mxu0 %v18071_v49  ;;  %2368 = vmatpush1.bf16.msra.mxu1 %v18074_v50  ;;  %v18163_v49 = vld [vmem:[#allocation5 + $0x6e4] ss:$16 sps:$4 sm:$0xff]   ;;  %v18166_v50 = vld [vmem:[#allocation5 + $0x6ec] ss:$16 sps:$4 sm:$0xff]  }
 0x302   :  { %2197 = vmatprep.subr.bf16.mxu0 %v18079_v51  ;;  %2369 = vmatprep.subr.bf16.mxu1 %v18082_v52  ;;  %v18161_v51 = vld [vmem:[#allocation5 + $0x6e0] ss:$16 sps:$4 sm:$0xff]   ;;  %v18164_v52 = vld [vmem:[#allocation5 + $0x6e8] ss:$16 sps:$4 sm:$0xff]  }
 0x305   :  { %2198 = vmatpush1.bf16.msra.mxu0 %v18077_v53  ;;  %2370 = vmatpush1.bf16.msra.mxu1 %v18080_v54  ;;  %v18169_v53 = vld [vmem:[#allocation5 + $0x704] ss:$16 sps:$4 sm:$0xff]   ;;  %v18172_v54 = vld [vmem:[#allocation5 + $0x70c] ss:$16 sps:$4 sm:$0xff]  }
 0x306   :  { %2199 = vmatprep.subr.bf16.mxu0 %v18085_v55  ;;  %2371 = vmatprep.subr.bf16.mxu1 %v18088_v56  ;;  %v18167_v55 = vld [vmem:[#allocation5 + $0x700] ss:$16 sps:$4 sm:$0xff]   ;;  %v18170_v56 = vld [vmem:[#allocation5 + $0x708] ss:$16 sps:$4 sm:$0xff]  }
 0x309   :  { %2200 = vmatpush1.bf16.msra.mxu0 %v18083_v57  ;;  %2372 = vmatpush1.bf16.msra.mxu1 %v18086_v58  ;;  %v18175_v57 = vld [vmem:[#allocation5 + $0x724] ss:$16 sps:$4 sm:$0xff]   ;;  %v18178_v58 = vld [vmem:[#allocation5 + $0x72c] ss:$16 sps:$4 sm:$0xff]  }
 0x30a   :  { %2201 = vmatprep.subr.bf16.mxu0 %v18091_v59  ;;  %2373 = vmatprep.subr.bf16.mxu1 %v18094_v60  ;;  %v18173_v59 = vld [vmem:[#allocation5 + $0x720] ss:$16 sps:$4 sm:$0xff]   ;;  %v18176_v60 = vld [vmem:[#allocation5 + $0x728] ss:$16 sps:$4 sm:$0xff]  }
 0x30d   :  { %2202 = vmatpush1.bf16.msra.mxu0 %v18089_v61  ;;  %2374 = vmatpush1.bf16.msra.mxu1 %v18092_v62  ;;  %v18181_v61 = vld [vmem:[#allocation5 + $0x744] ss:$16 sps:$4 sm:$0xff]   ;;  %v18184_v62 = vld [vmem:[#allocation5 + $0x74c] ss:$16 sps:$4 sm:$0xff]  }
 0x30e   :  { %2203 = vmatprep.subr.bf16.mxu0 %v18097_v63  ;;  %2375 = vmatprep.subr.bf16.mxu1 %v18100_v0  ;;  %v18179_v63 = vld [vmem:[#allocation5 + $0x740] ss:$16 sps:$4 sm:$0xff]   ;;  %v18182_v0 = vld [vmem:[#allocation5 + $0x748] ss:$16 sps:$4 sm:$0xff]  }
 0x311   :  { %2204 = vmatpush1.bf16.msra.mxu0 %v18095_v1  ;;  %2376 = vmatpush1.bf16.msra.mxu1 %v18098_v2  ;;  %v18187_v1 = vld [vmem:[#allocation5 + $0x764] ss:$16 sps:$4 sm:$0xff]   ;;  %v18190_v2 = vld [vmem:[#allocation5 + $0x76c] ss:$16 sps:$4 sm:$0xff]  }
 0x312   :  { %2205 = vmatprep.subr.bf16.mxu0 %v18103_v3  ;;  %2377 = vmatprep.subr.bf16.mxu1 %v18106_v4  ;;  %v18185_v3 = vld [vmem:[#allocation5 + $0x760] ss:$16 sps:$4 sm:$0xff]   ;;  %v18188_v4 = vld [vmem:[#allocation5 + $0x768] ss:$16 sps:$4 sm:$0xff]  }
 0x315   :  { %2206 = vmatpush1.bf16.msra.mxu0 %v18101_v5  ;;  %2378 = vmatpush1.bf16.msra.mxu1 %v18104_v6  ;;  %v18193_v5 = vld [vmem:[#allocation5 + $0x784] ss:$16 sps:$4 sm:$0xff]   ;;  %v18196_v6 = vld [vmem:[#allocation5 + $0x78c] ss:$16 sps:$4 sm:$0xff]  }
 0x316   :  { %2207 = vmatprep.subr.bf16.mxu0 %v18109_v7  ;;  %2379 = vmatprep.subr.bf16.mxu1 %v18112_v8  ;;  %v18191_v7 = vld [vmem:[#allocation5 + $0x780] ss:$16 sps:$4 sm:$0xff]   ;;  %v18194_v8 = vld [vmem:[#allocation5 + $0x788] ss:$16 sps:$4 sm:$0xff]  }
 0x319   :  { %2208 = vmatpush1.bf16.msra.mxu0 %v18107_v9  ;;  %2380 = vmatpush1.bf16.msra.mxu1 %v18110_v10  ;;  %v18199_v9 = vld [vmem:[#allocation5 + $0x7a4] ss:$16 sps:$4 sm:$0xff]   ;;  %v18202_v10 = vld [vmem:[#allocation5 + $0x7ac] ss:$16 sps:$4 sm:$0xff]  }
 0x31a   :  { %2209 = vmatprep.subr.bf16.mxu0 %v18115_v11  ;;  %2381 = vmatprep.subr.bf16.mxu1 %v18118_v12  ;;  %v18197_v11 = vld [vmem:[#allocation5 + $0x7a0] ss:$16 sps:$4 sm:$0xff]   ;;  %v18200_v12 = vld [vmem:[#allocation5 + $0x7a8] ss:$16 sps:$4 sm:$0xff]  }
 0x31d   :  { %2210 = vmatpush1.bf16.msra.mxu0 %v18113_v13  ;;  %2382 = vmatpush1.bf16.msra.mxu1 %v18116_v14  ;;  %v18205_v13 = vld [vmem:[#allocation5 + $0x7c4] ss:$16 sps:$4 sm:$0xff]   ;;  %v18208_v14 = vld [vmem:[#allocation5 + $0x7cc] ss:$16 sps:$4 sm:$0xff]  }
 0x31e   :  { %2222 = vmatprep.subr.bf16.mxu0 %v18121_v17  ;;  %2394 = vmatprep.subr.bf16.mxu1 %v18124_v18  ;;  %v18211_v17 = vld [vmem:[#allocation5 + $0x7e4] ss:$16 sps:$4 sm:$0xff]   ;;  %v18214_v18 = vld [vmem:[#allocation5 + $0x7ec] ss:$16 sps:$4 sm:$0xff]  }
 0x320   :  { %2212 = vmatmul.mubr.bf16.vlgmr.msra.gmra.mrb[0].mxu0 %v531_v23  ;;  %2384 = vmatmul.mubr.bf16.vlgmr.msra.gmra.mrb[0].mxu1 %v531_v23 }
 0x321   :  { %2223 = vmatpush1.bf16.msra.mxu0 %v18119_v21  ;;  %2395 = vmatpush1.bf16.msra.mxu1 %v18122_v22  ;;  %v517_v21 = vld [vmem:[#allocation2 + $0x30] sm:$0xff] }
 0x322   :  { %2224 = vmatprep.subr.bf16.mxu0 %v18127_v24  ;;  %2396 = vmatprep.subr.bf16.mxu1 %v18130_v25  ;;  %v525_v22 = vld [vmem:[#allocation2 + $0x70] sm:$0xff]  ;;  %v18215_v24 = vld [vmem:[#allocation8 + $0x40] sm:$0xff]  }
 0x323   :  { %2254 = vmatprep.mubr.bf16.mxu0 %v534_v28  ;;  %2426 = vmatprep.mubr.bf16.mxu1 %v534_v28  ;;  %v533_v23 = vpack.c.bf16 %v525_v22, %v517_v21  ;;  %v18216_v25 = vld [vmem:[#allocation8 + $0xc0] sm:$0xff]   ;;  %v18219_v28 = vld [vmem:[#allocation8 + $0x48] sm:$0xff]  }
 0x325   :  { %2225 = vmatpush1.bf16.msra.mxu0 %v18125_v26  ;;  %2397 = vmatpush1.bf16.msra.mxu1 %v18128_v27  ;;  %v18217_v26 = vld [vmem:[#allocation8] sm:$0xff]  }
 0x326   :  { %2226 = vmatprep.subr.bf16.mxu0 %v18133_v29  ;;  %2398 = vmatprep.subr.bf16.mxu1 %v18136_v30  ;;  %v18218_v27 = vld [vmem:[#allocation8 + $0x80] sm:$0xff]   ;;  %v18220_v29 = vld [vmem:[#allocation8 + $0xc8] sm:$0xff]  }
 0x327   :  { %v18221_v30 = vld [vmem:[#allocation8 + $0x8] sm:$0xff]  }
 0x329   :  { %2227 = vmatpush1.bf16.msra.mxu0 %v18131_v31  ;;  %2399 = vmatpush1.bf16.msra.mxu1 %v18134_v32  ;;  %v18222_v31 = vld [vmem:[#allocation8 + $0x88] sm:$0xff]   ;;  %v18223_v32 = vld [vmem:[#allocation8 + $0x50] sm:$0xff]  }
 0x32a   :  { %2228 = vmatprep.subr.bf16.mxu0 %v18139_v33  ;;  %2400 = vmatprep.subr.bf16.mxu1 %v18142_v34  ;;  %v18224_v33 = vld [vmem:[#allocation8 + $0xd0] sm:$0xff]  }
 0x32b   :  { %v18225_v34 = vld [vmem:[#allocation8 + $0x10] sm:$0xff]  }
 0x32d   :  { %2229 = vmatpush1.bf16.msra.mxu0 %v18137_v35  ;;  %2401 = vmatpush1.bf16.msra.mxu1 %v18140_v36  ;;  %v18226_v35 = vld [vmem:[#allocation8 + $0x90] sm:$0xff]   ;;  %v18227_v36 = vld [vmem:[#allocation8 + $0x58] sm:$0xff]  }
 0x32e   :  { %2230 = vmatprep.subr.bf16.mxu0 %v18145_v37  ;;  %2402 = vmatprep.subr.bf16.mxu1 %v18148_v38  ;;  %v18228_v37 = vld [vmem:[#allocation8 + $0xd8] sm:$0xff]  }
 0x32f   :  { %v18229_v38 = vld [vmem:[#allocation8 + $0x18] sm:$0xff]  }
 0x331   :  { %2231 = vmatpush1.bf16.msra.mxu0 %v18143_v39  ;;  %2403 = vmatpush1.bf16.msra.mxu1 %v18146_v40  ;;  %v18230_v39 = vld [vmem:[#allocation8 + $0x98] sm:$0xff]   ;;  %v18231_v40 = vld [vmem:[#allocation8 + $0x60] sm:$0xff]  }
 0x332   :  { %2232 = vmatprep.subr.bf16.mxu0 %v18151_v41  ;;  %2404 = vmatprep.subr.bf16.mxu1 %v18154_v42  ;;  %v18232_v41 = vld [vmem:[#allocation8 + $0xe0] sm:$0xff]  }
 0x333   :  { %v18233_v42 = vld [vmem:[#allocation8 + $0x20] sm:$0xff]  }
 0x335   :  { %2233 = vmatpush1.bf16.msra.mxu0 %v18149_v43  ;;  %2405 = vmatpush1.bf16.msra.mxu1 %v18152_v44  ;;  %v18234_v43 = vld [vmem:[#allocation8 + $0xa0] sm:$0xff]   ;;  %v18235_v44 = vld [vmem:[#allocation8 + $0x68] sm:$0xff]  }
 0x336   :  { %2234 = vmatprep.subr.bf16.mxu0 %v18157_v45  ;;  %2406 = vmatprep.subr.bf16.mxu1 %v18160_v46  ;;  %v18236_v45 = vld [vmem:[#allocation8 + $0xe8] sm:$0xff]  }
 0x337   :  { %v18237_v46 = vld [vmem:[#allocation8 + $0x28] sm:$0xff]  }
 0x339   :  { %2235 = vmatpush1.bf16.msra.mxu0 %v18155_v47  ;;  %2407 = vmatpush1.bf16.msra.mxu1 %v18158_v48  ;;  %v18238_v47 = vld [vmem:[#allocation8 + $0xa8] sm:$0xff]   ;;  %v18239_v48 = vld [vmem:[#allocation8 + $0x70] sm:$0xff]  }
 0x33a   :  { %2236 = vmatprep.subr.bf16.mxu0 %v18163_v49  ;;  %2408 = vmatprep.subr.bf16.mxu1 %v18166_v50  ;;  %v18240_v49 = vld [vmem:[#allocation8 + $0xf0] sm:$0xff]  }
 0x33b   :  { %v18241_v50 = vld [vmem:[#allocation8 + $0x30] sm:$0xff]  }
 0x33d   :  { %2237 = vmatpush1.bf16.msra.mxu0 %v18161_v51  ;;  %2409 = vmatpush1.bf16.msra.mxu1 %v18164_v52  ;;  %v18242_v51 = vld [vmem:[#allocation8 + $0xb0] sm:$0xff]   ;;  %v18243_v52 = vld [vmem:[#allocation8 + $0x78] sm:$0xff]  }
 0x33e   :  { %2238 = vmatprep.subr.bf16.mxu0 %v18169_v53  ;;  %2410 = vmatprep.subr.bf16.mxu1 %v18172_v54  ;;  %v18244_v53 = vld [vmem:[#allocation8 + $0xf8] sm:$0xff]  }
 0x33f   :  { %v18245_v54 = vld [vmem:[#allocation8 + $0x38] sm:$0xff]  }
 0x341   :  { %2239 = vmatpush1.bf16.msra.mxu0 %v18167_v55  ;;  %2411 = vmatpush1.bf16.msra.mxu1 %v18170_v56  ;;  %v18246_v55 = vld [vmem:[#allocation8 + $0xb8] sm:$0xff]   ;;  %v793_v56 = vlaneseq }
 0x342   :  { %2240 = vmatprep.subr.bf16.mxu0 %v18175_v57  ;;  %2412 = vmatprep.subr.bf16.mxu1 %v18178_v58 }
 0x343   :  { %v20038_v57 = vshrl.u32 %v793_v56, 7 }
 0x345   :  { %2241 = vmatpush1.bf16.msra.mxu0 %v18173_v59  ;;  %2413 = vmatpush1.bf16.msra.mxu1 %v18176_v60  ;;  %v20041_v58 = vsub.s32 0, %v20038_v57  ;;  %v20044_v59 = vsub.s32 2, %v20038_v57  ;;  %v20047_v60 = vsub.s32 1, %v20038_v57 }
 0x346   :  { %2242 = vmatprep.subr.bf16.mxu0 %v18181_v61  ;;  %2414 = vmatprep.subr.bf16.mxu1 %v18184_v62  ;;  %v20050_v61 = vsub.s32 3, %v20038_v57  ;;  %v791_v62 = vld [vmem:[#allocation7] sm:$0xf] }
 0x349   :  { %2243 = vmatpush1.bf16.msra.mxu0 %v18179_v63  ;;  %2415 = vmatpush1.bf16.msra.mxu1 %v18182_v0  ;;  %v796_v63 = vrot.slane %v791_v62, %v20041_v58  ;;  %v804_v0 = vrot.slane %v791_v62, %v20044_v59 }
 0x34a   :  { %2244 = vmatprep.subr.bf16.mxu0 %v18187_v1  ;;  %2416 = vmatprep.subr.bf16.mxu1 %v18190_v2  ;;  %v800_v1 = vrot.slane %v791_v62, %v20047_v60  ;;  %v808_v2 = vrot.slane %v791_v62, %v20050_v61 }
 0x34d   :  { %2245 = vmatpush1.bf16.msra.mxu0 %v18185_v3  ;;  %2417 = vmatpush1.bf16.msra.mxu1 %v18188_v4 }
 0x34e   :  { %2246 = vmatprep.subr.bf16.mxu0 %v18193_v5  ;;  %2418 = vmatprep.subr.bf16.mxu1 %v18196_v6 }
 0x351   :  { %2247 = vmatpush1.bf16.msra.mxu0 %v18191_v7  ;;  %2419 = vmatpush1.bf16.msra.mxu1 %v18194_v8 }
 0x352   :  { %2248 = vmatprep.subr.bf16.mxu0 %v18199_v9  ;;  %2420 = vmatprep.subr.bf16.mxu1 %v18202_v10 }
 0x355   :  { %2249 = vmatpush1.bf16.msra.mxu0 %v18197_v11  ;;  %2421 = vmatpush1.bf16.msra.mxu1 %v18200_v12 }
 0x356   :  { %2250 = vmatprep.subr.bf16.mxu0 %v18205_v13  ;;  %2422 = vmatprep.subr.bf16.mxu1 %v18208_v14 }
 0x359   :  { %2251 = vmatpush1.bf16.msra.mxu0 %v18203_v15  ;;  %2423 = vmatpush1.bf16.msra.mxu1 %v18206_v16 }
 0x35a   :  { %2252 = vmatprep.subr.bf16.mxu0 %v18211_v17  ;;  %2424 = vmatprep.subr.bf16.mxu1 %v18214_v18 }
 0x35d   :  { %2253 = vmatpush1.bf16.msra.mxu0 %v18209_v19  ;;  %2425 = vmatpush1.bf16.msra.mxu1 %v18212_v20 }
 0x35e   :  { %16541 = vmatprep.subr.bf16.mxu0 %v18215_v24  ;;  %16563 = vmatprep.subr.bf16.mxu1 %v18216_v25 }
 0x360   :  { %2255 = vmatmul.mubr.bf16.vlgmr.msra.gmra.mrb[0].mxu0 %v533_v23  ;;  %2427 = vmatmul.mubr.bf16.vlgmr.msra.gmra.mrb[0].mxu1 %v533_v23 }
 0x361   :  { %16542 = vmatpush3.bf16.msra.mxu0 %v18217_v26  ;;  %16564 = vmatpush3.bf16.msra.mxu1 %v18218_v27 }
 0x362   :  { %16543 = vmatprep.subr.bf16.mxu0 %v18219_v28  ;;  %16565 = vmatprep.subr.bf16.mxu1 %v18220_v29 }
 0x365   :  { %16544 = vmatpush3.bf16.msra.mxu0 %v18221_v30  ;;  %16566 = vmatpush3.bf16.msra.mxu1 %v18222_v31 }
 0x366   :  { %16545 = vmatprep.subr.bf16.mxu0 %v18223_v32  ;;  %16567 = vmatprep.subr.bf16.mxu1 %v18224_v33 }
 0x369   :  { %16546 = vmatpush3.bf16.msra.mxu0 %v18225_v34  ;;  %16568 = vmatpush3.bf16.msra.mxu1 %v18226_v35 }
 0x36a   :  { %16547 = vmatprep.subr.bf16.mxu0 %v18227_v36  ;;  %16569 = vmatprep.subr.bf16.mxu1 %v18228_v37 }
 0x36d   :  { %16548 = vmatpush3.bf16.msra.mxu0 %v18229_v38  ;;  %16570 = vmatpush3.bf16.msra.mxu1 %v18230_v39 }
 0x36e   :  { %16549 = vmatprep.subr.bf16.mxu0 %v18231_v40  ;;  %16571 = vmatprep.subr.bf16.mxu1 %v18232_v41 }
 0x371   :  { %16550 = vmatpush3.bf16.msra.mxu0 %v18233_v42  ;;  %16572 = vmatpush3.bf16.msra.mxu1 %v18234_v43 }
 0x372   :  { %16551 = vmatprep.subr.bf16.mxu0 %v18235_v44  ;;  %16573 = vmatprep.subr.bf16.mxu1 %v18236_v45 }
 0x375   :  { %16552 = vmatpush3.bf16.msra.mxu0 %v18237_v46  ;;  %16574 = vmatpush3.bf16.msra.mxu1 %v18238_v47 }
 0x376   :  { %16553 = vmatprep.subr.bf16.mxu0 %v18239_v48  ;;  %16575 = vmatprep.subr.bf16.mxu1 %v18240_v49 }
 0x379   :  { %16554 = vmatpush3.bf16.msra.mxu0 %v18241_v50  ;;  %16576 = vmatpush3.bf16.msra.mxu1 %v18242_v51 }
 0x37a   :  { %16555 = vmatprep.subr.bf16.mxu0 %v18243_v52  ;;  %16577 = vmatprep.subr.bf16.mxu1 %v18244_v53 }
 0x37d   :  { %16556 = vmatpush3.bf16.msra.mxu0 %v18245_v54  ;;  %16578 = vmatpush3.bf16.msra.mxu1 %v18246_v55 }
 0x433   :  { %v2256_v3 = vpop.f32.mrb[0].mxu0  ;;  %v2428_v4 = vpop.f32.mrb[0].mxu1 }
 0x434   :  { %v20056_v5 = vadd.f32 %v2256_v3, %v796_v63  ;;  %v20058_v6 = vadd.f32 %v2428_v4, %v804_v0  ;;  %v2258_v7 = vpop.f32.mrb[1].mxu0  ;;  %v2430_v8 = vpop.f32.mrb[1].mxu1 }
 0x435   :  { %v20060_v9 = vadd.f32 %v2258_v7, %v800_v1  ;;  %v20062_v10 = vadd.f32 %v2430_v8, %v808_v2  ;;  %v2260_v11 = vpop.f32.mrb[2].mxu0  ;;  %v2432_v12 = vpop.f32.mrb[2].mxu1 }
 0x436   :  { %v2437_v13 = vmin.f32 %v20056_v5, 20.0  ;;  %v2439_v14 = vmin.f32 %v20058_v6, 20.0  ;;  %v20066_v15 = vadd.f32 %v2260_v11, %v796_v63  ;;  %v20068_v16 = vadd.f32 %v2432_v12, %v804_v0  ;;  %v2262_v17 = vpop.f32.mrb[3].mxu0  ;;  %v2434_v18 = vpop.f32.mrb[3].mxu1 }
 0x437   :  { %v2438_v19 = vmin.f32 %v20060_v9, 20.0  ;;  %v2440_v20 = vmin.f32 %v20062_v10, 20.0  ;;  %v20072_v21 = vadd.f32 %v2262_v17, %v800_v1  ;;  %v20074_v22 = vadd.f32 %v2434_v18, %v808_v2 }
 0x438   :  { %v2445_v23 = vmul.f32 1.442695, %v2437_v13  ;;  %v2449_v24 = vmul.f32 1.442695, %v2439_v14  ;;  %v2441_v25 = vmin.f32 %v20066_v15, 20.0  ;;  %v2443_v26 = vmin.f32 %v20068_v16, 20.0 }
 0x439   :  { %v2447_v27 = vmul.f32 1.442695, %v2438_v19  ;;  %v2451_v28 = vmul.f32 1.442695, %v2440_v20  ;;  %v2442_v29 = vmin.f32 %v20072_v21, 20.0  ;;  %v2444_v30 = vmin.f32 %v20074_v22, 20.0 }
 0x43a   :  { %18751 = vpow2.f32 %v2445_v23  ;;  %v2453_v31 = vmul.f32 1.442695, %v2441_v25  ;;  %v2457_v32 = vmul.f32 1.442695, %v2443_v26 }
 0x43b   :  { %18753 = vpow2.f32 %v2449_v24  ;;  %v2455_v33 = vmul.f32 1.442695, %v2442_v29  ;;  %v2459_v34 = vmul.f32 1.442695, %v2444_v30 }
 0x43c   :  { %18755 = vpow2.f32 %v2447_v27 }
 0x43d   :  { %18757 = vpow2.f32 %v2451_v28 }
 0x43e   :  { %18759 = vpow2.f32 %v2453_v31 }
 0x43f   :  { %18761 = vpow2.f32 %v2457_v32 }
 0x440   :  { %18763 = vpow2.f32 %v2455_v33 }
 0x441   :  { %18765 = vpow2.f32 %v2459_v34 }
 0x444   :  { %v18752_v35 = vpop.eup %18751 }
 0x445   :  { %v18754_v36 = vpop.eup %18753  ;;  %v2461_v37 = vadd.f32 2.0, %v18752_v35 }
 0x446   :  { %v18756_v38 = vpop.eup %18755  ;;  %v2463_v39 = vadd.f32 2.0, %v18754_v36 }
 0x447   :  { %v18758_v40 = vpop.eup %18757  ;;  %v2469_v41 = vmul.f32 %v18752_v35, %v2461_v37  ;;  %v2462_v42 = vadd.f32 2.0, %v18756_v38 }
 0x448   :  { %v18760_v43 = vpop.eup %18759  ;;  %v2471_v44 = vmul.f32 %v18754_v36, %v2463_v39  ;;  %v2464_v45 = vadd.f32 2.0, %v18758_v40 }
 0x449   :  { %v18762_v46 = vpop.eup %18761  ;;  %v2485_v47 = vadd.f32 2.0, %v2469_v41  ;;  %v2470_v48 = vmul.f32 %v18756_v38, %v2462_v42  ;;  %v2465_v49 = vadd.f32 2.0, %v18760_v43  ;;  %v2477_v14 = vmul.f32 %v20056_v5, %v2469_v41  ;;  %v18254_v42 = vld [vmem:[#allocation10 + $0x20] ss:$12 sps:$4 sm:$0xff]  }
 0x44a   :  { %v18764_v50 = vpop.eup %18763  ;;  %v2487_v51 = vadd.f32 2.0, %v2471_v44  ;;  %v2472_v52 = vmul.f32 %v18758_v40, %v2464_v45  ;;  %v2467_v53 = vadd.f32 2.0, %v18762_v46  ;;  %v2479_v19 = vmul.f32 %v20058_v6, %v2471_v44  ;;  %v18247_v40 = vld [vmem:[#allocation10] ss:$12 sps:$4 sm:$0xff]   ;;  %v18255_v44 = vld [vmem:[#allocation10 + $0x30] ss:$12 sps:$4 sm:$0xff]  }
 0x44b   :  { %v18766_v54 = vpop.eup %18765  ;;  %v2473_v55 = vmul.f32 %v18760_v43, %v2465_v49  ;;  %v2486_v56 = vadd.f32 2.0, %v2470_v48  ;;  %18767 = vrcp.f32 %v2485_v47  ;;  %v2466_v1 = vadd.f32 2.0, %v18764_v50  ;;  %v18257_v43 = vld [vmem:[#allocation10 + $0x34] ss:$12 sps:$4 sm:$0xff]   ;;  %v18258_v45 = vld [vmem:[#allocation10 + $0x38] ss:$12 sps:$4 sm:$0xff]  }
 0x44c   :  { %v2488_v62 = vadd.f32 2.0, %v2472_v52  ;;  %v2475_v63 = vmul.f32 %v18762_v46, %v2467_v53  ;;  %18769 = vrcp.f32 %v2487_v51  ;;  %v2468_v3 = vadd.f32 2.0, %v18766_v54  ;;  %v18261_v46 = vld [vmem:[#allocation10 + $0x4c] ss:$12 sps:$4 sm:$0xff]   ;;  %v18259_v47 = vld [vmem:[#allocation10 + $0x48] ss:$12 sps:$4 sm:$0xff]  }
 0x44d   :  { %v2489_v0 = vadd.f32 2.0, %v2473_v55  ;;  %v2474_v4 = vmul.f32 %v18764_v50, %v2466_v1  ;;  %v2481_v17 = vmul.f32 %v20066_v15, %v2473_v55  ;;  %v2478_v30 = vmul.f32 %v20060_v9, %v2470_v48  ;;  %v18249_v9 = vld [vmem:[#allocation10 + $0x4] ss:$12 sps:$4 sm:$0xff]   ;;  %v18263_v50 = vld [vmem:[#allocation10 + $0x60] ss:$12 sps:$4 sm:$0xff]  }
 0x44e   :  { %v2491_v2 = vadd.f32 2.0, %v2475_v63  ;;  %v2476_v7 = vmul.f32 %v18766_v54, %v2468_v3  ;;  %v2483_v20 = vmul.f32 %v20068_v16, %v2475_v63  ;;  %v2480_v15 = vmul.f32 %v20062_v10, %v2472_v52  ;;  %3054 = vmatprep.subr.bf16.mxu0 %v18249_v9  ;;  %v18253_v10 = vld [vmem:[#allocation10 + $0x1c] ss:$12 sps:$4 sm:$0xff]   ;;  %v18265_v49 = vld [vmem:[#allocation10 + $0x64] ss:$12 sps:$4 sm:$0xff]  }
 0x44f   :  { %18771 = vrcp.f32 %v2489_v0  ;;  %v2490_v8 = vadd.f32 2.0, %v2474_v4  ;;  %v2482_v32 = vmul.f32 %v20072_v21, %v2474_v4  ;;  %v18250_v21 = vld [vmem:[#allocation10 + $0x8] ss:$12 sps:$4 sm:$0xff]   ;;  %v19632_v41 = vmov 0.0   ;;  %v18262_v48 = vld [vmem:[#allocation10 + $0x50] ss:$12 sps:$4 sm:$0xff]  }
 0x450   :  { %18773 = vrcp.f32 %v2491_v2  ;;  %v2492_v11 = vadd.f32 2.0, %v2476_v7  ;;  %v2484_v6 = vmul.f32 %v20074_v22, %v2476_v7  ;;  %17272 = vmatprep.subr.bf16.mxu1 %v19632_v41  ;;  %v18251_v22 = vld [vmem:[#allocation10 + $0x18] ss:$12 sps:$4 sm:$0xff]   ;;  %v18266_v51 = vld [vmem:[#allocation10 + $0x68] ss:$12 sps:$4 sm:$0xff]   ;;  %v19633_v2 = vmov 0  }
 0x451   :  { %18775 = vrcp.f32 %v2486_v56  ;;  %v18269_v52 = vld [vmem:[#allocation10 + $0x7c] ss:$12 sps:$4 sm:$0xff]   ;;  %v18267_v53 = vld [vmem:[#allocation10 + $0x78] ss:$12 sps:$4 sm:$0xff]   ;;  %v18270_v54 = vld [vmem:[#allocation10 + $0x80] ss:$12 sps:$4 sm:$0xff]  }
 0x452   :  { %18777 = vrcp.f32 %v2488_v62  ;;  %v18273_v55 = vld [vmem:[#allocation10 + $0x94] ss:$12 sps:$4 sm:$0xff]   ;;  %v18271_v56 = vld [vmem:[#allocation10 + $0x90] ss:$12 sps:$4 sm:$0xff]   ;;  %v18274_v62 = vld [vmem:[#allocation10 + $0x98] ss:$12 sps:$4 sm:$0xff]  }
 0x453   :  { %18779 = vrcp.f32 %v2490_v8  ;;  %v18277_v63 = vld [vmem:[#allocation10 + $0xac] ss:$12 sps:$4 sm:$0xff]   ;;  %v18275_v0 = vld [vmem:[#allocation10 + $0xa8] ss:$12 sps:$4 sm:$0xff]   ;;  %v18278_v1 = vld [vmem:[#allocation10 + $0xb0] ss:$12 sps:$4 sm:$0xff]  }
 0x454   :  { %18781 = vrcp.f32 %v2492_v11  ;;  %v15530_v7 = vld [vmem:[%s21048_s9] ss:$0 sm:$0xff] }
 0x455   :  { %v18768_v12 = vpop.eup %18767 }
 0x456   :  { %v18770_v13 = vpop.eup %18769  ;;  %v2501_v24 = vmul.f32 %v18768_v12, %v2477_v14 }
 0x457   :  { %v2503_v27 = vmul.f32 %v18770_v13, %v2479_v19 }
 0x459   :  { %v18772_v18 = vpop.eup %18771 }
 0x45a   :  { %v18774_v23 = vpop.eup %18773  ;;  %v2505_v25 = vmul.f32 %v18772_v18, %v2481_v17 }
 0x45b   :  { %v18776_v26 = vpop.eup %18775  ;;  %v2507_v28 = vmul.f32 %v18774_v23, %v2483_v20 }
 0x45c   :  { %v18778_v29 = vpop.eup %18777  ;;  %v2509_v31 = vpack.c.bf16 %v2505_v25, %v2501_v24  ;;  %v2502_v16 = vmul.f32 %v18776_v26, %v2478_v30 }
 0x45d   :  { %v18780_v5 = vpop.eup %18779  ;;  %v2511_v33 = vpack.c.bf16 %v2507_v28, %v2503_v27  ;;  %v2504_v36 = vmul.f32 %v18778_v29, %v2480_v15 }
 0x45e   :  { %v18782_v34 = vpop.eup %18781  ;;  %v2506_v35 = vmul.f32 %v18780_v5, %v2482_v32 }
 0x45f   :  { %v2508_v37 = vmul.f32 %v18782_v34, %v2484_v6 }
 0x460   :  { %v2510_v38 = vpack.c.bf16 %v2506_v35, %v2502_v16 }
 0x461   :  { %v2512_v39 = vpack.c.bf16 %v2508_v37, %v2504_v36 }
 0x462   :  { %2808 = vmatprep.mubr.bf16.mxu0 %v2510_v38 }
 0x463   :  { %2849 = vmatprep.mubr.bf16.mxu1 %v2512_v39  ;;  %2809 = vmatmul.mubr.bf16.vlgmr.msra.gmra.mrb[4].mxu0 %v2509_v31 }
 0x464   :  { %2850 = vmatmul.mubr.bf16.vlgmr.msra.gmra.mrb[4].mxu1 %v2511_v33  ;;  %3055 = vmatpush1.bf16.msra.mxu0 %v18247_v40 }
 0x465   :  { %17273 = vmatpush3.bf16.msra.mxu1 %v18250_v21  ;;  %3056 = vmatprep.subr.bf16.mxu0 %v18253_v10  ;;  %v2909_v10 = vld [vmem:[#allocation11] sm:$0x7] }
 0x466   :  { %17274 = vmatprep.subr.bf16.mxu1 %v19632_v41  ;;  %3086 = vmatprep.mubr.bf16.mxu0 %v19633_v2 }
 0x467   :  { %17288 = vmatprep.mubr.msk.bf16.mxu1 %vm19634_vm0, %v19632_v41 }
 0x468   :  { %3057 = vmatpush1.bf16.msra.mxu0 %v18251_v22  ;;  %v2918_v22 = vrot.slane %v2909_v10, %v20047_v60 }
 0x469   :  { %17275 = vmatpush3.bf16.msra.mxu1 %v18254_v42  ;;  %3058 = vmatprep.subr.bf16.mxu0 %v18257_v43  ;;  %v2914_v42 = vrot.slane %v2909_v10, %v20041_v58 }
 0x46a   :  { %17276 = vmatprep.subr.bf16.mxu1 %v19632_v41 }
 0x46c   :  { %3059 = vmatpush1.bf16.msra.mxu0 %v18255_v44 }
 0x46d   :  { %17277 = vmatpush3.bf16.msra.mxu1 %v18258_v45  ;;  %3060 = vmatprep.subr.bf16.mxu0 %v18261_v46 }
 0x46e   :  { %17278 = vmatprep.subr.bf16.mxu1 %v19632_v41 }
 0x470   :  { %3061 = vmatpush1.bf16.msra.mxu0 %v18259_v47  ;;  %v2922_v47 = vrot.slane %v2909_v10, %v20044_v59 }
 0x471   :  { %17279 = vmatpush3.bf16.msra.mxu1 %v18262_v48  ;;  %3062 = vmatprep.subr.bf16.mxu0 %v18265_v49 }
 0x472   :  { %17280 = vmatprep.subr.bf16.mxu1 %v19632_v41 }
 0x474   :  { %3063 = vmatpush1.bf16.msra.mxu0 %v18263_v50 }
 0x475   :  { %17281 = vmatpush3.bf16.msra.mxu1 %v18266_v51  ;;  %3064 = vmatprep.subr.bf16.mxu0 %v18269_v52 }
 0x476   :  { %17282 = vmatprep.subr.bf16.mxu1 %v19632_v41 }
 0x478   :  { %3065 = vmatpush1.bf16.msra.mxu0 %v18267_v53 }
 0x479   :  { %17283 = vmatpush3.bf16.msra.mxu1 %v18270_v54  ;;  %3066 = vmatprep.subr.bf16.mxu0 %v18273_v55 }
 0x47a   :  { %17284 = vmatprep.subr.bf16.mxu1 %v19632_v41 }
 0x47c   :  { %3067 = vmatpush1.bf16.msra.mxu0 %v18271_v56 }
 0x47d   :  { %17285 = vmatpush3.bf16.msra.mxu1 %v18274_v62  ;;  %3068 = vmatprep.subr.bf16.mxu0 %v18277_v63 }
 0x47e   :  { %17286 = vmatprep.subr.bf16.mxu1 %v19632_v41 }
 0x480   :  { %3069 = vmatpush1.bf16.msra.mxu0 %v18275_v0 }
 0x481   :  { %17287 = vmatpush3.bf16.msra.mxu1 %v18278_v1  ;;  %17292 = vmatprep.subr.bf16.mxu0 %v19632_v41 }
 0x482   :  { %17298 = vmatprep.subr.bf16.mxu1 %v19632_v41 }
 0x536   :  { %v16557_v3 = vpop.f32.mrb[4].mxu0 }
 0x537   :  { %v16579_v4 = vpop.f32.mrb[4].mxu1  ;;  %v16558_v8 = vpop.f32.mrb[5].mxu0 }
 0x538   :  { %v16559_v11 = vadd.f32 %v16558_v8, %v16557_v3  ;;  %v16580_v12 = vpop.f32.mrb[5].mxu1  ;;  %v16560_v13 = vpop.f32.mrb[6].mxu0 }
 0x539   :  { %v16581_v14 = vadd.f32 %v16580_v12, %v16579_v4  ;;  %v16582_v17 = vpop.f32.mrb[6].mxu1  ;;  %v16561_v18 = vpop.f32.mrb[7].mxu0 }
 0x53a   :  { %v2811_v19 = vadd.f32 %v16559_v11, %v15530_v7  ;;  %v16562_v20 = vadd.f32 %v16561_v18, %v16560_v13  ;;  %v16583_v23 = vpop.f32.mrb[7].mxu1 }
 0x53b   :  { %v16584_v24 = vadd.f32 %v16583_v23, %v16582_v17 }
 0x53c   :  { %v2852_v25 = vadd.f32 %v16581_v14, %v2811_v19  ;;  %v2814_v26 = vadd.f32 %v16562_v20, %v15530_v7 }
 0x53e   :  { %v2858_v27 = vmin.f32 %v2852_v25, 20.0  ;;  %v2855_v28 = vadd.f32 %v16584_v24, %v2814_v26 }
 0x540   :  { %v2860_v29 = vmul.f32 1.442695, %v2858_v27  ;;  %v2859_v30 = vmin.f32 %v2855_v28, 20.0 }
 0x542   :  { %18783 = vpow2.f32 %v2860_v29  ;;  %v2862_v31 = vmul.f32 1.442695, %v2859_v30 }
 0x544   :  { %18785 = vpow2.f32 %v2862_v31 }
 0x54c   :  { %v18784_v32 = vpop.eup %18783 }
 0x54d   :  { %v2864_v5 = vadd.f32 2.0, %v18784_v32 }
 0x54e   :  { %v18786_v15 = vpop.eup %18785 }
 0x54f   :  { %v2866_v33 = vmul.f32 %v18784_v32, %v2864_v5  ;;  %v2865_v6 = vadd.f32 2.0, %v18786_v15 }
 0x551   :  { %v2870_v34 = vadd.f32 2.0, %v2866_v33  ;;  %v2867_v16 = vmul.f32 %v18786_v15, %v2865_v6  ;;  %v2868_v37 = vmul.f32 %v2866_v33, %v2852_v25 }
 0x553   :  { %18787 = vrcp.f32 %v2870_v34  ;;  %v2871_v35 = vadd.f32 2.0, %v2867_v16  ;;  %v2869_v38 = vmul.f32 %v2867_v16, %v2855_v28 }
 0x555   :  { %18789 = vrcp.f32 %v2871_v35 }
 0x55d   :  { %v18788_v36 = vpop.eup %18787 }
 0x55e   :  { %v20102_v9 = vmul.f32 %v18788_v36, %v2868_v37 }
 0x55f   :  { %v18790_v39 = vpop.eup %18789 }
 0x560   :  { %v20104_v40 = vmul.f32 %v18790_v39, %v2869_v38 }
 0x562   :  { %v2876_v21 = vpack.c.bf16 %v20104_v40, %v20102_v9 }
 0x564   :  { %3087 = vmatmul.mubr.bf16.vlgmr.msra.gmra.mrb[8].mxu0 %v2876_v21  ;;  %17289 = vmatmul.mubr.bf16.vlgmr.msra.gmra.mrb[8].mxu1 %v2876_v21 }
 0x565   :  { %17294 = vmatprep.mubr.msk.bf16.mxu0 %vm19634_vm0, %v19632_v41  ;;  %17300 = vmatprep.mubr.msk.bf16.mxu1 %vm19634_vm0, %v19632_v41 }
 0x637   :  { %v3088_v43 = vpop.f32.mrb[8].mxu0  ;;  %v3131_v44 = vpop.f32.mrb[8].mxu1 }
 0x638   :  { %v3090_v45 = vpop.f32.mrb[9].mxu0  ;;  %v17290_v46 = vpop.f32.mrb[9].mxu1  ;;  %v3089_v53 = vadd.f32 %v3088_v43, %v2914_v42  ;;  %v3132_v56 = vadd.f32 %v3131_v44, %v2922_v47 }
 0x639   :  { %v3091_v48 = vadd.f32 %v3090_v45, %v2918_v22  ;;  %v3092_v49 = vpop.f32.mrb[10].mxu0  ;;  %v3134_v50 = vpop.f32.mrb[10].mxu1 }
 0x63a   :  { %v3094_v51 = vpop.f32.mrb[11].mxu0  ;;  %v17291_v52 = vpop.f32.mrb[11].mxu1  ;;  %v3093_v62 = vadd.f32 %v3092_v49, %v2914_v42  ;;  %v3138_v1 = vmul.f32 0.17677669, %v3089_v53  ;;  %v3135_v3 = vadd.f32 %v3134_v50, %v2922_v47  ;;  %v20126_v7 = vpack.c.bf16 %v3132_v56, %v3132_v56 }
 0x63b   :  { %v20115_v54 = vpack.c.bf16 %v3091_v48, %v3091_v48  ;;  %v3095_v55 = vadd.f32 %v3094_v51, %v2918_v22 }
 0x63c   :  { %v3139_v8 = vmul.f32 0.17677669, %v3093_v62  ;;  %v20129_v11 = vpack.c.bf16 %v3138_v1, %v3138_v1  ;;  %v20131_v12 = vpack.c.bf16 %v3135_v3, %v3135_v3  ;;  %v3297_v14 = vsel %vm3295_vm2, %v20126_v7, 0 }
 0x63d   :  { %v20117_v63 = vpack.c.bf16 %v3095_v55, %v3095_v55  ;;  %v3179_v0 = vsel %vm3174_vm1, %v20115_v54, 0 }
 0x63e   :  { %17293 = vmatpush3.bf16.xpose.msra.mxu0 %v3179_v0  ;;  %v20133_v13 = vpack.c.bf16 %v3139_v8, %v3139_v8  ;;  %v3343_v17 = vsel %vm3295_vm2, %v20131_v12, 0 }
 0x63f   :  { %3438 = vrot.lane.b32.xlu1 %v20117_v63, %s19635_s14  ;;  %v3225_v4 = vsel %vm3174_vm1, %v20117_v63, 0  ;;  %17304 = vmatprep.subr.bf16.mxu0 %v19632_v41 }
 0x640   :  { %17299 = vmatpush3.bf16.xpose.msra.mxu1 %v3225_v4 }
 0x641   :  { %17310 = vmatprep.subr.bf16.mxu1 %v19632_v41 }
 0x645   :  { %17295 = vmatmul.mubr.msk.bf16.vlgmr.msra.gmra.mrb[12].mxu0 %vm3174_vm1, %v20129_v11 }
 0x646   :  { %17305 = vmatpush3.bf16.msra.mxu0 %v3297_v14  ;;  %17306 = vmatprep.mubr.msk.bf16.mxu0 %vm19634_vm0, %v19632_v41 }
 0x647   :  { %17301 = vmatmul.mubr.msk.bf16.vlgmr.msra.gmra.mrb[12].mxu1 %vm3174_vm1, %v20133_v13  ;;  %17316 = vmatprep.subr.bf16.mxu0 %v19632_v41 }
 0x648   :  { %17311 = vmatpush3.bf16.msra.mxu1 %v3343_v17  ;;  %17312 = vmatprep.mubr.msk.bf16.mxu1 %vm19634_vm0, %v19632_v41 }
 0x649   :  { %17322 = vmatprep.subr.bf16.mxu1 %v19632_v41 }
 0x6b1   :  { %v3439_v36 = vpop.permute.xlu1 %3438 }
 0x6b2   :  { %v3444_v46 = vsel %vm3174_vm1, %v3439_v36, 0 }
 0x718   :  { %v3215_v18 = vpop.f32.mrb[12].mxu0 }
 0x719   :  { %v17296_v19 = vpop.f32.mrb[13].mxu0  ;;  %v3268_v20 = vsel %vm3267_vm3, %v3215_v18, -inf }
 0x71a   :  { %v3261_v23 = vpop.f32.mrb[12].mxu1  ;;  %3269 = vmax.xlane.f32.xlu0 %v3268_v20  ;;  %v3218_v24 = vpop.f32.mrb[14].mxu0 }
 0x71b   :  { %v17297_v25 = vpop.f32.mrb[15].mxu0  ;;  %v17302_v26 = vpop.f32.mrb[13].mxu1  ;;  %v3271_v29 = vsel %vm3267_vm3, %v3261_v23, -inf }
 0x71c   :  { %v3264_v27 = vpop.f32.mrb[14].mxu1 }
 0x71d   :  { %v17303_v28 = vpop.f32.mrb[15].mxu1 }
 0x71e   :  { %3272 = vmax.xlane.f32.xlu0 %v3271_v29 }
 0x734   :  { %3388 = vrot.lane.b32.xlu0 %v20115_v54, %s19635_s14 }
 0x7a7   :  { %v3270_v30 = vpop.xlane.xlu0 %3269 }
 0x7a8   :  { %v3274_v31 = vsub.f32 %v3215_v18, %v3270_v30 }
 0x7aa   :  { %v3276_v32 = vmul.f32 1.442695, %v3274_v31 }
 0x7ab   :  { %v3273_v5 = vpop.xlane.xlu0 %3272 }
 0x7ac   :  { %18791 = vpow2.f32 %v3276_v32  ;;  %v3275_v15 = vsub.f32 %v3261_v23, %v3273_v5 }
 0x7ae   :  { %v3278_v33 = vmul.f32 1.442695, %v3275_v15 }
 0x7af   :  { %v3389_v10 = vpop.permute.xlu0 %3388 }
 0x7b0   :  { %18793 = vpow2.f32 %v3278_v33  ;;  %v3394_v43 = vsel %vm3174_vm1, %v3389_v10, 0 }
 0x7b6   :  { %v18792_v6 = vpop.eup %18791 }
 0x7b7   :  { %v3280_v34 = vsel %vm3267_vm3, %v18792_v6, 0.0 }
 0x7b8   :  { %3281 = vadd.xlane.f32.xlu1 %v3280_v34 }
 0x7ba   :  { %v18794_v16 = vpop.eup %18793 }
 0x7bb   :  { %v3283_v35 = vsel %vm3267_vm3, %v18794_v16, 0.0 }
 0x7bc   :  { %3284 = vadd.xlane.f32.xlu1 %v3283_v35 }
 0x7cd   :  { %3386 = vrot.lane.b32.xlu1 %v20129_v11, %s19635_s14 }
 0x7d1   :  { %3436 = vrot.lane.b32.xlu1 %v20133_v13, %s19635_s14 }
 0x845   :  { %v3282_v37 = vpop.xlane.xlu1 %3281 }
 0x846   :  { %18795 = vrcp.f32 %v3282_v37 }
 0x849   :  { %v3285_v38 = vpop.xlane.xlu1 %3284 }
 0x84a   :  { %18797 = vrcp.f32 %v3285_v38  ;;  %v18281_v38 = vld [vmem:[#allocation13 + $0x10] sm:$0xff]  }
 0x84d   :  { %v3387_v47 = vpop.permute.xlu1 %3386 }
 0x850   :  { %v18796_v39 = vpop.eup %18795 }
 0x851   :  { %v3288_v21 = vmul.f32 %v18796_v39, %v18792_v6  ;;  %v3437_v48 = vpop.permute.xlu1 %3436 }
 0x853   :  { %v3290_v22 = vpack.c.bf16 %v3288_v21, %v3288_v21 }
 0x854   :  { %v18798_v42 = vpop.eup %18797 }
 0x855   :  { %17307 = vmatmul.mubr.msk.bf16.vlgmr.msra.gmra.mrb[16].mxu0 %vm3267_vm3, %v3290_v22  ;;  %v3289_v44 = vmul.f32 %v18798_v42, %v18794_v16  ;;  %v18279_v22 = vld [vmem:[#allocation13] sm:$0xff]  }
 0x856   :  { %17317 = vmatpush3.bf16.xpose.msra.mxu0 %v3394_v43  ;;  %17318 = vmatprep.mubr.msk.bf16.mxu0 %vm19634_vm0, %v19632_v41  ;;  %v18282_v43 = vld [vmem:[#allocation13 + $0x18] sm:$0xff]  }
 0x857   :  { %v3291_v45 = vpack.c.bf16 %v3289_v44, %v3289_v44  ;;  %17328 = vmatprep.subr.bf16.mxu0 %v19632_v41  ;;  %v18280_v44 = vld [vmem:[#allocation13 + $0x8] sm:$0xff]  }
 0x859   :  { %17313 = vmatmul.mubr.msk.bf16.vlgmr.msra.gmra.mrb[16].mxu1 %vm3267_vm3, %v3291_v45 }
 0x85a   :  { %17323 = vmatpush3.bf16.xpose.msra.mxu1 %v3444_v46  ;;  %17324 = vmatprep.mubr.msk.bf16.mxu1 %vm19634_vm0, %v19632_v41 }
 0x85b   :  { %17334 = vmatprep.subr.bf16.mxu1 %v19632_v41 }
 0x85d   :  { %17319 = vmatmul.mubr.msk.bf16.vlgmr.msra.gmra.mrb[20].mxu0 %vm3174_vm1, %v3387_v47 }
 0x85e   :  { %17330 = vmatprep.mubr.msk.bf16.mxu0 %vm19634_vm0, %v19632_v41 }
 0x861   :  { %17325 = vmatmul.mubr.msk.bf16.vlgmr.msra.gmra.mrb[20].mxu1 %vm3174_vm1, %v3437_v48 }
 0x862   :  { %17336 = vmatprep.mubr.msk.bf16.mxu1 %vm19634_vm0, %v19632_v41 }
 0x928   :  { %v20175_v49 = vpop.f32.mrb[16].mxu0 }
 0x929   :  { %v17308_v50 = vpop.f32.mrb[17].mxu0 }
 0x92a   :  { %v3336_v51 = vpop.f32.mrb[18].mxu0 }
 0x92b   :  { %v17309_v52 = vpop.f32.mrb[19].mxu0 }
 0x92c   :  { %v20177_v53 = vpop.f32.mrb[16].mxu1 }
 0x92d   :  { %v3385_v55 = vpack.c.bf16 %v20177_v53, %v20175_v49  ;;  %v17314_v56 = vpop.f32.mrb[17].mxu1 }
 0x92e   :  { %v3382_v62 = vpop.f32.mrb[18].mxu1 }
 0x92f   :  { %v17315_v0 = vpop.f32.mrb[19].mxu1 }
 0x930   :  { %v3430_v1 = vpop.f32.mrb[20].mxu0 }
 0x931   :  { %v17320_v3 = vpop.f32.mrb[21].mxu0  ;;  %v3486_v4 = vsel %vm3267_vm3, %v3430_v1, -inf }
 0x932   :  { %3487 = vmax.xlane.f32.xlu0 %v3486_v4  ;;  %v3433_v8 = vpop.f32.mrb[22].mxu0 }
 0x933   :  { %v17321_v14 = vpop.f32.mrb[23].mxu0 }
 0x934   :  { %v3480_v17 = vpop.f32.mrb[20].mxu1 }
 0x935   :  { %v17326_v18 = vpop.f32.mrb[21].mxu1  ;;  %v3489_v19 = vsel %vm3267_vm3, %v3480_v17, -inf }
 0x936   :  { %3490 = vmax.xlane.f32.xlu1 %v3489_v19  ;;  %v3483_v20 = vpop.f32.mrb[22].mxu1 }
 0x937   :  { %v17327_v23 = vpop.f32.mrb[23].mxu1 }
 0x947   :  { %3558 = vrot.lane.b32.xlu1 %v20131_v12, %s19635_s14 }
 0x94b   :  { %3721 = vrot.lane.b32.xlu1 %v20115_v54, %s19603_s2 }
 0x94f   :  { %3771 = vrot.lane.b32.xlu1 %v20117_v63, %s19603_s2 }
 0x953   :  { %3769 = vrot.lane.b32.xlu1 %v20133_v13, %s19603_s2 }
 0x9bf   :  { %v3488_v24 = vpop.xlane.xlu0 %3487 }
 0x9c0   :  { %v3492_v25 = vsub.f32 %v3430_v1, %v3488_v24 }
 0x9c2   :  { %v3494_v26 = vmul.f32 1.442695, %v3492_v25 }
 0x9c3   :  { %v3491_v27 = vpop.xlane.xlu1 %3490 }
 0x9c4   :  { %18799 = vpow2.f32 %v3494_v26  ;;  %v3493_v28 = vsub.f32 %v3480_v17, %v3491_v27 }
 0x9c6   :  { %v3496_v29 = vmul.f32 1.442695, %v3493_v28 }
 0x9c7   :  { %v3559_v30 = vpop.permute.xlu1 %3558 }
 0x9c8   :  { %18801 = vpow2.f32 %v3496_v29  ;;  %v3564_v31 = vsel %vm3295_vm2, %v3559_v30, 0 }
 0x9c9   :  { %17335 = vmatpush3.bf16.msra.mxu1 %v3564_v31 }
 0x9ca   :  { %17348 = vmatprep.subr.bf16.mxu1 %v19632_v41 }
 0x9cb   :  { %v3722_v45 = vpop.permute.xlu1 %3721 }
 0x9cc   :  { %v3727_v0 = vsel %vm3174_vm1, %v3722_v45, 0 }
 0x9ce   :  { %v18800_v32 = vpop.eup %18799 }
 0x9cf   :  { %v3498_v5 = vsel %vm3267_vm3, %v18800_v32, 0.0  ;;  %v3772_v46 = vpop.permute.xlu1 %3771 }
 0x9d0   :  { %3499 = vadd.xlane.f32.xlu0 %v3498_v5  ;;  %v3777_v47 = vsel %vm3174_vm1, %v3772_v46, 0 }
 0x9d2   :  { %v18802_v15 = vpop.eup %18801 }
 0x9d3   :  { %v3501_v33 = vsel %vm3267_vm3, %v18802_v15, 0.0  ;;  %v3770_v48 = vpop.permute.xlu1 %3769 }
 0x9d4   :  { %3502 = vadd.xlane.f32.xlu0 %v3501_v33 }
 0x9ea   :  { %3510 = vrot.lane.b32.xlu0 %v20126_v7, %s19635_s14 }
 0x9ee   :  { %3719 = vrot.lane.b32.xlu0 %v20129_v11, %s19603_s2 }
 0xa5d   :  { %v3500_v6 = vpop.xlane.xlu0 %3499 }
 0xa5e   :  { %18803 = vrcp.f32 %v3500_v6 }
 0xa61   :  { %v3503_v34 = vpop.xlane.xlu0 %3502 }
 0xa62   :  { %18805 = vrcp.f32 %v3503_v34 }
 0xa65   :  { %v3511_v16 = vpop.permute.xlu0 %3510 }
 0xa66   :  { %v3516_v35 = vsel %vm3295_vm2, %v3511_v16, 0 }
 0xa67   :  { %17329 = vmatpush3.bf16.msra.mxu0 %v3516_v35 }
 0xa68   :  { %v18804_v36 = vpop.eup %18803  ;;  %17340 = vmatprep.subr.bf16.mxu0 %v19632_v41 }
 0xa69   :  { %v3506_v37 = vmul.f32 %v18804_v36, %v18800_v32  ;;  %v3720_v8 = vpop.permute.xlu0 %3719 }
 0xa6b   :  { %v3508_v39 = vpack.c.bf16 %v3506_v37, %v3506_v37 }
 0xa6c   :  { %v18806_v21 = vpop.eup %18805 }
 0xa6d   :  { %17331 = vmatmul.mubr.msk.bf16.vlgmr.msra.gmra.mrb[24].mxu0 %vm3267_vm3, %v3508_v39  ;;  %v3507_v10 = vmul.f32 %v18806_v21, %v18802_v15 }
 0xa6e   :  { %17341 = vmatpush3.bf16.msra.mxu0 %v18281_v38  ;;  %17344 = vmatprep.mubr.msk.bf16.mxu0 %vm19634_vm0, %v19632_v41 }
 0xa6f   :  { %v3509_v42 = vpack.c.bf16 %v3507_v10, %v3507_v10  ;;  %17342 = vmatprep.subr.bf16.mxu0 %v19632_v41 }
 0xa71   :  { %17337 = vmatmul.mubr.msk.bf16.vlgmr.msra.gmra.mrb[24].mxu1 %vm3267_vm3, %v3509_v42 }
 0xa72   :  { %17349 = vmatpush3.bf16.msra.mxu1 %v18279_v22  ;;  %17352 = vmatprep.mubr.msk.bf16.mxu1 %vm19634_vm0, %v19632_v41 }
 0xa73   :  { %17350 = vmatprep.subr.bf16.mxu1 %v19632_v41  ;;  %17343 = vmatpush3.bf16.msra.mxu0 %v18282_v43 }
 0xa74   :  { %17356 = vmatprep.subr.bf16.mxu0 %v19632_v41 }
 0xa76   :  { %17351 = vmatpush3.bf16.msra.mxu1 %v18280_v44 }
 0xa77   :  { %17362 = vmatprep.subr.bf16.mxu1 %v19632_v41 }
 0xa79   :  { %17353 = vmatmul.mubr.msk.bf16.vlgmr.msra.gmra.mrb[28].mxu1 %vm3174_vm1, %v3385_v55 }
 0xa7a   :  { %17364 = vmatprep.mubr.msk.bf16.mxu1 %vm19634_vm0, %v19632_v41 }
 0xa7f   :  { %17363 = vmatpush3.bf16.xpose.msra.mxu1 %v3777_v47 }
 0xa80   :  { %17374 = vmatprep.subr.bf16.mxu1 %v19632_v41 }
 0xa86   :  { %17365 = vmatmul.mubr.msk.bf16.vlgmr.msra.gmra.mrb[32].mxu1 %vm3174_vm1, %v3770_v48 }
 0xa87   :  { %17376 = vmatprep.mubr.msk.bf16.mxu1 %vm19634_vm0, %v19632_v41 }
 0xb40   :  { %v3552_v50 = vpop.f32.mrb[24].mxu0 }
 0xb41   :  { %v17332_v51 = vpop.f32.mrb[25].mxu0 }
 0xb42   :  { %v3555_v49 = vpop.f32.mrb[26].mxu0 }
 0xb43   :  { %v17333_v52 = vpop.f32.mrb[27].mxu0 }
 0xb44   :  { %v3600_v53 = vpop.f32.mrb[24].mxu1  ;;  %v18283_v52 = vld [vmem:[#allocation13 + $0x20] sm:$0xff]  }
 0xb45   :  { %v3606_v55 = vpack.c.bf16 %v3600_v53, %v3552_v50  ;;  %v17338_v56 = vpop.f32.mrb[25].mxu1 }
 0xb46   :  { %v3603_v62 = vpop.f32.mrb[26].mxu1 }
 0xb47   :  { %v17339_v1 = vpop.f32.mrb[27].mxu1  ;;  %17345 = vmatmul.mubr.msk.bf16.vlgmr.msra.gmra.mrb[28].mxu0 %vm3174_vm1, %v3606_v55 }
 0xb48   :  { %17357 = vmatpush3.bf16.xpose.msra.mxu0 %v3727_v0  ;;  %17358 = vmatprep.mubr.msk.bf16.mxu0 %vm19634_vm0, %v19632_v41  ;;  %v18284_v0 = vld [vmem:[#allocation13 + $0x28] sm:$0xff]  }
 0xb49   :  { %17368 = vmatprep.subr.bf16.mxu0 %v19632_v41 }
 0xb4c   :  { %v3712_v3 = vpop.f32.mrb[28].mxu1 }
 0xb4d   :  { %v17354_v4 = vpop.f32.mrb[29].mxu1 }
 0xb4e   :  { %v3715_v14 = vpop.f32.mrb[30].mxu1 }
 0xb4f   :  { %v17355_v17 = vpop.f32.mrb[31].mxu1  ;;  %17359 = vmatmul.mubr.msk.bf16.vlgmr.msra.gmra.mrb[32].mxu0 %vm3174_vm1, %v3720_v8 }
 0xb50   :  { %17370 = vmatprep.mubr.msk.bf16.mxu0 %vm19634_vm0, %v19632_v41 }
 0xb59   :  { %v3813_v18 = vpop.f32.mrb[32].mxu1 }
 0xb5a   :  { %v17366_v19 = vpop.f32.mrb[33].mxu1  ;;  %v3822_v20 = vsel %vm3267_vm3, %v3813_v18, -inf }
 0xb5b   :  { %3823 = vmax.xlane.f32.xlu1 %v3822_v20  ;;  %v3816_v23 = vpop.f32.mrb[34].mxu1 }
 0xb5c   :  { %v17367_v24 = vpop.f32.mrb[35].mxu1 }
 0xb6c   :  { %3891 = vrot.lane.b32.xlu1 %v20131_v12, %s19603_s2 }
 0xb70   :  { %4000 = vrot.lane.b32.xlu1 %v20115_v54, %s19636_s4 }
 0xb74   :  { %4050 = vrot.lane.b32.xlu1 %v20117_v63, %s19636_s4 }
 0xb78   :  { %4048 = vrot.lane.b32.xlu1 %v20133_v13, %s19636_s4 }
 0xbe8   :  { %v3824_v25 = vpop.xlane.xlu1 %3823 }
 0xbe9   :  { %v3826_v28 = vsub.f32 %v3813_v18, %v3824_v25 }
 0xbeb   :  { %v3829_v29 = vmul.f32 1.442695, %v3826_v28 }
 0xbec   :  { %v3892_v26 = vpop.permute.xlu1 %3891 }
 0xbed   :  { %v3897_v27 = vsel %vm3295_vm2, %v3892_v26, 0  ;;  %18807 = vpow2.f32 %v3829_v29 }
 0xbee   :  { %17375 = vmatpush3.bf16.msra.mxu1 %v3897_v27 }
 0xbef   :  { %17388 = vmatprep.subr.bf16.mxu1 %v19632_v41 }
 0xbf0   :  { %v4001_v43 = vpop.permute.xlu1 %4000 }
 0xbf1   :  { %v4006_v45 = vsel %vm3174_vm1, %v4001_v43, 0 }
 0xbf4   :  { %v4051_v17 = vpop.permute.xlu1 %4050 }
 0xbf5   :  { %v4056_v24 = vsel %vm3174_vm1, %v4051_v17, 0 }
 0xbf7   :  { %v18808_v6 = vpop.eup %18807 }
 0xbf8   :  { %v3834_v35 = vsel %vm3267_vm3, %v18808_v6, 0.0  ;;  %v4049_v26 = vpop.permute.xlu1 %4048 }
 0xc1a   :  { %v3656_v30 = vpop.f32.mrb[28].mxu0 }
 0xc1b   :  { %v20241_v31 = vadd.f32 %v3712_v3, %v3656_v30  ;;  %v17346_v54 = vpop.f32.mrb[29].mxu0 }
 0xc1c   :  { %v3659_v32 = vpop.f32.mrb[30].mxu0 }
 0xc1d   :  { %v20243_v5 = vadd.f32 %v3715_v14, %v3659_v32  ;;  %v17347_v63 = vpop.f32.mrb[31].mxu0 }
 0xc22   :  { %v3763_v15 = vpop.f32.mrb[32].mxu0 }
 0xc23   :  { %v17360_v13 = vpop.f32.mrb[33].mxu0  ;;  %v3819_v33 = vsel %vm3267_vm3, %v3763_v15, -inf }
 0xc24   :  { %3820 = vmax.xlane.f32.xlu0 %v3819_v33  ;;  %v3766_v34 = vpop.f32.mrb[34].mxu0 }
 0xc25   :  { %v17361_v16 = vpop.f32.mrb[35].mxu0 }
 0xc28   :  { %3835 = vadd.xlane.f32.xlu0 %v3834_v35 }
 0xcb1   :  { %v3821_v36 = vpop.xlane.xlu0 %3820 }
 0xcb2   :  { %v3825_v37 = vsub.f32 %v3763_v15, %v3821_v36 }
 0xcb4   :  { %v3827_v38 = vmul.f32 1.442695, %v3825_v37 }
 0xcb5   :  { %v3836_v39 = vpop.xlane.xlu0 %3835 }
 0xcb6   :  { %18809 = vpow2.f32 %v3827_v38 }
 0xcb7   :  { %18811 = vrcp.f32 %v3836_v39 }
 0xcc0   :  { %v18810_v21 = vpop.eup %18809 }
 0xcc1   :  { %v18812_v10 = vpop.eup %18811  ;;  %v3831_v22 = vsel %vm3267_vm3, %v18810_v21, 0.0 }
 0xcc2   :  { %3832 = vadd.xlane.f32.xlu0 %v3831_v22  ;;  %v3840_v42 = vmul.f32 %v18812_v10, %v18808_v6 }
 0xcc4   :  { %v3842_v44 = vpack.c.bf16 %v3840_v42, %v3840_v42 }
 0xcc6   :  { %17377 = vmatmul.mubr.msk.bf16.vlgmr.msra.gmra.mrb[36].mxu1 %vm3267_vm3, %v3842_v44 }
 0xcc7   :  { %17389 = vmatpush3.bf16.xpose.msra.mxu1 %v4006_v45  ;;  %17390 = vmatprep.mubr.msk.bf16.mxu1 %vm19634_vm0, %v19632_v41 }
 0xcc8   :  { %17400 = vmatprep.subr.bf16.mxu1 %v19632_v41 }
 0xcd8   :  { %3843 = vrot.lane.b32.xlu0 %v20126_v7, %s19603_s2 }
 0xcdc   :  { %3998 = vrot.lane.b32.xlu0 %v20129_v11, %s19636_s4 }
 0xd4f   :  { %v3833_v46 = vpop.xlane.xlu0 %3832 }
 0xd50   :  { %18813 = vrcp.f32 %v3833_v46 }
 0xd53   :  { %v3844_v47 = vpop.permute.xlu0 %3843 }
 0xd54   :  { %v3849_v48 = vsel %vm3295_vm2, %v3844_v47, 0 }
 0xd55   :  { %17369 = vmatpush3.bf16.msra.mxu0 %v3849_v48 }
 0xd56   :  { %17380 = vmatprep.subr.bf16.mxu0 %v19632_v41 }
 0xd57   :  { %v3999_v50 = vpop.permute.xlu0 %3998 }
 0xd58   :  { %17391 = vmatmul.mubr.msk.bf16.vlgmr.msra.gmra.mrb[40].mxu1 %vm3174_vm1, %v3999_v50 }
 0xd59   :  { %17402 = vmatprep.mubr.msk.bf16.mxu1 %vm19634_vm0, %v19632_v41 }
 0xd5a   :  { %v18814_v51 = vpop.eup %18813 }
 0xd5b   :  { %v3839_v49 = vmul.f32 %v18814_v51, %v18810_v21  ;;  %v18285_v51 = vld [vmem:[#allocation13 + $0x30] sm:$0xff]  }
 0xd5d   :  { %v3841_v53 = vpack.c.bf16 %v3839_v49, %v3839_v49  ;;  %v18286_v49 = vld [vmem:[#allocation13 + $0x38] sm:$0xff]  }
 0xd5f   :  { %17371 = vmatmul.mubr.msk.bf16.vlgmr.msra.gmra.mrb[36].mxu0 %vm3267_vm3, %v3841_v53 }
 0xd60   :  { %17381 = vmatpush3.bf16.msra.mxu0 %v18283_v52  ;;  %17384 = vmatprep.mubr.msk.bf16.mxu0 %vm19634_vm0, %v19632_v41 }
 0xd61   :  { %17382 = vmatprep.subr.bf16.mxu0 %v19632_v41 }
 0xd64   :  { %17383 = vmatpush3.bf16.msra.mxu0 %v18284_v0 }
 0xd65   :  { %17394 = vmatprep.subr.bf16.mxu0 %v19632_v41 }
 0xd99   :  { %v3933_v11 = vpop.f32.mrb[36].mxu1 }
 0xd9a   :  { %v17378_v55 = vpop.f32.mrb[37].mxu1 }
 0xd9b   :  { %v3936_v56 = vpop.f32.mrb[38].mxu1 }
 0xd9c   :  { %v17379_v62 = vpop.f32.mrb[39].mxu1 }
 0xe2b   :  { %v4042_v1 = vpop.f32.mrb[40].mxu1 }
 0xe2c   :  { %v17392_v3 = vpop.f32.mrb[41].mxu1  ;;  %v4098_v4 = vsel %vm3267_vm3, %v4042_v1, -inf }
 0xe2d   :  { %4099 = vmax.xlane.f32.xlu0 %v4098_v4  ;;  %v4045_v8 = vpop.f32.mrb[42].mxu1 }
 0xe2e   :  { %v17393_v14 = vpop.f32.mrb[43].mxu1  ;;  %v15621_v8 = vld [vmem:[%s21049_s7] ss:$0 sm:$0xff] }
 0xe32   :  { %v3885_v18 = vpop.f32.mrb[36].mxu0 }
 0xe33   :  { %v3939_v19 = vpack.c.bf16 %v3933_v11, %v3885_v18  ;;  %v17372_v20 = vpop.f32.mrb[37].mxu0 }
 0xe34   :  { %v3888_v23 = vpop.f32.mrb[38].mxu0 }
 0xe35   :  { %v17373_v25 = vpop.f32.mrb[39].mxu0  ;;  %17385 = vmatmul.mubr.msk.bf16.vlgmr.msra.gmra.mrb[40].mxu0 %vm3174_vm1, %v3939_v19 }
 0xe36   :  { %17395 = vmatpush3.bf16.xpose.msra.mxu0 %v4056_v24  ;;  %17396 = vmatprep.mubr.msk.bf16.mxu0 %vm19634_vm0, %v19632_v41 }
 0xe37   :  { %17406 = vmatprep.subr.bf16.mxu0 %v19632_v41 }
 0xe3d   :  { %17397 = vmatmul.mubr.msk.bf16.vlgmr.msra.gmra.mrb[44].mxu0 %vm3174_vm1, %v4049_v26 }
 0xe3e   :  { %17408 = vmatprep.mubr.msk.bf16.mxu0 %vm19634_vm0, %v19632_v41 }
 0xeba   :  { %v4100_v27 = vpop.xlane.xlu0 %4099 }
 0xebb   :  { %v4104_v28 = vsub.f32 %v4042_v1, %v4100_v27 }
 0xebd   :  { %v4106_v29 = vmul.f32 1.442695, %v4104_v28 }
 0xebf   :  { %18815 = vpow2.f32 %v4106_v29  ;;  %v4336_v29 = vld [vmem:[#allocation17] sm:$0xff] }
 0xec9   :  { %v18816_v30 = vpop.eup %18815 }
 0xeca   :  { %v4110_v54 = vsel %vm3267_vm3, %v18816_v30, 0.0 }
 0xecb   :  { %4111 = vadd.xlane.f32.xlu0 %v4110_v54  ;;  %v4337_v54 = vld [vmem:[#allocation17 + $0x8] sm:$0xff] }
 0xf08   :  { %v3989_v32 = vpop.f32.mrb[40].mxu0 }
 0xf09   :  { %v3996_v63 = vadd.f32 %v3989_v32, %v20241_v31  ;;  %v17386_v15 = vpop.f32.mrb[41].mxu0  ;;  %v4345_v32 = vld [vmem:[#allocation17 + $0x48] sm:$0xff] }
 0xf0a   :  { %v3992_v13 = vpop.f32.mrb[42].mxu0  ;;  %v15626_v15 = vcombine.low %v4337_v54, %v4345_v32 }
 0xf0b   :  { %v3997_v33 = vadd.f32 %v3992_v13, %v20243_v5  ;;  %v17387_v6 = vpop.f32.mrb[43].mxu0  ;;  %v15627_v13 = vcombine.high %v4337_v54, %v4345_v32  ;;  %v4456_v54 = vld [vmem:[#allocation17 + $0x3c0] sm:$0xff] }
 0xf0c   :  { %v4353_v6 = vld [vmem:[#allocation17 + $0x88] sm:$0xff] }
 0xf10   :  { %v4092_v34 = vpop.f32.mrb[44].mxu0 }
 0xf11   :  { %v17398_v16 = vpop.f32.mrb[45].mxu0  ;;  %v4101_v35 = vsel %vm3267_vm3, %v4092_v34, -inf }
 0xf12   :  { %4102 = vmax.xlane.f32.xlu1 %v4101_v35  ;;  %v4095_v36 = vpop.f32.mrb[46].mxu0  ;;  %v4361_v16 = vld [vmem:[#allocation17 + $0xc8] sm:$0xff] }
 0xf13   :  { %v17399_v37 = vpop.f32.mrb[47].mxu0  ;;  %v15642_v36 = vcombine.low %v4353_v6, %v4361_v16 }
 0xf14   :  { %v15643_v37 = vcombine.high %v4353_v6, %v4361_v16  ;;  %v4346_v6 = vld [vmem:[#allocation17 + $0x50] sm:$0xff] }
 0xf23   :  { %4170 = vrot.lane.b32.xlu1 %v20131_v12, %s19636_s4 }
 0xf58   :  { %v4112_v42 = vpop.xlane.xlu0 %4111 }
 0xf9f   :  { %v4103_v38 = vpop.xlane.xlu1 %4102 }
 0xfa0   :  { %v4105_v39 = vsub.f32 %v4092_v34, %v4103_v38  ;;  %v4368_v38 = vld [vmem:[#allocation17 + $0x100] sm:$0xff] }
 0xfa2   :  { %v4108_v21 = vmul.f32 1.442695, %v4105_v39  ;;  %v4376_v39 = vld [vmem:[#allocation17 + $0x140] sm:$0xff] }
 0xfa3   :  { %v4171_v10 = vpop.permute.xlu1 %4170 }
 0xfa4   :  { %18817 = vpow2.f32 %v4108_v21  ;;  %v4176_v31 = vsel %vm3295_vm2, %v4171_v10, 0  ;;  %v4369_v21 = vld [vmem:[#allocation17 + $0x108] sm:$0xff]  ;;  %v15657_v10 = vcombine.high %v4368_v38, %v4376_v39 }
 0xfa5   :  { %17407 = vmatpush3.bf16.msra.mxu0 %v4176_v31  ;;  %18819 = vrcp.f32 %v4112_v42  ;;  %v4377_v31 = vld [vmem:[#allocation17 + $0x148] sm:$0xff] }
 0xfa6   :  { %v15659_v42 = vcombine.high %v4369_v21, %v4377_v31 }
 0xfae   :  { %v18818_v5 = vpop.eup %18817 }
 0xfaf   :  { %v4113_v22 = vsel %vm3267_vm3, %v18818_v5, 0.0  ;;  %v18820_v43 = vpop.eup %18819 }
 0xfb0   :  { %4114 = vadd.xlane.f32.xlu0 %v4113_v22  ;;  %v4118_v12 = vmul.f32 %v18820_v43, %v18816_v30  ;;  %v4344_v30 = vld [vmem:[#allocation17 + $0x40] sm:$0xff]  ;;  %v15658_v22 = vcombine.low %v4369_v21, %v4377_v31 }
 0xfb1   :  { %v4384_v43 = vld [vmem:[#allocation17 + $0x180] sm:$0xff] }
 0xfb2   :  { %v4120_v47 = vpack.c.bf16 %v4118_v12, %v4118_v12  ;;  %v4385_v12 = vld [vmem:[#allocation17 + $0x188] sm:$0xff] }
 0xfc6   :  { %4122 = vrot.lane.b32.xlu0 %v20126_v7, %s19636_s4 }
0x103d   :  { %v4115_v44 = vpop.xlane.xlu0 %4114 }
0x103e   :  { %18821 = vrcp.f32 %v4115_v44  ;;  %v4392_v44 = vld [vmem:[#allocation17 + $0x1c0] sm:$0xff] }
0x1041   :  { %v4123_v45 = vpop.permute.xlu0 %4122 }
0x1042   :  { %v4128_v46 = vsel %vm3295_vm2, %v4123_v45, 0  ;;  %v15673_v45 = vcombine.high %v4384_v43, %v4392_v44 }
0x1043   :  { %17401 = vmatpush3.bf16.msra.mxu1 %v4128_v46  ;;  %v4393_v46 = vld [vmem:[#allocation17 + $0x1c8] sm:$0xff] }
0x1044   :  { %17412 = vmatprep.subr.bf16.mxu1 %v19632_v41 }
0x1046   :  { %17403 = vmatmul.mubr.msk.bf16.vlgmr.msra.gmra.mrb[44].mxu1 %vm3267_vm3, %v4120_v47  ;;  %v15672_v47 = vcombine.low %v4384_v43, %v4392_v44 }
0x1047   :  { %17416 = vmatprep.mubr.msk.bf16.mxu1 %vm19634_vm0, %v19632_v41  ;;  %17413 = vmatpush3.bf16.msra.mxu1 %v18285_v51  ;;  %v4408_v51 = vld [vmem:[#allocation17 + $0x240] sm:$0xff] }
0x1048   :  { %v18822_v48 = vpop.eup %18821  ;;  %17414 = vmatprep.subr.bf16.mxu1 %v19632_v41 }
0x1049   :  { %v4119_v7 = vmul.f32 %v18822_v48, %v18818_v5  ;;  %v15656_v5 = vcombine.low %v4368_v38, %v4376_v39  ;;  %v15674_v48 = vcombine.low %v4385_v12, %v4393_v46 }
0x104b   :  { %v4121_v50 = vpack.c.bf16 %v4119_v7, %v4119_v7  ;;  %17415 = vmatpush3.bf16.msra.mxu1 %v18286_v49  ;;  %v15675_v7 = vcombine.high %v4385_v12, %v4393_v46  ;;  %v4401_v49 = vld [vmem:[#allocation17 + $0x208] sm:$0xff] }
0x104c   :  { %5231 = vmatprep.subr.bf16.mxu1 %v15627_v13 }
0x104d   :  { %17409 = vmatmul.mubr.msk.bf16.vlgmr.msra.gmra.mrb[48].mxu0 %vm3267_vm3, %v4121_v50  ;;  %v4400_v50 = vld [vmem:[#allocation17 + $0x200] sm:$0xff] }
0x104e   :  { %5220 = vmatprep.mubr.bf16.mxu0 %v19633_v2 }
0x1119   :  { %v4164_v52 = vpop.f32.mrb[44].mxu1 }
0x111a   :  { %v17404_v53 = vpop.f32.mrb[45].mxu1 }
0x111b   :  { %v4167_v11 = vpop.f32.mrb[46].mxu1  ;;  %v4409_v53 = vld [vmem:[#allocation17 + $0x248] sm:$0xff] }
0x111c   :  { %v17405_v55 = vpop.f32.mrb[47].mxu1  ;;  %v15688_v11 = vcombine.low %v4400_v50, %v4408_v51 }
0x111d   :  { %v15690_v55 = vcombine.low %v4401_v49, %v4409_v53 }
0x1120   :  { %v4212_v56 = vpop.f32.mrb[48].mxu0 }
0x1121   :  { %v4218_v62 = vpack.c.bf16 %v4212_v56, %v4164_v52  ;;  %v17410_v0 = vpop.f32.mrb[49].mxu0  ;;  %v15689_v52 = vcombine.high %v4400_v50, %v4408_v51  ;;  %v15691_v56 = vcombine.high %v4401_v49, %v4409_v53 }
0x1122   :  { %v4215_v1 = vpop.f32.mrb[50].mxu0  ;;  %v4424_v0 = vld [vmem:[#allocation17 + $0x2c0] sm:$0xff] }
0x1123   :  { %v17411_v3 = vpop.f32.mrb[51].mxu0  ;;  %17417 = vmatmul.mubr.msk.bf16.vlgmr.msra.gmra.mrb[48].mxu1 %vm3174_vm1, %v4218_v62  ;;  %v4416_v62 = vld [vmem:[#allocation17 + $0x280] sm:$0xff]  ;;  %v4417_v1 = vld [vmem:[#allocation17 + $0x288] sm:$0xff] }
0x1124   :  { %5263 = vmatprep.mubr.bf16.mxu1 %v19633_v2  ;;  %5232 = vmatpush1.bf16.msra.mxu1 %v15626_v15  ;;  %v15705_v3 = vcombine.high %v4416_v62, %v4424_v0 }
0x1125   :  { %5233 = vmatprep.subr.bf16.mxu1 %v15643_v37 }
0x1128   :  { %5234 = vmatpush1.bf16.msra.mxu1 %v15642_v36  ;;  %v4347_v36 = vld [vmem:[#allocation17 + $0x58] sm:$0xff] }
0x1129   :  { %5235 = vmatprep.subr.bf16.mxu1 %v15659_v42 }
0x112c   :  { %5236 = vmatpush1.bf16.msra.mxu1 %v15658_v22 }
0x112d   :  { %5237 = vmatprep.subr.bf16.mxu1 %v15675_v7 }
0x1130   :  { %5238 = vmatpush1.bf16.msra.mxu1 %v15674_v48 }
0x1131   :  { %5239 = vmatprep.subr.bf16.mxu1 %v15691_v56 }
0x1134   :  { %5240 = vmatpush1.bf16.msra.mxu1 %v15690_v55 }
0x11f6   :  { %v4268_v4 = vpop.f32.mrb[48].mxu1 }
0x11f7   :  { %v4275_v14 = vadd.f32 %v4268_v4, %v3996_v63  ;;  %v17418_v17 = vpop.f32.mrb[49].mxu1  ;;  %v15624_v63 = vcombine.low %v4336_v29, %v4344_v30  ;;  %v4425_v4 = vld [vmem:[#allocation17 + $0x2c8] sm:$0xff] }
0x11f8   :  { %v4271_v18 = vpop.f32.mrb[50].mxu1  ;;  %v15707_v17 = vcombine.high %v4417_v1, %v4425_v4 }
0x11f9   :  { %v4284_v19 = vadd.f32 %v15621_v8, %v4275_v14  ;;  %v4276_v20 = vadd.f32 %v4271_v18, %v3997_v33  ;;  %v17419_v23 = vpop.f32.mrb[51].mxu1  ;;  %v4360_v33 = vld [vmem:[#allocation17 + $0xc0] sm:$0xff]  ;;  %v15706_v14 = vcombine.low %v4417_v1, %v4425_v4  ;;  %v4362_v4 = vld [vmem:[#allocation17 + $0xd0] sm:$0xff] }
0x11fa   :  { %5241 = vmatprep.subr.bf16.mxu1 %v15707_v17  ;;  %v4432_v18 = vld [vmem:[#allocation17 + $0x300] sm:$0xff] }
0x11fb   :  { %v4285_v24 = vadd.f32 %v15621_v8, %v4276_v20  ;;  %v20298_v25 = vadd.f32 %v4284_v19, %v20102_v9  ;;  %v15625_v9 = vcombine.high %v4336_v29, %v4344_v30  ;;  %v15704_v8 = vcombine.low %v4416_v62, %v4424_v0  ;;  %v4440_v19 = vld [vmem:[#allocation17 + $0x340] sm:$0xff]  ;;  %v4433_v20 = vld [vmem:[#allocation17 + $0x308] sm:$0xff]  ;;  %5242 = vmatpush1.bf16.msra.mxu1 %v15706_v14  ;;  %v15623_v0 = vld [vmem:[#allocation16] ss:$0 sm:$0xff] }
0x11fc   :  { %v15721_v23 = vcombine.high %v4432_v18, %v4440_v19  ;;  %v4448_v30 = vld [vmem:[#allocation17 + $0x380] sm:$0xff]  ;;  %v4363_v14 = vld [vmem:[#allocation17 + $0xd8] sm:$0xff] }
0x11fd   :  { %4290 = vadd.xlane.f32.xlu1 %v20298_v25  ;;  %v20302_v26 = vadd.f32 %v4285_v24, %v20104_v40  ;;  %v4297_v28 = vmul.f32 %v20298_v25, %v20298_v25  ;;  %5188 = vmatprep.subr.bf16.mxu0 %v15625_v9  ;;  %v4352_v40 = vld [vmem:[#allocation17 + $0x80] sm:$0xff]  ;;  %v4441_v24 = vld [vmem:[#allocation17 + $0x348] sm:$0xff]  ;;  %v15737_v32 = vcombine.high %v4448_v30, %v4456_v54 }
0x11fe   :  { %5189 = vmatpush1.bf16.msra.mxu0 %v15624_v63  ;;  %v15641_v34 = vcombine.high %v4352_v40, %v4360_v33  ;;  %v15640_v35 = vcombine.low %v4352_v40, %v4360_v33  ;;  %v15723_v29 = vcombine.high %v4433_v20, %v4441_v24  ;;  %v4449_v9 = vld [vmem:[#allocation17 + $0x388] sm:$0xff]  ;;  %v15736_v15 = vcombine.low %v4448_v30, %v4456_v54  ;;  %v4338_v33 = vld [vmem:[#allocation17 + $0x10] sm:$0xff] }
0x11ff   :  { %4292 = vadd.xlane.f32.xlu0 %v20302_v26  ;;  %v4298_v27 = vmul.f32 %v20302_v26, %v20302_v26  ;;  %v4457_v63 = vld [vmem:[#allocation17 + $0x3c8] sm:$0xff]  ;;  %v15628_v16 = vcombine.low %v4338_v33, %v4346_v6 }
0x1200   :  { %5190 = vmatprep.subr.bf16.mxu0 %v15641_v34  ;;  %5243 = vmatprep.subr.bf16.mxu1 %v15723_v29  ;;  %v15738_v13 = vcombine.low %v4449_v9, %v4457_v63  ;;  %v15739_v40 = vcombine.high %v4449_v9, %v4457_v63  ;;  %v4339_v34 = vld [vmem:[#allocation17 + $0x18] sm:$0xff]  ;;  %v4386_v9 = vld [vmem:[#allocation17 + $0x190] sm:$0xff] }
0x1201   :  { %4301 = vadd.xlane.f32.xlu1 %v4298_v27  ;;  %v15720_v27 = vcombine.low %v4432_v18, %v4440_v19  ;;  %v15630_v37 = vcombine.low %v4339_v34, %v4347_v36  ;;  %v15631_v38 = vcombine.high %v4339_v34, %v4347_v36  ;;  %v4387_v63 = vld [vmem:[#allocation17 + $0x198] sm:$0xff]  ;;  %v4402_v34 = vld [vmem:[#allocation17 + $0x210] sm:$0xff] }
0x1202   :  { %5191 = vmatpush1.bf16.msra.mxu0 %v15640_v35  ;;  %v15629_v35 = vcombine.high %v4338_v33, %v4346_v6  ;;  %v4411_v36 = vld [vmem:[#allocation17 + $0x258] sm:$0xff] }
0x1203   :  { %4299 = vadd.xlane.f32.xlu0 %v4297_v28  ;;  %5192 = vmatprep.subr.bf16.mxu0 %v15657_v10  ;;  %v15722_v28 = vcombine.low %v4433_v20, %v4441_v24  ;;  %v4370_v20 = vld [vmem:[#allocation17 + $0x110] sm:$0xff]  ;;  %v4371_v24 = vld [vmem:[#allocation17 + $0x118] sm:$0xff] }
0x1205   :  { %5244 = vmatpush1.bf16.msra.mxu1 %v15722_v28 }
0x1206   :  { %5193 = vmatpush1.bf16.msra.mxu0 %v15656_v5  ;;  %5245 = vmatprep.subr.bf16.mxu1 %v15739_v40 }
0x1207   :  { %5194 = vmatprep.subr.bf16.mxu0 %v15673_v45 }
0x1209   :  { %5246 = vmatpush1.bf16.msra.mxu1 %v15738_v13 }
0x120a   :  { %5195 = vmatpush1.bf16.msra.mxu0 %v15672_v47  ;;  %5317 = vmatprep.subr.bf16.mxu1 %v15631_v38 }
0x120b   :  { %5196 = vmatprep.subr.bf16.mxu0 %v15689_v52  ;;  %v15622_v52 = vld [vmem:[#allocation14] ss:$0 sm:$0xff] }
0x120e   :  { %5197 = vmatpush1.bf16.msra.mxu0 %v15688_v11 }
0x120f   :  { %5198 = vmatprep.subr.bf16.mxu0 %v15705_v3  ;;  %v4354_v3 = vld [vmem:[#allocation17 + $0x90] sm:$0xff] }
0x1210   :  { %v15645_v19 = vcombine.high %v4354_v3, %v4362_v4  ;;  %v15644_v28 = vcombine.low %v4354_v3, %v4362_v4  ;;  %v4340_v3 = vld [vmem:[#allocation17 + $0x20] sm:$0xff] }
0x1211   :  { %v4348_v4 = vld [vmem:[#allocation17 + $0x60] sm:$0xff] }
0x1212   :  { %5199 = vmatpush1.bf16.msra.mxu0 %v15704_v8  ;;  %v4355_v8 = vld [vmem:[#allocation17 + $0x98] sm:$0xff] }
0x1213   :  { %5200 = vmatprep.subr.bf16.mxu0 %v15721_v23  ;;  %v4378_v23 = vld [vmem:[#allocation17 + $0x150] sm:$0xff]  ;;  %v15646_v29 = vcombine.low %v4355_v8, %v4363_v14 }
0x1214   :  { %v15661_v30 = vcombine.high %v4370_v20, %v4378_v23  ;;  %v15660_v13 = vcombine.low %v4370_v20, %v4378_v23  ;;  %v15633_v20 = vcombine.high %v4340_v3, %v4348_v4 }
0x1216   :  { %5201 = vmatpush1.bf16.msra.mxu0 %v15720_v27  ;;  %v4379_v27 = vld [vmem:[#allocation17 + $0x158] sm:$0xff] }
0x1217   :  { %5202 = vmatprep.subr.bf16.mxu0 %v15737_v32  ;;  %v15663_v54 = vcombine.high %v4371_v24, %v4379_v27  ;;  %v4394_v32 = vld [vmem:[#allocation17 + $0x1d0] sm:$0xff]  ;;  %v15662_v40 = vcombine.low %v4371_v24, %v4379_v27  ;;  %v4356_v24 = vld [vmem:[#allocation17 + $0xa0] sm:$0xff] }
0x1218   :  { %v15677_v33 = vcombine.high %v4386_v9, %v4394_v32  ;;  %v4364_v27 = vld [vmem:[#allocation17 + $0xe0] sm:$0xff] }
0x121a   :  { %5203 = vmatpush1.bf16.msra.mxu0 %v15736_v15  ;;  %v4395_v15 = vld [vmem:[#allocation17 + $0x1d8] sm:$0xff] }
0x121b   :  { %5274 = vmatprep.subr.bf16.mxu0 %v15629_v35  ;;  %v15679_v6 = vcombine.high %v4387_v63, %v4395_v15  ;;  %v4403_v35 = vld [vmem:[#allocation17 + $0x218] sm:$0xff]  ;;  %v15678_v38 = vcombine.low %v4387_v63, %v4395_v15  ;;  %v4372_v63 = vld [vmem:[#allocation17 + $0x120] sm:$0xff] }
0x121c   :  { %v4380_v15 = vld [vmem:[#allocation17 + $0x160] sm:$0xff] }
0x128a   :  { %v4291_v39 = vpop.xlane.xlu1 %4290 }
0x128b   :  { %v4295_v10 = vmul.f32 0.0078125, %v4291_v39 }
0x128c   :  { %v4293_v21 = vpop.xlane.xlu0 %4292 }
0x128d   :  { %v4296_v31 = vmul.f32 0.0078125, %v4293_v21  ;;  %v4305_v44 = vmul.f32 %v4295_v10, %v4295_v10  ;;  %v4311_v53 = vsub.f32 %v20298_v25, %v4295_v10  ;;  %v15647_v25 = vcombine.high %v4355_v8, %v4363_v14  ;;  %v4418_v10 = vld [vmem:[#allocation17 + $0x290] sm:$0xff]  ;;  %v4341_v8 = vld [vmem:[#allocation17 + $0x28] sm:$0xff] }
0x128e   :  { %v4302_v5 = vpop.xlane.xlu1 %4301  ;;  %v15695_v21 = vcombine.high %v4403_v35, %v4411_v36  ;;  %v4349_v14 = vld [vmem:[#allocation17 + $0x68] sm:$0xff] }
0x128f   :  { %v4306_v22 = vmul.f32 %v4296_v31, %v4296_v31  ;;  %v4304_v42 = vmul.f32 0.0078125, %v4302_v5  ;;  %v4312_v51 = vsub.f32 %v20302_v26, %v4296_v31  ;;  %v4426_v31 = vld [vmem:[#allocation17 + $0x2d0] sm:$0xff]  ;;  %v4419_v5 = vld [vmem:[#allocation17 + $0x298] sm:$0xff]  ;;  %v15635_v23 = vcombine.high %v4341_v8, %v4349_v14 }
0x1290   :  { %v4300_v43 = vpop.xlane.xlu0 %4299 }
0x1291   :  { %v4308_v12 = vsub.f32 %v4304_v42, %v4306_v22  ;;  %v4303_v45 = vmul.f32 0.0078125, %v4300_v43  ;;  %v4427_v22 = vld [vmem:[#allocation17 + $0x2d8] sm:$0xff]  ;;  %v15694_v43 = vcombine.low %v4403_v35, %v4411_v36  ;;  %v4388_v35 = vld [vmem:[#allocation17 + $0x1a0] sm:$0xff] }
0x1292   :  { %v4396_v36 = vld [vmem:[#allocation17 + $0x1e0] sm:$0xff] }
0x1293   :  { %v4310_v46 = vmax.f32 %v4308_v12, 0.0  ;;  %v4307_v47 = vsub.f32 %v4303_v45, %v4305_v44  ;;  %v15709_v44 = vcombine.high %v4418_v10, %v4426_v31  ;;  %v15711_v12 = vcombine.high %v4419_v5, %v4427_v22  ;;  %v4434_v45 = vld [vmem:[#allocation17 + $0x310] sm:$0xff] }
0x1295   :  { %v4314_v48 = vadd.f32 1e-05, %v4310_v46  ;;  %v4309_v7 = vmax.f32 %v4307_v47, 0.0  ;;  %v4442_v46 = vld [vmem:[#allocation17 + $0x350] sm:$0xff]  ;;  %v4435_v47 = vld [vmem:[#allocation17 + $0x318] sm:$0xff] }
0x1297   :  { %18823 = vrsqrt.f32 %v4314_v48  ;;  %v4313_v50 = vadd.f32 1e-05, %v4309_v7  ;;  %v4443_v48 = vld [vmem:[#allocation17 + $0x358] sm:$0xff]  ;;  %v15708_v7 = vcombine.low %v4418_v10, %v4426_v31  ;;  %v15681_v10 = vcombine.high %v4388_v35, %v4396_v36 }
0x1299   :  { %18825 = vrsqrt.f32 %v4313_v50  ;;  %v15710_v50 = vcombine.low %v4419_v5, %v4427_v22  ;;  %v4404_v5 = vld [vmem:[#allocation17 + $0x220] sm:$0xff] }
0x129a   :  { %v4412_v22 = vld [vmem:[#allocation17 + $0x260] sm:$0xff] }
0x12a1   :  { %v18824_v49 = vpop.eup %18823 }
0x12a2   :  { %v4318_v11 = vmul.f32 %v18824_v49, %v4312_v51  ;;  %v15725_v51 = vcombine.high %v4434_v45, %v4442_v46  ;;  %v15727_v49 = vcombine.high %v4435_v47, %v4443_v48 }
0x12a3   :  { %v18826_v55 = vpop.eup %18825 }
0x12a4   :  { %v4326_v56 = vmul.f32 %v15622_v52, %v4318_v11  ;;  %v4317_v62 = vmul.f32 %v18826_v55, %v4311_v53  ;;  %v4458_v53 = vld [vmem:[#allocation17 + $0x3d0] sm:$0xff]  ;;  %v4451_v11 = vld [vmem:[#allocation17 + $0x398] sm:$0xff] }
0x12a5   :  { %v4459_v55 = vld [vmem:[#allocation17 + $0x3d8] sm:$0xff] }
0x12a6   :  { %v4325_v1 = vmul.f32 %v15622_v52, %v4317_v62  ;;  %v20311_v17 = vadd.f32 %v15623_v0, %v4326_v56  ;;  %v4450_v52 = vld [vmem:[#allocation17 + $0x390] sm:$0xff]  ;;  %v15724_v56 = vcombine.low %v4434_v45, %v4442_v46  ;;  %v15726_v62 = vcombine.low %v4435_v47, %v4443_v48  ;;  %v4420_v47 = vld [vmem:[#allocation17 + $0x2a0] sm:$0xff] }
0x12a7   :  { %v15697_v45 = vcombine.high %v4404_v5, %v4412_v22  ;;  %v4428_v48 = vld [vmem:[#allocation17 + $0x2e0] sm:$0xff] }
0x12a8   :  { %v20313_v18 = vadd.f32 %v15623_v0, %v4325_v1  ;;  %v15741_v0 = vcombine.high %v4450_v52, %v4458_v53  ;;  %v15743_v1 = vcombine.high %v4451_v11, %v4459_v55 }
0x12aa   :  { %v20317_v26 = vpack.c.bf16 %v20311_v17, %v20313_v18 }
0x12ac   :  { %5221 = vmatmul.mubr.bf16.vlgmr.msra.gmra.mrb[52].mxu0 %v20317_v26  ;;  %5264 = vmatmul.mubr.bf16.vlgmr.msra.gmra.mrb[52].mxu1 %v20317_v26 }
0x12ad   :  { %5275 = vmatpush1.bf16.msra.mxu0 %v15628_v16  ;;  %5318 = vmatpush1.bf16.msra.mxu1 %v15630_v37  ;;  %v4410_v16 = vld [vmem:[#allocation17 + $0x250] sm:$0xff]  ;;  %v15676_v37 = vcombine.low %v4386_v9, %v4394_v32  ;;  %v15649_v9 = vcombine.high %v4356_v24, %v4364_v27 }
0x12ae   :  { %5276 = vmatprep.subr.bf16.mxu0 %v15645_v19  ;;  %5319 = vmatprep.subr.bf16.mxu1 %v15647_v25  ;;  %v15693_v39 = vcombine.high %v4402_v34, %v4410_v16  ;;  %v15692_v42 = vcombine.low %v4402_v34, %v4410_v16  ;;  %v15740_v19 = vcombine.low %v4450_v52, %v4458_v53 }
0x12af   :  { %5306 = vmatprep.mubr.bf16.mxu0 %v19633_v2  ;;  %5349 = vmatprep.mubr.bf16.mxu1 %v19633_v2  ;;  %v15742_v25 = vcombine.low %v4451_v11, %v4459_v55  ;;  %v15665_v34 = vcombine.high %v4372_v63, %v4380_v15  ;;  %v15713_v52 = vcombine.high %v4420_v47, %v4428_v48  ;;  %v4436_v11 = vld [vmem:[#allocation17 + $0x320] sm:$0xff] }
0x12b0   :  { %v4444_v55 = vld [vmem:[#allocation17 + $0x360] sm:$0xff] }
0x12b1   :  { %5277 = vmatpush1.bf16.msra.mxu0 %v15644_v28  ;;  %5320 = vmatpush1.bf16.msra.mxu1 %v15646_v29  ;;  %v4357_v28 = vld [vmem:[#allocation17 + $0xa8] sm:$0xff] }
0x12b2   :  { %5278 = vmatprep.subr.bf16.mxu0 %v15661_v30  ;;  %5321 = vmatprep.subr.bf16.mxu1 %v15663_v54  ;;  %v4365_v29 = vld [vmem:[#allocation17 + $0xe8] sm:$0xff]  ;;  %v15632_v30 = vcombine.low %v4340_v3, %v4348_v4  ;;  %v15634_v54 = vcombine.low %v4341_v8, %v4349_v14  ;;  %v15729_v3 = vcombine.high %v4436_v11, %v4444_v55  ;;  %v4452_v8 = vld [vmem:[#allocation17 + $0x3a0] sm:$0xff] }
0x12b3   :  { %v15651_v32 = vcombine.high %v4357_v28, %v4365_v29  ;;  %v4460_v14 = vld [vmem:[#allocation17 + $0x3e0] sm:$0xff] }
0x12b5   :  { %5279 = vmatpush1.bf16.msra.mxu0 %v15660_v13  ;;  %5322 = vmatpush1.bf16.msra.mxu1 %v15662_v40  ;;  %v4373_v13 = vld [vmem:[#allocation17 + $0x128] sm:$0xff] }
0x12b6   :  { %5280 = vmatprep.subr.bf16.mxu0 %v15677_v33  ;;  %5323 = vmatprep.subr.bf16.mxu1 %v15679_v6  ;;  %v4381_v40 = vld [vmem:[#allocation17 + $0x168] sm:$0xff]  ;;  %v15648_v33 = vcombine.low %v4356_v24, %v4364_v27  ;;  %v15650_v6 = vcombine.low %v4357_v28, %v4365_v29  ;;  %v15745_v24 = vcombine.high %v4452_v8, %v4460_v14  ;;  %v4342_v28 = vld [vmem:[#allocation17 + $0x30] sm:$0xff] }
0x12b7   :  { %v15667_v16 = vcombine.high %v4373_v13, %v4381_v40  ;;  %v4350_v29 = vld [vmem:[#allocation17 + $0x70] sm:$0xff] }
0x12b9   :  { %5281 = vmatpush1.bf16.msra.mxu0 %v15676_v37  ;;  %5324 = vmatpush1.bf16.msra.mxu1 %v15678_v38  ;;  %v4389_v37 = vld [vmem:[#allocation17 + $0x1a8] sm:$0xff] }
0x12ba   :  { %5282 = vmatprep.subr.bf16.mxu0 %v15693_v39  ;;  %5325 = vmatprep.subr.bf16.mxu1 %v15695_v21  ;;  %v4397_v38 = vld [vmem:[#allocation17 + $0x1e8] sm:$0xff]  ;;  %v15664_v39 = vcombine.low %v4372_v63, %v4380_v15  ;;  %v15666_v21 = vcombine.low %v4373_v13, %v4381_v40  ;;  %v15637_v63 = vcombine.high %v4342_v28, %v4350_v29  ;;  %v4358_v13 = vld [vmem:[#allocation17 + $0xb0] sm:$0xff] }
0x12bb   :  { %v15683_v31 = vcombine.high %v4389_v37, %v4397_v38  ;;  %v4366_v40 = vld [vmem:[#allocation17 + $0xf0] sm:$0xff] }
0x12bd   :  { %5283 = vmatpush1.bf16.msra.mxu0 %v15692_v42  ;;  %5326 = vmatpush1.bf16.msra.mxu1 %v15694_v43  ;;  %v4405_v42 = vld [vmem:[#allocation17 + $0x228] sm:$0xff] }
0x12be   :  { %5284 = vmatprep.subr.bf16.mxu0 %v15709_v44  ;;  %5327 = vmatprep.subr.bf16.mxu1 %v15711_v12  ;;  %v4413_v43 = vld [vmem:[#allocation17 + $0x268] sm:$0xff]  ;;  %v15680_v44 = vcombine.low %v4388_v35, %v4396_v36  ;;  %v15682_v12 = vcombine.low %v4389_v37, %v4397_v38  ;;  %v15653_v35 = vcombine.high %v4358_v13, %v4366_v40  ;;  %v4374_v37 = vld [vmem:[#allocation17 + $0x130] sm:$0xff] }
0x12bf   :  { %v15699_v46 = vcombine.high %v4405_v42, %v4413_v43  ;;  %v4382_v38 = vld [vmem:[#allocation17 + $0x170] sm:$0xff] }
0x12c1   :  { %5285 = vmatpush1.bf16.msra.mxu0 %v15708_v7  ;;  %5328 = vmatpush1.bf16.msra.mxu1 %v15710_v50  ;;  %v4421_v7 = vld [vmem:[#allocation17 + $0x2a8] sm:$0xff] }
0x12c2   :  { %5286 = vmatprep.subr.bf16.mxu0 %v15725_v51  ;;  %5329 = vmatprep.subr.bf16.mxu1 %v15727_v49  ;;  %v4429_v50 = vld [vmem:[#allocation17 + $0x2e8] sm:$0xff]  ;;  %v15696_v51 = vcombine.low %v4404_v5, %v4412_v22  ;;  %v15698_v49 = vcombine.low %v4405_v42, %v4413_v43  ;;  %v15669_v5 = vcombine.high %v4374_v37, %v4382_v38  ;;  %v4390_v42 = vld [vmem:[#allocation17 + $0x1b0] sm:$0xff] }
0x12c3   :  { %v15715_v53 = vcombine.high %v4421_v7, %v4429_v50  ;;  %v4398_v43 = vld [vmem:[#allocation17 + $0x1f0] sm:$0xff] }
0x12c5   :  { %5287 = vmatpush1.bf16.msra.mxu0 %v15724_v56  ;;  %5330 = vmatpush1.bf16.msra.mxu1 %v15726_v62  ;;  %v4437_v56 = vld [vmem:[#allocation17 + $0x328] sm:$0xff] }
0x12c6   :  { %5288 = vmatprep.subr.bf16.mxu0 %v15741_v0  ;;  %5331 = vmatprep.subr.bf16.mxu1 %v15743_v1  ;;  %v4445_v62 = vld [vmem:[#allocation17 + $0x368] sm:$0xff]  ;;  %v15712_v0 = vcombine.low %v4420_v47, %v4428_v48  ;;  %v15714_v1 = vcombine.low %v4421_v7, %v4429_v50  ;;  %v15685_v47 = vcombine.high %v4390_v42, %v4398_v43  ;;  %v4406_v7 = vld [vmem:[#allocation17 + $0x230] sm:$0xff] }
0x12c7   :  { %v15731_v4 = vcombine.high %v4437_v56, %v4445_v62  ;;  %v4414_v50 = vld [vmem:[#allocation17 + $0x270] sm:$0xff] }
0x12c9   :  { %5289 = vmatpush1.bf16.msra.mxu0 %v15740_v19  ;;  %5332 = vmatpush1.bf16.msra.mxu1 %v15742_v25  ;;  %v4453_v19 = vld [vmem:[#allocation17 + $0x3a8] sm:$0xff] }
0x12ca   :  { %5360 = vmatprep.subr.bf16.mxu0 %v15633_v20  ;;  %5403 = vmatprep.subr.bf16.mxu1 %v15635_v23  ;;  %v4461_v25 = vld [vmem:[#allocation17 + $0x3e8] sm:$0xff]  ;;  %v15728_v20 = vcombine.low %v4436_v11, %v4444_v55  ;;  %v15730_v23 = vcombine.low %v4437_v56, %v4445_v62  ;;  %v15701_v11 = vcombine.high %v4406_v7, %v4414_v50  ;;  %v4422_v56 = vld [vmem:[#allocation17 + $0x2b0] sm:$0xff] }
0x12cb   :  { %v15747_v27 = vcombine.high %v4453_v19, %v4461_v25  ;;  %v4430_v62 = vld [vmem:[#allocation17 + $0x2f0] sm:$0xff] }
0x12cc   :  { %5307 = vmatmul.mubr.bf16.vlgmr.msra.gmra.mrb[56].mxu0 %v20317_v26  ;;  %5350 = vmatmul.mubr.bf16.vlgmr.msra.gmra.mrb[56].mxu1 %v20317_v26 }
0x12cd   :  { %5361 = vmatpush1.bf16.msra.mxu0 %v15632_v30  ;;  %5404 = vmatpush1.bf16.msra.mxu1 %v15634_v54  ;;  %v4343_v30 = vld [vmem:[#allocation17 + $0x38] sm:$0xff] }
0x12ce   :  { %5362 = vmatprep.subr.bf16.mxu0 %v15649_v9  ;;  %5405 = vmatprep.subr.bf16.mxu1 %v15651_v32  ;;  %v4351_v54 = vld [vmem:[#allocation17 + $0x78] sm:$0xff]  ;;  %v15744_v9 = vcombine.low %v4452_v8, %v4460_v14  ;;  %v15746_v32 = vcombine.low %v4453_v19, %v4461_v25  ;;  %v15717_v8 = vcombine.high %v4422_v56, %v4430_v62  ;;  %v4438_v19 = vld [vmem:[#allocation17 + $0x330] sm:$0xff] }
0x12cf   :  { %5392 = vmatprep.mubr.bf16.mxu0 %v19633_v2  ;;  %5435 = vmatprep.mubr.bf16.mxu1 %v19633_v2  ;;  %v15639_v15 = vcombine.high %v4343_v30, %v4351_v54  ;;  %v4446_v25 = vld [vmem:[#allocation17 + $0x370] sm:$0xff] }
0x12d1   :  { %5363 = vmatpush1.bf16.msra.mxu0 %v15648_v33  ;;  %5406 = vmatpush1.bf16.msra.mxu1 %v15650_v6  ;;  %v4359_v33 = vld [vmem:[#allocation17 + $0xb8] sm:$0xff] }
0x12d2   :  { %5364 = vmatprep.subr.bf16.mxu0 %v15665_v34  ;;  %5407 = vmatprep.subr.bf16.mxu1 %v15667_v16  ;;  %v4367_v6 = vld [vmem:[#allocation17 + $0xf8] sm:$0xff]  ;;  %v15636_v34 = vcombine.low %v4342_v28, %v4350_v29  ;;  %v15638_v16 = vcombine.low %v4343_v30, %v4351_v54  ;;  %v15733_v28 = vcombine.high %v4438_v19, %v4446_v25  ;;  %v4454_v30 = vld [vmem:[#allocation17 + $0x3b0] sm:$0xff] }
0x12d3   :  { %v15655_v36 = vcombine.high %v4359_v33, %v4367_v6  ;;  %v4462_v54 = vld [vmem:[#allocation17 + $0x3f0] sm:$0xff] }
0x12d5   :  { %5365 = vmatpush1.bf16.msra.mxu0 %v15664_v39  ;;  %5408 = vmatpush1.bf16.msra.mxu1 %v15666_v21  ;;  %v4375_v39 = vld [vmem:[#allocation17 + $0x138] sm:$0xff] }
0x12d6   :  { %5366 = vmatprep.subr.bf16.mxu0 %v15681_v10  ;;  %5409 = vmatprep.subr.bf16.mxu1 %v15683_v31  ;;  %v4383_v21 = vld [vmem:[#allocation17 + $0x178] sm:$0xff]  ;;  %v15652_v10 = vcombine.low %v4358_v13, %v4366_v40  ;;  %v15654_v31 = vcombine.low %v4359_v33, %v4367_v6  ;;  %v15749_v13 = vcombine.high %v4454_v30, %v4462_v54 }
0x12d7   :  { %v15671_v22 = vcombine.high %v4375_v39, %v4383_v21  ;;  %v15748_v33 = vcombine.low %v4454_v30, %v4462_v54 }
0x12d9   :  { %5367 = vmatpush1.bf16.msra.mxu0 %v15680_v44  ;;  %5410 = vmatpush1.bf16.msra.mxu1 %v15682_v12  ;;  %v4391_v44 = vld [vmem:[#allocation17 + $0x1b8] sm:$0xff] }
0x12da   :  { %5368 = vmatprep.subr.bf16.mxu0 %v15697_v45  ;;  %5411 = vmatprep.subr.bf16.mxu1 %v15699_v46  ;;  %v4399_v12 = vld [vmem:[#allocation17 + $0x1f8] sm:$0xff]  ;;  %v15668_v45 = vcombine.low %v4374_v37, %v4382_v38  ;;  %v15670_v46 = vcombine.low %v4375_v39, %v4383_v21 }
0x12db   :  { %v15687_v48 = vcombine.high %v4391_v44, %v4399_v12  ;;  %v18291_v37 = vld [vmem:[#allocation20 + $0x48] sm:$0xff]  }
0x12dc   :  { %v18292_v38 = vld [vmem:[#allocation20 + $0xc8] sm:$0xff]  }
0x12dd   :  { %5369 = vmatpush1.bf16.msra.mxu0 %v15696_v51  ;;  %5412 = vmatpush1.bf16.msra.mxu1 %v15698_v49  ;;  %v4407_v51 = vld [vmem:[#allocation17 + $0x238] sm:$0xff] }
0x12de   :  { %5370 = vmatprep.subr.bf16.mxu0 %v15713_v52  ;;  %5413 = vmatprep.subr.bf16.mxu1 %v15715_v53  ;;  %v4415_v49 = vld [vmem:[#allocation17 + $0x278] sm:$0xff]  ;;  %v15684_v52 = vcombine.low %v4390_v42, %v4398_v43  ;;  %v15686_v53 = vcombine.low %v4391_v44, %v4399_v12  ;;  %v18299_v42 = vld [vmem:[#allocation20 + $0x58] sm:$0xff]   ;;  %v18303_v12 = vld [vmem:[#allocation20 + $0x60] sm:$0xff]  }
0x12df   :  { %v15703_v55 = vcombine.high %v4407_v51, %v4415_v49  ;;  %v18293_v39 = vld [vmem:[#allocation20 + $0x8] sm:$0xff]   ;;  %v18300_v43 = vld [vmem:[#allocation20 + $0xd8] sm:$0xff]  }
0x12e0   :  { %v18294_v21 = vld [vmem:[#allocation20 + $0x88] sm:$0xff]   ;;  %v18301_v44 = vld [vmem:[#allocation20 + $0x18] sm:$0xff]  }
0x12e1   :  { %5371 = vmatpush1.bf16.msra.mxu0 %v15712_v0  ;;  %5414 = vmatpush1.bf16.msra.mxu1 %v15714_v1  ;;  %v4423_v0 = vld [vmem:[#allocation17 + $0x2b8] sm:$0xff] }
0x12e2   :  { %5372 = vmatprep.subr.bf16.mxu0 %v15729_v3  ;;  %5415 = vmatprep.subr.bf16.mxu1 %v15731_v4  ;;  %v4431_v1 = vld [vmem:[#allocation17 + $0x2f8] sm:$0xff]  ;;  %v15700_v3 = vcombine.low %v4406_v7, %v4414_v50  ;;  %v15702_v4 = vcombine.low %v4407_v51, %v4415_v49  ;;  %v18311_v49 = vld [vmem:[#allocation20 + $0x70] sm:$0xff]  }
0x12e3   :  { %v15719_v14 = vcombine.high %v4423_v0, %v4431_v1  ;;  %v18308_v7 = vld [vmem:[#allocation20 + $0xe8] sm:$0xff]  }
0x12e4   :  { %v18309_v50 = vld [vmem:[#allocation20 + $0x28] sm:$0xff]  }
0x12e5   :  { %5373 = vmatpush1.bf16.msra.mxu0 %v15728_v20  ;;  %5416 = vmatpush1.bf16.msra.mxu1 %v15730_v23  ;;  %v4439_v20 = vld [vmem:[#allocation17 + $0x338] sm:$0xff] }
0x12e6   :  { %5374 = vmatprep.subr.bf16.mxu0 %v15745_v24  ;;  %5417 = vmatprep.subr.bf16.mxu1 %v15747_v27  ;;  %v4447_v23 = vld [vmem:[#allocation17 + $0x378] sm:$0xff]  ;;  %v15716_v24 = vcombine.low %v4422_v56, %v4430_v62  ;;  %v15718_v27 = vcombine.low %v4423_v0, %v4431_v1  ;;  %v18316_v56 = vld [vmem:[#allocation20 + $0xf8] sm:$0xff]   ;;  %v18319_v1 = vld [vmem:[#allocation20 + $0x140] sm:$0xff]  }
0x12e7   :  { %v15735_v29 = vcombine.high %v4439_v20, %v4447_v23  ;;  %v18310_v51 = vld [vmem:[#allocation20 + $0xa8] sm:$0xff]   ;;  %v18317_v62 = vld [vmem:[#allocation20 + $0x38] sm:$0xff]  }
0x12e8   :  { %v18318_v0 = vld [vmem:[#allocation20 + $0xb8] sm:$0xff]  }
0x12e9   :  { %5375 = vmatpush1.bf16.msra.mxu0 %v15744_v9  ;;  %5418 = vmatpush1.bf16.msra.mxu1 %v15746_v32  ;;  %v4455_v9 = vld [vmem:[#allocation17 + $0x3b8] sm:$0xff] }
0x12ea   :  { %5446 = vmatprep.subr.bf16.mxu0 %v15637_v63  ;;  %5489 = vmatprep.subr.bf16.mxu1 %v15639_v15  ;;  %v4463_v32 = vld [vmem:[#allocation17 + $0x3f8] sm:$0xff]  ;;  %v15732_v63 = vcombine.low %v4438_v19, %v4446_v25  ;;  %v15734_v15 = vcombine.low %v4439_v20, %v4447_v23 }
0x12eb   :  { %v15751_v40 = vcombine.high %v4455_v9, %v4463_v32  ;;  %v15750_v6 = vcombine.low %v4455_v9, %v4463_v32 }
0x12ec   :  { %5393 = vmatmul.mubr.bf16.vlgmr.msra.gmra.mrb[60].mxu0 %v20317_v26  ;;  %5436 = vmatmul.mubr.bf16.vlgmr.msra.gmra.mrb[60].mxu1 %v20317_v26 }
0x12ed   :  { %5447 = vmatpush1.bf16.msra.mxu0 %v15636_v34  ;;  %5490 = vmatpush1.bf16.msra.mxu1 %v15638_v16  ;;  %v18287_v34 = vld [vmem:[#allocation20 + $0x40] sm:$0xff]  }
0x12ee   :  { %5448 = vmatprep.subr.bf16.mxu0 %v15653_v35  ;;  %5491 = vmatprep.subr.bf16.mxu1 %v15655_v36  ;;  %v18288_v16 = vld [vmem:[#allocation20 + $0xc0] sm:$0xff]  }
0x12ef   :  { %5478 = vmatprep.mubr.bf16.mxu0 %v19633_v2  ;;  %5521 = vmatprep.mubr.bf16.mxu1 %v19633_v2  ;;  %v18289_v35 = vld [vmem:[#allocation20] sm:$0xff]  }
0x12f0   :  { %v18290_v36 = vld [vmem:[#allocation20 + $0x80] sm:$0xff]  }
0x12f1   :  { %5449 = vmatpush1.bf16.msra.mxu0 %v15652_v10  ;;  %5492 = vmatpush1.bf16.msra.mxu1 %v15654_v31  ;;  %v18295_v10 = vld [vmem:[#allocation20 + $0x50] sm:$0xff]  }
0x12f2   :  { %5450 = vmatprep.subr.bf16.mxu0 %v15669_v5  ;;  %5493 = vmatprep.subr.bf16.mxu1 %v15671_v22  ;;  %v18296_v31 = vld [vmem:[#allocation20 + $0xd0] sm:$0xff]  }
0x12f3   :  { %v18297_v5 = vld [vmem:[#allocation20 + $0x10] sm:$0xff]  }
0x12f4   :  { %v18298_v22 = vld [vmem:[#allocation20 + $0x90] sm:$0xff]  }
0x12f5   :  { %5451 = vmatpush1.bf16.msra.mxu0 %v15668_v45  ;;  %5494 = vmatpush1.bf16.msra.mxu1 %v15670_v46  ;;  %v18304_v45 = vld [vmem:[#allocation20 + $0xe0] sm:$0xff]  }
0x12f6   :  { %5452 = vmatprep.subr.bf16.mxu0 %v15685_v47  ;;  %5495 = vmatprep.subr.bf16.mxu1 %v15687_v48  ;;  %v18305_v46 = vld [vmem:[#allocation20 + $0x20] sm:$0xff]   ;;  %v18307_v48 = vld [vmem:[#allocation20 + $0x68] sm:$0xff]  }
0x12f7   :  { %v18306_v47 = vld [vmem:[#allocation20 + $0xa0] sm:$0xff]  }
0x12f9   :  { %5453 = vmatpush1.bf16.msra.mxu0 %v15684_v52  ;;  %5496 = vmatpush1.bf16.msra.mxu1 %v15686_v53  ;;  %v18312_v52 = vld [vmem:[#allocation20 + $0xf0] sm:$0xff]  }
0x12fa   :  { %5454 = vmatprep.subr.bf16.mxu0 %v15701_v11  ;;  %5497 = vmatprep.subr.bf16.mxu1 %v15703_v55  ;;  %v18313_v53 = vld [vmem:[#allocation20 + $0x30] sm:$0xff]   ;;  %v18315_v55 = vld [vmem:[#allocation20 + $0x78] sm:$0xff]  }
0x12fb   :  { %v18314_v11 = vld [vmem:[#allocation20 + $0xb0] sm:$0xff]  }
0x12fd   :  { %5455 = vmatpush1.bf16.msra.mxu0 %v15700_v3  ;;  %5498 = vmatpush1.bf16.msra.mxu1 %v15702_v4  ;;  %v18320_v3 = vld [vmem:[#allocation20 + $0x1c0] sm:$0xff]   ;;  %v20333_v4 = vld [vmem:[#allocation19] sm:$0xff] }
0x12fe   :  { %5456 = vmatprep.subr.bf16.mxu0 %v15717_v8  ;;  %5499 = vmatprep.subr.bf16.mxu1 %v15719_v14  ;;  %v4471_v8 = vrot.slane %v20333_v4, %v20041_v58  ;;  %v4479_v14 = vrot.slane %v20333_v4, %v20044_v59  ;;  %v4475_v19 = vrot.slane %v20333_v4, %v20047_v60 }
0x12ff   :  { %v4483_v25 = vrot.slane %v20333_v4, %v20050_v61 }
0x1301   :  { %5457 = vmatpush1.bf16.msra.mxu0 %v15716_v24  ;;  %5500 = vmatpush1.bf16.msra.mxu1 %v15718_v27 }
0x1302   :  { %5458 = vmatprep.subr.bf16.mxu0 %v15733_v28  ;;  %5501 = vmatprep.subr.bf16.mxu1 %v15735_v29 }
0x1305   :  { %5459 = vmatpush1.bf16.msra.mxu0 %v15732_v63  ;;  %5502 = vmatpush1.bf16.msra.mxu1 %v15734_v15 }
0x1306   :  { %5460 = vmatprep.subr.bf16.mxu0 %v15749_v13  ;;  %5503 = vmatprep.subr.bf16.mxu1 %v15751_v40 }
0x1309   :  { %5461 = vmatpush1.bf16.msra.mxu0 %v15748_v33  ;;  %5504 = vmatpush1.bf16.msra.mxu1 %v15750_v6 }
0x130a   :  { %16638 = vmatprep.subr.bf16.mxu0 %v18287_v34  ;;  %16660 = vmatprep.subr.bf16.mxu1 %v18288_v16 }
0x130c   :  { %5479 = vmatmul.mubr.bf16.vlgmr.msra.gmra.mrb[64].mxu0 %v20317_v26  ;;  %5522 = vmatmul.mubr.bf16.vlgmr.msra.gmra.mrb[64].mxu1 %v20317_v26  ;;  %v18302_v26 = vld [vmem:[#allocation20 + $0x98] sm:$0xff]  }
0x130d   :  { %16639 = vmatpush3.bf16.msra.mxu0 %v18289_v35  ;;  %16661 = vmatpush3.bf16.msra.mxu1 %v18290_v36 }
0x130e   :  { %16640 = vmatprep.subr.bf16.mxu0 %v18291_v37  ;;  %16662 = vmatprep.subr.bf16.mxu1 %v18292_v38 }
0x1311   :  { %16641 = vmatpush3.bf16.msra.mxu0 %v18293_v39  ;;  %16663 = vmatpush3.bf16.msra.mxu1 %v18294_v21 }
0x1312   :  { %16642 = vmatprep.subr.bf16.mxu0 %v18295_v10  ;;  %16664 = vmatprep.subr.bf16.mxu1 %v18296_v31 }
0x1315   :  { %16643 = vmatpush3.bf16.msra.mxu0 %v18297_v5  ;;  %16665 = vmatpush3.bf16.msra.mxu1 %v18298_v22 }
0x1316   :  { %16644 = vmatprep.subr.bf16.mxu0 %v18299_v42  ;;  %16666 = vmatprep.subr.bf16.mxu1 %v18300_v43  ;;  %v18321_v42 = vld [vmem:[#allocation20 + $0x100] sm:$0xff]  }
0x1317   :  { %v18322_v43 = vld [vmem:[#allocation20 + $0x180] sm:$0xff]  }
0x1319   :  { %16645 = vmatpush3.bf16.msra.mxu0 %v18301_v44  ;;  %16667 = vmatpush3.bf16.msra.mxu1 %v18302_v26  ;;  %v18323_v44 = vld [vmem:[#allocation20 + $0x148] sm:$0xff]  }
0x131a   :  { %16646 = vmatprep.subr.bf16.mxu0 %v18303_v12  ;;  %16668 = vmatprep.subr.bf16.mxu1 %v18304_v45  ;;  %v18324_v26 = vld [vmem:[#allocation20 + $0x1c8] sm:$0xff]  }
0x131b   :  { %v18325_v12 = vld [vmem:[#allocation20 + $0x108] sm:$0xff]  }
0x131c   :  { %v18326_v45 = vld [vmem:[#allocation20 + $0x188] sm:$0xff]  }
0x131d   :  { %16647 = vmatpush3.bf16.msra.mxu0 %v18305_v46  ;;  %16669 = vmatpush3.bf16.msra.mxu1 %v18306_v47  ;;  %v18327_v46 = vld [vmem:[#allocation20 + $0x150] sm:$0xff]  }
0x131e   :  { %16648 = vmatprep.subr.bf16.mxu0 %v18307_v48  ;;  %16670 = vmatprep.subr.bf16.mxu1 %v18308_v7  ;;  %v18328_v47 = vld [vmem:[#allocation20 + $0x1d0] sm:$0xff]  }
0x131f   :  { %v18329_v48 = vld [vmem:[#allocation20 + $0x110] sm:$0xff]  }
0x1320   :  { %v18330_v7 = vld [vmem:[#allocation20 + $0x190] sm:$0xff]  }
0x1321   :  { %16649 = vmatpush3.bf16.msra.mxu0 %v18309_v50  ;;  %16671 = vmatpush3.bf16.msra.mxu1 %v18310_v51  ;;  %v18331_v50 = vld [vmem:[#allocation20 + $0x158] sm:$0xff]  }
0x1322   :  { %16650 = vmatprep.subr.bf16.mxu0 %v18311_v49  ;;  %16672 = vmatprep.subr.bf16.mxu1 %v18312_v52  ;;  %v18332_v51 = vld [vmem:[#allocation20 + $0x1d8] sm:$0xff]  }
0x1323   :  { %v18333_v49 = vld [vmem:[#allocation20 + $0x118] sm:$0xff]  }
0x1324   :  { %v18334_v52 = vld [vmem:[#allocation20 + $0x198] sm:$0xff]  }
0x1325   :  { %16651 = vmatpush3.bf16.msra.mxu0 %v18313_v53  ;;  %16673 = vmatpush3.bf16.msra.mxu1 %v18314_v11  ;;  %v18335_v53 = vld [vmem:[#allocation20 + $0x160] sm:$0xff]  }
0x1326   :  { %16652 = vmatprep.subr.bf16.mxu0 %v18315_v55  ;;  %16674 = vmatprep.subr.bf16.mxu1 %v18316_v56  ;;  %v18336_v11 = vld [vmem:[#allocation20 + $0x1e0] sm:$0xff]  }
0x1327   :  { %v18337_v55 = vld [vmem:[#allocation20 + $0x120] sm:$0xff]  }
0x1328   :  { %v18338_v56 = vld [vmem:[#allocation20 + $0x1a0] sm:$0xff]  }
0x1329   :  { %16653 = vmatpush3.bf16.msra.mxu0 %v18317_v62  ;;  %16675 = vmatpush3.bf16.msra.mxu1 %v18318_v0  ;;  %v18339_v62 = vld [vmem:[#allocation20 + $0x168] sm:$0xff]  }
0x132a   :  { %16682 = vmatprep.subr.bf16.mxu0 %v18319_v1  ;;  %16704 = vmatprep.subr.bf16.mxu1 %v18320_v3  ;;  %v18340_v0 = vld [vmem:[#allocation20 + $0x1e8] sm:$0xff]   ;;  %v20344_v1 = vsub.s32 4, %v20038_v57  ;;  %v20347_v3 = vsub.s32 6, %v20038_v57 }
0x137f   :  { %v5222_v20 = vpop.f32.mrb[52].mxu0  ;;  %v5265_v23 = vpop.f32.mrb[52].mxu1 }
0x1380   :  { %v5223_v24 = vadd.f32 %v5222_v20, %v4471_v8  ;;  %v5266_v27 = vadd.f32 %v5265_v23, %v4479_v14  ;;  %v5224_v28 = vpop.f32.mrb[53].mxu0  ;;  %v5267_v29 = vpop.f32.mrb[53].mxu1  ;;  %v4487_v20 = vrot.slane %v20333_v4, %v20344_v1  ;;  %v4495_v23 = vrot.slane %v20333_v4, %v20347_v3 }
0x1381   :  { %v5225_v30 = vadd.f32 %v5224_v28, %v4475_v19  ;;  %v5268_v54 = vadd.f32 %v5267_v29, %v4483_v25  ;;  %v5226_v9 = vpop.f32.mrb[54].mxu0  ;;  %v5269_v32 = vpop.f32.mrb[54].mxu1 }
0x1382   :  { %v5227_v63 = vadd.f32 %v5226_v9, %v4471_v8  ;;  %v5270_v15 = vadd.f32 %v5269_v32, %v4479_v14  ;;  %v5228_v13 = vpop.f32.mrb[55].mxu0  ;;  %v5271_v40 = vpop.f32.mrb[55].mxu1  ;;  %v5532_v34 = vmax.f32 %v5223_v24, 0.0  ;;  %v5534_v16 = vmax.f32 %v5266_v27, 0.0  ;;  %v18343_v24 = vld [vmem:[#allocation20 + $0x170] sm:$0xff]  }
0x1383   :  { %v5229_v33 = vadd.f32 %v5228_v13, %v4475_v19  ;;  %v5272_v6 = vadd.f32 %v5271_v40, %v4483_v25  ;;  %v5533_v37 = vmax.f32 %v5225_v30, 0.0  ;;  %v5535_v38 = vmax.f32 %v5268_v54, 0.0  ;;  %v18341_v19 = vld [vmem:[#allocation20 + $0x128] sm:$0xff]   ;;  %v18344_v27 = vld [vmem:[#allocation20 + $0x1f0] sm:$0xff]   ;;  %v18347_v40 = vld [vmem:[#allocation20 + $0x178] sm:$0xff]  }
0x1384   :  { %v5548_v35 = vmax.f32 %v5227_v63, 0.0  ;;  %v5550_v36 = vmax.f32 %v5270_v15, 0.0  ;;  %v20350_v8 = vsub.s32 5, %v20038_v57  ;;  %v20353_v14 = vsub.s32 7, %v20038_v57  ;;  %v18342_v25 = vld [vmem:[#allocation20 + $0x1a8] sm:$0xff]   ;;  %v18345_v54 = vld [vmem:[#allocation20 + $0x130] sm:$0xff]  }
0x1385   :  { %v5549_v39 = vmax.f32 %v5229_v33, 0.0  ;;  %v5551_v21 = vmax.f32 %v5272_v6, 0.0  ;;  %v18346_v9 = vld [vmem:[#allocation20 + $0x1b0] sm:$0xff]   ;;  %v18348_v33 = vld [vmem:[#allocation20 + $0x1f8] sm:$0xff]  }
0x1386   :  { %v5564_v10 = vpack.c.bf16 %v5548_v35, %v5532_v34  ;;  %v5566_v31 = vpack.c.bf16 %v5550_v36, %v5534_v16  ;;  %v4491_v28 = vrot.slane %v20333_v4, %v20350_v8  ;;  %v4499_v57 = vrot.slane %v20333_v4, %v20353_v14 }
0x1387   :  { %v5565_v5 = vpack.c.bf16 %v5549_v39, %v5533_v37  ;;  %v5567_v22 = vpack.c.bf16 %v5551_v21, %v5535_v38 }
0x1389   :  { %6643 = vmatprep.mubr.bf16.mxu0 %v5565_v5  ;;  %6684 = vmatprep.mubr.bf16.mxu1 %v5567_v22 }
0x138a   :  { %6644 = vmatmul.mubr.bf16.vlgmr.msra.gmra.mrb[68].mxu0 %v5564_v10  ;;  %6685 = vmatmul.mubr.bf16.vlgmr.msra.gmra.mrb[68].mxu1 %v5566_v31  ;;  %v18349_v10 = vld [vmem:[#allocation20 + $0x138] sm:$0xff]  }
0x138b   :  { %16683 = vmatpush3.bf16.msra.mxu0 %v18321_v42  ;;  %16705 = vmatpush3.bf16.msra.mxu1 %v18322_v43  ;;  %v18350_v31 = vld [vmem:[#allocation20 + $0x1b8] sm:$0xff]  }
0x138c   :  { %16684 = vmatprep.subr.bf16.mxu0 %v18323_v44  ;;  %16706 = vmatprep.subr.bf16.mxu1 %v18324_v26  ;;  %v18351_v44 = vld [vmem:[#allocation20 + $0x240] sm:$0xff]  }
0x138d   :  { %v18352_v26 = vld [vmem:[#allocation20 + $0x2c0] sm:$0xff]  }
0x138f   :  { %16685 = vmatpush3.bf16.msra.mxu0 %v18325_v12  ;;  %16707 = vmatpush3.bf16.msra.mxu1 %v18326_v45 }
0x1390   :  { %16686 = vmatprep.subr.bf16.mxu0 %v18327_v46  ;;  %16708 = vmatprep.subr.bf16.mxu1 %v18328_v47 }
0x1393   :  { %16687 = vmatpush3.bf16.msra.mxu0 %v18329_v48  ;;  %16709 = vmatpush3.bf16.msra.mxu1 %v18330_v7 }
0x1394   :  { %16688 = vmatprep.subr.bf16.mxu0 %v18331_v50  ;;  %16710 = vmatprep.subr.bf16.mxu1 %v18332_v51 }
0x1397   :  { %16689 = vmatpush3.bf16.msra.mxu0 %v18333_v49  ;;  %16711 = vmatpush3.bf16.msra.mxu1 %v18334_v52  ;;  %v18353_v49 = vld [vmem:[#allocation20 + $0x200] sm:$0xff]  }
0x1398   :  { %16690 = vmatprep.subr.bf16.mxu0 %v18335_v53  ;;  %16712 = vmatprep.subr.bf16.mxu1 %v18336_v11  ;;  %v18354_v52 = vld [vmem:[#allocation20 + $0x280] sm:$0xff]   ;;  %v18355_v53 = vld [vmem:[#allocation20 + $0x248] sm:$0xff]  }
0x1399   :  { %v18356_v11 = vld [vmem:[#allocation20 + $0x2c8] sm:$0xff]  }
0x139b   :  { %16691 = vmatpush3.bf16.msra.mxu0 %v18337_v55  ;;  %16713 = vmatpush3.bf16.msra.mxu1 %v18338_v56  ;;  %v18357_v55 = vld [vmem:[#allocation20 + $0x208] sm:$0xff]  }
0x139c   :  { %16692 = vmatprep.subr.bf16.mxu0 %v18339_v62  ;;  %16714 = vmatprep.subr.bf16.mxu1 %v18340_v0  ;;  %v18358_v56 = vld [vmem:[#allocation20 + $0x288] sm:$0xff]   ;;  %v18359_v62 = vld [vmem:[#allocation20 + $0x250] sm:$0xff]  }
0x139d   :  { %v18360_v0 = vld [vmem:[#allocation20 + $0x2d0] sm:$0xff]  }
0x139f   :  { %v5308_v29 = vpop.f32.mrb[56].mxu0  ;;  %v5351_v30 = vpop.f32.mrb[56].mxu1  ;;  %16693 = vmatpush3.bf16.msra.mxu0 %v18341_v19  ;;  %16715 = vmatpush3.bf16.msra.mxu1 %v18342_v25  ;;  %v18361_v19 = vld [vmem:[#allocation20 + $0x210] sm:$0xff]  }
0x13a0   :  { %v5309_v32 = vadd.f32 %v5308_v29, %v4487_v20  ;;  %v5352_v63 = vadd.f32 %v5351_v30, %v4495_v23  ;;  %v5310_v15 = vpop.f32.mrb[57].mxu0  ;;  %v5353_v13 = vpop.f32.mrb[57].mxu1  ;;  %16694 = vmatprep.subr.bf16.mxu0 %v18343_v24  ;;  %16716 = vmatprep.subr.bf16.mxu1 %v18344_v27  ;;  %v18362_v25 = vld [vmem:[#allocation20 + $0x290] sm:$0xff]   ;;  %v18365_v24 = vld [vmem:[#allocation20 + $0x218] sm:$0xff]   ;;  %v18369_v29 = vld [vmem:[#allocation20 + $0x220] sm:$0xff]  }
0x13a1   :  { %v5311_v6 = vadd.f32 %v5310_v15, %v4491_v28  ;;  %v5354_v34 = vadd.f32 %v5353_v13, %v4499_v57  ;;  %v5312_v16 = vpop.f32.mrb[58].mxu0  ;;  %v5355_v35 = vpop.f32.mrb[58].mxu1  ;;  %v18366_v27 = vld [vmem:[#allocation20 + $0x298] sm:$0xff]   ;;  %v18370_v30 = vld [vmem:[#allocation20 + $0x2a0] sm:$0xff]   ;;  %v18374_v15 = vld [vmem:[#allocation20 + $0x2a8] sm:$0xff]  }
0x13a2   :  { %v5313_v36 = vadd.f32 %v5312_v16, %v4487_v20  ;;  %v5356_v4 = vadd.f32 %v5355_v35, %v4495_v23  ;;  %v5314_v37 = vpop.f32.mrb[59].mxu0  ;;  %v5357_v38 = vpop.f32.mrb[59].mxu1  ;;  %v5536_v5 = vmax.f32 %v5309_v32, 0.0  ;;  %v5538_v22 = vmax.f32 %v5352_v63, 0.0  ;;  %v18363_v20 = vld [vmem:[#allocation20 + $0x258] sm:$0xff]   ;;  %v18373_v63 = vld [vmem:[#allocation20 + $0x228] sm:$0xff]  }
0x13a3   :  { %v5315_v39 = vadd.f32 %v5314_v37, %v4491_v28  ;;  %v5358_v21 = vadd.f32 %v5357_v38, %v4499_v57  ;;  %16695 = vmatpush3.bf16.msra.mxu0 %v18345_v54  ;;  %16717 = vmatpush3.bf16.msra.mxu1 %v18346_v9  ;;  %v5537_v12 = vmax.f32 %v5311_v6, 0.0  ;;  %v5539_v45 = vmax.f32 %v5354_v34, 0.0  ;;  %v18364_v23 = vld [vmem:[#allocation20 + $0x2d8] sm:$0xff]   ;;  %v18367_v28 = vld [vmem:[#allocation20 + $0x260] sm:$0xff]   ;;  %v18371_v54 = vld [vmem:[#allocation20 + $0x268] sm:$0xff]  }
0x13a4   :  { %v5552_v42 = vmax.f32 %v5313_v36, 0.0  ;;  %v5554_v43 = vmax.f32 %v5356_v4, 0.0  ;;  %16696 = vmatprep.subr.bf16.mxu0 %v18347_v40  ;;  %16718 = vmatprep.subr.bf16.mxu1 %v18348_v33  ;;  %v18368_v57 = vld [vmem:[#allocation20 + $0x2e0] sm:$0xff]   ;;  %v18372_v9 = vld [vmem:[#allocation20 + $0x2e8] sm:$0xff]   ;;  %v20363_v32 = vld [vmem:[#allocation19 + $0x8] sm:$0xff] }
0x13a5   :  { %v5553_v46 = vmax.f32 %v5315_v39, 0.0  ;;  %v5555_v47 = vmax.f32 %v5358_v21, 0.0  ;;  %v4503_v13 = vrot.slane %v20363_v32, %v20041_v58  ;;  %v4511_v40 = vrot.slane %v20363_v32, %v20044_v59  ;;  %v18375_v33 = vld [vmem:[#allocation20 + $0x270] sm:$0xff]  }
0x13a6   :  { %v5568_v48 = vpack.c.bf16 %v5552_v42, %v5536_v5  ;;  %v5570_v7 = vpack.c.bf16 %v5554_v43, %v5538_v22  ;;  %v18376_v6 = vld [vmem:[#allocation20 + $0x2f0] sm:$0xff]   ;;  %v4507_v34 = vrot.slane %v20363_v32, %v20047_v60  ;;  %v4515_v16 = vrot.slane %v20363_v32, %v20050_v61  ;;  %v18380_v5 = vld [vmem:[#allocation20 + $0x2f8] sm:$0xff]  }
0x13a7   :  { %v5569_v50 = vpack.c.bf16 %v5553_v46, %v5537_v12  ;;  %v5571_v51 = vpack.c.bf16 %v5555_v47, %v5539_v45  ;;  %16697 = vmatpush3.bf16.msra.mxu0 %v18349_v10  ;;  %16719 = vmatpush3.bf16.msra.mxu1 %v18350_v31  ;;  %v18377_v4 = vld [vmem:[#allocation20 + $0x230] sm:$0xff]   ;;  %v18379_v31 = vld [vmem:[#allocation20 + $0x278] sm:$0xff]  }
0x13a8   :  { %16726 = vmatprep.subr.bf16.mxu0 %v18351_v44  ;;  %16748 = vmatprep.subr.bf16.mxu1 %v18352_v26  ;;  %v18378_v37 = vld [vmem:[#allocation20 + $0x2b0] sm:$0xff]  }
0x13a9   :  { %6725 = vmatprep.mubr.bf16.mxu0 %v5569_v50  ;;  %6766 = vmatprep.mubr.bf16.mxu1 %v5571_v51  ;;  %v18382_v50 = vld [vmem:[#allocation20 + $0x2b8] sm:$0xff]  }
0x13aa   :  { %6726 = vmatmul.mubr.bf16.vlgmr.msra.gmra.mrb[72].mxu0 %v5568_v48  ;;  %6767 = vmatmul.mubr.bf16.vlgmr.msra.gmra.mrb[72].mxu1 %v5570_v7  ;;  %v18381_v7 = vld [vmem:[#allocation20 + $0x238] sm:$0xff]  }
0x13ab   :  { %16727 = vmatpush3.bf16.msra.mxu0 %v18353_v49  ;;  %16749 = vmatpush3.bf16.msra.mxu1 %v18354_v52 }
0x13ac   :  { %16728 = vmatprep.subr.bf16.mxu0 %v18355_v53  ;;  %16750 = vmatprep.subr.bf16.mxu1 %v18356_v11  ;;  %v18383_v11 = vld [vmem:[#allocation20 + $0x340] sm:$0xff]  }
0x13af   :  { %16729 = vmatpush3.bf16.msra.mxu0 %v18357_v55  ;;  %16751 = vmatpush3.bf16.msra.mxu1 %v18358_v56  ;;  %v18384_v55 = vld [vmem:[#allocation20 + $0x3c0] sm:$0xff]  }
0x13b0   :  { %16730 = vmatprep.subr.bf16.mxu0 %v18359_v62  ;;  %16752 = vmatprep.subr.bf16.mxu1 %v18360_v0 }
0x13b3   :  { %16731 = vmatpush3.bf16.msra.mxu0 %v18361_v19  ;;  %16753 = vmatpush3.bf16.msra.mxu1 %v18362_v25 }
0x13b4   :  { %16732 = vmatprep.subr.bf16.mxu0 %v18363_v20  ;;  %16754 = vmatprep.subr.bf16.mxu1 %v18364_v23 }
0x13b7   :  { %16733 = vmatpush3.bf16.msra.mxu0 %v18365_v24  ;;  %16755 = vmatpush3.bf16.msra.mxu1 %v18366_v27  ;;  %v18385_v27 = vld [vmem:[#allocation20 + $0x300] sm:$0xff]  }
0x13b8   :  { %16734 = vmatprep.subr.bf16.mxu0 %v18367_v28  ;;  %16756 = vmatprep.subr.bf16.mxu1 %v18368_v57  ;;  %v18386_v28 = vld [vmem:[#allocation20 + $0x380] sm:$0xff]   ;;  %v18387_v57 = vld [vmem:[#allocation20 + $0x348] sm:$0xff]  }
0x13bb   :  { %16735 = vmatpush3.bf16.msra.mxu0 %v18369_v29  ;;  %16757 = vmatpush3.bf16.msra.mxu1 %v18370_v30  ;;  %v18388_v29 = vld [vmem:[#allocation20 + $0x3c8] sm:$0xff]  }
0x13bc   :  { %16736 = vmatprep.subr.bf16.mxu0 %v18371_v54  ;;  %16758 = vmatprep.subr.bf16.mxu1 %v18372_v9  ;;  %v18389_v30 = vld [vmem:[#allocation20 + $0x308] sm:$0xff]   ;;  %v18391_v9 = vld [vmem:[#allocation20 + $0x350] sm:$0xff]  }
0x13bd   :  { %v18390_v54 = vld [vmem:[#allocation20 + $0x388] sm:$0xff]  }
0x13bf   :  { %v5394_v35 = vpop.f32.mrb[60].mxu0  ;;  %v5437_v36 = vpop.f32.mrb[60].mxu1  ;;  %16737 = vmatpush3.bf16.msra.mxu0 %v18373_v63  ;;  %16759 = vmatpush3.bf16.msra.mxu1 %v18374_v15  ;;  %v18392_v63 = vld [vmem:[#allocation20 + $0x3d0] sm:$0xff]  }
0x13c0   :  { %v5395_v38 = vadd.f32 %v5394_v35, %v4503_v13  ;;  %v5438_v39 = vadd.f32 %v5437_v36, %v4511_v40  ;;  %v5396_v21 = vpop.f32.mrb[61].mxu0  ;;  %v5439_v10 = vpop.f32.mrb[61].mxu1  ;;  %16738 = vmatprep.subr.bf16.mxu0 %v18375_v33  ;;  %16760 = vmatprep.subr.bf16.mxu1 %v18376_v6  ;;  %v18393_v15 = vld [vmem:[#allocation20 + $0x310] sm:$0xff]   ;;  %v18396_v33 = vld [vmem:[#allocation20 + $0x3d8] sm:$0xff]   ;;  %v18400_v35 = vld [vmem:[#allocation20 + $0x3e0] sm:$0xff]  }
0x13c1   :  { %v5397_v22 = vadd.f32 %v5396_v21, %v4507_v34  ;;  %v5440_v42 = vadd.f32 %v5439_v10, %v4515_v16  ;;  %v5398_v43 = vpop.f32.mrb[62].mxu0  ;;  %v5441_v44 = vpop.f32.mrb[62].mxu1  ;;  %v18397_v6 = vld [vmem:[#allocation20 + $0x318] sm:$0xff]   ;;  %v18401_v36 = vld [vmem:[#allocation20 + $0x320] sm:$0xff]   ;;  %v18406_v21 = vld [vmem:[#allocation20 + $0x3a8] sm:$0xff]   ;;  %v4519_v10 = vrot.slane %v20363_v32, %v20344_v1 }
0x13c2   :  { %v5399_v26 = vadd.f32 %v5398_v43, %v4503_v13  ;;  %v5442_v12 = vadd.f32 %v5441_v44, %v4511_v40  ;;  %v5400_v45 = vpop.f32.mrb[63].mxu0  ;;  %v5443_v46 = vpop.f32.mrb[63].mxu1  ;;  %v5540_v51 = vmax.f32 %v5395_v38, 0.0  ;;  %v5542_v49 = vmax.f32 %v5438_v39, 0.0  ;;  %v18394_v13 = vld [vmem:[#allocation20 + $0x390] sm:$0xff]   ;;  %v18395_v40 = vld [vmem:[#allocation20 + $0x358] sm:$0xff]  }
0x13c3   :  { %v5401_v47 = vadd.f32 %v5400_v45, %v4507_v34  ;;  %v5444_v48 = vadd.f32 %v5443_v46, %v4515_v16  ;;  %16739 = vmatpush3.bf16.msra.mxu0 %v18377_v4  ;;  %16761 = vmatpush3.bf16.msra.mxu1 %v18378_v37  ;;  %v5541_v56 = vmax.f32 %v5397_v22, 0.0  ;;  %v5543_v62 = vmax.f32 %v5440_v42, 0.0  ;;  %v18398_v34 = vld [vmem:[#allocation20 + $0x398] sm:$0xff]   ;;  %v18399_v16 = vld [vmem:[#allocation20 + $0x360] sm:$0xff]   ;;  %v18403_v37 = vld [vmem:[#allocation20 + $0x368] sm:$0xff]  }
0x13c4   :  { %v5556_v52 = vmax.f32 %v5399_v26, 0.0  ;;  %v5558_v53 = vmax.f32 %v5442_v12, 0.0  ;;  %16740 = vmatprep.subr.bf16.mxu0 %v18379_v31  ;;  %16762 = vmatprep.subr.bf16.mxu1 %v18380_v5  ;;  %v18402_v4 = vld [vmem:[#allocation20 + $0x3a0] sm:$0xff]   ;;  %v18404_v38 = vld [vmem:[#allocation20 + $0x3e8] sm:$0xff]   ;;  %v4527_v31 = vrot.slane %v20363_v32, %v20347_v3  ;;  %v18407_v5 = vld [vmem:[#allocation20 + $0x370] sm:$0xff]   ;;  %v4523_v42 = vrot.slane %v20363_v32, %v20350_v8 }
0x13c5   :  { %v5557_v0 = vmax.f32 %v5401_v47, 0.0  ;;  %v5559_v19 = vmax.f32 %v5444_v48, 0.0  ;;  %v18405_v39 = vld [vmem:[#allocation20 + $0x328] sm:$0xff]   ;;  %v18408_v22 = vld [vmem:[#allocation20 + $0x3f0] sm:$0xff]   ;;  %v4531_v43 = vrot.slane %v20363_v32, %v20353_v14 }
0x13c6   :  { %v5572_v25 = vpack.c.bf16 %v5556_v52, %v5540_v51  ;;  %v5574_v20 = vpack.c.bf16 %v5558_v53, %v5542_v49  ;;  %v18409_v12 = vld [vmem:[#allocation20 + $0x330] sm:$0xff]   ;;  %v18412_v51 = vld [vmem:[#allocation20 + $0x3f8] sm:$0xff]  }
0x13c7   :  { %v5573_v23 = vpack.c.bf16 %v5557_v0, %v5541_v56  ;;  %v5575_v24 = vpack.c.bf16 %v5559_v19, %v5543_v62  ;;  %16741 = vmatpush3.bf16.msra.mxu0 %v18381_v7  ;;  %16763 = vmatpush3.bf16.msra.mxu1 %v18382_v50  ;;  %v18410_v45 = vld [vmem:[#allocation20 + $0x3b0] sm:$0xff]   ;;  %v18411_v50 = vld [vmem:[#allocation20 + $0x378] sm:$0xff]  }
0x13c8   :  { %16770 = vmatprep.subr.bf16.mxu0 %v18383_v11  ;;  %16792 = vmatprep.subr.bf16.mxu1 %v18384_v55 }
0x13c9   :  { %6807 = vmatprep.mubr.bf16.mxu0 %v5573_v23  ;;  %6848 = vmatprep.mubr.bf16.mxu1 %v5575_v24 }
0x13ca   :  { %6808 = vmatmul.mubr.bf16.vlgmr.msra.gmra.mrb[76].mxu0 %v5572_v25  ;;  %6849 = vmatmul.mubr.bf16.vlgmr.msra.gmra.mrb[76].mxu1 %v5574_v20  ;;  %v18413_v25 = vld [vmem:[#allocation20 + $0x338] sm:$0xff]  }
0x13cb   :  { %16771 = vmatpush3.bf16.msra.mxu0 %v18385_v27  ;;  %16793 = vmatpush3.bf16.msra.mxu1 %v18386_v28  ;;  %v18414_v20 = vld [vmem:[#allocation20 + $0x3b8] sm:$0xff]  }
0x13cc   :  { %16772 = vmatprep.subr.bf16.mxu0 %v18387_v57  ;;  %16794 = vmatprep.subr.bf16.mxu1 %v18388_v29 }
0x13cf   :  { %16773 = vmatpush3.bf16.msra.mxu0 %v18389_v30  ;;  %16795 = vmatpush3.bf16.msra.mxu1 %v18390_v54 }
0x13d0   :  { %16774 = vmatprep.subr.bf16.mxu0 %v18391_v9  ;;  %16796 = vmatprep.subr.bf16.mxu1 %v18392_v63 }
0x13d3   :  { %16775 = vmatpush3.bf16.msra.mxu0 %v18393_v15  ;;  %16797 = vmatpush3.bf16.msra.mxu1 %v18394_v13 }
0x13d4   :  { %16776 = vmatprep.subr.bf16.mxu0 %v18395_v40  ;;  %16798 = vmatprep.subr.bf16.mxu1 %v18396_v33 }
0x13d7   :  { %16777 = vmatpush3.bf16.msra.mxu0 %v18397_v6  ;;  %16799 = vmatpush3.bf16.msra.mxu1 %v18398_v34  ;;  %v15752_v6 = vld [vmem:[#allocation22] ss:$0 sm:$0xff] }
0x13d8   :  { %16778 = vmatprep.subr.bf16.mxu0 %v18399_v16  ;;  %16800 = vmatprep.subr.bf16.mxu1 %v18400_v35 }
0x13db   :  { %16779 = vmatpush3.bf16.msra.mxu0 %v18401_v36  ;;  %16801 = vmatpush3.bf16.msra.mxu1 %v18402_v4 }
0x13dc   :  { %16780 = vmatprep.subr.bf16.mxu0 %v18403_v37  ;;  %16802 = vmatprep.subr.bf16.mxu1 %v18404_v38 }
0x13df   :  { %v5480_v44 = vpop.f32.mrb[64].mxu0  ;;  %v5523_v26 = vpop.f32.mrb[64].mxu1  ;;  %16781 = vmatpush3.bf16.msra.mxu0 %v18405_v39  ;;  %16803 = vmatpush3.bf16.msra.mxu1 %v18406_v21 }
0x13e0   :  { %v5481_v46 = vadd.f32 %v5480_v44, %v4519_v10  ;;  %v5524_v47 = vadd.f32 %v5523_v26, %v4527_v31  ;;  %v5482_v48 = vpop.f32.mrb[65].mxu0  ;;  %v5525_v7 = vpop.f32.mrb[65].mxu1  ;;  %16782 = vmatprep.subr.bf16.mxu0 %v18407_v5  ;;  %16804 = vmatprep.subr.bf16.mxu1 %v18408_v22 }
0x13e1   :  { %v5483_v49 = vadd.f32 %v5482_v48, %v4523_v42  ;;  %v5526_v52 = vadd.f32 %v5525_v7, %v4531_v43  ;;  %v5484_v53 = vpop.f32.mrb[66].mxu0  ;;  %v5527_v11 = vpop.f32.mrb[66].mxu1 }
0x13e2   :  { %v5485_v55 = vadd.f32 %v5484_v53, %v4519_v10  ;;  %v5528_v32 = vadd.f32 %v5527_v11, %v4527_v31  ;;  %v5486_v56 = vpop.f32.mrb[67].mxu0  ;;  %v5529_v62 = vpop.f32.mrb[67].mxu1  ;;  %v5544_v23 = vmax.f32 %v5481_v46, 0.0  ;;  %v5546_v24 = vmax.f32 %v5524_v47, 0.0 }
0x13e3   :  { %v5487_v0 = vadd.f32 %v5486_v56, %v4523_v42  ;;  %v5530_v19 = vadd.f32 %v5529_v62, %v4531_v43  ;;  %16783 = vmatpush3.bf16.msra.mxu0 %v18409_v12  ;;  %16805 = vmatpush3.bf16.msra.mxu1 %v18410_v45  ;;  %v5545_v57 = vmax.f32 %v5483_v49, 0.0  ;;  %v5547_v29 = vmax.f32 %v5526_v52, 0.0 }
0x13e4   :  { %v5560_v27 = vmax.f32 %v5485_v55, 0.0  ;;  %v5562_v28 = vmax.f32 %v5528_v32, 0.0  ;;  %16784 = vmatprep.subr.bf16.mxu0 %v18411_v50  ;;  %16806 = vmatprep.subr.bf16.mxu1 %v18412_v51 }
0x13e5   :  { %v5561_v30 = vmax.f32 %v5487_v0, 0.0  ;;  %v5563_v54 = vmax.f32 %v5530_v19, 0.0 }
0x13e6   :  { %v5576_v9 = vpack.c.bf16 %v5560_v27, %v5544_v23  ;;  %v5578_v63 = vpack.c.bf16 %v5562_v28, %v5546_v24 }
0x13e7   :  { %v5577_v15 = vpack.c.bf16 %v5561_v30, %v5545_v57  ;;  %v5579_v13 = vpack.c.bf16 %v5563_v54, %v5547_v29  ;;  %16785 = vmatpush3.bf16.msra.mxu0 %v18413_v25  ;;  %16807 = vmatpush3.bf16.msra.mxu1 %v18414_v20 }
0x13e8   :  { %17420 = vmatprep.subr.bf16.mxu1 %v19632_v41 }
0x13e9   :  { %6889 = vmatprep.mubr.bf16.mxu0 %v5577_v15  ;;  %6930 = vmatprep.mubr.bf16.mxu1 %v5579_v13 }
0x13ea   :  { %6890 = vmatmul.mubr.bf16.vlgmr.msra.gmra.mrb[80].mxu0 %v5576_v9  ;;  %6931 = vmatmul.mubr.bf16.vlgmr.msra.gmra.mrb[80].mxu1 %v5578_v63 }
0x13eb   :  { %7197 = vmatprep.mubr.bf16.mxu0 %v19633_v2  ;;  %17436 = vmatprep.mubr.msk.bf16.mxu1 %vm19634_vm0, %v19632_v41 }
0x145d   :  { %v16654_v40 = vpop.f32.mrb[68].mxu0  ;;  %v16676_v33 = vpop.f32.mrb[68].mxu1 }
0x145e   :  { %v16655_v34 = vpop.f32.mrb[69].mxu0  ;;  %v16677_v16 = vpop.f32.mrb[69].mxu1 }
0x145f   :  { %v16656_v35 = vadd.f32 %v16655_v34, %v16654_v40  ;;  %v16678_v36 = vadd.f32 %v16677_v16, %v16676_v33  ;;  %v16657_v4 = vpop.f32.mrb[70].mxu0  ;;  %v16679_v37 = vpop.f32.mrb[70].mxu1 }
0x1460   :  { %v16658_v38 = vpop.f32.mrb[71].mxu0  ;;  %v16680_v39 = vpop.f32.mrb[71].mxu1 }
0x1461   :  { %v6646_v21 = vadd.f32 %v16656_v35, %v15752_v6  ;;  %v16659_v10 = vadd.f32 %v16658_v38, %v16657_v4  ;;  %v16681_v31 = vadd.f32 %v16680_v39, %v16679_v37 }
0x1463   :  { %v6687_v5 = vadd.f32 %v16678_v36, %v6646_v21  ;;  %v6649_v22 = vadd.f32 %v16659_v10, %v15752_v6 }
0x1465   :  { %v6690_v42 = vadd.f32 %v16681_v31, %v6649_v22 }
0x147d   :  { %v16698_v43 = vpop.f32.mrb[72].mxu0  ;;  %v16720_v44 = vpop.f32.mrb[72].mxu1 }
0x147e   :  { %v16699_v26 = vpop.f32.mrb[73].mxu0  ;;  %v16721_v12 = vpop.f32.mrb[73].mxu1 }
0x147f   :  { %v16700_v45 = vadd.f32 %v16699_v26, %v16698_v43  ;;  %v16722_v46 = vadd.f32 %v16721_v12, %v16720_v44  ;;  %v16701_v47 = vpop.f32.mrb[74].mxu0  ;;  %v16723_v48 = vpop.f32.mrb[74].mxu1  ;;  %v18417_v43 = vld [vmem:[#allocation26 + $0x4] ss:$12 sps:$4 sm:$0xff]   ;;  %v18415_v44 = vld [vmem:[#allocation26] ss:$12 sps:$4 sm:$0xff]  }
0x1480   :  { %v16702_v7 = vpop.f32.mrb[75].mxu0  ;;  %v16724_v50 = vpop.f32.mrb[75].mxu1  ;;  %v18418_v26 = vld [vmem:[#allocation26 + $0x8] ss:$12 sps:$4 sm:$0xff]   ;;  %7165 = vmatprep.subr.bf16.mxu0 %v18417_v43  ;;  %v18422_v12 = vld [vmem:[#allocation26 + $0x20] ss:$12 sps:$4 sm:$0xff]  }
0x1481   :  { %v6728_v51 = vadd.f32 %v16700_v45, %v6687_v5  ;;  %v16703_v49 = vadd.f32 %v16702_v7, %v16701_v47  ;;  %v16725_v52 = vadd.f32 %v16724_v50, %v16723_v48  ;;  %7166 = vmatpush1.bf16.msra.mxu0 %v18415_v44  ;;  %17421 = vmatpush3.bf16.msra.mxu1 %v18418_v26  ;;  %v18425_v45 = vld [vmem:[#allocation26 + $0x34] ss:$12 sps:$4 sm:$0xff]   ;;  %v18426_v47 = vld [vmem:[#allocation26 + $0x38] ss:$12 sps:$4 sm:$0xff]   ;;  %v18430_v50 = vld [vmem:[#allocation26 + $0x50] ss:$12 sps:$4 sm:$0xff]  }
0x1482   :  { %17422 = vmatprep.subr.bf16.mxu1 %v19632_v41  ;;  %v18429_v48 = vld [vmem:[#allocation26 + $0x4c] ss:$12 sps:$4 sm:$0xff]   ;;  %v18427_v7 = vld [vmem:[#allocation26 + $0x48] ss:$12 sps:$4 sm:$0xff]  }
0x1483   :  { %v6769_v53 = vadd.f32 %v16722_v46, %v6728_v51  ;;  %v6731_v11 = vadd.f32 %v16703_v49, %v6690_v42  ;;  %v18423_v46 = vld [vmem:[#allocation26 + $0x30] ss:$12 sps:$4 sm:$0xff]   ;;  %v18431_v49 = vld [vmem:[#allocation26 + $0x60] ss:$12 sps:$4 sm:$0xff]  }
0x1484   :  { %v18433_v51 = vld [vmem:[#allocation26 + $0x64] ss:$12 sps:$4 sm:$0xff]  }
0x1485   :  { %v6772_v55 = vadd.f32 %v16725_v52, %v6731_v11  ;;  %17423 = vmatpush3.bf16.msra.mxu1 %v18422_v12  ;;  %v18434_v52 = vld [vmem:[#allocation26 + $0x68] ss:$12 sps:$4 sm:$0xff]   ;;  %v18435_v11 = vld [vmem:[#allocation26 + $0x78] ss:$12 sps:$4 sm:$0xff]  }
0x1486   :  { %17424 = vmatprep.subr.bf16.mxu1 %v19632_v41 }
0x1489   :  { %17425 = vmatpush3.bf16.msra.mxu1 %v18426_v47 }
0x148a   :  { %17426 = vmatprep.subr.bf16.mxu1 %v19632_v41 }
0x148d   :  { %17427 = vmatpush3.bf16.msra.mxu1 %v18430_v50 }
0x148e   :  { %17428 = vmatprep.subr.bf16.mxu1 %v19632_v41 }
0x1491   :  { %17429 = vmatpush3.bf16.msra.mxu1 %v18434_v52 }
0x1492   :  { %17430 = vmatprep.subr.bf16.mxu1 %v19632_v41 }
0x149d   :  { %v16742_v32 = vpop.f32.mrb[76].mxu0  ;;  %v16764_v56 = vpop.f32.mrb[76].mxu1 }
0x149e   :  { %v16743_v62 = vpop.f32.mrb[77].mxu0  ;;  %v16765_v0 = vpop.f32.mrb[77].mxu1 }
0x149f   :  { %v16744_v19 = vadd.f32 %v16743_v62, %v16742_v32  ;;  %v16766_v25 = vadd.f32 %v16765_v0, %v16764_v56  ;;  %v16745_v20 = vpop.f32.mrb[78].mxu0  ;;  %v16767_v23 = vpop.f32.mrb[78].mxu1  ;;  %v18441_v32 = vld [vmem:[#allocation26 + $0x94] ss:$12 sps:$4 sm:$0xff]   ;;  %v18439_v56 = vld [vmem:[#allocation26 + $0x90] ss:$12 sps:$4 sm:$0xff]  }
0x14a0   :  { %v16746_v24 = vpop.f32.mrb[79].mxu0  ;;  %v16768_v27 = vpop.f32.mrb[79].mxu1  ;;  %v18442_v62 = vld [vmem:[#allocation26 + $0x98] ss:$12 sps:$4 sm:$0xff]  }
0x14a1   :  { %v6810_v28 = vadd.f32 %v16744_v19, %v6769_v53  ;;  %v16747_v57 = vadd.f32 %v16746_v24, %v16745_v20  ;;  %v16769_v29 = vadd.f32 %v16768_v27, %v16767_v23  ;;  %v18437_v53 = vld [vmem:[#allocation26 + $0x7c] ss:$12 sps:$4 sm:$0xff]   ;;  %v18445_v0 = vld [vmem:[#allocation26 + $0xac] ss:$12 sps:$4 sm:$0xff]  }
0x14a2   :  { %v18443_v19 = vld [vmem:[#allocation26 + $0xa8] ss:$12 sps:$4 sm:$0xff]  }
0x14a3   :  { %v6851_v30 = vadd.f32 %v16766_v25, %v6810_v28  ;;  %v6813_v54 = vadd.f32 %v16747_v57, %v6772_v55  ;;  %v18438_v55 = vld [vmem:[#allocation26 + $0x80] ss:$12 sps:$4 sm:$0xff]   ;;  %v18446_v25 = vld [vmem:[#allocation26 + $0xb0] ss:$12 sps:$4 sm:$0xff]  }
0x14a4   :  { %17431 = vmatpush3.bf16.msra.mxu1 %v18438_v55 }
0x14a5   :  { %v6854_v9 = vadd.f32 %v16769_v29, %v6813_v54  ;;  %17432 = vmatprep.subr.bf16.mxu1 %v19632_v41 }
0x14a8   :  { %17433 = vmatpush3.bf16.msra.mxu1 %v18442_v62 }
0x14a9   :  { %17434 = vmatprep.subr.bf16.mxu1 %v19632_v41 }
0x14ac   :  { %17435 = vmatpush3.bf16.msra.mxu1 %v18446_v25 }
0x14ad   :  { %17446 = vmatprep.subr.bf16.mxu1 %v19632_v41 }
0x14bd   :  { %v16786_v63 = vpop.f32.mrb[80].mxu0  ;;  %v16808_v15 = vpop.f32.mrb[80].mxu1 }
0x14be   :  { %v16787_v13 = vpop.f32.mrb[81].mxu0  ;;  %v16809_v40 = vpop.f32.mrb[81].mxu1 }
0x14bf   :  { %v16788_v33 = vadd.f32 %v16787_v13, %v16786_v63  ;;  %v16810_v6 = vadd.f32 %v16809_v40, %v16808_v15  ;;  %v16789_v34 = vpop.f32.mrb[82].mxu0  ;;  %v16811_v16 = vpop.f32.mrb[82].mxu1 }
0x14c0   :  { %v16790_v35 = vpop.f32.mrb[83].mxu0  ;;  %v16812_v36 = vpop.f32.mrb[83].mxu1 }
0x14c1   :  { %v6892_v4 = vadd.f32 %v16788_v33, %v6851_v30  ;;  %v16791_v37 = vadd.f32 %v16790_v35, %v16789_v34  ;;  %v16813_v38 = vadd.f32 %v16812_v36, %v16811_v16  ;;  %v15881_v35 = vld [vmem:[#allocation23] ss:$0 sm:$0xff] }
0x14c3   :  { %v6933_v39 = vadd.f32 %v16810_v6, %v6892_v4  ;;  %v6895_v21 = vadd.f32 %v16791_v37, %v6854_v9 }
0x14c5   :  { %v6936_v10 = vadd.f32 %v16813_v38, %v6895_v21  ;;  %v20386_v31 = vadd.f32 %v6933_v39, %v20313_v18  ;;  %v18421_v18 = vld [vmem:[#allocation26 + $0x1c] ss:$12 sps:$4 sm:$0xff]  }
0x14c6   :  { %7167 = vmatprep.subr.bf16.mxu0 %v18421_v18  ;;  %v15882_v21 = vld [vmem:[#allocation25] ss:$0 sm:$0xff] }
0x14c7   :  { %6943 = vadd.xlane.f32.xlu0 %v20386_v31  ;;  %v20390_v5 = vadd.f32 %v6936_v10, %v20311_v17  ;;  %v6949_v22 = vmul.f32 %v20386_v31, %v20386_v31  ;;  %v18419_v17 = vld [vmem:[#allocation26 + $0x18] ss:$12 sps:$4 sm:$0xff]  }
0x14c8   :  { %7168 = vmatpush1.bf16.msra.mxu0 %v18419_v17 }
0x14c9   :  { %6945 = vadd.xlane.f32.xlu1 %v20390_v5  ;;  %v6950_v42 = vmul.f32 %v20390_v5, %v20390_v5  ;;  %7169 = vmatprep.subr.bf16.mxu0 %v18425_v45 }
0x14cb   :  { %6951 = vadd.xlane.f32.xlu0 %v6949_v22 }
0x14cc   :  { %7170 = vmatpush1.bf16.msra.mxu0 %v18423_v46 }
0x14cd   :  { %6953 = vadd.xlane.f32.xlu1 %v6950_v42  ;;  %7171 = vmatprep.subr.bf16.mxu0 %v18429_v48 }
0x14d0   :  { %7172 = vmatpush1.bf16.msra.mxu0 %v18427_v7 }
0x14d1   :  { %7173 = vmatprep.subr.bf16.mxu0 %v18433_v51 }
0x14d4   :  { %7174 = vmatpush1.bf16.msra.mxu0 %v18431_v49 }
0x14d5   :  { %7175 = vmatprep.subr.bf16.mxu0 %v18437_v53 }
0x14d8   :  { %7176 = vmatpush1.bf16.msra.mxu0 %v18435_v11 }
0x14d9   :  { %7177 = vmatprep.subr.bf16.mxu0 %v18441_v32 }
0x14dc   :  { %7178 = vmatpush1.bf16.msra.mxu0 %v18439_v56 }
0x14dd   :  { %7179 = vmatprep.subr.bf16.mxu0 %v18445_v0 }
0x14e0   :  { %7180 = vmatpush1.bf16.msra.mxu0 %v18443_v19 }
0x14e1   :  { %17440 = vmatprep.subr.bf16.mxu0 %v19632_v41 }
0x1554   :  { %v6944_v20 = vpop.xlane.xlu0 %6943 }
0x1555   :  { %v6947_v23 = vmul.f32 0.0078125, %v6944_v20 }
0x1556   :  { %v6946_v24 = vpop.xlane.xlu1 %6945 }
0x1557   :  { %v6948_v27 = vmul.f32 0.0078125, %v6946_v24  ;;  %v6957_v57 = vmul.f32 %v6947_v23, %v6947_v23  ;;  %v6963_v34 = vsub.f32 %v20386_v31, %v6947_v23  ;;  %v7020_v31 = vld [vmem:[#allocation28] sm:$0x7] }
0x1558   :  { %v6952_v28 = vpop.xlane.xlu0 %6951  ;;  %v7025_v44 = vrot.slane %v7020_v31, %v20041_v58  ;;  %v7033_v45 = vrot.slane %v7020_v31, %v20044_v59 }
0x1559   :  { %v6955_v29 = vmul.f32 0.0078125, %v6952_v28  ;;  %v6958_v54 = vmul.f32 %v6948_v27, %v6948_v27  ;;  %v6964_v36 = vsub.f32 %v20390_v5, %v6948_v27  ;;  %v7029_v5 = vrot.slane %v7020_v31, %v20047_v60 }
0x155a   :  { %v6954_v30 = vpop.xlane.xlu1 %6953 }
0x155b   :  { %v6959_v9 = vsub.f32 %v6955_v29, %v6957_v57  ;;  %v6956_v63 = vmul.f32 0.0078125, %v6954_v30 }
0x155d   :  { %v6961_v15 = vmax.f32 %v6959_v9, 0.0  ;;  %v6960_v13 = vsub.f32 %v6956_v63, %v6958_v54 }
0x155f   :  { %v6965_v40 = vadd.f32 1e-05, %v6961_v15  ;;  %v6962_v33 = vmax.f32 %v6960_v13, 0.0 }
0x1561   :  { %18827 = vrsqrt.f32 %v6965_v40  ;;  %v6966_v6 = vadd.f32 1e-05, %v6962_v33 }
0x1563   :  { %18829 = vrsqrt.f32 %v6966_v6 }
0x156b   :  { %v18828_v16 = vpop.eup %18827 }
0x156c   :  { %v6969_v4 = vmul.f32 %v18828_v16, %v6963_v34 }
0x156d   :  { %v18830_v37 = vpop.eup %18829 }
0x156e   :  { %v6970_v38 = vmul.f32 %v18830_v37, %v6964_v36  ;;  %v6977_v39 = vmul.f32 %v15881_v35, %v6969_v4 }
0x1570   :  { %v6978_v10 = vmul.f32 %v15881_v35, %v6970_v38  ;;  %v20408_v22 = vadd.f32 %v15882_v21, %v6977_v39 }
0x1572   :  { %v20410_v42 = vadd.f32 %v15882_v21, %v6978_v10 }
0x1574   :  { %v6987_v43 = vpack.c.bf16 %v20410_v42, %v20408_v22 }
0x1576   :  { %7198 = vmatmul.mubr.bf16.vlgmr.msra.gmra.mrb[84].mxu0 %v6987_v43  ;;  %17437 = vmatmul.mubr.bf16.vlgmr.msra.gmra.mrb[84].mxu1 %v6987_v43 }
0x1577   :  { %17442 = vmatprep.mubr.msk.bf16.mxu0 %vm19634_vm0, %v19632_v41  ;;  %17448 = vmatprep.mubr.msk.bf16.mxu1 %vm19634_vm0, %v19632_v41 }
0x1649   :  { %v7199_v26 = vpop.f32.mrb[84].mxu0  ;;  %v7242_v18 = vpop.f32.mrb[84].mxu1 }
0x164a   :  { %v7201_v17 = vpop.f32.mrb[85].mxu0  ;;  %v17438_v12 = vpop.f32.mrb[85].mxu1  ;;  %v7200_v51 = vadd.f32 %v7199_v26, %v7025_v44  ;;  %v7243_v53 = vadd.f32 %v7242_v18, %v7033_v45 }
0x164b   :  { %v7202_v46 = vadd.f32 %v7201_v17, %v7029_v5  ;;  %v7203_v47 = vpop.f32.mrb[86].mxu0  ;;  %v7245_v48 = vpop.f32.mrb[86].mxu1 }
0x164c   :  { %v7205_v7 = vpop.f32.mrb[87].mxu0  ;;  %v17439_v50 = vpop.f32.mrb[87].mxu1  ;;  %v7204_v11 = vadd.f32 %v7203_v47, %v7025_v44  ;;  %v7249_v56 = vmul.f32 0.17677669, %v7200_v51  ;;  %v7246_v62 = vadd.f32 %v7245_v48, %v7033_v45  ;;  %v20430_v19 = vpack.c.bf16 %v7243_v53, %v7243_v53 }
0x164d   :  { %v20421_v49 = vpack.c.bf16 %v7202_v46, %v7202_v46  ;;  %v7206_v52 = vadd.f32 %v7205_v7, %v7029_v5 }
0x164e   :  { %v7250_v25 = vmul.f32 0.17677669, %v7204_v11  ;;  %v20433_v20 = vpack.c.bf16 %v7249_v56, %v7249_v56  ;;  %v20435_v23 = vpack.c.bf16 %v7246_v62, %v7246_v62  ;;  %v7405_v27 = vsel %vm3295_vm2, %v20430_v19, 0 }
0x164f   :  { %v20423_v55 = vpack.c.bf16 %v7206_v52, %v7206_v52  ;;  %v7289_v32 = vsel %vm3174_vm1, %v20421_v49, 0 }
0x1650   :  { %17441 = vmatpush3.bf16.xpose.msra.mxu0 %v7289_v32  ;;  %v20437_v24 = vpack.c.bf16 %v7250_v25, %v7250_v25  ;;  %v7451_v28 = vsel %vm3295_vm2, %v20435_v23, 0 }
0x1651   :  { %v7335_v0 = vsel %vm3174_vm1, %v20423_v55, 0  ;;  %17452 = vmatprep.subr.bf16.mxu0 %v19632_v41 }
0x1652   :  { %17447 = vmatpush3.bf16.xpose.msra.mxu1 %v7335_v0 }
0x1653   :  { %17458 = vmatprep.subr.bf16.mxu1 %v19632_v41 }
0x1657   :  { %17443 = vmatmul.mubr.msk.bf16.vlgmr.msra.gmra.mrb[88].mxu0 %vm3174_vm1, %v20433_v20 }
0x1658   :  { %17453 = vmatpush3.bf16.msra.mxu0 %v7405_v27  ;;  %17454 = vmatprep.mubr.msk.bf16.mxu0 %vm19634_vm0, %v19632_v41 }
0x1659   :  { %17449 = vmatmul.mubr.msk.bf16.vlgmr.msra.gmra.mrb[88].mxu1 %vm3174_vm1, %v20437_v24  ;;  %17464 = vmatprep.subr.bf16.mxu0 %v19632_v41 }
0x165a   :  { %17459 = vmatpush3.bf16.msra.mxu1 %v7451_v28  ;;  %17460 = vmatprep.mubr.msk.bf16.mxu1 %vm19634_vm0, %v19632_v41 }
0x165b   :  { %17470 = vmatprep.subr.bf16.mxu1 %v19632_v41 }
0x172a   :  { %v7325_v57 = vpop.f32.mrb[88].mxu0 }
0x172b   :  { %v17444_v29 = vpop.f32.mrb[89].mxu0  ;;  %v7377_v30 = vsel %vm3267_vm3, %v7325_v57, -inf }
0x172c   :  { %v7371_v54 = vpop.f32.mrb[88].mxu1  ;;  %7378 = vmax.xlane.f32.xlu0 %v7377_v30  ;;  %v7328_v9 = vpop.f32.mrb[90].mxu0 }
0x172d   :  { %v17445_v63 = vpop.f32.mrb[91].mxu0  ;;  %v17450_v15 = vpop.f32.mrb[89].mxu1  ;;  %v7380_v13 = vsel %vm3267_vm3, %v7371_v54, -inf }
0x172e   :  { %7381 = vmax.xlane.f32.xlu1 %v7380_v13  ;;  %v7374_v40 = vpop.f32.mrb[90].mxu1 }
0x172f   :  { %v17451_v33 = vpop.f32.mrb[91].mxu1 }
0x173f   :  { %7546 = vrot.lane.b32.xlu1 %v20423_v55, %s19635_s14 }
0x17b9   :  { %v7379_v6 = vpop.xlane.xlu0 %7378 }
0x17ba   :  { %v7383_v34 = vsub.f32 %v7325_v57, %v7379_v6 }
0x17bb   :  { %v7382_v16 = vpop.xlane.xlu1 %7381 }
0x17bc   :  { %v7385_v35 = vmul.f32 1.442695, %v7383_v34  ;;  %v7384_v36 = vsub.f32 %v7371_v54, %v7382_v16 }
0x17be   :  { %18831 = vpow2.f32 %v7385_v35  ;;  %v7387_v4 = vmul.f32 1.442695, %v7384_v36 }
0x17bf   :  { %v7547_v10 = vpop.permute.xlu1 %7546 }
0x17c0   :  { %18833 = vpow2.f32 %v7387_v4  ;;  %v7552_v47 = vsel %vm3174_vm1, %v7547_v10, 0 }
0x17c8   :  { %v18832_v37 = vpop.eup %18831 }
0x17c9   :  { %v7389_v38 = vsel %vm3267_vm3, %v18832_v37, 0.0 }
0x17ca   :  { %v18834_v39 = vpop.eup %18833  ;;  %7390 = vadd.xlane.f32.xlu0 %v7389_v38 }
0x17cb   :  { %v7392_v21 = vsel %vm3267_vm3, %v18834_v39, 0.0 }
0x17cc   :  { %7393 = vadd.xlane.f32.xlu1 %v7392_v21 }
0x17dd   :  { %7494 = vrot.lane.b32.xlu1 %v20433_v20, %s19635_s14 }
0x17e0   :  { %7496 = vrot.lane.b32.xlu0 %v20421_v49, %s19635_s14 }
0x17e1   :  { %7544 = vrot.lane.b32.xlu1 %v20437_v24, %s19635_s14 }
0x1857   :  { %v7391_v43 = vpop.xlane.xlu0 %7390 }
0x1858   :  { %18835 = vrcp.f32 %v7391_v43 }
0x1859   :  { %v7394_v31 = vpop.xlane.xlu1 %7393 }
0x185a   :  { %18837 = vrcp.f32 %v7394_v31 }
0x185b   :  { %v7497_v18 = vpop.permute.xlu0 %7496 }
0x185c   :  { %v7502_v45 = vsel %vm3174_vm1, %v7497_v18, 0 }
0x185d   :  { %v7495_v48 = vpop.permute.xlu1 %7494 }
0x1861   :  { %v7545_v7 = vpop.permute.xlu1 %7544 }
0x1862   :  { %v18836_v5 = vpop.eup %18835 }
0x1863   :  { %v7397_v44 = vmul.f32 %v18836_v5, %v18832_v37 }
0x1864   :  { %v18838_v26 = vpop.eup %18837 }
0x1865   :  { %v7398_v17 = vmul.f32 %v18838_v26, %v18834_v39  ;;  %v7399_v12 = vpack.c.bf16 %v7397_v44, %v7397_v44  ;;  %v18449_v26 = vld [vmem:[%s21050_s24 + $0x10] sm:$0xff]  }
0x1867   :  { %17455 = vmatmul.mubr.msk.bf16.vlgmr.msra.gmra.mrb[92].mxu0 %vm3267_vm3, %v7399_v12  ;;  %v7400_v46 = vpack.c.bf16 %v7398_v17, %v7398_v17 }
0x1868   :  { %17465 = vmatpush3.bf16.xpose.msra.mxu0 %v7502_v45  ;;  %17466 = vmatprep.mubr.msk.bf16.mxu0 %vm19634_vm0, %v19632_v41  ;;  %v18447_v45 = vld [vmem:[%s21050_s24] sm:$0xff]  }
0x1869   :  { %17461 = vmatmul.mubr.msk.bf16.vlgmr.msra.gmra.mrb[92].mxu1 %vm3267_vm3, %v7400_v46  ;;  %17476 = vmatprep.subr.bf16.mxu0 %v19632_v41 }
0x186a   :  { %17471 = vmatpush3.bf16.xpose.msra.mxu1 %v7552_v47  ;;  %17472 = vmatprep.mubr.msk.bf16.mxu1 %vm19634_vm0, %v19632_v41  ;;  %v18450_v47 = vld [vmem:[%s21050_s24 + $0x18] sm:$0xff]  }
0x186b   :  { %17482 = vmatprep.subr.bf16.mxu1 %v19632_v41 }
0x186f   :  { %17467 = vmatmul.mubr.msk.bf16.vlgmr.msra.gmra.mrb[96].mxu0 %vm3174_vm1, %v7495_v48  ;;  %v18448_v48 = vld [vmem:[%s21050_s24 + $0x8] sm:$0xff]  }
0x1870   :  { %17478 = vmatprep.mubr.msk.bf16.mxu0 %vm19634_vm0, %v19632_v41 }
0x1871   :  { %17473 = vmatmul.mubr.msk.bf16.vlgmr.msra.gmra.mrb[96].mxu1 %vm3174_vm1, %v7545_v7 }
0x1872   :  { %17484 = vmatprep.mubr.msk.bf16.mxu1 %vm19634_vm0, %v19632_v41 }
0x193a   :  { %v20481_v50 = vpop.f32.mrb[92].mxu0 }
0x193b   :  { %v17456_v51 = vpop.f32.mrb[93].mxu0 }
0x193c   :  { %v7444_v52 = vpop.f32.mrb[94].mxu0  ;;  %v20483_v53 = vpop.f32.mrb[92].mxu1 }
0x193d   :  { %v7493_v11 = vpack.c.bf16 %v20483_v53, %v20481_v50  ;;  %v17457_v32 = vpop.f32.mrb[95].mxu0  ;;  %v17462_v56 = vpop.f32.mrb[93].mxu1 }
0x193e   :  { %v7490_v62 = vpop.f32.mrb[94].mxu1 }
0x193f   :  { %v17463_v0 = vpop.f32.mrb[95].mxu1 }
0x1942   :  { %v7538_v25 = vpop.f32.mrb[96].mxu0 }
0x1943   :  { %v17468_v27 = vpop.f32.mrb[97].mxu0  ;;  %v7594_v28 = vsel %vm3267_vm3, %v7538_v25, -inf }
0x1944   :  { %v7588_v57 = vpop.f32.mrb[96].mxu1  ;;  %7595 = vmax.xlane.f32.xlu0 %v7594_v28  ;;  %v7541_v29 = vpop.f32.mrb[98].mxu0 }
0x1945   :  { %v17469_v30 = vpop.f32.mrb[99].mxu0  ;;  %v17474_v54 = vpop.f32.mrb[97].mxu1  ;;  %v7597_v9 = vsel %vm3267_vm3, %v7588_v57, -inf }
0x1946   :  { %7598 = vmax.xlane.f32.xlu1 %v7597_v9  ;;  %v7591_v63 = vpop.f32.mrb[98].mxu1 }
0x1947   :  { %v17475_v15 = vpop.f32.mrb[99].mxu1 }
0x1957   :  { %7666 = vrot.lane.b32.xlu1 %v20435_v23, %s19635_s14 }
0x195b   :  { %7829 = vrot.lane.b32.xlu1 %v20421_v49, %s19603_s2 }
0x195f   :  { %7879 = vrot.lane.b32.xlu1 %v20423_v55, %s19603_s2 }
0x1963   :  { %7877 = vrot.lane.b32.xlu1 %v20437_v24, %s19603_s2 }
0x19d1   :  { %v7596_v13 = vpop.xlane.xlu0 %7595 }
0x19d2   :  { %v7600_v40 = vsub.f32 %v7538_v25, %v7596_v13 }
0x19d3   :  { %v7599_v33 = vpop.xlane.xlu1 %7598 }
0x19d4   :  { %v7602_v6 = vmul.f32 1.442695, %v7600_v40  ;;  %v7601_v34 = vsub.f32 %v7588_v57, %v7599_v33 }
0x19d6   :  { %18839 = vpow2.f32 %v7602_v6  ;;  %v7604_v16 = vmul.f32 1.442695, %v7601_v34 }
0x19d7   :  { %v7667_v35 = vpop.permute.xlu1 %7666 }
0x19d8   :  { %18841 = vpow2.f32 %v7604_v16  ;;  %v7672_v36 = vsel %vm3295_vm2, %v7667_v35, 0 }
0x19d9   :  { %17483 = vmatpush3.bf16.msra.mxu1 %v7672_v36 }
0x19da   :  { %17496 = vmatprep.subr.bf16.mxu1 %v19632_v41 }
0x19db   :  { %v7830_v7 = vpop.permute.xlu1 %7829 }
0x19dc   :  { %v7835_v28 = vsel %vm3174_vm1, %v7830_v7, 0 }
0x19df   :  { %v7880_v51 = vpop.permute.xlu1 %7879 }
0x19e0   :  { %v18840_v4 = vpop.eup %18839  ;;  %v7885_v52 = vsel %vm3174_vm1, %v7880_v51, 0 }
0x19e1   :  { %v7606_v37 = vsel %vm3267_vm3, %v18840_v4, 0.0 }
0x19e2   :  { %v18842_v38 = vpop.eup %18841  ;;  %7607 = vadd.xlane.f32.xlu0 %v7606_v37 }
0x19e3   :  { %v7609_v39 = vsel %vm3267_vm3, %v18842_v38, 0.0  ;;  %v7878_v32 = vpop.permute.xlu1 %7877 }
0x19e6   :  { %7610 = vadd.xlane.f32.xlu0 %v7609_v39 }
0x19fc   :  { %7618 = vrot.lane.b32.xlu0 %v20430_v19, %s19635_s14 }
0x1a00   :  { %7827 = vrot.lane.b32.xlu0 %v20433_v20, %s19603_s2 }
0x1a6f   :  { %v7608_v21 = vpop.xlane.xlu0 %7607 }
0x1a70   :  { %18843 = vrcp.f32 %v7608_v21 }
0x1a73   :  { %v7611_v10 = vpop.xlane.xlu0 %7610 }
0x1a74   :  { %18845 = vrcp.f32 %v7611_v10 }
0x1a77   :  { %v7619_v43 = vpop.permute.xlu0 %7618 }
0x1a78   :  { %v7624_v31 = vsel %vm3295_vm2, %v7619_v43, 0 }
0x1a79   :  { %17477 = vmatpush3.bf16.msra.mxu0 %v7624_v31 }
0x1a7a   :  { %v18844_v5 = vpop.eup %18843  ;;  %17488 = vmatprep.subr.bf16.mxu0 %v19632_v41 }
0x1a7b   :  { %v7614_v44 = vmul.f32 %v18844_v5, %v18840_v4  ;;  %v7828_v54 = vpop.permute.xlu0 %7827 }
0x1a7d   :  { %v7616_v18 = vpack.c.bf16 %v7614_v44, %v7614_v44 }
0x1a7e   :  { %v18846_v17 = vpop.eup %18845 }
0x1a7f   :  { %v7615_v12 = vmul.f32 %v18846_v17, %v18842_v38  ;;  %17479 = vmatmul.mubr.msk.bf16.vlgmr.msra.gmra.mrb[100].mxu0 %vm3267_vm3, %v7616_v18 }
0x1a80   :  { %17489 = vmatpush3.bf16.msra.mxu0 %v18449_v26  ;;  %17492 = vmatprep.mubr.msk.bf16.mxu0 %vm19634_vm0, %v19632_v41 }
0x1a81   :  { %v7617_v46 = vpack.c.bf16 %v7615_v12, %v7615_v12  ;;  %17490 = vmatprep.subr.bf16.mxu0 %v19632_v41 }
0x1a83   :  { %17485 = vmatmul.mubr.msk.bf16.vlgmr.msra.gmra.mrb[100].mxu1 %vm3267_vm3, %v7617_v46 }
0x1a84   :  { %17497 = vmatpush3.bf16.msra.mxu1 %v18447_v45  ;;  %17500 = vmatprep.mubr.msk.bf16.mxu1 %vm19634_vm0, %v19632_v41 }
0x1a85   :  { %17498 = vmatprep.subr.bf16.mxu1 %v19632_v41  ;;  %17491 = vmatpush3.bf16.msra.mxu0 %v18450_v47 }
0x1a86   :  { %17504 = vmatprep.subr.bf16.mxu0 %v19632_v41 }
0x1a88   :  { %17499 = vmatpush3.bf16.msra.mxu1 %v18448_v48 }
0x1a89   :  { %17510 = vmatprep.subr.bf16.mxu1 %v19632_v41 }
0x1a8b   :  { %17501 = vmatmul.mubr.msk.bf16.vlgmr.msra.gmra.mrb[104].mxu1 %vm3174_vm1, %v7493_v11 }
0x1a8c   :  { %17512 = vmatprep.mubr.msk.bf16.mxu1 %vm19634_vm0, %v19632_v41 }
0x1a91   :  { %17511 = vmatpush3.bf16.xpose.msra.mxu1 %v7885_v52 }
0x1a92   :  { %17522 = vmatprep.subr.bf16.mxu1 %v19632_v41 }
0x1a98   :  { %17513 = vmatmul.mubr.msk.bf16.vlgmr.msra.gmra.mrb[108].mxu1 %vm3174_vm1, %v7878_v32 }
0x1a99   :  { %17524 = vmatprep.mubr.msk.bf16.mxu1 %vm19634_vm0, %v19632_v41 }
0x1b52   :  { %v7660_v56 = vpop.f32.mrb[100].mxu0 }
0x1b53   :  { %v17480_v62 = vpop.f32.mrb[101].mxu0 }
0x1b54   :  { %v7663_v50 = vpop.f32.mrb[102].mxu0 }
0x1b55   :  { %v17481_v53 = vpop.f32.mrb[103].mxu0 }
0x1b56   :  { %v7708_v11 = vpop.f32.mrb[100].mxu1 }
0x1b57   :  { %v7714_v0 = vpack.c.bf16 %v7708_v11, %v7660_v56  ;;  %v17486_v25 = vpop.f32.mrb[101].mxu1 }
0x1b58   :  { %v7711_v27 = vpop.f32.mrb[102].mxu1  ;;  %v18451_v25 = vld [vmem:[%s21050_s24 + $0x20] sm:$0xff]  }
0x1b59   :  { %v17487_v57 = vpop.f32.mrb[103].mxu1  ;;  %17493 = vmatmul.mubr.msk.bf16.vlgmr.msra.gmra.mrb[104].mxu0 %vm3174_vm1, %v7714_v0 }
0x1b5a   :  { %17505 = vmatpush3.bf16.xpose.msra.mxu0 %v7835_v28  ;;  %17506 = vmatprep.mubr.msk.bf16.mxu0 %vm19634_vm0, %v19632_v41 }
0x1b5b   :  { %17516 = vmatprep.subr.bf16.mxu0 %v19632_v41 }
0x1b5e   :  { %v7820_v29 = vpop.f32.mrb[104].mxu1 }
0x1b5f   :  { %v17502_v30 = vpop.f32.mrb[105].mxu1 }
0x1b60   :  { %v7823_v9 = vpop.f32.mrb[106].mxu1  ;;  %v18452_v30 = vld [vmem:[%s21050_s24 + $0x28] sm:$0xff]  }
0x1b61   :  { %v17503_v63 = vpop.f32.mrb[107].mxu1  ;;  %17507 = vmatmul.mubr.msk.bf16.vlgmr.msra.gmra.mrb[108].mxu0 %vm3174_vm1, %v7828_v54 }
0x1b62   :  { %17518 = vmatprep.mubr.msk.bf16.mxu0 %vm19634_vm0, %v19632_v41 }
0x1b6b   :  { %v7921_v15 = vpop.f32.mrb[108].mxu1 }
0x1b6c   :  { %v17514_v13 = vpop.f32.mrb[109].mxu1  ;;  %v7930_v40 = vsel %vm3267_vm3, %v7921_v15, -inf }
0x1b6d   :  { %7931 = vmax.xlane.f32.xlu1 %v7930_v40  ;;  %v7924_v33 = vpop.f32.mrb[110].mxu1 }
0x1b6e   :  { %v17515_v6 = vpop.f32.mrb[111].mxu1 }
0x1b7e   :  { %7999 = vrot.lane.b32.xlu1 %v20435_v23, %s19603_s2 }
0x1b82   :  { %8108 = vrot.lane.b32.xlu1 %v20421_v49, %s19636_s4 }
0x1b86   :  { %8158 = vrot.lane.b32.xlu1 %v20423_v55, %s19636_s4 }
0x1b8a   :  { %8156 = vrot.lane.b32.xlu1 %v20437_v24, %s19636_s4 }
0x1bfa   :  { %v7932_v34 = vpop.xlane.xlu1 %7931 }
0x1bfb   :  { %v7934_v36 = vsub.f32 %v7921_v15, %v7932_v34 }
0x1bfd   :  { %v7937_v4 = vmul.f32 1.442695, %v7934_v36 }
0x1bfe   :  { %v8000_v16 = vpop.permute.xlu1 %7999 }
0x1bff   :  { %v8005_v35 = vsel %vm3295_vm2, %v8000_v16, 0  ;;  %18847 = vpow2.f32 %v7937_v4 }
0x1c00   :  { %17523 = vmatpush3.bf16.msra.mxu1 %v8005_v35 }
0x1c01   :  { %17536 = vmatprep.subr.bf16.mxu1 %v19632_v41 }
0x1c02   :  { %v8109_v51 = vpop.permute.xlu1 %8108 }
0x1c03   :  { %v8114_v32 = vsel %vm3174_vm1, %v8109_v51, 0 }
0x1c06   :  { %v8159_v40 = vpop.permute.xlu1 %8158 }
0x1c07   :  { %v8164_v35 = vsel %vm3174_vm1, %v8159_v40, 0 }
0x1c09   :  { %v18848_v31 = vpop.eup %18847 }
0x1c0a   :  { %v7942_v26 = vsel %vm3267_vm3, %v18848_v31, 0.0  ;;  %v8157_v4 = vpop.permute.xlu1 %8156 }
0x1c2c   :  { %v7764_v37 = vpop.f32.mrb[104].mxu0 }
0x1c2d   :  { %v20551_v38 = vadd.f32 %v7820_v29, %v7764_v37  ;;  %v17494_v49 = vpop.f32.mrb[105].mxu0 }
0x1c2e   :  { %v7767_v39 = vpop.f32.mrb[106].mxu0 }
0x1c2f   :  { %v20553_v21 = vadd.f32 %v7823_v9, %v7767_v39  ;;  %v17495_v55 = vpop.f32.mrb[107].mxu0 }
0x1c34   :  { %v7871_v10 = vpop.f32.mrb[108].mxu0 }
0x1c35   :  { %v17508_v24 = vpop.f32.mrb[109].mxu0  ;;  %v7927_v43 = vsel %vm3267_vm3, %v7871_v10, -inf }
0x1c36   :  { %7928 = vmax.xlane.f32.xlu0 %v7927_v43  ;;  %v7874_v5 = vpop.f32.mrb[110].mxu0 }
0x1c37   :  { %v17509_v44 = vpop.f32.mrb[111].mxu0 }
0x1c3a   :  { %7943 = vadd.xlane.f32.xlu0 %v7942_v26 }
0x1cc3   :  { %v7929_v18 = vpop.xlane.xlu0 %7928 }
0x1cc4   :  { %v7933_v17 = vsub.f32 %v7871_v10, %v7929_v18 }
0x1cc6   :  { %v7935_v12 = vmul.f32 1.442695, %v7933_v17 }
0x1cc7   :  { %v7944_v45 = vpop.xlane.xlu0 %7943 }
0x1cc8   :  { %18849 = vpow2.f32 %v7935_v12 }
0x1cc9   :  { %18851 = vrcp.f32 %v7944_v45 }
0x1cd2   :  { %v18850_v46 = vpop.eup %18849 }
0x1cd3   :  { %v18852_v47 = vpop.eup %18851  ;;  %v7939_v48 = vsel %vm3267_vm3, %v18850_v46, 0.0 }
0x1cd4   :  { %v7948_v7 = vmul.f32 %v18852_v47, %v18848_v31  ;;  %7940 = vadd.xlane.f32.xlu0 %v7939_v48 }
0x1cd6   :  { %v7950_v52 = vpack.c.bf16 %v7948_v7, %v7948_v7 }
0x1cd8   :  { %17525 = vmatmul.mubr.msk.bf16.vlgmr.msra.gmra.mrb[112].mxu1 %vm3267_vm3, %v7950_v52 }
0x1cd9   :  { %17537 = vmatpush3.bf16.xpose.msra.mxu1 %v8114_v32  ;;  %17538 = vmatprep.mubr.msk.bf16.mxu1 %vm19634_vm0, %v19632_v41 }
0x1cda   :  { %17548 = vmatprep.subr.bf16.mxu1 %v19632_v41 }
0x1cea   :  { %7951 = vrot.lane.b32.xlu0 %v20430_v19, %s19603_s2 }
0x1cee   :  { %8106 = vrot.lane.b32.xlu0 %v20433_v20, %s19636_s4 }
0x1d61   :  { %v7941_v56 = vpop.xlane.xlu0 %7940 }
0x1d62   :  { %18853 = vrcp.f32 %v7941_v56 }
0x1d65   :  { %v7952_v62 = vpop.permute.xlu0 %7951 }
0x1d66   :  { %v7957_v50 = vsel %vm3295_vm2, %v7952_v62, 0 }
0x1d67   :  { %17517 = vmatpush3.bf16.msra.mxu0 %v7957_v50 }
0x1d68   :  { %17528 = vmatprep.subr.bf16.mxu0 %v19632_v41 }
0x1d69   :  { %v8107_v53 = vpop.permute.xlu0 %8106 }
0x1d6a   :  { %17539 = vmatmul.mubr.msk.bf16.vlgmr.msra.gmra.mrb[116].mxu1 %vm3174_vm1, %v8107_v53 }
0x1d6b   :  { %17550 = vmatprep.mubr.msk.bf16.mxu1 %vm19634_vm0, %v19632_v41 }
0x1d6c   :  { %v18854_v11 = vpop.eup %18853 }
0x1d6d   :  { %v7947_v0 = vmul.f32 %v18854_v11, %v18850_v46 }
0x1d6f   :  { %v7949_v27 = vpack.c.bf16 %v7947_v0, %v7947_v0 }
0x1d71   :  { %17519 = vmatmul.mubr.msk.bf16.vlgmr.msra.gmra.mrb[112].mxu0 %vm3267_vm3, %v7949_v27  ;;  %v18453_v27 = vld [vmem:[%s21050_s24 + $0x30] sm:$0xff]  }
0x1d72   :  { %17529 = vmatpush3.bf16.msra.mxu0 %v18451_v25  ;;  %17532 = vmatprep.mubr.msk.bf16.mxu0 %vm19634_vm0, %v19632_v41 }
0x1d73   :  { %17530 = vmatprep.subr.bf16.mxu0 %v19632_v41 }
0x1d76   :  { %17531 = vmatpush3.bf16.msra.mxu0 %v18452_v30 }
0x1d77   :  { %17542 = vmatprep.subr.bf16.mxu0 %v19632_v41 }
0x1dab   :  { %v8041_v20 = vpop.f32.mrb[112].mxu1 }
0x1dac   :  { %v17526_v28 = vpop.f32.mrb[113].mxu1 }
0x1dad   :  { %v8044_v57 = vpop.f32.mrb[114].mxu1 }
0x1dae   :  { %v17527_v29 = vpop.f32.mrb[115].mxu1 }
0x1e3d   :  { %v8150_v54 = vpop.f32.mrb[116].mxu1 }
0x1e3e   :  { %v17540_v9 = vpop.f32.mrb[117].mxu1  ;;  %v8206_v63 = vsel %vm3267_vm3, %v8150_v54, -inf }
0x1e3f   :  { %8207 = vmax.xlane.f32.xlu0 %v8206_v63  ;;  %v8153_v15 = vpop.f32.mrb[118].mxu1 }
0x1e40   :  { %v17541_v13 = vpop.f32.mrb[119].mxu1 }
0x1e44   :  { %v7993_v33 = vpop.f32.mrb[112].mxu0 }
0x1e45   :  { %v8047_v6 = vpack.c.bf16 %v8041_v20, %v7993_v33  ;;  %v17520_v34 = vpop.f32.mrb[113].mxu0  ;;  %v18454_v20 = vld [vmem:[%s21050_s24 + $0x38] sm:$0xff]   ;;  %v15941_v33 = vld [vmem:[#allocation29] ss:$0 sm:$0xff] }
0x1e46   :  { %v7996_v16 = vpop.f32.mrb[114].mxu0 }
0x1e47   :  { %v17521_v36 = vpop.f32.mrb[115].mxu0  ;;  %17533 = vmatmul.mubr.msk.bf16.vlgmr.msra.gmra.mrb[116].mxu0 %vm3174_vm1, %v8047_v6 }
0x1e48   :  { %17543 = vmatpush3.bf16.xpose.msra.mxu0 %v8164_v35  ;;  %17544 = vmatprep.mubr.msk.bf16.mxu0 %vm19634_vm0, %v19632_v41 }
0x1e49   :  { %17554 = vmatprep.subr.bf16.mxu0 %v19632_v41 }
0x1e4f   :  { %17545 = vmatmul.mubr.msk.bf16.vlgmr.msra.gmra.mrb[120].mxu0 %vm3174_vm1, %v8157_v4 }
0x1e50   :  { %17556 = vmatprep.mubr.msk.bf16.mxu0 %vm19634_vm0, %v19632_v41 }
0x1ecc   :  { %v8208_v37 = vpop.xlane.xlu0 %8207 }
0x1ecd   :  { %v8212_v49 = vsub.f32 %v8150_v54, %v8208_v37 }
0x1ecf   :  { %v8214_v39 = vmul.f32 1.442695, %v8212_v49 }
0x1ed1   :  { %18855 = vpow2.f32 %v8214_v39 }
0x1edb   :  { %v18856_v55 = vpop.eup %18855 }
0x1edc   :  { %v8218_v10 = vsel %vm3267_vm3, %v18856_v55, 0.0 }
0x1edd   :  { %8219 = vadd.xlane.f32.xlu0 %v8218_v10 }
0x1f1a   :  { %v8097_v24 = vpop.f32.mrb[116].mxu0 }
0x1f1b   :  { %v8104_v43 = vadd.f32 %v8097_v24, %v20551_v38  ;;  %v17534_v31 = vpop.f32.mrb[117].mxu0  ;;  %v8443_v24 = vld [vmem:[#allocation34] sm:$0xff] }
0x1f1c   :  { %v8100_v5 = vpop.f32.mrb[118].mxu0  ;;  %v8444_v31 = vld [vmem:[#allocation34 + $0x8] sm:$0xff] }
0x1f1d   :  { %v8105_v44 = vadd.f32 %v8100_v5, %v20553_v21  ;;  %v17535_v26 = vpop.f32.mrb[119].mxu0  ;;  %v8452_v5 = vld [vmem:[#allocation34 + $0x48] sm:$0xff] }
0x1f1e   :  { %v15946_v26 = vcombine.low %v8444_v31, %v8452_v5 }
0x1f22   :  { %v8200_v18 = vpop.f32.mrb[120].mxu0 }
0x1f23   :  { %v17546_v17 = vpop.f32.mrb[121].mxu0  ;;  %v8209_v12 = vsel %vm3267_vm3, %v8200_v18, -inf }
0x1f24   :  { %8210 = vmax.xlane.f32.xlu1 %v8209_v12  ;;  %v8203_v45 = vpop.f32.mrb[122].mxu0  ;;  %v8467_v17 = vld [vmem:[#allocation34 + $0xc0] sm:$0xff]  ;;  %v8460_v12 = vld [vmem:[#allocation34 + $0x88] sm:$0xff] }
0x1f25   :  { %v17547_v46 = vpop.f32.mrb[123].mxu0 }
0x1f26   :  { %v8468_v46 = vld [vmem:[#allocation34 + $0xc8] sm:$0xff] }
0x1f35   :  { %8278 = vrot.lane.b32.xlu1 %v20435_v23, %s19636_s4 }
0x1f6a   :  { %v8220_v32 = vpop.xlane.xlu0 %8219 }
0x1fb1   :  { %v8211_v47 = vpop.xlane.xlu1 %8210 }
0x1fb2   :  { %v8213_v48 = vsub.f32 %v8200_v18, %v8211_v47  ;;  %v15947_v18 = vcombine.high %v8444_v31, %v8452_v5  ;;  %v8555_v5 = vld [vmem:[#allocation34 + $0x380] sm:$0xff] }
0x1fb4   :  { %v8216_v7 = vmul.f32 1.442695, %v8213_v48  ;;  %v15962_v48 = vcombine.low %v8460_v12, %v8468_v46 }
0x1fb5   :  { %v8279_v51 = vpop.permute.xlu1 %8278 }
0x1fb6   :  { %18857 = vpow2.f32 %v8216_v7  ;;  %v8284_v38 = vsel %vm3295_vm2, %v8279_v51, 0  ;;  %v15963_v7 = vcombine.high %v8460_v12, %v8468_v46  ;;  %v8475_v51 = vld [vmem:[#allocation34 + $0x100] sm:$0xff]  ;;  %v8445_v46 = vld [vmem:[#allocation34 + $0x10] sm:$0xff] }
0x1fb7   :  { %17555 = vmatpush3.bf16.msra.mxu0 %v8284_v38  ;;  %18859 = vrcp.f32 %v8220_v32  ;;  %v8483_v38 = vld [vmem:[#allocation34 + $0x140] sm:$0xff]  ;;  %v8484_v32 = vld [vmem:[#allocation34 + $0x148] sm:$0xff] }
0x1fc0   :  { %v18858_v21 = vpop.eup %18857 }
0x1fc1   :  { %v8221_v52 = vsel %vm3267_vm3, %v18858_v21, 0.0  ;;  %v18860_v56 = vpop.eup %18859 }
0x1fc2   :  { %8222 = vadd.xlane.f32.xlu0 %v8221_v52  ;;  %v8226_v62 = vmul.f32 %v18860_v56, %v18856_v55  ;;  %v15977_v52 = vcombine.high %v8475_v51, %v8483_v38  ;;  %v15976_v56 = vcombine.low %v8475_v51, %v8483_v38  ;;  %v8454_v38 = vld [vmem:[#allocation34 + $0x58] sm:$0xff] }
0x1fc4   :  { %v8228_v11 = vpack.c.bf16 %v8226_v62, %v8226_v62 }
0x1fd8   :  { %8230 = vrot.lane.b32.xlu0 %v20430_v19, %s19636_s4 }
0x204f   :  { %v8223_v23 = vpop.xlane.xlu0 %8222 }
0x2050   :  { %18861 = vrcp.f32 %v8223_v23 }
0x2053   :  { %v8231_v50 = vpop.permute.xlu0 %8230 }
0x2054   :  { %v8236_v53 = vsel %vm3295_vm2, %v8231_v50, 0  ;;  %v8491_v50 = vld [vmem:[#allocation34 + $0x180] sm:$0xff] }
0x2055   :  { %17549 = vmatpush3.bf16.msra.mxu1 %v8236_v53  ;;  %v8499_v53 = vld [vmem:[#allocation34 + $0x1c0] sm:$0xff] }
0x2056   :  { %17560 = vmatprep.subr.bf16.mxu1 %v19632_v41 }
0x2058   :  { %17551 = vmatmul.mubr.msk.bf16.vlgmr.msra.gmra.mrb[120].mxu1 %vm3267_vm3, %v8228_v11  ;;  %v8492_v11 = vld [vmem:[#allocation34 + $0x188] sm:$0xff] }
0x2059   :  { %17564 = vmatprep.mubr.msk.bf16.mxu1 %vm19634_vm0, %v19632_v41  ;;  %17561 = vmatpush3.bf16.msra.mxu1 %v18453_v27 }
0x205a   :  { %v18862_v19 = vpop.eup %18861  ;;  %17562 = vmatprep.subr.bf16.mxu1 %v19632_v41 }
0x205b   :  { %v8227_v0 = vmul.f32 %v18862_v19, %v18858_v21  ;;  %v8476_v21 = vld [vmem:[#allocation34 + $0x108] sm:$0xff]  ;;  %v15993_v19 = vcombine.high %v8491_v50, %v8499_v53 }
0x205c   :  { %v15978_v23 = vcombine.low %v8476_v21, %v8484_v32  ;;  %v15979_v62 = vcombine.high %v8476_v21, %v8484_v32 }
0x205d   :  { %v8229_v25 = vpack.c.bf16 %v8227_v0, %v8227_v0  ;;  %17563 = vmatpush3.bf16.msra.mxu1 %v18454_v20  ;;  %v8500_v0 = vld [vmem:[#allocation34 + $0x1c8] sm:$0xff] }
0x205e   :  { %9338 = vmatprep.subr.bf16.mxu1 %v15947_v18  ;;  %v15994_v27 = vcombine.low %v8492_v11, %v8500_v0  ;;  %v15995_v20 = vcombine.high %v8492_v11, %v8500_v0 }
0x205f   :  { %17557 = vmatmul.mubr.msk.bf16.vlgmr.msra.gmra.mrb[124].mxu0 %vm3267_vm3, %v8229_v25  ;;  %v15992_v25 = vcombine.low %v8491_v50, %v8499_v53 }
0x2060   :  { %9327 = vmatprep.mubr.bf16.mxu0 %v19633_v2 }
0x212b   :  { %v8272_v28 = vpop.f32.mrb[120].mxu1 }
0x212c   :  { %v17552_v57 = vpop.f32.mrb[121].mxu1 }
0x212d   :  { %v8275_v29 = vpop.f32.mrb[122].mxu1  ;;  %v8515_v57 = vld [vmem:[#allocation34 + $0x240] sm:$0xff] }
0x212e   :  { %v17553_v30 = vpop.f32.mrb[123].mxu1  ;;  %v8508_v29 = vld [vmem:[#allocation34 + $0x208] sm:$0xff] }
0x2132   :  { %v8320_v54 = vpop.f32.mrb[124].mxu0 }
0x2133   :  { %v8326_v9 = vpack.c.bf16 %v8320_v54, %v8272_v28  ;;  %v17558_v63 = vpop.f32.mrb[125].mxu0  ;;  %v8507_v28 = vld [vmem:[#allocation34 + $0x200] sm:$0xff]  ;;  %v8516_v54 = vld [vmem:[#allocation34 + $0x248] sm:$0xff] }
0x2134   :  { %v8323_v15 = vpop.f32.mrb[126].mxu0  ;;  %v16009_v30 = vcombine.high %v8507_v28, %v8515_v57  ;;  %v16010_v63 = vcombine.low %v8508_v29, %v8516_v54 }
0x2135   :  { %v17559_v13 = vpop.f32.mrb[127].mxu0  ;;  %17565 = vmatmul.mubr.msk.bf16.vlgmr.msra.gmra.mrb[124].mxu1 %vm3174_vm1, %v8326_v9  ;;  %v16008_v9 = vcombine.low %v8507_v28, %v8515_v57  ;;  %v16011_v15 = vcombine.high %v8508_v29, %v8516_v54 }
0x2136   :  { %9370 = vmatprep.mubr.bf16.mxu1 %v19633_v2  ;;  %9339 = vmatpush1.bf16.msra.mxu1 %v15946_v26  ;;  %v8523_v13 = vld [vmem:[#allocation34 + $0x280] sm:$0xff]  ;;  %v8556_v26 = vld [vmem:[#allocation34 + $0x388] sm:$0xff] }
0x2137   :  { %9340 = vmatprep.subr.bf16.mxu1 %v15963_v7 }
0x213a   :  { %9341 = vmatpush1.bf16.msra.mxu1 %v15962_v48  ;;  %v8446_v48 = vld [vmem:[#allocation34 + $0x18] sm:$0xff] }
0x213b   :  { %9342 = vmatprep.subr.bf16.mxu1 %v15979_v62  ;;  %v15950_v21 = vcombine.low %v8446_v48, %v8454_v38 }
0x213e   :  { %9343 = vmatpush1.bf16.msra.mxu1 %v15978_v23 }
0x213f   :  { %9344 = vmatprep.subr.bf16.mxu1 %v15995_v20 }
0x2142   :  { %9345 = vmatpush1.bf16.msra.mxu1 %v15994_v27 }
0x2143   :  { %9346 = vmatprep.subr.bf16.mxu1 %v16011_v15 }
0x2146   :  { %9347 = vmatpush1.bf16.msra.mxu1 %v16010_v63  ;;  %v15942_v63 = vld [vmem:[#allocation31] ss:$0 sm:$0xff] }
0x2208   :  { %v8376_v40 = vpop.f32.mrb[124].mxu1 }
0x2209   :  { %v8383_v6 = vadd.f32 %v8376_v40, %v8104_v43  ;;  %v17566_v34 = vpop.f32.mrb[125].mxu1  ;;  %v8451_v43 = vld [vmem:[#allocation34 + $0x40] sm:$0xff] }
0x220a   :  { %v8379_v16 = vpop.f32.mrb[126].mxu1  ;;  %v8531_v40 = vld [vmem:[#allocation34 + $0x2c0] sm:$0xff]  ;;  %v8532_v34 = vld [vmem:[#allocation34 + $0x2c8] sm:$0xff] }
0x220b   :  { %v8392_v35 = vadd.f32 %v15941_v33, %v8383_v6  ;;  %v8384_v36 = vadd.f32 %v8379_v16, %v8105_v44  ;;  %v17567_v4 = vpop.f32.mrb[127].mxu1  ;;  %v15944_v44 = vcombine.low %v8443_v24, %v8451_v43  ;;  %v16025_v6 = vcombine.high %v8523_v13, %v8531_v40 }
0x220c   :  { %v16024_v16 = vcombine.low %v8523_v13, %v8531_v40  ;;  %v8539_v4 = vld [vmem:[#allocation34 + $0x300] sm:$0xff] }
0x220d   :  { %v8393_v37 = vadd.f32 %v15941_v33, %v8384_v36  ;;  %v20611_v49 = vadd.f32 %v8392_v35, %v20408_v22  ;;  %v15945_v22 = vcombine.high %v8443_v24, %v8451_v43  ;;  %v8524_v33 = vld [vmem:[#allocation34 + $0x288] sm:$0xff] }
0x220e   :  { %v16026_v35 = vcombine.low %v8524_v33, %v8532_v34  ;;  %v16027_v36 = vcombine.high %v8524_v33, %v8532_v34  ;;  %v8548_v24 = vld [vmem:[#allocation34 + $0x348] sm:$0xff]  ;;  %v15943_v34 = vld [vmem:[#allocation32] ss:$0 sm:$0xff] }
0x220f   :  { %8398 = vadd.xlane.f32.xlu1 %v20611_v49  ;;  %v20615_v39 = vadd.f32 %v8393_v37, %v20410_v42  ;;  %v8404_v10 = vmul.f32 %v20611_v49, %v20611_v49  ;;  %9295 = vmatprep.subr.bf16.mxu0 %v15945_v22  ;;  %v8459_v42 = vld [vmem:[#allocation34 + $0x80] sm:$0xff] }
0x2210   :  { %9296 = vmatpush1.bf16.msra.mxu0 %v15944_v44  ;;  %v15961_v45 = vcombine.high %v8459_v42, %v8467_v17  ;;  %v15960_v47 = vcombine.low %v8459_v42, %v8467_v17  ;;  %9348 = vmatprep.subr.bf16.mxu1 %v16027_v36  ;;  %v8547_v37 = vld [vmem:[#allocation34 + $0x340] sm:$0xff]  ;;  %v8564_v42 = vld [vmem:[#allocation34 + $0x3c8] sm:$0xff]  ;;  %v8469_v36 = vld [vmem:[#allocation34 + $0xd0] sm:$0xff] }
0x2211   :  { %8400 = vadd.xlane.f32.xlu0 %v20615_v39  ;;  %v8405_v55 = vmul.f32 %v20615_v39, %v20615_v39  ;;  %9349 = vmatpush1.bf16.msra.mxu1 %v16026_v35  ;;  %v16040_v43 = vcombine.low %v8539_v4, %v8547_v37  ;;  %v8563_v44 = vld [vmem:[#allocation34 + $0x3c0] sm:$0xff]  ;;  %v16058_v12 = vcombine.low %v8556_v26, %v8564_v42  ;;  %v8461_v35 = vld [vmem:[#allocation34 + $0x90] sm:$0xff] }
0x2212   :  { %9297 = vmatprep.subr.bf16.mxu0 %v15961_v45  ;;  %v16057_v18 = vcombine.high %v8555_v5, %v8563_v44  ;;  %v16056_v17 = vcombine.low %v8555_v5, %v8563_v44  ;;  %v16059_v45 = vcombine.high %v8556_v26, %v8564_v42  ;;  %v8486_v5 = vld [vmem:[#allocation34 + $0x158] sm:$0xff]  ;;  %v15964_v44 = vcombine.low %v8461_v35, %v8469_v36 }
0x2213   :  { %8408 = vadd.xlane.f32.xlu1 %v8405_v55  ;;  %v8540_v55 = vld [vmem:[#allocation34 + $0x308] sm:$0xff] }
0x2214   :  { %9298 = vmatpush1.bf16.msra.mxu0 %v15960_v47  ;;  %v16042_v31 = vcombine.low %v8540_v55, %v8548_v24  ;;  %v16043_v22 = vcombine.high %v8540_v55, %v8548_v24  ;;  %v8453_v47 = vld [vmem:[#allocation34 + $0x50] sm:$0xff]  ;;  %v15965_v24 = vcombine.high %v8461_v35, %v8469_v36 }
0x2215   :  { %8406 = vadd.xlane.f32.xlu0 %v8404_v10  ;;  %9299 = vmatprep.subr.bf16.mxu0 %v15977_v52  ;;  %v16041_v10 = vcombine.high %v8539_v4, %v8547_v37  ;;  %v15948_v7 = vcombine.low %v8445_v46, %v8453_v47  ;;  %v15949_v51 = vcombine.high %v8445_v46, %v8453_v47  ;;  %v8462_v4 = vld [vmem:[#allocation34 + $0x98] sm:$0xff] }
0x2216   :  { %9350 = vmatprep.subr.bf16.mxu1 %v16043_v22  ;;  %v15951_v52 = vcombine.high %v8446_v48, %v8454_v38  ;;  %v8470_v37 = vld [vmem:[#allocation34 + $0xd8] sm:$0xff]  ;;  %v8509_v38 = vld [vmem:[#allocation34 + $0x210] sm:$0xff] }
0x2217   :  { %9351 = vmatpush1.bf16.msra.mxu1 %v16042_v31  ;;  %v8485_v31 = vld [vmem:[#allocation34 + $0x150] sm:$0xff]  ;;  %v8478_v22 = vld [vmem:[#allocation34 + $0x118] sm:$0xff]  ;;  %v15966_v26 = vcombine.low %v8462_v4, %v8470_v37 }
0x2218   :  { %9300 = vmatpush1.bf16.msra.mxu0 %v15976_v56  ;;  %9352 = vmatprep.subr.bf16.mxu1 %v16059_v45  ;;  %v15983_v42 = vcombine.high %v8478_v22, %v8486_v5  ;;  %v8494_v45 = vld [vmem:[#allocation34 + $0x198] sm:$0xff]  ;;  %v15982_v48 = vcombine.low %v8478_v22, %v8486_v5 }
0x2219   :  { %9301 = vmatprep.subr.bf16.mxu0 %v15993_v19  ;;  %v8502_v46 = vld [vmem:[#allocation34 + $0x1d8] sm:$0xff] }
0x221b   :  { %9353 = vmatpush1.bf16.msra.mxu1 %v16058_v12  ;;  %v8501_v12 = vld [vmem:[#allocation34 + $0x1d0] sm:$0xff] }
0x221c   :  { %9302 = vmatpush1.bf16.msra.mxu0 %v15992_v25  ;;  %9424 = vmatprep.subr.bf16.mxu1 %v15951_v52  ;;  %v8510_v52 = vld [vmem:[#allocation34 + $0x218] sm:$0xff] }
0x221d   :  { %9303 = vmatprep.subr.bf16.mxu0 %v16009_v30 }
0x2220   :  { %9304 = vmatpush1.bf16.msra.mxu0 %v16008_v9 }
0x2221   :  { %9305 = vmatprep.subr.bf16.mxu0 %v16025_v6 }
0x2224   :  { %9306 = vmatpush1.bf16.msra.mxu0 %v16024_v16 }
0x2225   :  { %9307 = vmatprep.subr.bf16.mxu0 %v16041_v10 }
0x2228   :  { %9308 = vmatpush1.bf16.msra.mxu0 %v16040_v43  ;;  %v8477_v43 = vld [vmem:[#allocation34 + $0x110] sm:$0xff] }
0x2229   :  { %9309 = vmatprep.subr.bf16.mxu0 %v16057_v18  ;;  %v15981_v18 = vcombine.high %v8477_v43, %v8485_v31  ;;  %v15980_v47 = vcombine.low %v8477_v43, %v8485_v31  ;;  %v8456_v43 = vld [vmem:[#allocation34 + $0x68] sm:$0xff] }
0x222c   :  { %9310 = vmatpush1.bf16.msra.mxu0 %v16056_v17  ;;  %v8493_v17 = vld [vmem:[#allocation34 + $0x190] sm:$0xff] }
0x222d   :  { %9381 = vmatprep.subr.bf16.mxu0 %v15949_v51  ;;  %v15999_v51 = vcombine.high %v8494_v45, %v8502_v46 }
0x229c   :  { %v8399_v32 = vpop.xlane.xlu1 %8398 }
0x229d   :  { %v8402_v23 = vmul.f32 0.0078125, %v8399_v32  ;;  %v8518_v32 = vld [vmem:[#allocation34 + $0x258] sm:$0xff] }
0x229e   :  { %v8401_v56 = vpop.xlane.xlu0 %8400 }
0x229f   :  { %v8403_v62 = vmul.f32 0.0078125, %v8401_v56  ;;  %v8412_v0 = vmul.f32 %v8402_v23, %v8402_v23  ;;  %v8418_v15 = vsub.f32 %v20611_v49, %v8402_v23  ;;  %v15967_v49 = vcombine.high %v8462_v4, %v8470_v37  ;;  %v8447_v37 = vld [vmem:[#allocation34 + $0x20] sm:$0xff] }
0x22a0   :  { %v8409_v50 = vpop.xlane.xlu1 %8408  ;;  %v15996_v56 = vcombine.low %v8493_v17, %v8501_v12  ;;  %v15998_v23 = vcombine.low %v8494_v45, %v8502_v46 }
0x22a1   :  { %v8413_v53 = vmul.f32 %v8403_v62, %v8403_v62  ;;  %v8411_v11 = vmul.f32 0.0078125, %v8409_v50  ;;  %v8419_v54 = vsub.f32 %v20615_v39, %v8403_v62  ;;  %v16015_v50 = vcombine.high %v8510_v52, %v8518_v32 }
0x22a2   :  { %v8407_v19 = vpop.xlane.xlu0 %8406 }
0x22a3   :  { %v8415_v25 = vsub.f32 %v8411_v11, %v8413_v53  ;;  %v8410_v27 = vmul.f32 0.0078125, %v8407_v19  ;;  %v8525_v53 = vld [vmem:[#allocation34 + $0x290] sm:$0xff]  ;;  %v8526_v19 = vld [vmem:[#allocation34 + $0x298] sm:$0xff] }
0x22a4   :  { %v8533_v11 = vld [vmem:[#allocation34 + $0x2d0] sm:$0xff] }
0x22a5   :  { %v8417_v20 = vmax.f32 %v8415_v25, 0.0  ;;  %v8414_v28 = vsub.f32 %v8410_v27, %v8412_v0  ;;  %v8534_v0 = vld [vmem:[#allocation34 + $0x2d8] sm:$0xff]  ;;  %v16014_v27 = vcombine.low %v8510_v52, %v8518_v32 }
0x22a7   :  { %v8421_v57 = vadd.f32 1e-05, %v8417_v20  ;;  %v8416_v29 = vmax.f32 %v8414_v28, 0.0  ;;  %v16029_v20 = vcombine.high %v8525_v53, %v8533_v11  ;;  %v16031_v28 = vcombine.high %v8526_v19, %v8534_v0 }
0x22a9   :  { %18863 = vrsqrt.f32 %v8421_v57  ;;  %v8420_v30 = vadd.f32 1e-05, %v8416_v29  ;;  %v8541_v57 = vld [vmem:[#allocation34 + $0x310] sm:$0xff] }
0x22aa   :  { %v8549_v29 = vld [vmem:[#allocation34 + $0x350] sm:$0xff] }
0x22ab   :  { %18865 = vrsqrt.f32 %v8420_v30  ;;  %v8542_v30 = vld [vmem:[#allocation34 + $0x318] sm:$0xff] }
0x22b3   :  { %v18864_v9 = vpop.eup %18863 }
0x22b4   :  { %v8425_v13 = vmul.f32 %v18864_v9, %v8419_v54  ;;  %v8550_v54 = vld [vmem:[#allocation34 + $0x358] sm:$0xff]  ;;  %v16028_v9 = vcombine.low %v8525_v53, %v8533_v11  ;;  %v8504_v53 = vld [vmem:[#allocation34 + $0x1e8] sm:$0xff] }
0x22b5   :  { %v18866_v40 = vpop.eup %18865  ;;  %v16046_v35 = vcombine.low %v8542_v30, %v8550_v54 }
0x22b6   :  { %v8433_v33 = vmul.f32 %v15942_v63, %v8425_v13  ;;  %v8424_v6 = vmul.f32 %v18866_v40, %v8418_v15  ;;  %v16045_v15 = vcombine.high %v8541_v57, %v8549_v29  ;;  %v16047_v13 = vcombine.high %v8542_v30, %v8550_v54  ;;  %v8557_v40 = vld [vmem:[#allocation34 + $0x390] sm:$0xff] }
0x22b8   :  { %v8432_v16 = vmul.f32 %v15942_v63, %v8424_v6  ;;  %v20624_v55 = vadd.f32 %v15943_v34, %v8433_v33  ;;  %v16030_v63 = vcombine.low %v8526_v19, %v8534_v0  ;;  %v8565_v33 = vld [vmem:[#allocation34 + $0x3d0] sm:$0xff]  ;;  %v8558_v6 = vld [vmem:[#allocation34 + $0x398] sm:$0xff] }
0x22b9   :  { %v16061_v36 = vcombine.high %v8557_v40, %v8565_v33  ;;  %v16060_v31 = vcombine.low %v8557_v40, %v8565_v33  ;;  %v8536_v40 = vld [vmem:[#allocation34 + $0x2e8] sm:$0xff] }
0x22ba   :  { %v20626_v10 = vadd.f32 %v15943_v34, %v8432_v16  ;;  %v8566_v34 = vld [vmem:[#allocation34 + $0x3d8] sm:$0xff]  ;;  %v16044_v16 = vcombine.low %v8541_v57, %v8549_v29  ;;  %v8520_v57 = vld [vmem:[#allocation34 + $0x268] sm:$0xff] }
0x22bb   :  { %v16063_v4 = vcombine.high %v8558_v6, %v8566_v34  ;;  %v16062_v22 = vcombine.low %v8558_v6, %v8566_v34 }
0x22bc   :  { %v20630_v39 = vpack.c.bf16 %v20624_v55, %v20626_v10 }
0x22be   :  { %9328 = vmatmul.mubr.bf16.vlgmr.msra.gmra.mrb[128].mxu0 %v20630_v39  ;;  %9371 = vmatmul.mubr.bf16.vlgmr.msra.gmra.mrb[128].mxu1 %v20630_v39 }
0x22bf   :  { %9382 = vmatpush1.bf16.msra.mxu0 %v15948_v7  ;;  %9425 = vmatpush1.bf16.msra.mxu1 %v15950_v21  ;;  %v15997_v7 = vcombine.high %v8493_v17, %v8501_v12  ;;  %v8517_v21 = vld [vmem:[#allocation34 + $0x250] sm:$0xff]  ;;  %v8472_v17 = vld [vmem:[#allocation34 + $0xe8] sm:$0xff] }
0x22c0   :  { %9383 = vmatprep.subr.bf16.mxu0 %v15965_v24  ;;  %9426 = vmatprep.subr.bf16.mxu1 %v15967_v49  ;;  %v16013_v62 = vcombine.high %v8509_v38, %v8517_v21  ;;  %v16012_v25 = vcombine.low %v8509_v38, %v8517_v21  ;;  %v8455_v24 = vld [vmem:[#allocation34 + $0x60] sm:$0xff]  ;;  %v8448_v49 = vld [vmem:[#allocation34 + $0x28] sm:$0xff] }
0x22c1   :  { %9413 = vmatprep.mubr.bf16.mxu0 %v19633_v2  ;;  %9456 = vmatprep.mubr.bf16.mxu1 %v19633_v2  ;;  %v15953_v5 = vcombine.high %v8447_v37, %v8455_v24  ;;  %v15952_v12 = vcombine.low %v8447_v37, %v8455_v24  ;;  %v15954_v45 = vcombine.low %v8448_v49, %v8456_v43  ;;  %v8488_v38 = vld [vmem:[#allocation34 + $0x168] sm:$0xff] }
0x22c2   :  { %v8552_v37 = vld [vmem:[#allocation34 + $0x368] sm:$0xff] }
0x22c3   :  { %9384 = vmatpush1.bf16.msra.mxu0 %v15964_v44  ;;  %9427 = vmatpush1.bf16.msra.mxu1 %v15966_v26  ;;  %v15955_v44 = vcombine.high %v8448_v49, %v8456_v43  ;;  %v8463_v26 = vld [vmem:[#allocation34 + $0xa0] sm:$0xff] }
0x22c4   :  { %9385 = vmatprep.subr.bf16.mxu0 %v15981_v18  ;;  %9428 = vmatprep.subr.bf16.mxu1 %v15983_v42  ;;  %v8471_v18 = vld [vmem:[#allocation34 + $0xe0] sm:$0xff]  ;;  %v8464_v42 = vld [vmem:[#allocation34 + $0xa8] sm:$0xff] }
0x22c5   :  { %v15969_v46 = vcombine.high %v8463_v26, %v8471_v18  ;;  %v15968_v21 = vcombine.low %v8463_v26, %v8471_v18  ;;  %v15970_v52 = vcombine.low %v8464_v42, %v8472_v17  ;;  %v8568_v26 = vld [vmem:[#allocation34 + $0x3e8] sm:$0xff] }
0x22c7   :  { %9386 = vmatpush1.bf16.msra.mxu0 %v15980_v47  ;;  %9429 = vmatpush1.bf16.msra.mxu1 %v15982_v48  ;;  %v15971_v47 = vcombine.high %v8464_v42, %v8472_v17  ;;  %v8479_v48 = vld [vmem:[#allocation34 + $0x120] sm:$0xff] }
0x22c8   :  { %9387 = vmatprep.subr.bf16.mxu0 %v15997_v7  ;;  %9430 = vmatprep.subr.bf16.mxu1 %v15999_v51  ;;  %v8487_v7 = vld [vmem:[#allocation34 + $0x160] sm:$0xff]  ;;  %v8480_v51 = vld [vmem:[#allocation34 + $0x128] sm:$0xff] }
0x22c9   :  { %v15985_v32 = vcombine.high %v8479_v48, %v8487_v7  ;;  %v15984_v11 = vcombine.low %v8479_v48, %v8487_v7  ;;  %v15986_v19 = vcombine.low %v8480_v51, %v8488_v38  ;;  %v8458_v48 = vld [vmem:[#allocation34 + $0x78] sm:$0xff] }
0x22cb   :  { %9388 = vmatpush1.bf16.msra.mxu0 %v15996_v56  ;;  %9431 = vmatpush1.bf16.msra.mxu1 %v15998_v23  ;;  %v15987_v56 = vcombine.high %v8480_v51, %v8488_v38  ;;  %v8495_v23 = vld [vmem:[#allocation34 + $0x1a0] sm:$0xff] }
0x22cc   :  { %9389 = vmatprep.subr.bf16.mxu0 %v16013_v62  ;;  %9432 = vmatprep.subr.bf16.mxu1 %v16015_v50  ;;  %v8503_v62 = vld [vmem:[#allocation34 + $0x1e0] sm:$0xff]  ;;  %v8496_v50 = vld [vmem:[#allocation34 + $0x1a8] sm:$0xff] }
0x22cd   :  { %v16001_v0 = vcombine.high %v8495_v23, %v8503_v62  ;;  %v16000_v29 = vcombine.low %v8495_v23, %v8503_v62  ;;  %v16002_v30 = vcombine.low %v8496_v50, %v8504_v53  ;;  %v8474_v23 = vld [vmem:[#allocation34 + $0xf8] sm:$0xff] }
0x22cf   :  { %9390 = vmatpush1.bf16.msra.mxu0 %v16012_v25  ;;  %9433 = vmatpush1.bf16.msra.mxu1 %v16014_v27  ;;  %v16003_v25 = vcombine.high %v8496_v50, %v8504_v53  ;;  %v8511_v27 = vld [vmem:[#allocation34 + $0x220] sm:$0xff] }
0x22d0   :  { %9391 = vmatprep.subr.bf16.mxu0 %v16029_v20  ;;  %9434 = vmatprep.subr.bf16.mxu1 %v16031_v28  ;;  %v8519_v20 = vld [vmem:[#allocation34 + $0x260] sm:$0xff]  ;;  %v8512_v28 = vld [vmem:[#allocation34 + $0x228] sm:$0xff] }
0x22d1   :  { %v16017_v54 = vcombine.high %v8511_v27, %v8519_v20  ;;  %v16016_v33 = vcombine.low %v8511_v27, %v8519_v20  ;;  %v16018_v6 = vcombine.low %v8512_v28, %v8520_v57  ;;  %v8490_v27 = vld [vmem:[#allocation34 + $0x178] sm:$0xff] }
0x22d3   :  { %9392 = vmatpush1.bf16.msra.mxu0 %v16028_v9  ;;  %9435 = vmatpush1.bf16.msra.mxu1 %v16030_v63  ;;  %v16019_v9 = vcombine.high %v8512_v28, %v8520_v57  ;;  %v8527_v63 = vld [vmem:[#allocation34 + $0x2a0] sm:$0xff] }
0x22d4   :  { %9393 = vmatprep.subr.bf16.mxu0 %v16045_v15  ;;  %9436 = vmatprep.subr.bf16.mxu1 %v16047_v13  ;;  %v8535_v15 = vld [vmem:[#allocation34 + $0x2e0] sm:$0xff]  ;;  %v8528_v13 = vld [vmem:[#allocation34 + $0x2a8] sm:$0xff] }
0x22d5   :  { %v16033_v34 = vcombine.high %v8527_v63, %v8535_v15  ;;  %v16032_v24 = vcombine.low %v8527_v63, %v8535_v15  ;;  %v16034_v49 = vcombine.low %v8528_v13, %v8536_v40  ;;  %v8506_v63 = vld [vmem:[#allocation34 + $0x1f8] sm:$0xff] }
0x22d7   :  { %9394 = vmatpush1.bf16.msra.mxu0 %v16044_v16  ;;  %9437 = vmatpush1.bf16.msra.mxu1 %v16046_v35  ;;  %v16035_v16 = vcombine.high %v8528_v13, %v8536_v40  ;;  %v8543_v35 = vld [vmem:[#allocation34 + $0x320] sm:$0xff] }
0x22d8   :  { %9395 = vmatprep.subr.bf16.mxu0 %v16061_v36  ;;  %9438 = vmatprep.subr.bf16.mxu1 %v16063_v4  ;;  %v8551_v36 = vld [vmem:[#allocation34 + $0x360] sm:$0xff]  ;;  %v8544_v4 = vld [vmem:[#allocation34 + $0x328] sm:$0xff] }
0x22d9   :  { %v16049_v43 = vcombine.high %v8543_v35, %v8551_v36  ;;  %v16048_v18 = vcombine.low %v8543_v35, %v8551_v36  ;;  %v16050_v42 = vcombine.low %v8544_v4, %v8552_v37  ;;  %v8522_v35 = vld [vmem:[#allocation34 + $0x278] sm:$0xff] }
0x22db   :  { %9396 = vmatpush1.bf16.msra.mxu0 %v16060_v31  ;;  %9439 = vmatpush1.bf16.msra.mxu1 %v16062_v22  ;;  %v16051_v31 = vcombine.high %v8544_v4, %v8552_v37  ;;  %v8559_v22 = vld [vmem:[#allocation34 + $0x3a0] sm:$0xff] }
0x22dc   :  { %9467 = vmatprep.subr.bf16.mxu0 %v15953_v5  ;;  %9510 = vmatprep.subr.bf16.mxu1 %v15955_v44  ;;  %v8567_v5 = vld [vmem:[#allocation34 + $0x3e0] sm:$0xff]  ;;  %v8560_v44 = vld [vmem:[#allocation34 + $0x3a8] sm:$0xff] }
0x22dd   :  { %v16065_v17 = vcombine.high %v8559_v22, %v8567_v5  ;;  %v16064_v7 = vcombine.low %v8559_v22, %v8567_v5  ;;  %v16066_v51 = vcombine.low %v8560_v44, %v8568_v26  ;;  %v8538_v22 = vld [vmem:[#allocation34 + $0x2f8] sm:$0xff] }
0x22de   :  { %9414 = vmatmul.mubr.bf16.vlgmr.msra.gmra.mrb[132].mxu0 %v20630_v39  ;;  %9457 = vmatmul.mubr.bf16.vlgmr.msra.gmra.mrb[132].mxu1 %v20630_v39 }
0x22df   :  { %9468 = vmatpush1.bf16.msra.mxu0 %v15952_v12  ;;  %9511 = vmatpush1.bf16.msra.mxu1 %v15954_v45  ;;  %v16067_v12 = vcombine.high %v8560_v44, %v8568_v26  ;;  %v8449_v45 = vld [vmem:[#allocation34 + $0x30] sm:$0xff] }
0x22e0   :  { %9469 = vmatprep.subr.bf16.mxu0 %v15969_v46  ;;  %9512 = vmatprep.subr.bf16.mxu1 %v15971_v47  ;;  %v8457_v46 = vld [vmem:[#allocation34 + $0x70] sm:$0xff]  ;;  %v8450_v47 = vld [vmem:[#allocation34 + $0x38] sm:$0xff] }
0x22e1   :  { %9499 = vmatprep.mubr.bf16.mxu0 %v19633_v2  ;;  %9542 = vmatprep.mubr.bf16.mxu1 %v19633_v2  ;;  %v15957_v38 = vcombine.high %v8449_v45, %v8457_v46  ;;  %v15956_v62 = vcombine.low %v8449_v45, %v8457_v46  ;;  %v15958_v50 = vcombine.low %v8450_v47, %v8458_v48  ;;  %v8554_v45 = vld [vmem:[#allocation34 + $0x378] sm:$0xff] }
0x22e3   :  { %9470 = vmatpush1.bf16.msra.mxu0 %v15968_v21  ;;  %9513 = vmatpush1.bf16.msra.mxu1 %v15970_v52  ;;  %v15959_v21 = vcombine.high %v8450_v47, %v8458_v48  ;;  %v8465_v52 = vld [vmem:[#allocation34 + $0xb0] sm:$0xff] }
0x22e4   :  { %9471 = vmatprep.subr.bf16.mxu0 %v15985_v32  ;;  %9514 = vmatprep.subr.bf16.mxu1 %v15987_v56  ;;  %v8473_v32 = vld [vmem:[#allocation34 + $0xf0] sm:$0xff]  ;;  %v8466_v56 = vld [vmem:[#allocation34 + $0xb8] sm:$0xff] }
0x22e5   :  { %v15973_v53 = vcombine.high %v8465_v52, %v8473_v32  ;;  %v15972_v20 = vcombine.low %v8465_v52, %v8473_v32  ;;  %v15974_v28 = vcombine.low %v8466_v56, %v8474_v23  ;;  %v8570_v52 = vld [vmem:[#allocation34 + $0x3f8] sm:$0xff] }
0x22e7   :  { %9472 = vmatpush1.bf16.msra.mxu0 %v15984_v11  ;;  %9515 = vmatpush1.bf16.msra.mxu1 %v15986_v19  ;;  %v15975_v11 = vcombine.high %v8466_v56, %v8474_v23  ;;  %v8481_v19 = vld [vmem:[#allocation34 + $0x130] sm:$0xff] }
0x22e8   :  { %9473 = vmatprep.subr.bf16.mxu0 %v16001_v0  ;;  %9516 = vmatprep.subr.bf16.mxu1 %v16003_v25  ;;  %v8489_v0 = vld [vmem:[#allocation34 + $0x170] sm:$0xff]  ;;  %v8482_v25 = vld [vmem:[#allocation34 + $0x138] sm:$0xff] }
0x22e9   :  { %v15989_v57 = vcombine.high %v8481_v19, %v8489_v0  ;;  %v15988_v15 = vcombine.low %v8481_v19, %v8489_v0  ;;  %v15990_v13 = vcombine.low %v8482_v25, %v8490_v27  ;;  %v18456_v19 = vld [vmem:[#allocation35 + $0xc0] sm:$0xff]  }
0x22ea   :  { %v18457_v0 = vld [vmem:[#allocation35] sm:$0xff]  }
0x22eb   :  { %9474 = vmatpush1.bf16.msra.mxu0 %v16000_v29  ;;  %9517 = vmatpush1.bf16.msra.mxu1 %v16002_v30  ;;  %v15991_v29 = vcombine.high %v8482_v25, %v8490_v27  ;;  %v8497_v30 = vld [vmem:[#allocation34 + $0x1b0] sm:$0xff]  ;;  %v18458_v25 = vld [vmem:[#allocation35 + $0x80] sm:$0xff]   ;;  %v18459_v27 = vld [vmem:[#allocation35 + $0x48] sm:$0xff]  }
0x22ec   :  { %9475 = vmatprep.subr.bf16.mxu0 %v16017_v54  ;;  %9518 = vmatprep.subr.bf16.mxu1 %v16019_v9  ;;  %v8505_v54 = vld [vmem:[#allocation34 + $0x1f0] sm:$0xff]  ;;  %v8498_v9 = vld [vmem:[#allocation34 + $0x1b8] sm:$0xff] }
0x22ed   :  { %v16005_v40 = vcombine.high %v8497_v30, %v8505_v54  ;;  %v16004_v36 = vcombine.low %v8497_v30, %v8505_v54  ;;  %v16006_v4 = vcombine.low %v8498_v9, %v8506_v63  ;;  %v18464_v30 = vld [vmem:[#allocation35 + $0xd0] sm:$0xff]  }
0x22ee   :  { %v18465_v54 = vld [vmem:[#allocation35 + $0x10] sm:$0xff]  }
0x22ef   :  { %9476 = vmatpush1.bf16.msra.mxu0 %v16016_v33  ;;  %9519 = vmatpush1.bf16.msra.mxu1 %v16018_v6  ;;  %v16007_v33 = vcombine.high %v8498_v9, %v8506_v63  ;;  %v8513_v6 = vld [vmem:[#allocation34 + $0x230] sm:$0xff]  ;;  %v18467_v63 = vld [vmem:[#allocation35 + $0x58] sm:$0xff]  }
0x22f0   :  { %9477 = vmatprep.subr.bf16.mxu0 %v16033_v34  ;;  %9520 = vmatprep.subr.bf16.mxu1 %v16035_v16  ;;  %v8521_v34 = vld [vmem:[#allocation34 + $0x270] sm:$0xff]  ;;  %v8514_v16 = vld [vmem:[#allocation34 + $0x238] sm:$0xff] }
0x22f1   :  { %v16021_v37 = vcombine.high %v8513_v6, %v8521_v34  ;;  %v16020_v5 = vcombine.low %v8513_v6, %v8521_v34  ;;  %v16022_v44 = vcombine.low %v8514_v16, %v8522_v35  ;;  %v18466_v9 = vld [vmem:[#allocation35 + $0x90] sm:$0xff]   ;;  %v18473_v6 = vld [vmem:[#allocation35 + $0x20] sm:$0xff]  }
0x22f2   :  { %v18474_v34 = vld [vmem:[#allocation35 + $0xa0] sm:$0xff]  }
0x22f3   :  { %9478 = vmatpush1.bf16.msra.mxu0 %v16032_v24  ;;  %9521 = vmatpush1.bf16.msra.mxu1 %v16034_v49  ;;  %v16023_v24 = vcombine.high %v8514_v16, %v8522_v35  ;;  %v8529_v49 = vld [vmem:[#allocation34 + $0x2b0] sm:$0xff]  ;;  %v18475_v16 = vld [vmem:[#allocation35 + $0x68] sm:$0xff]  }
0x22f4   :  { %9479 = vmatprep.subr.bf16.mxu0 %v16049_v43  ;;  %9522 = vmatprep.subr.bf16.mxu1 %v16051_v31  ;;  %v8537_v43 = vld [vmem:[#allocation34 + $0x2f0] sm:$0xff]  ;;  %v8530_v31 = vld [vmem:[#allocation34 + $0x2b8] sm:$0xff]  ;;  %v18476_v35 = vld [vmem:[#allocation35 + $0xe8] sm:$0xff]  }
0x22f5   :  { %v16037_v26 = vcombine.high %v8529_v49, %v8537_v43  ;;  %v16036_v46 = vcombine.low %v8529_v49, %v8537_v43  ;;  %v16038_v47 = vcombine.low %v8530_v31, %v8538_v22  ;;  %v18481_v49 = vld [vmem:[#allocation35 + $0x30] sm:$0xff]  }
0x22f6   :  { %v18482_v43 = vld [vmem:[#allocation35 + $0xb0] sm:$0xff]  }
0x22f7   :  { %9480 = vmatpush1.bf16.msra.mxu0 %v16048_v18  ;;  %9523 = vmatpush1.bf16.msra.mxu1 %v16050_v42  ;;  %v16039_v18 = vcombine.high %v8530_v31, %v8538_v22  ;;  %v8545_v42 = vld [vmem:[#allocation34 + $0x330] sm:$0xff]  ;;  %v18483_v31 = vld [vmem:[#allocation35 + $0x78] sm:$0xff]  }
0x22f8   :  { %9481 = vmatprep.subr.bf16.mxu0 %v16065_v17  ;;  %9524 = vmatprep.subr.bf16.mxu1 %v16067_v12  ;;  %v8553_v17 = vld [vmem:[#allocation34 + $0x370] sm:$0xff]  ;;  %v8546_v12 = vld [vmem:[#allocation34 + $0x338] sm:$0xff] }
0x22f9   :  { %v16053_v48 = vcombine.high %v8545_v42, %v8553_v17  ;;  %v16052_v32 = vcombine.low %v8545_v42, %v8553_v17  ;;  %v16054_v56 = vcombine.low %v8546_v12, %v8554_v45  ;;  %v18484_v22 = vld [vmem:[#allocation35 + $0xf8] sm:$0xff]  }
0x22fa   :  { %v20647_v42 = vld [vmem:[%s21051_s21] sm:$0xff] }
0x22fb   :  { %9482 = vmatpush1.bf16.msra.mxu0 %v16064_v7  ;;  %9525 = vmatpush1.bf16.msra.mxu1 %v16066_v51  ;;  %v16055_v7 = vcombine.high %v8546_v12, %v8554_v45  ;;  %v8561_v51 = vld [vmem:[#allocation34 + $0x3b0] sm:$0xff]  ;;  %v8578_v17 = vrot.slane %v20647_v42, %v20041_v58  ;;  %v8586_v12 = vrot.slane %v20647_v42, %v20044_v59 }
0x22fc   :  { %9553 = vmatprep.subr.bf16.mxu0 %v15957_v38  ;;  %9596 = vmatprep.subr.bf16.mxu1 %v15959_v21  ;;  %v8569_v38 = vld [vmem:[#allocation34 + $0x3f0] sm:$0xff]  ;;  %v8562_v21 = vld [vmem:[#allocation34 + $0x3b8] sm:$0xff]  ;;  %v8582_v45 = vrot.slane %v20647_v42, %v20047_v60 }
0x22fd   :  { %v16069_v23 = vcombine.high %v8561_v51, %v8569_v38 }
0x22fe   :  { %9500 = vmatmul.mubr.bf16.vlgmr.msra.gmra.mrb[136].mxu0 %v20630_v39  ;;  %9543 = vmatmul.mubr.bf16.vlgmr.msra.gmra.mrb[136].mxu1 %v20630_v39 }
0x22ff   :  { %9554 = vmatpush1.bf16.msra.mxu0 %v15956_v62  ;;  %9597 = vmatpush1.bf16.msra.mxu1 %v15958_v50  ;;  %v16071_v62 = vcombine.high %v8562_v21, %v8570_v52  ;;  %v16068_v50 = vcombine.low %v8561_v51, %v8569_v38 }
0x2300   :  { %9555 = vmatprep.subr.bf16.mxu0 %v15973_v53  ;;  %9598 = vmatprep.subr.bf16.mxu1 %v15975_v11  ;;  %v16070_v53 = vcombine.low %v8562_v21, %v8570_v52  ;;  %v18455_v11 = vld [vmem:[#allocation35 + $0x40] sm:$0xff]  }
0x2301   :  { %9585 = vmatprep.mubr.bf16.mxu0 %v19633_v2  ;;  %9628 = vmatprep.mubr.bf16.mxu1 %v19633_v2 }
0x2303   :  { %9556 = vmatpush1.bf16.msra.mxu0 %v15972_v20  ;;  %9599 = vmatpush1.bf16.msra.mxu1 %v15974_v28  ;;  %v18460_v20 = vld [vmem:[#allocation35 + $0xc8] sm:$0xff]  }
0x2304   :  { %9557 = vmatprep.subr.bf16.mxu0 %v15989_v57  ;;  %9600 = vmatprep.subr.bf16.mxu1 %v15991_v29  ;;  %v18461_v28 = vld [vmem:[#allocation35 + $0x8] sm:$0xff]   ;;  %v18463_v29 = vld [vmem:[#allocation35 + $0x50] sm:$0xff]  }
0x2305   :  { %v18462_v57 = vld [vmem:[#allocation35 + $0x88] sm:$0xff]  }
0x2307   :  { %9558 = vmatpush1.bf16.msra.mxu0 %v15988_v15  ;;  %9601 = vmatpush1.bf16.msra.mxu1 %v15990_v13  ;;  %v18468_v15 = vld [vmem:[#allocation35 + $0xd8] sm:$0xff]  }
0x2308   :  { %9559 = vmatprep.subr.bf16.mxu0 %v16005_v40  ;;  %9602 = vmatprep.subr.bf16.mxu1 %v16007_v33  ;;  %v18469_v13 = vld [vmem:[#allocation35 + $0x18] sm:$0xff]   ;;  %v18471_v40 = vld [vmem:[#allocation35 + $0x60] sm:$0xff]  }
0x2309   :  { %v18472_v33 = vld [vmem:[#allocation35 + $0xe0] sm:$0xff]  }
0x230b   :  { %9560 = vmatpush1.bf16.msra.mxu0 %v16004_v36  ;;  %9603 = vmatpush1.bf16.msra.mxu1 %v16006_v4  ;;  %v18477_v36 = vld [vmem:[#allocation35 + $0x28] sm:$0xff]  }
0x230c   :  { %9561 = vmatprep.subr.bf16.mxu0 %v16021_v37  ;;  %9604 = vmatprep.subr.bf16.mxu1 %v16023_v24  ;;  %v18478_v4 = vld [vmem:[#allocation35 + $0xa8] sm:$0xff]   ;;  %v18479_v37 = vld [vmem:[#allocation35 + $0x70] sm:$0xff]  }
0x230d   :  { %v18480_v24 = vld [vmem:[#allocation35 + $0xf0] sm:$0xff]  }
0x230f   :  { %9562 = vmatpush1.bf16.msra.mxu0 %v16020_v5  ;;  %9605 = vmatpush1.bf16.msra.mxu1 %v16022_v44  ;;  %v18485_v5 = vld [vmem:[#allocation35 + $0x38] sm:$0xff]  }
0x2310   :  { %9563 = vmatprep.subr.bf16.mxu0 %v16037_v26  ;;  %9606 = vmatprep.subr.bf16.mxu1 %v16039_v18  ;;  %v18486_v44 = vld [vmem:[#allocation35 + $0xb8] sm:$0xff]   ;;  %v18487_v26 = vld [vmem:[#allocation35 + $0x140] sm:$0xff]  }
0x2311   :  { %v18488_v18 = vld [vmem:[#allocation35 + $0x1c0] sm:$0xff]  }
0x2313   :  { %9564 = vmatpush1.bf16.msra.mxu0 %v16036_v46  ;;  %9607 = vmatpush1.bf16.msra.mxu1 %v16038_v47  ;;  %v8590_v46 = vrot.slane %v20647_v42, %v20050_v61 }
0x2314   :  { %9565 = vmatprep.subr.bf16.mxu0 %v16053_v48  ;;  %9608 = vmatprep.subr.bf16.mxu1 %v16055_v7 }
0x2317   :  { %9566 = vmatpush1.bf16.msra.mxu0 %v16052_v32  ;;  %9609 = vmatpush1.bf16.msra.mxu1 %v16054_v56 }
0x2318   :  { %9567 = vmatprep.subr.bf16.mxu0 %v16069_v23  ;;  %9610 = vmatprep.subr.bf16.mxu1 %v16071_v62 }
0x231b   :  { %9568 = vmatpush1.bf16.msra.mxu0 %v16068_v50  ;;  %9611 = vmatpush1.bf16.msra.mxu1 %v16070_v53 }
0x231c   :  { %16867 = vmatprep.subr.bf16.mxu0 %v18455_v11  ;;  %16889 = vmatprep.subr.bf16.mxu1 %v18456_v19 }
0x231e   :  { %9586 = vmatmul.mubr.bf16.vlgmr.msra.gmra.mrb[140].mxu0 %v20630_v39  ;;  %9629 = vmatmul.mubr.bf16.vlgmr.msra.gmra.mrb[140].mxu1 %v20630_v39  ;;  %v18470_v39 = vld [vmem:[#allocation35 + $0x98] sm:$0xff]  }
0x231f   :  { %16868 = vmatpush3.bf16.msra.mxu0 %v18457_v0  ;;  %16890 = vmatpush3.bf16.msra.mxu1 %v18458_v25 }
0x2320   :  { %16869 = vmatprep.subr.bf16.mxu0 %v18459_v27  ;;  %16891 = vmatprep.subr.bf16.mxu1 %v18460_v20 }
0x2323   :  { %16870 = vmatpush3.bf16.msra.mxu0 %v18461_v28  ;;  %16892 = vmatpush3.bf16.msra.mxu1 %v18462_v57 }
0x2324   :  { %16871 = vmatprep.subr.bf16.mxu0 %v18463_v29  ;;  %16893 = vmatprep.subr.bf16.mxu1 %v18464_v30 }
0x2327   :  { %16872 = vmatpush3.bf16.msra.mxu0 %v18465_v54  ;;  %16894 = vmatpush3.bf16.msra.mxu1 %v18466_v9 }
0x2328   :  { %16873 = vmatprep.subr.bf16.mxu0 %v18467_v63  ;;  %16895 = vmatprep.subr.bf16.mxu1 %v18468_v15 }
0x232b   :  { %16874 = vmatpush3.bf16.msra.mxu0 %v18469_v13  ;;  %16896 = vmatpush3.bf16.msra.mxu1 %v18470_v39  ;;  %v18489_v39 = vld [vmem:[#allocation35 + $0x100] sm:$0xff]  }
0x232c   :  { %16875 = vmatprep.subr.bf16.mxu0 %v18471_v40  ;;  %16897 = vmatprep.subr.bf16.mxu1 %v18472_v33  ;;  %v18490_v40 = vld [vmem:[#allocation35 + $0x180] sm:$0xff]   ;;  %v18491_v33 = vld [vmem:[#allocation35 + $0x148] sm:$0xff]  }
0x232f   :  { %16876 = vmatpush3.bf16.msra.mxu0 %v18473_v6  ;;  %16898 = vmatpush3.bf16.msra.mxu1 %v18474_v34  ;;  %v18492_v6 = vld [vmem:[#allocation35 + $0x1c8] sm:$0xff]  }
0x2330   :  { %16877 = vmatprep.subr.bf16.mxu0 %v18475_v16  ;;  %16899 = vmatprep.subr.bf16.mxu1 %v18476_v35  ;;  %v18493_v34 = vld [vmem:[#allocation35 + $0x108] sm:$0xff]   ;;  %v18495_v35 = vld [vmem:[#allocation35 + $0x150] sm:$0xff]  }
0x2331   :  { %v18494_v16 = vld [vmem:[#allocation35 + $0x188] sm:$0xff]  }
0x2333   :  { %16878 = vmatpush3.bf16.msra.mxu0 %v18477_v36  ;;  %16900 = vmatpush3.bf16.msra.mxu1 %v18478_v4  ;;  %v18496_v36 = vld [vmem:[#allocation35 + $0x1d0] sm:$0xff]  }
0x2334   :  { %16879 = vmatprep.subr.bf16.mxu0 %v18479_v37  ;;  %16901 = vmatprep.subr.bf16.mxu1 %v18480_v24  ;;  %v18497_v4 = vld [vmem:[#allocation35 + $0x110] sm:$0xff]   ;;  %v18499_v24 = vld [vmem:[#allocation35 + $0x158] sm:$0xff]  }
0x2335   :  { %v18498_v37 = vld [vmem:[#allocation35 + $0x190] sm:$0xff]  }
0x2337   :  { %16880 = vmatpush3.bf16.msra.mxu0 %v18481_v49  ;;  %16902 = vmatpush3.bf16.msra.mxu1 %v18482_v43  ;;  %v18500_v49 = vld [vmem:[#allocation35 + $0x1d8] sm:$0xff]  }
0x2338   :  { %16881 = vmatprep.subr.bf16.mxu0 %v18483_v31  ;;  %16903 = vmatprep.subr.bf16.mxu1 %v18484_v22  ;;  %v18501_v43 = vld [vmem:[#allocation35 + $0x118] sm:$0xff]   ;;  %v18503_v22 = vld [vmem:[#allocation35 + $0x160] sm:$0xff]  }
0x2339   :  { %v18502_v31 = vld [vmem:[#allocation35 + $0x198] sm:$0xff]  }
0x233b   :  { %16882 = vmatpush3.bf16.msra.mxu0 %v18485_v5  ;;  %16904 = vmatpush3.bf16.msra.mxu1 %v18486_v44  ;;  %v18504_v5 = vld [vmem:[#allocation35 + $0x1e0] sm:$0xff]  }
0x233c   :  { %16911 = vmatprep.subr.bf16.mxu0 %v18487_v26  ;;  %16933 = vmatprep.subr.bf16.mxu1 %v18488_v18  ;;  %v18505_v44 = vld [vmem:[#allocation35 + $0x120] sm:$0xff]   ;;  %v18507_v18 = vld [vmem:[#allocation35 + $0x168] sm:$0xff]  }
0x233d   :  { %v18506_v26 = vld [vmem:[#allocation35 + $0x1a0] sm:$0xff]  }
0x2391   :  { %v9329_v47 = vpop.f32.mrb[128].mxu0  ;;  %v9372_v48 = vpop.f32.mrb[128].mxu1 }
0x2392   :  { %v9330_v7 = vadd.f32 %v9329_v47, %v8578_v17  ;;  %v9373_v51 = vadd.f32 %v9372_v48, %v8586_v12  ;;  %v9331_v38 = vpop.f32.mrb[129].mxu0  ;;  %v9374_v21 = vpop.f32.mrb[129].mxu1  ;;  %v8602_v47 = vrot.slane %v20647_v42, %v20347_v3  ;;  %v18511_v48 = vld [vmem:[#allocation35 + $0x170] sm:$0xff]  }
0x2393   :  { %v9332_v52 = vadd.f32 %v9331_v38, %v8582_v45  ;;  %v9375_v32 = vadd.f32 %v9374_v21, %v8590_v46  ;;  %v9333_v56 = vpop.f32.mrb[130].mxu0  ;;  %v9376_v23 = vpop.f32.mrb[130].mxu1  ;;  %v8606_v38 = vrot.slane %v20647_v42, %v20353_v14 }
0x2394   :  { %v9334_v62 = vadd.f32 %v9333_v56, %v8578_v17  ;;  %v9377_v50 = vadd.f32 %v9376_v23, %v8586_v12  ;;  %v9335_v53 = vpop.f32.mrb[131].mxu0  ;;  %v9378_v11 = vpop.f32.mrb[131].mxu1  ;;  %v9639_v25 = vmax.f32 %v9330_v7, 0.0  ;;  %v9641_v27 = vmax.f32 %v9373_v51, 0.0  ;;  %v18508_v17 = vld [vmem:[#allocation35 + $0x1e8] sm:$0xff]   ;;  %v18512_v7 = vld [vmem:[#allocation35 + $0x1f0] sm:$0xff]  }
0x2395   :  { %v9336_v19 = vadd.f32 %v9335_v53, %v8582_v45  ;;  %v9379_v0 = vadd.f32 %v9378_v11, %v8590_v46  ;;  %v9640_v57 = vmax.f32 %v9332_v52, 0.0  ;;  %v9642_v29 = vmax.f32 %v9375_v32, 0.0  ;;  %v18509_v12 = vld [vmem:[#allocation35 + $0x128] sm:$0xff]   ;;  %v18513_v32 = vld [vmem:[#allocation35 + $0x130] sm:$0xff]   ;;  %v18515_v11 = vld [vmem:[#allocation35 + $0x178] sm:$0xff]  }
0x2396   :  { %v9655_v20 = vmax.f32 %v9334_v62, 0.0  ;;  %v9657_v28 = vmax.f32 %v9377_v50, 0.0  ;;  %v18510_v45 = vld [vmem:[#allocation35 + $0x1a8] sm:$0xff]   ;;  %v8594_v46 = vrot.slane %v20647_v42, %v20344_v1  ;;  %v8598_v51 = vrot.slane %v20647_v42, %v20350_v8  ;;  %v18514_v56 = vld [vmem:[#allocation35 + $0x1b0] sm:$0xff]  }
0x2397   :  { %v9656_v30 = vmax.f32 %v9336_v19, 0.0  ;;  %v9658_v54 = vmax.f32 %v9379_v0, 0.0  ;;  %v18516_v19 = vld [vmem:[#allocation35 + $0x1f8] sm:$0xff]  }
0x2398   :  { %v9671_v9 = vpack.c.bf16 %v9655_v20, %v9639_v25  ;;  %v9673_v63 = vpack.c.bf16 %v9657_v28, %v9641_v27 }
0x2399   :  { %v9672_v15 = vpack.c.bf16 %v9656_v30, %v9640_v57  ;;  %v9674_v13 = vpack.c.bf16 %v9658_v54, %v9642_v29 }
0x239b   :  { %10750 = vmatprep.mubr.bf16.mxu0 %v9672_v15  ;;  %10791 = vmatprep.mubr.bf16.mxu1 %v9674_v13 }
0x239c   :  { %10751 = vmatmul.mubr.bf16.vlgmr.msra.gmra.mrb[144].mxu0 %v9671_v9  ;;  %10792 = vmatmul.mubr.bf16.vlgmr.msra.gmra.mrb[144].mxu1 %v9673_v63  ;;  %v18517_v9 = vld [vmem:[#allocation35 + $0x138] sm:$0xff]  }
0x239d   :  { %16912 = vmatpush3.bf16.msra.mxu0 %v18489_v39  ;;  %16934 = vmatpush3.bf16.msra.mxu1 %v18490_v40  ;;  %v18518_v63 = vld [vmem:[#allocation35 + $0x1b8] sm:$0xff]  }
0x239e   :  { %16913 = vmatprep.subr.bf16.mxu0 %v18491_v33  ;;  %16935 = vmatprep.subr.bf16.mxu1 %v18492_v6  ;;  %v18519_v33 = vld [vmem:[#allocation35 + $0x240] sm:$0xff]  }
0x239f   :  { %v18520_v6 = vld [vmem:[#allocation35 + $0x2c0] sm:$0xff]  }
0x23a1   :  { %16914 = vmatpush3.bf16.msra.mxu0 %v18493_v34  ;;  %16936 = vmatpush3.bf16.msra.mxu1 %v18494_v16 }
0x23a2   :  { %16915 = vmatprep.subr.bf16.mxu0 %v18495_v35  ;;  %16937 = vmatprep.subr.bf16.mxu1 %v18496_v36 }
0x23a5   :  { %16916 = vmatpush3.bf16.msra.mxu0 %v18497_v4  ;;  %16938 = vmatpush3.bf16.msra.mxu1 %v18498_v37 }
0x23a6   :  { %16917 = vmatprep.subr.bf16.mxu0 %v18499_v24  ;;  %16939 = vmatprep.subr.bf16.mxu1 %v18500_v49 }
0x23a9   :  { %16918 = vmatpush3.bf16.msra.mxu0 %v18501_v43  ;;  %16940 = vmatpush3.bf16.msra.mxu1 %v18502_v31  ;;  %v18521_v43 = vld [vmem:[#allocation35 + $0x200] sm:$0xff]  }
0x23aa   :  { %16919 = vmatprep.subr.bf16.mxu0 %v18503_v22  ;;  %16941 = vmatprep.subr.bf16.mxu1 %v18504_v5  ;;  %v18522_v31 = vld [vmem:[#allocation35 + $0x280] sm:$0xff]   ;;  %v18523_v22 = vld [vmem:[#allocation35 + $0x248] sm:$0xff]  }
0x23ab   :  { %v18524_v5 = vld [vmem:[#allocation35 + $0x2c8] sm:$0xff]  }
0x23ad   :  { %16920 = vmatpush3.bf16.msra.mxu0 %v18505_v44  ;;  %16942 = vmatpush3.bf16.msra.mxu1 %v18506_v26  ;;  %v18525_v44 = vld [vmem:[#allocation35 + $0x208] sm:$0xff]  }
0x23ae   :  { %16921 = vmatprep.subr.bf16.mxu0 %v18507_v18  ;;  %16943 = vmatprep.subr.bf16.mxu1 %v18508_v17  ;;  %v18526_v26 = vld [vmem:[#allocation35 + $0x288] sm:$0xff]   ;;  %v18527_v18 = vld [vmem:[#allocation35 + $0x250] sm:$0xff]  }
0x23af   :  { %v18528_v17 = vld [vmem:[#allocation35 + $0x2d0] sm:$0xff]  }
0x23b1   :  { %v9415_v21 = vpop.f32.mrb[132].mxu0  ;;  %v9458_v52 = vpop.f32.mrb[132].mxu1  ;;  %16922 = vmatpush3.bf16.msra.mxu0 %v18509_v12  ;;  %16944 = vmatpush3.bf16.msra.mxu1 %v18510_v45  ;;  %v18529_v12 = vld [vmem:[#allocation35 + $0x210] sm:$0xff]  }
0x23b2   :  { %v9416_v23 = vadd.f32 %v9415_v21, %v8594_v46  ;;  %v9459_v62 = vadd.f32 %v9458_v52, %v8602_v47  ;;  %v9417_v50 = vpop.f32.mrb[133].mxu0  ;;  %v9460_v53 = vpop.f32.mrb[133].mxu1  ;;  %16923 = vmatprep.subr.bf16.mxu0 %v18511_v48  ;;  %16945 = vmatprep.subr.bf16.mxu1 %v18512_v7  ;;  %v18530_v45 = vld [vmem:[#allocation35 + $0x290] sm:$0xff]   ;;  %v18533_v48 = vld [vmem:[#allocation35 + $0x218] sm:$0xff]   ;;  %v18537_v21 = vld [vmem:[#allocation35 + $0x220] sm:$0xff]  }
0x23b3   :  { %v9418_v0 = vadd.f32 %v9417_v50, %v8598_v51  ;;  %v9461_v25 = vadd.f32 %v9460_v53, %v8606_v38  ;;  %v9419_v27 = vpop.f32.mrb[134].mxu0  ;;  %v9462_v20 = vpop.f32.mrb[134].mxu1  ;;  %v18534_v7 = vld [vmem:[#allocation35 + $0x298] sm:$0xff]   ;;  %v18538_v52 = vld [vmem:[#allocation35 + $0x2a0] sm:$0xff]   ;;  %v18542_v50 = vld [vmem:[#allocation35 + $0x2a8] sm:$0xff]  }
0x23b4   :  { %v9420_v28 = vadd.f32 %v9419_v27, %v8594_v46  ;;  %v9463_v42 = vadd.f32 %v9462_v20, %v8602_v47  ;;  %v9421_v57 = vpop.f32.mrb[135].mxu0  ;;  %v9464_v29 = vpop.f32.mrb[135].mxu1  ;;  %v9643_v15 = vmax.f32 %v9416_v23, 0.0  ;;  %v9645_v13 = vmax.f32 %v9459_v62, 0.0  ;;  %v18531_v46 = vld [vmem:[#allocation35 + $0x258] sm:$0xff]   ;;  %v18541_v62 = vld [vmem:[#allocation35 + $0x228] sm:$0xff]  }
0x23b5   :  { %v9422_v30 = vadd.f32 %v9421_v57, %v8598_v51  ;;  %v9465_v54 = vadd.f32 %v9464_v29, %v8606_v38  ;;  %16924 = vmatpush3.bf16.msra.mxu0 %v18513_v32  ;;  %16946 = vmatpush3.bf16.msra.mxu1 %v18514_v56  ;;  %v9644_v34 = vmax.f32 %v9418_v0, 0.0  ;;  %v9646_v16 = vmax.f32 %v9461_v25, 0.0  ;;  %v18532_v47 = vld [vmem:[#allocation35 + $0x2d8] sm:$0xff]   ;;  %v18535_v51 = vld [vmem:[#allocation35 + $0x260] sm:$0xff]   ;;  %v18539_v32 = vld [vmem:[#allocation35 + $0x268] sm:$0xff]  }
0x23b6   :  { %v9659_v39 = vmax.f32 %v9420_v28, 0.0  ;;  %v9661_v40 = vmax.f32 %v9463_v42, 0.0  ;;  %16925 = vmatprep.subr.bf16.mxu0 %v18515_v11  ;;  %16947 = vmatprep.subr.bf16.mxu1 %v18516_v19  ;;  %v18536_v38 = vld [vmem:[#allocation35 + $0x2e0] sm:$0xff]   ;;  %v18540_v56 = vld [vmem:[#allocation35 + $0x2e8] sm:$0xff]   ;;  %v18543_v19 = vld [vmem:[#allocation35 + $0x270] sm:$0xff]  }
0x23b7   :  { %v9660_v35 = vmax.f32 %v9422_v30, 0.0  ;;  %v9662_v36 = vmax.f32 %v9465_v54, 0.0  ;;  %v20666_v23 = vld [vmem:[%s21051_s21 + $0x8] sm:$0xff]  ;;  %v18544_v0 = vld [vmem:[#allocation35 + $0x2f0] sm:$0xff]  }
0x23b8   :  { %v9675_v4 = vpack.c.bf16 %v9659_v39, %v9643_v15  ;;  %v9677_v37 = vpack.c.bf16 %v9661_v40, %v9645_v13  ;;  %v8610_v53 = vrot.slane %v20666_v23, %v20041_v58  ;;  %v8618_v11 = vrot.slane %v20666_v23, %v20044_v59  ;;  %v18545_v42 = vld [vmem:[#allocation35 + $0x230] sm:$0xff]   ;;  %v18548_v15 = vld [vmem:[#allocation35 + $0x2f8] sm:$0xff]  }
0x23b9   :  { %v9676_v24 = vpack.c.bf16 %v9660_v35, %v9644_v34  ;;  %v9678_v49 = vpack.c.bf16 %v9662_v36, %v9646_v16  ;;  %16926 = vmatpush3.bf16.msra.mxu0 %v18517_v9  ;;  %16948 = vmatpush3.bf16.msra.mxu1 %v18518_v63  ;;  %v8614_v25 = vrot.slane %v20666_v23, %v20047_v60  ;;  %v18546_v57 = vld [vmem:[#allocation35 + $0x2b0] sm:$0xff]   ;;  %v18547_v63 = vld [vmem:[#allocation35 + $0x278] sm:$0xff]  }
0x23ba   :  { %16955 = vmatprep.subr.bf16.mxu0 %v18519_v33  ;;  %16977 = vmatprep.subr.bf16.mxu1 %v18520_v6  ;;  %v8622_v27 = vrot.slane %v20666_v23, %v20050_v61 }
0x23bb   :  { %10832 = vmatprep.mubr.bf16.mxu0 %v9676_v24  ;;  %10873 = vmatprep.mubr.bf16.mxu1 %v9678_v49  ;;  %v18550_v24 = vld [vmem:[#allocation35 + $0x2b8] sm:$0xff]  }
0x23bc   :  { %10833 = vmatmul.mubr.bf16.vlgmr.msra.gmra.mrb[148].mxu0 %v9675_v4  ;;  %10874 = vmatmul.mubr.bf16.vlgmr.msra.gmra.mrb[148].mxu1 %v9677_v37  ;;  %v18549_v37 = vld [vmem:[#allocation35 + $0x238] sm:$0xff]  }
0x23bd   :  { %16956 = vmatpush3.bf16.msra.mxu0 %v18521_v43  ;;  %16978 = vmatpush3.bf16.msra.mxu1 %v18522_v31 }
0x23be   :  { %16957 = vmatprep.subr.bf16.mxu0 %v18523_v22  ;;  %16979 = vmatprep.subr.bf16.mxu1 %v18524_v5  ;;  %v18551_v5 = vld [vmem:[#allocation35 + $0x340] sm:$0xff]  }
0x23c1   :  { %16958 = vmatpush3.bf16.msra.mxu0 %v18525_v44  ;;  %16980 = vmatpush3.bf16.msra.mxu1 %v18526_v26  ;;  %v18552_v44 = vld [vmem:[#allocation35 + $0x3c0] sm:$0xff]  }
0x23c2   :  { %16959 = vmatprep.subr.bf16.mxu0 %v18527_v18  ;;  %16981 = vmatprep.subr.bf16.mxu1 %v18528_v17 }
0x23c5   :  { %16960 = vmatpush3.bf16.msra.mxu0 %v18529_v12  ;;  %16982 = vmatpush3.bf16.msra.mxu1 %v18530_v45 }
0x23c6   :  { %16961 = vmatprep.subr.bf16.mxu0 %v18531_v46  ;;  %16983 = vmatprep.subr.bf16.mxu1 %v18532_v47 }
0x23c9   :  { %16962 = vmatpush3.bf16.msra.mxu0 %v18533_v48  ;;  %16984 = vmatpush3.bf16.msra.mxu1 %v18534_v7  ;;  %v18553_v7 = vld [vmem:[#allocation35 + $0x300] sm:$0xff]  }
0x23ca   :  { %16963 = vmatprep.subr.bf16.mxu0 %v18535_v51  ;;  %16985 = vmatprep.subr.bf16.mxu1 %v18536_v38  ;;  %v18554_v51 = vld [vmem:[#allocation35 + $0x380] sm:$0xff]   ;;  %v18555_v38 = vld [vmem:[#allocation35 + $0x348] sm:$0xff]  }
0x23cd   :  { %16964 = vmatpush3.bf16.msra.mxu0 %v18537_v21  ;;  %16986 = vmatpush3.bf16.msra.mxu1 %v18538_v52  ;;  %v18556_v21 = vld [vmem:[#allocation35 + $0x3c8] sm:$0xff]  }
0x23ce   :  { %16965 = vmatprep.subr.bf16.mxu0 %v18539_v32  ;;  %16987 = vmatprep.subr.bf16.mxu1 %v18540_v56  ;;  %v18557_v52 = vld [vmem:[#allocation35 + $0x308] sm:$0xff]   ;;  %v18559_v56 = vld [vmem:[#allocation35 + $0x350] sm:$0xff]  }
0x23cf   :  { %v18558_v32 = vld [vmem:[#allocation35 + $0x388] sm:$0xff]  }
0x23d1   :  { %v9501_v20 = vpop.f32.mrb[136].mxu0  ;;  %v9544_v28 = vpop.f32.mrb[136].mxu1  ;;  %16966 = vmatpush3.bf16.msra.mxu0 %v18541_v62  ;;  %16988 = vmatpush3.bf16.msra.mxu1 %v18542_v50  ;;  %v18560_v62 = vld [vmem:[#allocation35 + $0x3d0] sm:$0xff]  }
0x23d2   :  { %v9502_v29 = vadd.f32 %v9501_v20, %v8610_v53  ;;  %v9545_v30 = vadd.f32 %v9544_v28, %v8618_v11  ;;  %v9503_v54 = vpop.f32.mrb[137].mxu0  ;;  %v9546_v9 = vpop.f32.mrb[137].mxu1  ;;  %16967 = vmatprep.subr.bf16.mxu0 %v18543_v19  ;;  %16989 = vmatprep.subr.bf16.mxu1 %v18544_v0  ;;  %v18561_v50 = vld [vmem:[#allocation35 + $0x310] sm:$0xff]   ;;  %v18564_v19 = vld [vmem:[#allocation35 + $0x3d8] sm:$0xff]   ;;  %v18568_v20 = vld [vmem:[#allocation35 + $0x3e0] sm:$0xff]  }
0x23d3   :  { %v9504_v13 = vadd.f32 %v9503_v54, %v8614_v25  ;;  %v9547_v39 = vadd.f32 %v9546_v9, %v8622_v27  ;;  %v9505_v40 = vpop.f32.mrb[138].mxu0  ;;  %v9548_v33 = vpop.f32.mrb[138].mxu1  ;;  %v18565_v0 = vld [vmem:[#allocation35 + $0x318] sm:$0xff]   ;;  %v18569_v28 = vld [vmem:[#allocation35 + $0x320] sm:$0xff]   ;;  %v18574_v54 = vld [vmem:[#allocation35 + $0x3a8] sm:$0xff]   ;;  %v8626_v9 = vrot.slane %v20666_v23, %v20344_v1 }
0x23d4   :  { %v9506_v6 = vadd.f32 %v9505_v40, %v8610_v53  ;;  %v9549_v34 = vadd.f32 %v9548_v33, %v8618_v11  ;;  %v9507_v16 = vpop.f32.mrb[139].mxu0  ;;  %v9550_v35 = vpop.f32.mrb[139].mxu1  ;;  %v9647_v49 = vmax.f32 %v9502_v29, 0.0  ;;  %v9649_v43 = vmax.f32 %v9545_v30, 0.0  ;;  %v18562_v53 = vld [vmem:[#allocation35 + $0x390] sm:$0xff]   ;;  %v18563_v11 = vld [vmem:[#allocation35 + $0x358] sm:$0xff]  }
0x23d5   :  { %v9508_v36 = vadd.f32 %v9507_v16, %v8614_v25  ;;  %v9551_v4 = vadd.f32 %v9550_v35, %v8622_v27  ;;  %16968 = vmatpush3.bf16.msra.mxu0 %v18545_v42  ;;  %16990 = vmatpush3.bf16.msra.mxu1 %v18546_v57  ;;  %v9648_v26 = vmax.f32 %v9504_v13, 0.0  ;;  %v9650_v18 = vmax.f32 %v9547_v39, 0.0  ;;  %v18566_v25 = vld [vmem:[#allocation35 + $0x398] sm:$0xff]   ;;  %v18567_v27 = vld [vmem:[#allocation35 + $0x360] sm:$0xff]   ;;  %v18571_v57 = vld [vmem:[#allocation35 + $0x368] sm:$0xff]  }
0x23d6   :  { %v9663_v31 = vmax.f32 %v9506_v6, 0.0  ;;  %v9665_v22 = vmax.f32 %v9549_v34, 0.0  ;;  %16969 = vmatprep.subr.bf16.mxu0 %v18547_v63  ;;  %16991 = vmatprep.subr.bf16.mxu1 %v18548_v15  ;;  %v18570_v42 = vld [vmem:[#allocation35 + $0x3a0] sm:$0xff]   ;;  %v18572_v29 = vld [vmem:[#allocation35 + $0x3e8] sm:$0xff]   ;;  %v8634_v63 = vrot.slane %v20666_v23, %v20347_v3  ;;  %v18575_v15 = vld [vmem:[#allocation35 + $0x370] sm:$0xff]   ;;  %v8630_v39 = vrot.slane %v20666_v23, %v20350_v8 }
0x23d7   :  { %v9664_v17 = vmax.f32 %v9508_v36, 0.0  ;;  %v9666_v12 = vmax.f32 %v9551_v4, 0.0  ;;  %v18573_v30 = vld [vmem:[#allocation35 + $0x328] sm:$0xff]   ;;  %v18576_v13 = vld [vmem:[#allocation35 + $0x3f0] sm:$0xff]   ;;  %v8638_v40 = vrot.slane %v20666_v23, %v20353_v14 }
0x23d8   :  { %v9679_v45 = vpack.c.bf16 %v9663_v31, %v9647_v49  ;;  %v9681_v46 = vpack.c.bf16 %v9665_v22, %v9649_v43  ;;  %v18577_v34 = vld [vmem:[#allocation35 + $0x330] sm:$0xff]   ;;  %v18580_v49 = vld [vmem:[#allocation35 + $0x3f8] sm:$0xff]  }
0x23d9   :  { %v9680_v47 = vpack.c.bf16 %v9664_v17, %v9648_v26  ;;  %v9682_v48 = vpack.c.bf16 %v9666_v12, %v9650_v18  ;;  %16970 = vmatpush3.bf16.msra.mxu0 %v18549_v37  ;;  %16992 = vmatpush3.bf16.msra.mxu1 %v18550_v24  ;;  %v18578_v16 = vld [vmem:[#allocation35 + $0x3b0] sm:$0xff]   ;;  %v18579_v24 = vld [vmem:[#allocation35 + $0x378] sm:$0xff]  }
0x23da   :  { %16999 = vmatprep.subr.bf16.mxu0 %v18551_v5  ;;  %17021 = vmatprep.subr.bf16.mxu1 %v18552_v44 }
0x23db   :  { %10914 = vmatprep.mubr.bf16.mxu0 %v9680_v47  ;;  %10955 = vmatprep.mubr.bf16.mxu1 %v9682_v48 }
0x23dc   :  { %10915 = vmatmul.mubr.bf16.vlgmr.msra.gmra.mrb[152].mxu0 %v9679_v45  ;;  %10956 = vmatmul.mubr.bf16.vlgmr.msra.gmra.mrb[152].mxu1 %v9681_v46  ;;  %v18581_v45 = vld [vmem:[#allocation35 + $0x338] sm:$0xff]  }
0x23dd   :  { %17000 = vmatpush3.bf16.msra.mxu0 %v18553_v7  ;;  %17022 = vmatpush3.bf16.msra.mxu1 %v18554_v51  ;;  %v18582_v46 = vld [vmem:[#allocation35 + $0x3b8] sm:$0xff]  }
0x23de   :  { %17001 = vmatprep.subr.bf16.mxu0 %v18555_v38  ;;  %17023 = vmatprep.subr.bf16.mxu1 %v18556_v21 }
0x23e1   :  { %17002 = vmatpush3.bf16.msra.mxu0 %v18557_v52  ;;  %17024 = vmatpush3.bf16.msra.mxu1 %v18558_v32 }
0x23e2   :  { %17003 = vmatprep.subr.bf16.mxu0 %v18559_v56  ;;  %17025 = vmatprep.subr.bf16.mxu1 %v18560_v62 }
0x23e5   :  { %17004 = vmatpush3.bf16.msra.mxu0 %v18561_v50  ;;  %17026 = vmatpush3.bf16.msra.mxu1 %v18562_v53 }
0x23e6   :  { %17005 = vmatprep.subr.bf16.mxu0 %v18563_v11  ;;  %17027 = vmatprep.subr.bf16.mxu1 %v18564_v19 }
0x23e9   :  { %17006 = vmatpush3.bf16.msra.mxu0 %v18565_v0  ;;  %17028 = vmatpush3.bf16.msra.mxu1 %v18566_v25  ;;  %v16072_v0 = vld [vmem:[#allocation37] ss:$0 sm:$0xff] }
0x23ea   :  { %17007 = vmatprep.subr.bf16.mxu0 %v18567_v27  ;;  %17029 = vmatprep.subr.bf16.mxu1 %v18568_v20 }
0x23ed   :  { %17008 = vmatpush3.bf16.msra.mxu0 %v18569_v28  ;;  %17030 = vmatpush3.bf16.msra.mxu1 %v18570_v42 }
0x23ee   :  { %17009 = vmatprep.subr.bf16.mxu0 %v18571_v57  ;;  %17031 = vmatprep.subr.bf16.mxu1 %v18572_v29 }
0x23f1   :  { %v9587_v33 = vpop.f32.mrb[140].mxu0  ;;  %v9630_v6 = vpop.f32.mrb[140].mxu1  ;;  %17010 = vmatpush3.bf16.msra.mxu0 %v18573_v30  ;;  %17032 = vmatpush3.bf16.msra.mxu1 %v18574_v54 }
0x23f2   :  { %v9588_v35 = vadd.f32 %v9587_v33, %v8626_v9  ;;  %v9631_v36 = vadd.f32 %v9630_v6, %v8634_v63  ;;  %v9589_v4 = vpop.f32.mrb[141].mxu0  ;;  %v9632_v37 = vpop.f32.mrb[141].mxu1  ;;  %17011 = vmatprep.subr.bf16.mxu0 %v18575_v15  ;;  %17033 = vmatprep.subr.bf16.mxu1 %v18576_v13 }
0x23f3   :  { %v9590_v43 = vadd.f32 %v9589_v4, %v8630_v39  ;;  %v9633_v31 = vadd.f32 %v9632_v37, %v8638_v40  ;;  %v9591_v22 = vpop.f32.mrb[142].mxu0  ;;  %v9634_v5 = vpop.f32.mrb[142].mxu1 }
0x23f4   :  { %v9592_v44 = vadd.f32 %v9591_v22, %v8626_v9  ;;  %v9635_v23 = vadd.f32 %v9634_v5, %v8634_v63  ;;  %v9593_v26 = vpop.f32.mrb[143].mxu0  ;;  %v9636_v18 = vpop.f32.mrb[143].mxu1  ;;  %v9651_v47 = vmax.f32 %v9588_v35, 0.0  ;;  %v9653_v48 = vmax.f32 %v9631_v36, 0.0 }
0x23f5   :  { %v9594_v17 = vadd.f32 %v9593_v26, %v8630_v39  ;;  %v9637_v12 = vadd.f32 %v9636_v18, %v8638_v40  ;;  %17012 = vmatpush3.bf16.msra.mxu0 %v18577_v34  ;;  %17034 = vmatpush3.bf16.msra.mxu1 %v18578_v16  ;;  %v9652_v38 = vmax.f32 %v9590_v43, 0.0  ;;  %v9654_v21 = vmax.f32 %v9633_v31, 0.0 }
0x23f6   :  { %v9667_v7 = vmax.f32 %v9592_v44, 0.0  ;;  %v9669_v51 = vmax.f32 %v9635_v23, 0.0  ;;  %17013 = vmatprep.subr.bf16.mxu0 %v18579_v24  ;;  %17035 = vmatprep.subr.bf16.mxu1 %v18580_v49 }
0x23f7   :  { %v9668_v52 = vmax.f32 %v9594_v17, 0.0  ;;  %v9670_v32 = vmax.f32 %v9637_v12, 0.0 }
0x23f8   :  { %v9683_v56 = vpack.c.bf16 %v9667_v7, %v9651_v47  ;;  %v9685_v62 = vpack.c.bf16 %v9669_v51, %v9653_v48 }
0x23f9   :  { %v9684_v50 = vpack.c.bf16 %v9668_v52, %v9652_v38  ;;  %v9686_v53 = vpack.c.bf16 %v9670_v32, %v9654_v21  ;;  %17014 = vmatpush3.bf16.msra.mxu0 %v18581_v45  ;;  %17036 = vmatpush3.bf16.msra.mxu1 %v18582_v46 }
0x23fa   :  { %17568 = vmatprep.subr.bf16.mxu1 %v19632_v41 }
0x23fb   :  { %10996 = vmatprep.mubr.bf16.mxu0 %v9684_v50  ;;  %11037 = vmatprep.mubr.bf16.mxu1 %v9686_v53 }
0x23fc   :  { %10997 = vmatmul.mubr.bf16.vlgmr.msra.gmra.mrb[156].mxu0 %v9683_v56  ;;  %11038 = vmatmul.mubr.bf16.vlgmr.msra.gmra.mrb[156].mxu1 %v9685_v62 }
0x23fd   :  { %11304 = vmatprep.mubr.bf16.mxu0 %v19633_v2  ;;  %17584 = vmatprep.mubr.msk.bf16.mxu1 %vm19634_vm0, %v19632_v41 }
0x246f   :  { %v16883_v11 = vpop.f32.mrb[144].mxu0  ;;  %v16905_v19 = vpop.f32.mrb[144].mxu1 }
0x2470   :  { %v16884_v25 = vpop.f32.mrb[145].mxu0  ;;  %v16906_v27 = vpop.f32.mrb[145].mxu1 }
0x2471   :  { %v16885_v20 = vadd.f32 %v16884_v25, %v16883_v11  ;;  %v16907_v28 = vadd.f32 %v16906_v27, %v16905_v19  ;;  %v16886_v42 = vpop.f32.mrb[146].mxu0  ;;  %v16908_v57 = vpop.f32.mrb[146].mxu1 }
0x2472   :  { %v16887_v29 = vpop.f32.mrb[147].mxu0  ;;  %v16909_v30 = vpop.f32.mrb[147].mxu1 }
0x2473   :  { %v10753_v54 = vadd.f32 %v16885_v20, %v16072_v0  ;;  %v16888_v9 = vadd.f32 %v16887_v29, %v16886_v42  ;;  %v16910_v63 = vadd.f32 %v16909_v30, %v16908_v57 }
0x2475   :  { %v10794_v15 = vadd.f32 %v16907_v28, %v10753_v54  ;;  %v10756_v13 = vadd.f32 %v16888_v9, %v16072_v0 }
0x2477   :  { %v10797_v39 = vadd.f32 %v16910_v63, %v10756_v13 }
0x248f   :  { %v16927_v40 = vpop.f32.mrb[148].mxu0  ;;  %v16949_v33 = vpop.f32.mrb[148].mxu1 }
0x2490   :  { %v16928_v6 = vpop.f32.mrb[149].mxu0  ;;  %v16950_v34 = vpop.f32.mrb[149].mxu1 }
0x2491   :  { %v16929_v16 = vadd.f32 %v16928_v6, %v16927_v40  ;;  %v16951_v35 = vadd.f32 %v16950_v34, %v16949_v33  ;;  %v16930_v36 = vpop.f32.mrb[150].mxu0  ;;  %v16952_v4 = vpop.f32.mrb[150].mxu1  ;;  %v18585_v40 = vld [vmem:[#allocation38 + $0x4] ss:$12 sps:$4 sm:$0xff]   ;;  %v18583_v33 = vld [vmem:[#allocation38] ss:$12 sps:$4 sm:$0xff]  }
0x2492   :  { %v16931_v37 = vpop.f32.mrb[151].mxu0  ;;  %v16953_v24 = vpop.f32.mrb[151].mxu1  ;;  %v18586_v6 = vld [vmem:[#allocation38 + $0x8] ss:$12 sps:$4 sm:$0xff]   ;;  %11272 = vmatprep.subr.bf16.mxu0 %v18585_v40  ;;  %v18590_v34 = vld [vmem:[#allocation38 + $0x20] ss:$12 sps:$4 sm:$0xff]  }
0x2493   :  { %v10835_v49 = vadd.f32 %v16929_v16, %v10794_v15  ;;  %v16932_v43 = vadd.f32 %v16931_v37, %v16930_v36  ;;  %v16954_v31 = vadd.f32 %v16953_v24, %v16952_v4  ;;  %11273 = vmatpush1.bf16.msra.mxu0 %v18583_v33  ;;  %17569 = vmatpush3.bf16.msra.mxu1 %v18586_v6  ;;  %v18593_v16 = vld [vmem:[#allocation38 + $0x34] ss:$12 sps:$4 sm:$0xff]   ;;  %v18594_v36 = vld [vmem:[#allocation38 + $0x38] ss:$12 sps:$4 sm:$0xff]   ;;  %v18598_v24 = vld [vmem:[#allocation38 + $0x50] ss:$12 sps:$4 sm:$0xff]  }
0x2494   :  { %17570 = vmatprep.subr.bf16.mxu1 %v19632_v41  ;;  %v18597_v4 = vld [vmem:[#allocation38 + $0x4c] ss:$12 sps:$4 sm:$0xff]   ;;  %v18595_v37 = vld [vmem:[#allocation38 + $0x48] ss:$12 sps:$4 sm:$0xff]  }
0x2495   :  { %v10876_v22 = vadd.f32 %v16951_v35, %v10835_v49  ;;  %v10838_v5 = vadd.f32 %v16932_v43, %v10797_v39  ;;  %v18591_v35 = vld [vmem:[#allocation38 + $0x30] ss:$12 sps:$4 sm:$0xff]   ;;  %v18599_v43 = vld [vmem:[#allocation38 + $0x60] ss:$12 sps:$4 sm:$0xff]  }
0x2496   :  { %v18601_v49 = vld [vmem:[#allocation38 + $0x64] ss:$12 sps:$4 sm:$0xff]  }
0x2497   :  { %v10879_v44 = vadd.f32 %v16954_v31, %v10838_v5  ;;  %17571 = vmatpush3.bf16.msra.mxu1 %v18590_v34  ;;  %v18602_v31 = vld [vmem:[#allocation38 + $0x68] ss:$12 sps:$4 sm:$0xff]   ;;  %v18603_v5 = vld [vmem:[#allocation38 + $0x78] ss:$12 sps:$4 sm:$0xff]  }
0x2498   :  { %17572 = vmatprep.subr.bf16.mxu1 %v19632_v41 }
0x249b   :  { %17573 = vmatpush3.bf16.msra.mxu1 %v18594_v36 }
0x249c   :  { %17574 = vmatprep.subr.bf16.mxu1 %v19632_v41 }
0x249f   :  { %17575 = vmatpush3.bf16.msra.mxu1 %v18598_v24 }
0x24a0   :  { %17576 = vmatprep.subr.bf16.mxu1 %v19632_v41 }
0x24a3   :  { %17577 = vmatpush3.bf16.msra.mxu1 %v18602_v31 }
0x24a4   :  { %17578 = vmatprep.subr.bf16.mxu1 %v19632_v41 }
0x24af   :  { %v16971_v23 = vpop.f32.mrb[152].mxu0  ;;  %v16993_v26 = vpop.f32.mrb[152].mxu1 }
0x24b0   :  { %v16972_v18 = vpop.f32.mrb[153].mxu0  ;;  %v16994_v17 = vpop.f32.mrb[153].mxu1 }
0x24b1   :  { %v16973_v12 = vadd.f32 %v16972_v18, %v16971_v23  ;;  %v16995_v45 = vadd.f32 %v16994_v17, %v16993_v26  ;;  %v16974_v46 = vpop.f32.mrb[154].mxu0  ;;  %v16996_v47 = vpop.f32.mrb[154].mxu1  ;;  %v18609_v23 = vld [vmem:[#allocation38 + $0x94] ss:$12 sps:$4 sm:$0xff]   ;;  %v18607_v26 = vld [vmem:[#allocation38 + $0x90] ss:$12 sps:$4 sm:$0xff]  }
0x24b2   :  { %v16975_v48 = vpop.f32.mrb[155].mxu0  ;;  %v16997_v7 = vpop.f32.mrb[155].mxu1  ;;  %v18610_v18 = vld [vmem:[#allocation38 + $0x98] ss:$12 sps:$4 sm:$0xff]  }
0x24b3   :  { %v10917_v51 = vadd.f32 %v16973_v12, %v10876_v22  ;;  %v16976_v38 = vadd.f32 %v16975_v48, %v16974_v46  ;;  %v16998_v21 = vadd.f32 %v16997_v7, %v16996_v47  ;;  %v18605_v22 = vld [vmem:[#allocation38 + $0x7c] ss:$12 sps:$4 sm:$0xff]   ;;  %v18613_v17 = vld [vmem:[#allocation38 + $0xac] ss:$12 sps:$4 sm:$0xff]  }
0x24b4   :  { %v18611_v12 = vld [vmem:[#allocation38 + $0xa8] ss:$12 sps:$4 sm:$0xff]  }
0x24b5   :  { %v10958_v52 = vadd.f32 %v16995_v45, %v10917_v51  ;;  %v10920_v32 = vadd.f32 %v16976_v38, %v10879_v44  ;;  %v18606_v44 = vld [vmem:[#allocation38 + $0x80] ss:$12 sps:$4 sm:$0xff]   ;;  %v18614_v45 = vld [vmem:[#allocation38 + $0xb0] ss:$12 sps:$4 sm:$0xff]  }
0x24b6   :  { %17579 = vmatpush3.bf16.msra.mxu1 %v18606_v44 }
0x24b7   :  { %v10961_v56 = vadd.f32 %v16998_v21, %v10920_v32  ;;  %17580 = vmatprep.subr.bf16.mxu1 %v19632_v41 }
0x24ba   :  { %17581 = vmatpush3.bf16.msra.mxu1 %v18610_v18 }
0x24bb   :  { %17582 = vmatprep.subr.bf16.mxu1 %v19632_v41 }
0x24be   :  { %17583 = vmatpush3.bf16.msra.mxu1 %v18614_v45 }
0x24bf   :  { %17594 = vmatprep.subr.bf16.mxu1 %v19632_v41 }
0x24cf   :  { %v17015_v62 = vpop.f32.mrb[156].mxu0  ;;  %v17037_v50 = vpop.f32.mrb[156].mxu1 }
0x24d0   :  { %v17016_v53 = vpop.f32.mrb[157].mxu0  ;;  %v17038_v11 = vpop.f32.mrb[157].mxu1 }
0x24d1   :  { %v17017_v19 = vadd.f32 %v17016_v53, %v17015_v62  ;;  %v17039_v0 = vadd.f32 %v17038_v11, %v17037_v50  ;;  %v17018_v25 = vpop.f32.mrb[158].mxu0  ;;  %v17040_v27 = vpop.f32.mrb[158].mxu1 }
0x24d2   :  { %v17019_v20 = vpop.f32.mrb[159].mxu0  ;;  %v17041_v28 = vpop.f32.mrb[159].mxu1 }
0x24d3   :  { %v10999_v42 = vadd.f32 %v17017_v19, %v10958_v52  ;;  %v17020_v57 = vadd.f32 %v17019_v20, %v17018_v25  ;;  %v17042_v29 = vadd.f32 %v17041_v28, %v17040_v27  ;;  %v16201_v20 = vld [vmem:[%s21052_s10] ss:$0 sm:$0xff] }
0x24d5   :  { %v11040_v30 = vadd.f32 %v17039_v0, %v10999_v42  ;;  %v11002_v54 = vadd.f32 %v17020_v57, %v10961_v56 }
0x24d7   :  { %v11043_v9 = vadd.f32 %v17042_v29, %v11002_v54  ;;  %v20689_v63 = vadd.f32 %v11040_v30, %v20626_v10  ;;  %v18589_v10 = vld [vmem:[#allocation38 + $0x1c] ss:$12 sps:$4 sm:$0xff]   ;;  %v16202_v54 = vld [vmem:[%s21053_s17] ss:$0 sm:$0xff] }
0x24d8   :  { %11274 = vmatprep.subr.bf16.mxu0 %v18589_v10 }
0x24d9   :  { %11050 = vadd.xlane.f32.xlu0 %v20689_v63  ;;  %v20693_v15 = vadd.f32 %v11043_v9, %v20624_v55  ;;  %v11056_v13 = vmul.f32 %v20689_v63, %v20689_v63  ;;  %v18587_v55 = vld [vmem:[#allocation38 + $0x18] ss:$12 sps:$4 sm:$0xff]  }
0x24da   :  { %11275 = vmatpush1.bf16.msra.mxu0 %v18587_v55 }
0x24db   :  { %11052 = vadd.xlane.f32.xlu1 %v20693_v15  ;;  %v11057_v39 = vmul.f32 %v20693_v15, %v20693_v15  ;;  %11276 = vmatprep.subr.bf16.mxu0 %v18593_v16 }
0x24dd   :  { %11058 = vadd.xlane.f32.xlu0 %v11056_v13 }
0x24de   :  { %11277 = vmatpush1.bf16.msra.mxu0 %v18591_v35 }
0x24df   :  { %11060 = vadd.xlane.f32.xlu1 %v11057_v39  ;;  %11278 = vmatprep.subr.bf16.mxu0 %v18597_v4 }
0x24e2   :  { %11279 = vmatpush1.bf16.msra.mxu0 %v18595_v37 }
0x24e3   :  { %11280 = vmatprep.subr.bf16.mxu0 %v18601_v49 }
0x24e6   :  { %11281 = vmatpush1.bf16.msra.mxu0 %v18599_v43 }
0x24e7   :  { %11282 = vmatprep.subr.bf16.mxu0 %v18605_v22 }
0x24ea   :  { %11283 = vmatpush1.bf16.msra.mxu0 %v18603_v5 }
0x24eb   :  { %11284 = vmatprep.subr.bf16.mxu0 %v18609_v23 }
0x24ee   :  { %11285 = vmatpush1.bf16.msra.mxu0 %v18607_v26 }
0x24ef   :  { %11286 = vmatprep.subr.bf16.mxu0 %v18613_v17 }
0x24f2   :  { %11287 = vmatpush1.bf16.msra.mxu0 %v18611_v12 }
0x24f3   :  { %17588 = vmatprep.subr.bf16.mxu0 %v19632_v41 }
0x2566   :  { %v11051_v46 = vpop.xlane.xlu0 %11050 }
0x2567   :  { %v11054_v47 = vmul.f32 0.0078125, %v11051_v46 }
0x2568   :  { %v11053_v48 = vpop.xlane.xlu1 %11052 }
0x2569   :  { %v11055_v7 = vmul.f32 0.0078125, %v11053_v48  ;;  %v11064_v38 = vmul.f32 %v11054_v47, %v11054_v47  ;;  %v11070_v25 = vsub.f32 %v20689_v63, %v11054_v47  ;;  %v11127_v63 = vld [vmem:[%s21054_s11] sm:$0x7] }
0x256a   :  { %v11059_v51 = vpop.xlane.xlu0 %11058  ;;  %v11132_v33 = vrot.slane %v11127_v63, %v20041_v58  ;;  %v11140_v16 = vrot.slane %v11127_v63, %v20044_v59 }
0x256b   :  { %v11062_v21 = vmul.f32 0.0078125, %v11059_v51  ;;  %v11065_v32 = vmul.f32 %v11055_v7, %v11055_v7  ;;  %v11071_v28 = vsub.f32 %v20693_v15, %v11055_v7  ;;  %v11136_v15 = vrot.slane %v11127_v63, %v20047_v60 }
0x256c   :  { %v11061_v52 = vpop.xlane.xlu1 %11060 }
0x256d   :  { %v11066_v56 = vsub.f32 %v11062_v21, %v11064_v38  ;;  %v11063_v62 = vmul.f32 0.0078125, %v11061_v52 }
0x256f   :  { %v11068_v50 = vmax.f32 %v11066_v56, 0.0  ;;  %v11067_v53 = vsub.f32 %v11063_v62, %v11065_v32 }
0x2571   :  { %v11072_v11 = vadd.f32 1e-05, %v11068_v50  ;;  %v11069_v19 = vmax.f32 %v11067_v53, 0.0 }
0x2573   :  { %18867 = vrsqrt.f32 %v11072_v11  ;;  %v11073_v0 = vadd.f32 1e-05, %v11069_v19 }
0x2575   :  { %18869 = vrsqrt.f32 %v11073_v0 }
0x257d   :  { %v18868_v27 = vpop.eup %18867 }
0x257e   :  { %v11076_v42 = vmul.f32 %v18868_v27, %v11070_v25 }
0x257f   :  { %v18870_v57 = vpop.eup %18869 }
0x2580   :  { %v11077_v29 = vmul.f32 %v18870_v57, %v11071_v28  ;;  %v11084_v30 = vmul.f32 %v16201_v20, %v11076_v42 }
0x2582   :  { %v11085_v9 = vmul.f32 %v16201_v20, %v11077_v29  ;;  %v20713_v13 = vadd.f32 %v16202_v54, %v11084_v30 }
0x2584   :  { %v20715_v39 = vadd.f32 %v16202_v54, %v11085_v9 }
0x2586   :  { %v11094_v40 = vpack.c.bf16 %v20715_v39, %v20713_v13 }
0x2588   :  { %11305 = vmatmul.mubr.bf16.vlgmr.msra.gmra.mrb[160].mxu0 %v11094_v40  ;;  %17585 = vmatmul.mubr.bf16.vlgmr.msra.gmra.mrb[160].mxu1 %v11094_v40 }
0x2589   :  { %17590 = vmatprep.mubr.msk.bf16.mxu0 %vm19634_vm0, %v19632_v41  ;;  %17596 = vmatprep.mubr.msk.bf16.mxu1 %vm19634_vm0, %v19632_v41 }
0x265b   :  { %v11306_v6 = vpop.f32.mrb[160].mxu0  ;;  %v11349_v10 = vpop.f32.mrb[160].mxu1 }
0x265c   :  { %v11308_v55 = vpop.f32.mrb[161].mxu0  ;;  %v17586_v34 = vpop.f32.mrb[161].mxu1  ;;  %v11307_v49 = vadd.f32 %v11306_v6, %v11132_v33  ;;  %v11350_v22 = vadd.f32 %v11349_v10, %v11140_v16 }
0x265d   :  { %v11309_v35 = vadd.f32 %v11308_v55, %v11136_v15  ;;  %v11310_v36 = vpop.f32.mrb[162].mxu0  ;;  %v11352_v4 = vpop.f32.mrb[162].mxu1 }
0x265e   :  { %v11312_v37 = vpop.f32.mrb[163].mxu0  ;;  %v17587_v24 = vpop.f32.mrb[163].mxu1  ;;  %v11311_v5 = vadd.f32 %v11310_v36, %v11132_v33  ;;  %v11356_v26 = vmul.f32 0.17677669, %v11307_v49  ;;  %v11353_v18 = vadd.f32 %v11352_v4, %v11140_v16  ;;  %v20736_v12 = vpack.c.bf16 %v11350_v22, %v11350_v22 }
0x265f   :  { %v20727_v43 = vpack.c.bf16 %v11309_v35, %v11309_v35  ;;  %v11313_v31 = vadd.f32 %v11312_v37, %v11136_v15 }
0x2660   :  { %v11357_v45 = vmul.f32 0.17677669, %v11311_v5  ;;  %v20739_v46 = vpack.c.bf16 %v11356_v26, %v11356_v26  ;;  %v20741_v47 = vpack.c.bf16 %v11353_v18, %v11353_v18  ;;  %v11512_v7 = vsel %vm3295_vm2, %v20736_v12, 0 }
0x2661   :  { %v20729_v44 = vpack.c.bf16 %v11313_v31, %v11313_v31  ;;  %v11396_v23 = vsel %vm3174_vm1, %v20727_v43, 0 }
0x2662   :  { %17589 = vmatpush3.bf16.xpose.msra.mxu0 %v11396_v23  ;;  %v20743_v48 = vpack.c.bf16 %v11357_v45, %v11357_v45  ;;  %v11558_v51 = vsel %vm3295_vm2, %v20741_v47, 0 }
0x2663   :  { %v11442_v17 = vsel %vm3174_vm1, %v20729_v44, 0  ;;  %17600 = vmatprep.subr.bf16.mxu0 %v19632_v41 }
0x2664   :  { %17595 = vmatpush3.bf16.xpose.msra.mxu1 %v11442_v17 }
0x2665   :  { %17606 = vmatprep.subr.bf16.mxu1 %v19632_v41 }
0x2669   :  { %17591 = vmatmul.mubr.msk.bf16.vlgmr.msra.gmra.mrb[164].mxu0 %vm3174_vm1, %v20739_v46 }
0x266a   :  { %17601 = vmatpush3.bf16.msra.mxu0 %v11512_v7  ;;  %17602 = vmatprep.mubr.msk.bf16.mxu0 %vm19634_vm0, %v19632_v41 }
0x266b   :  { %17597 = vmatmul.mubr.msk.bf16.vlgmr.msra.gmra.mrb[164].mxu1 %vm3174_vm1, %v20743_v48  ;;  %17612 = vmatprep.subr.bf16.mxu0 %v19632_v41 }
0x266c   :  { %17607 = vmatpush3.bf16.msra.mxu1 %v11558_v51  ;;  %17608 = vmatprep.mubr.msk.bf16.mxu1 %vm19634_vm0, %v19632_v41 }
0x266d   :  { %17618 = vmatprep.subr.bf16.mxu1 %v19632_v41 }
0x273c   :  { %v11432_v38 = vpop.f32.mrb[164].mxu0 }
0x273d   :  { %v17592_v21 = vpop.f32.mrb[165].mxu0  ;;  %v11484_v52 = vsel %vm3267_vm3, %v11432_v38, -inf }
0x273e   :  { %v11478_v32 = vpop.f32.mrb[164].mxu1  ;;  %11485 = vmax.xlane.f32.xlu0 %v11484_v52  ;;  %v11435_v56 = vpop.f32.mrb[166].mxu0 }
0x273f   :  { %v17593_v62 = vpop.f32.mrb[167].mxu0  ;;  %v17598_v50 = vpop.f32.mrb[165].mxu1  ;;  %v11487_v53 = vsel %vm3267_vm3, %v11478_v32, -inf }
0x2740   :  { %11488 = vmax.xlane.f32.xlu1 %v11487_v53  ;;  %v11481_v11 = vpop.f32.mrb[166].mxu1 }
0x2741   :  { %v17599_v19 = vpop.f32.mrb[167].mxu1 }
0x2751   :  { %11653 = vrot.lane.b32.xlu1 %v20729_v44, %s19635_s14 }
0x27cb   :  { %v11486_v0 = vpop.xlane.xlu0 %11485 }
0x27cc   :  { %v11490_v25 = vsub.f32 %v11432_v38, %v11486_v0 }
0x27cd   :  { %v11489_v27 = vpop.xlane.xlu1 %11488 }
0x27ce   :  { %v11492_v20 = vmul.f32 1.442695, %v11490_v25  ;;  %v11491_v28 = vsub.f32 %v11478_v32, %v11489_v27 }
0x27d0   :  { %18871 = vpow2.f32 %v11492_v20  ;;  %v11494_v42 = vmul.f32 1.442695, %v11491_v28 }
0x27d1   :  { %v11654_v9 = vpop.permute.xlu1 %11653 }
0x27d2   :  { %18873 = vpow2.f32 %v11494_v42  ;;  %v11659_v36 = vsel %vm3174_vm1, %v11654_v9, 0 }
0x27da   :  { %v18872_v57 = vpop.eup %18871 }
0x27db   :  { %v11496_v29 = vsel %vm3267_vm3, %v18872_v57, 0.0 }
0x27dc   :  { %v18874_v30 = vpop.eup %18873  ;;  %11497 = vadd.xlane.f32.xlu0 %v11496_v29 }
0x27dd   :  { %v11499_v54 = vsel %vm3267_vm3, %v18874_v30, 0.0 }
0x27de   :  { %11500 = vadd.xlane.f32.xlu1 %v11499_v54 }
0x27ef   :  { %11601 = vrot.lane.b32.xlu1 %v20739_v46, %s19635_s14 }
0x27f2   :  { %11603 = vrot.lane.b32.xlu0 %v20727_v43, %s19635_s14 }
0x27f3   :  { %11651 = vrot.lane.b32.xlu1 %v20743_v48, %s19635_s14 }
0x2869   :  { %v11498_v40 = vpop.xlane.xlu0 %11497 }
0x286a   :  { %18875 = vrcp.f32 %v11498_v40 }
0x286b   :  { %v11501_v63 = vpop.xlane.xlu1 %11500 }
0x286c   :  { %18877 = vrcp.f32 %v11501_v63 }
0x286d   :  { %v11604_v10 = vpop.permute.xlu0 %11603 }
0x286e   :  { %v11609_v16 = vsel %vm3174_vm1, %v11604_v10, 0 }
0x286f   :  { %v11602_v4 = vpop.permute.xlu1 %11601 }
0x2873   :  { %v11652_v37 = vpop.permute.xlu1 %11651 }
0x2874   :  { %v18876_v15 = vpop.eup %18875 }
0x2875   :  { %v11504_v33 = vmul.f32 %v18876_v15, %v18872_v57 }
0x2876   :  { %v18878_v6 = vpop.eup %18877 }
0x2877   :  { %v11505_v55 = vmul.f32 %v18878_v6, %v18874_v30  ;;  %v11506_v34 = vpack.c.bf16 %v11504_v33, %v11504_v33  ;;  %v18617_v6 = vld [vmem:[#allocation40 + $0x10] sm:$0xff]  }
0x2879   :  { %17603 = vmatmul.mubr.msk.bf16.vlgmr.msra.gmra.mrb[168].mxu0 %vm3267_vm3, %v11506_v34  ;;  %v11507_v35 = vpack.c.bf16 %v11505_v55, %v11505_v55 }
0x287a   :  { %17613 = vmatpush3.bf16.xpose.msra.mxu0 %v11609_v16  ;;  %17614 = vmatprep.mubr.msk.bf16.mxu0 %vm19634_vm0, %v19632_v41  ;;  %v18615_v16 = vld [vmem:[#allocation40] sm:$0xff]  }
0x287b   :  { %17609 = vmatmul.mubr.msk.bf16.vlgmr.msra.gmra.mrb[168].mxu1 %vm3267_vm3, %v11507_v35  ;;  %17624 = vmatprep.subr.bf16.mxu0 %v19632_v41 }
0x287c   :  { %17619 = vmatpush3.bf16.xpose.msra.mxu1 %v11659_v36  ;;  %17620 = vmatprep.mubr.msk.bf16.mxu1 %vm19634_vm0, %v19632_v41  ;;  %v18618_v36 = vld [vmem:[#allocation40 + $0x18] sm:$0xff]  }
0x287d   :  { %17630 = vmatprep.subr.bf16.mxu1 %v19632_v41 }
0x2881   :  { %17615 = vmatmul.mubr.msk.bf16.vlgmr.msra.gmra.mrb[172].mxu0 %vm3174_vm1, %v11602_v4  ;;  %v18616_v4 = vld [vmem:[#allocation40 + $0x8] sm:$0xff]  }
0x2882   :  { %17626 = vmatprep.mubr.msk.bf16.mxu0 %vm19634_vm0, %v19632_v41 }
0x2883   :  { %17621 = vmatmul.mubr.msk.bf16.vlgmr.msra.gmra.mrb[172].mxu1 %vm3174_vm1, %v11652_v37 }
0x2884   :  { %17632 = vmatprep.mubr.msk.bf16.mxu1 %vm19634_vm0, %v19632_v41 }
0x294c   :  { %v20787_v24 = vpop.f32.mrb[168].mxu0 }
0x294d   :  { %v17604_v49 = vpop.f32.mrb[169].mxu0 }
0x294e   :  { %v11551_v31 = vpop.f32.mrb[170].mxu0  ;;  %v20789_v22 = vpop.f32.mrb[168].mxu1 }
0x294f   :  { %v11600_v5 = vpack.c.bf16 %v20789_v22, %v20787_v24  ;;  %v17605_v23 = vpop.f32.mrb[171].mxu0  ;;  %v17610_v26 = vpop.f32.mrb[169].mxu1 }
0x2950   :  { %v11597_v18 = vpop.f32.mrb[170].mxu1 }
0x2951   :  { %v17611_v17 = vpop.f32.mrb[171].mxu1 }
0x2954   :  { %v11645_v45 = vpop.f32.mrb[172].mxu0 }
0x2955   :  { %v17616_v7 = vpop.f32.mrb[173].mxu0  ;;  %v11701_v51 = vsel %vm3267_vm3, %v11645_v45, -inf }
0x2956   :  { %v11695_v38 = vpop.f32.mrb[172].mxu1  ;;  %11702 = vmax.xlane.f32.xlu0 %v11701_v51  ;;  %v11648_v21 = vpop.f32.mrb[174].mxu0 }
0x2957   :  { %v17617_v52 = vpop.f32.mrb[175].mxu0  ;;  %v17622_v32 = vpop.f32.mrb[173].mxu1  ;;  %v11704_v56 = vsel %vm3267_vm3, %v11695_v38, -inf }
0x2958   :  { %11705 = vmax.xlane.f32.xlu1 %v11704_v56  ;;  %v11698_v62 = vpop.f32.mrb[174].mxu1 }
0x2959   :  { %v17623_v50 = vpop.f32.mrb[175].mxu1 }
0x2969   :  { %11773 = vrot.lane.b32.xlu1 %v20741_v47, %s19635_s14 }
0x296d   :  { %11936 = vrot.lane.b32.xlu1 %v20727_v43, %s19603_s2 }
0x2971   :  { %11986 = vrot.lane.b32.xlu1 %v20729_v44, %s19603_s2 }
0x2975   :  { %11984 = vrot.lane.b32.xlu1 %v20743_v48, %s19603_s2 }
0x29e3   :  { %v11703_v53 = vpop.xlane.xlu0 %11702 }
0x29e4   :  { %v11707_v11 = vsub.f32 %v11645_v45, %v11703_v53 }
0x29e5   :  { %v11706_v19 = vpop.xlane.xlu1 %11705 }
0x29e6   :  { %v11709_v0 = vmul.f32 1.442695, %v11707_v11  ;;  %v11708_v25 = vsub.f32 %v11695_v38, %v11706_v19 }
0x29e8   :  { %18879 = vpow2.f32 %v11709_v0  ;;  %v11711_v27 = vmul.f32 1.442695, %v11708_v25 }
0x29e9   :  { %v11774_v20 = vpop.permute.xlu1 %11773 }
0x29ea   :  { %18881 = vpow2.f32 %v11711_v27  ;;  %v11779_v28 = vsel %vm3295_vm2, %v11774_v20, 0 }
0x29eb   :  { %17631 = vmatpush3.bf16.msra.mxu1 %v11779_v28 }
0x29ec   :  { %17644 = vmatprep.subr.bf16.mxu1 %v19632_v41 }
0x29ed   :  { %v11937_v37 = vpop.permute.xlu1 %11936 }
0x29ee   :  { %v11942_v51 = vsel %vm3174_vm1, %v11937_v37, 0 }
0x29f1   :  { %v11987_v49 = vpop.permute.xlu1 %11986 }
0x29f2   :  { %v18880_v42 = vpop.eup %18879  ;;  %v11992_v31 = vsel %vm3174_vm1, %v11987_v49, 0 }
0x29f3   :  { %v11713_v57 = vsel %vm3267_vm3, %v18880_v42, 0.0 }
0x29f4   :  { %v18882_v29 = vpop.eup %18881  ;;  %11714 = vadd.xlane.f32.xlu0 %v11713_v57 }
0x29f5   :  { %v11716_v30 = vsel %vm3267_vm3, %v18882_v29, 0.0  ;;  %v11985_v23 = vpop.permute.xlu1 %11984 }
0x29f8   :  { %11717 = vadd.xlane.f32.xlu0 %v11716_v30 }
0x2a0e   :  { %11725 = vrot.lane.b32.xlu0 %v20736_v12, %s19635_s14 }
0x2a12   :  { %11934 = vrot.lane.b32.xlu0 %v20739_v46, %s19603_s2 }
0x2a81   :  { %v11715_v54 = vpop.xlane.xlu0 %11714 }
0x2a82   :  { %18883 = vrcp.f32 %v11715_v54 }
0x2a85   :  { %v11718_v9 = vpop.xlane.xlu0 %11717 }
0x2a86   :  { %18885 = vrcp.f32 %v11718_v9 }
0x2a89   :  { %v11726_v40 = vpop.permute.xlu0 %11725 }
0x2a8a   :  { %v11731_v63 = vsel %vm3295_vm2, %v11726_v40, 0 }
0x2a8b   :  { %17625 = vmatpush3.bf16.msra.mxu0 %v11731_v63 }
0x2a8c   :  { %v18884_v15 = vpop.eup %18883  ;;  %17636 = vmatprep.subr.bf16.mxu0 %v19632_v41 }
0x2a8d   :  { %v11721_v33 = vmul.f32 %v18884_v15, %v18880_v42  ;;  %v11935_v32 = vpop.permute.xlu0 %11934 }
0x2a8f   :  { %v11723_v10 = vpack.c.bf16 %v11721_v33, %v11721_v33 }
0x2a90   :  { %v18886_v55 = vpop.eup %18885 }
0x2a91   :  { %v11722_v34 = vmul.f32 %v18886_v55, %v18882_v29  ;;  %17627 = vmatmul.mubr.msk.bf16.vlgmr.msra.gmra.mrb[176].mxu0 %vm3267_vm3, %v11723_v10 }
0x2a92   :  { %17637 = vmatpush3.bf16.msra.mxu0 %v18617_v6  ;;  %17640 = vmatprep.mubr.msk.bf16.mxu0 %vm19634_vm0, %v19632_v41 }
0x2a93   :  { %v11724_v35 = vpack.c.bf16 %v11722_v34, %v11722_v34  ;;  %17638 = vmatprep.subr.bf16.mxu0 %v19632_v41 }
0x2a95   :  { %17633 = vmatmul.mubr.msk.bf16.vlgmr.msra.gmra.mrb[176].mxu1 %vm3267_vm3, %v11724_v35 }
0x2a96   :  { %17645 = vmatpush3.bf16.msra.mxu1 %v18615_v16  ;;  %17648 = vmatprep.mubr.msk.bf16.mxu1 %vm19634_vm0, %v19632_v41 }
0x2a97   :  { %17646 = vmatprep.subr.bf16.mxu1 %v19632_v41  ;;  %17639 = vmatpush3.bf16.msra.mxu0 %v18618_v36 }
0x2a98   :  { %17652 = vmatprep.subr.bf16.mxu0 %v19632_v41 }
0x2a9a   :  { %17647 = vmatpush3.bf16.msra.mxu1 %v18616_v4 }
0x2a9b   :  { %17658 = vmatprep.subr.bf16.mxu1 %v19632_v41 }
0x2a9d   :  { %17649 = vmatmul.mubr.msk.bf16.vlgmr.msra.gmra.mrb[180].mxu1 %vm3174_vm1, %v11600_v5 }
0x2a9e   :  { %17660 = vmatprep.mubr.msk.bf16.mxu1 %vm19634_vm0, %v19632_v41 }
0x2aa3   :  { %17659 = vmatpush3.bf16.xpose.msra.mxu1 %v11992_v31 }
0x2aa4   :  { %17670 = vmatprep.subr.bf16.mxu1 %v19632_v41 }
0x2aaa   :  { %17661 = vmatmul.mubr.msk.bf16.vlgmr.msra.gmra.mrb[184].mxu1 %vm3174_vm1, %v11985_v23 }
0x2aab   :  { %17672 = vmatprep.mubr.msk.bf16.mxu1 %vm19634_vm0, %v19632_v41 }
0x2b64   :  { %v11767_v26 = vpop.f32.mrb[176].mxu0 }
0x2b65   :  { %v17628_v18 = vpop.f32.mrb[177].mxu0 }
0x2b66   :  { %v11770_v24 = vpop.f32.mrb[178].mxu0 }
0x2b67   :  { %v17629_v22 = vpop.f32.mrb[179].mxu0 }
0x2b68   :  { %v11815_v5 = vpop.f32.mrb[176].mxu1 }
0x2b69   :  { %v11821_v17 = vpack.c.bf16 %v11815_v5, %v11767_v26  ;;  %v17634_v45 = vpop.f32.mrb[177].mxu1 }
0x2b6a   :  { %v11818_v7 = vpop.f32.mrb[178].mxu1  ;;  %v18619_v45 = vld [vmem:[#allocation40 + $0x20] sm:$0xff]  }
0x2b6b   :  { %v17635_v38 = vpop.f32.mrb[179].mxu1  ;;  %17641 = vmatmul.mubr.msk.bf16.vlgmr.msra.gmra.mrb[180].mxu0 %vm3174_vm1, %v11821_v17 }
0x2b6c   :  { %17653 = vmatpush3.bf16.xpose.msra.mxu0 %v11942_v51  ;;  %17654 = vmatprep.mubr.msk.bf16.mxu0 %vm19634_vm0, %v19632_v41 }
0x2b6d   :  { %17664 = vmatprep.subr.bf16.mxu0 %v19632_v41 }
0x2b70   :  { %v11927_v21 = vpop.f32.mrb[180].mxu1 }
0x2b71   :  { %v17650_v52 = vpop.f32.mrb[181].mxu1 }
0x2b72   :  { %v11930_v56 = vpop.f32.mrb[182].mxu1  ;;  %v18620_v52 = vld [vmem:[#allocation40 + $0x28] sm:$0xff]  }
0x2b73   :  { %v17651_v62 = vpop.f32.mrb[183].mxu1  ;;  %17655 = vmatmul.mubr.msk.bf16.vlgmr.msra.gmra.mrb[184].mxu0 %vm3174_vm1, %v11935_v32 }
0x2b74   :  { %17666 = vmatprep.mubr.msk.bf16.mxu0 %vm19634_vm0, %v19632_v41 }
0x2b7d   :  { %v12028_v50 = vpop.f32.mrb[184].mxu1 }
0x2b7e   :  { %v17662_v53 = vpop.f32.mrb[185].mxu1  ;;  %v12037_v11 = vsel %vm3267_vm3, %v12028_v50, -inf }
0x2b7f   :  { %12038 = vmax.xlane.f32.xlu1 %v12037_v11  ;;  %v12031_v19 = vpop.f32.mrb[186].mxu1 }
0x2b80   :  { %v17663_v0 = vpop.f32.mrb[187].mxu1 }
0x2b90   :  { %12106 = vrot.lane.b32.xlu1 %v20741_v47, %s19603_s2 }
0x2b94   :  { %12215 = vrot.lane.b32.xlu1 %v20727_v43, %s19636_s4 }
0x2b98   :  { %12265 = vrot.lane.b32.xlu1 %v20729_v44, %s19636_s4 }
0x2b9c   :  { %12263 = vrot.lane.b32.xlu1 %v20743_v48, %s19636_s4 }
0x2c0c   :  { %v12039_v25 = vpop.xlane.xlu1 %12038 }
0x2c0d   :  { %v12041_v28 = vsub.f32 %v12028_v50, %v12039_v25 }
0x2c0f   :  { %v12044_v42 = vmul.f32 1.442695, %v12041_v28 }
0x2c10   :  { %v12107_v27 = vpop.permute.xlu1 %12106 }
0x2c11   :  { %v12112_v20 = vsel %vm3295_vm2, %v12107_v27, 0  ;;  %18887 = vpow2.f32 %v12044_v42 }
0x2c12   :  { %17671 = vmatpush3.bf16.msra.mxu1 %v12112_v20 }
0x2c13   :  { %17684 = vmatprep.subr.bf16.mxu1 %v19632_v41 }
0x2c14   :  { %v12216_v49 = vpop.permute.xlu1 %12215 }
0x2c15   :  { %v12221_v23 = vsel %vm3174_vm1, %v12216_v49, 0 }
0x2c18   :  { %v12266_v11 = vpop.permute.xlu1 %12265 }
0x2c19   :  { %v12271_v20 = vsel %vm3174_vm1, %v12266_v11, 0 }
0x2c1b   :  { %v18888_v63 = vpop.eup %18887 }
0x2c1c   :  { %v12049_v6 = vsel %vm3267_vm3, %v18888_v63, 0.0  ;;  %v12264_v42 = vpop.permute.xlu1 %12263 }
0x2c3e   :  { %v11871_v57 = vpop.f32.mrb[180].mxu0 }
0x2c3f   :  { %v20853_v29 = vadd.f32 %v11927_v21, %v11871_v57  ;;  %v17642_v43 = vpop.f32.mrb[181].mxu0 }
0x2c40   :  { %v11874_v30 = vpop.f32.mrb[182].mxu0 }
0x2c41   :  { %v20855_v54 = vadd.f32 %v11930_v56, %v11874_v30  ;;  %v17643_v44 = vpop.f32.mrb[183].mxu0 }
0x2c46   :  { %v11978_v9 = vpop.f32.mrb[184].mxu0 }
0x2c47   :  { %v17656_v48 = vpop.f32.mrb[185].mxu0  ;;  %v12034_v40 = vsel %vm3267_vm3, %v11978_v9, -inf }
0x2c48   :  { %12035 = vmax.xlane.f32.xlu0 %v12034_v40  ;;  %v11981_v15 = vpop.f32.mrb[186].mxu0 }
0x2c49   :  { %v17657_v33 = vpop.f32.mrb[187].mxu0 }
0x2c4c   :  { %12050 = vadd.xlane.f32.xlu0 %v12049_v6 }
0x2cd5   :  { %v12036_v10 = vpop.xlane.xlu0 %12035 }
0x2cd6   :  { %v12040_v55 = vsub.f32 %v11978_v9, %v12036_v10 }
0x2cd8   :  { %v12042_v34 = vmul.f32 1.442695, %v12040_v55 }
0x2cd9   :  { %v12051_v16 = vpop.xlane.xlu0 %12050 }
0x2cda   :  { %18889 = vpow2.f32 %v12042_v34 }
0x2cdb   :  { %18891 = vrcp.f32 %v12051_v16 }
0x2ce4   :  { %v18890_v35 = vpop.eup %18889 }
0x2ce5   :  { %v18892_v36 = vpop.eup %18891  ;;  %v12046_v4 = vsel %vm3267_vm3, %v18890_v35, 0.0 }
0x2ce6   :  { %v12055_v37 = vmul.f32 %v18892_v36, %v18888_v63  ;;  %12047 = vadd.xlane.f32.xlu0 %v12046_v4 }
0x2ce8   :  { %v12057_v31 = vpack.c.bf16 %v12055_v37, %v12055_v37 }
0x2cea   :  { %17673 = vmatmul.mubr.msk.bf16.vlgmr.msra.gmra.mrb[188].mxu1 %vm3267_vm3, %v12057_v31 }
0x2ceb   :  { %17685 = vmatpush3.bf16.xpose.msra.mxu1 %v12221_v23  ;;  %17686 = vmatprep.mubr.msk.bf16.mxu1 %vm19634_vm0, %v19632_v41 }
0x2cec   :  { %17696 = vmatprep.subr.bf16.mxu1 %v19632_v41 }
0x2cfc   :  { %12058 = vrot.lane.b32.xlu0 %v20736_v12, %s19603_s2  ;;  %s21055_s2 = sld [smem:[#allocation79_spill]] }
0x2d00   :  { %12213 = vrot.lane.b32.xlu0 %v20739_v46, %s19636_s4 }
0x2d73   :  { %v12048_v26 = vpop.xlane.xlu0 %12047 }
0x2d74   :  { %18893 = vrcp.f32 %v12048_v26 }
0x2d77   :  { %v12059_v18 = vpop.permute.xlu0 %12058 }
0x2d78   :  { %v12064_v24 = vsel %vm3295_vm2, %v12059_v18, 0 }
0x2d79   :  { %17665 = vmatpush3.bf16.msra.mxu0 %v12064_v24 }
0x2d7a   :  { %17676 = vmatprep.subr.bf16.mxu0 %v19632_v41 }
0x2d7b   :  { %v12214_v22 = vpop.permute.xlu0 %12213 }
0x2d7c   :  { %17687 = vmatmul.mubr.msk.bf16.vlgmr.msra.gmra.mrb[192].mxu1 %vm3174_vm1, %v12214_v22 }
0x2d7d   :  { %17698 = vmatprep.mubr.msk.bf16.mxu1 %vm19634_vm0, %v19632_v41 }
0x2d7e   :  { %v18894_v5 = vpop.eup %18893 }
0x2d7f   :  { %v12054_v17 = vmul.f32 %v18894_v5, %v18890_v35 }
0x2d81   :  { %v12056_v7 = vpack.c.bf16 %v12054_v17, %v12054_v17 }
0x2d83   :  { %17667 = vmatmul.mubr.msk.bf16.vlgmr.msra.gmra.mrb[188].mxu0 %vm3267_vm3, %v12056_v7  ;;  %v18621_v7 = vld [vmem:[#allocation40 + $0x30] sm:$0xff]  }
0x2d84   :  { %17677 = vmatpush3.bf16.msra.mxu0 %v18619_v45  ;;  %17680 = vmatprep.mubr.msk.bf16.mxu0 %vm19634_vm0, %v19632_v41 }
0x2d85   :  { %17678 = vmatprep.subr.bf16.mxu0 %v19632_v41 }
0x2d88   :  { %17679 = vmatpush3.bf16.msra.mxu0 %v18620_v52 }
0x2d89   :  { %17690 = vmatprep.subr.bf16.mxu0 %v19632_v41 }
0x2dbd   :  { %v12148_v46 = vpop.f32.mrb[188].mxu1 }
0x2dbe   :  { %v17674_v51 = vpop.f32.mrb[189].mxu1 }
0x2dbf   :  { %v12151_v38 = vpop.f32.mrb[190].mxu1 }
0x2dc0   :  { %v17675_v21 = vpop.f32.mrb[191].mxu1 }
0x2e4f   :  { %v12257_v32 = vpop.f32.mrb[192].mxu1 }
0x2e50   :  { %v17688_v56 = vpop.f32.mrb[193].mxu1  ;;  %v12313_v62 = vsel %vm3267_vm3, %v12257_v32, -inf }
0x2e51   :  { %12314 = vmax.xlane.f32.xlu0 %v12313_v62  ;;  %v12260_v50 = vpop.f32.mrb[194].mxu1 }
0x2e52   :  { %v17689_v53 = vpop.f32.mrb[195].mxu1 }
0x2e56   :  { %v12100_v19 = vpop.f32.mrb[188].mxu0 }
0x2e57   :  { %v12154_v0 = vpack.c.bf16 %v12148_v46, %v12100_v19  ;;  %v17668_v25 = vpop.f32.mrb[189].mxu0  ;;  %v18622_v46 = vld [vmem:[#allocation40 + $0x38] sm:$0xff]   ;;  %v16261_v19 = vld [vmem:[%s21055_s2] ss:$0 sm:$0xff] }
0x2e58   :  { %v12103_v27 = vpop.f32.mrb[190].mxu0 }
0x2e59   :  { %v17669_v28 = vpop.f32.mrb[191].mxu0  ;;  %17681 = vmatmul.mubr.msk.bf16.vlgmr.msra.gmra.mrb[192].mxu0 %vm3174_vm1, %v12154_v0 }
0x2e5a   :  { %17691 = vmatpush3.bf16.xpose.msra.mxu0 %v12271_v20  ;;  %17692 = vmatprep.mubr.msk.bf16.mxu0 %vm19634_vm0, %v19632_v41 }
0x2e5b   :  { %17702 = vmatprep.subr.bf16.mxu0 %v19632_v41 }
0x2e61   :  { %17693 = vmatmul.mubr.msk.bf16.vlgmr.msra.gmra.mrb[196].mxu0 %vm3174_vm1, %v12264_v42 }
0x2e62   :  { %17704 = vmatprep.mubr.msk.bf16.mxu0 %vm19634_vm0, %v19632_v41 }
0x2ede   :  { %v12315_v57 = vpop.xlane.xlu0 %12314 }
0x2edf   :  { %v12319_v43 = vsub.f32 %v12257_v32, %v12315_v57 }
0x2ee1   :  { %v12321_v30 = vmul.f32 1.442695, %v12319_v43 }
0x2ee3   :  { %18895 = vpow2.f32 %v12321_v30 }
0x2eed   :  { %v18896_v44 = vpop.eup %18895 }
0x2eee   :  { %v12325_v9 = vsel %vm3267_vm3, %v18896_v44, 0.0 }
0x2eef   :  { %12326 = vadd.xlane.f32.xlu0 %v12325_v9  ;;  %v12550_v9 = vld [vmem:[#allocation41] sm:$0xff] }
0x2f2c   :  { %v12204_v48 = vpop.f32.mrb[192].mxu0 }
0x2f2d   :  { %v12211_v40 = vadd.f32 %v12204_v48, %v20853_v29  ;;  %v17682_v63 = vpop.f32.mrb[193].mxu0  ;;  %v12558_v48 = vld [vmem:[#allocation41 + $0x40] sm:$0xff] }
0x2f2e   :  { %v12207_v15 = vpop.f32.mrb[194].mxu0  ;;  %v12559_v63 = vld [vmem:[#allocation41 + $0x48] sm:$0xff] }
0x2f2f   :  { %v12212_v33 = vadd.f32 %v12207_v15, %v20855_v54  ;;  %v17683_v6 = vpop.f32.mrb[195].mxu0  ;;  %v16264_v15 = vcombine.low %v12550_v9, %v12558_v48 }
0x2f34   :  { %v12307_v10 = vpop.f32.mrb[196].mxu0 }
0x2f35   :  { %v17694_v55 = vpop.f32.mrb[197].mxu0  ;;  %v12316_v34 = vsel %vm3267_vm3, %v12307_v10, -inf }
0x2f36   :  { %12317 = vmax.xlane.f32.xlu1 %v12316_v34  ;;  %v12310_v16 = vpop.f32.mrb[198].mxu0  ;;  %v12567_v55 = vld [vmem:[#allocation41 + $0x88] sm:$0xff] }
0x2f37   :  { %v17695_v35 = vpop.f32.mrb[199].mxu0  ;;  %v12575_v16 = vld [vmem:[#allocation41 + $0xc8] sm:$0xff] }
0x2f47   :  { %12385 = vrot.lane.b32.xlu1 %v20741_v47, %s19636_s4 }
0x2f7c   :  { %v12327_v23 = vpop.xlane.xlu0 %12326 }
0x2fc3   :  { %v12318_v36 = vpop.xlane.xlu1 %12317 }
0x2fc4   :  { %v12320_v4 = vsub.f32 %v12307_v10, %v12318_v36  ;;  %v12574_v10 = vld [vmem:[#allocation41 + $0xc0] sm:$0xff]  ;;  %v16282_v36 = vcombine.low %v12567_v55, %v12575_v16 }
0x2fc6   :  { %v12323_v37 = vmul.f32 1.442695, %v12320_v4  ;;  %v16283_v4 = vcombine.high %v12567_v55, %v12575_v16  ;;  %v12560_v16 = vld [vmem:[#allocation41 + $0x50] sm:$0xff] }
0x2fc7   :  { %v12386_v49 = vpop.permute.xlu1 %12385 }
0x2fc8   :  { %18897 = vpow2.f32 %v12323_v37  ;;  %v12391_v29 = vsel %vm3295_vm2, %v12386_v49, 0  ;;  %v12582_v37 = vld [vmem:[#allocation41 + $0x100] sm:$0xff] }
0x2fc9   :  { %17703 = vmatpush3.bf16.msra.mxu0 %v12391_v29  ;;  %18899 = vrcp.f32 %v12327_v23  ;;  %v12590_v49 = vld [vmem:[#allocation41 + $0x140] sm:$0xff]  ;;  %v12583_v29 = vld [vmem:[#allocation41 + $0x108] sm:$0xff] }
0x2fca   :  { %v16296_v23 = vcombine.low %v12582_v37, %v12590_v49 }
0x2fd2   :  { %v18898_v54 = vpop.eup %18897 }
0x2fd3   :  { %v12328_v31 = vsel %vm3267_vm3, %v18898_v54, 0.0  ;;  %v18900_v26 = vpop.eup %18899 }
0x2fd4   :  { %12329 = vadd.xlane.f32.xlu0 %v12328_v31  ;;  %v12333_v47 = vmul.f32 %v18900_v26, %v18896_v44  ;;  %v12591_v31 = vld [vmem:[#allocation41 + $0x148] sm:$0xff] }
0x2fd5   :  { %v16298_v26 = vcombine.low %v12583_v29, %v12591_v31 }
0x2fd6   :  { %v12335_v5 = vpack.c.bf16 %v12333_v47, %v12333_v47  ;;  %v12598_v47 = vld [vmem:[#allocation41 + $0x180] sm:$0xff] }
0x2fea   :  { %12337 = vrot.lane.b32.xlu0 %v20736_v12, %s19636_s4 }
0x3061   :  { %v12330_v18 = vpop.xlane.xlu0 %12329 }
0x3062   :  { %18901 = vrcp.f32 %v12330_v18  ;;  %v16299_v18 = vcombine.high %v12583_v29, %v12591_v31 }
0x3065   :  { %v12338_v24 = vpop.permute.xlu0 %12337 }
0x3066   :  { %v12343_v22 = vsel %vm3295_vm2, %v12338_v24, 0  ;;  %v12606_v24 = vld [vmem:[#allocation41 + $0x1c0] sm:$0xff] }
0x3067   :  { %17697 = vmatpush3.bf16.msra.mxu1 %v12343_v22  ;;  %v12599_v22 = vld [vmem:[#allocation41 + $0x188] sm:$0xff] }
0x3068   :  { %17708 = vmatprep.subr.bf16.mxu1 %v19632_v41 }
0x306a   :  { %17699 = vmatmul.mubr.msk.bf16.vlgmr.msra.gmra.mrb[196].mxu1 %vm3267_vm3, %v12335_v5  ;;  %v16313_v5 = vcombine.high %v12598_v47, %v12606_v24 }
0x306b   :  { %17712 = vmatprep.mubr.msk.bf16.mxu1 %vm19634_vm0, %v19632_v41  ;;  %17709 = vmatpush3.bf16.msra.mxu1 %v18621_v7 }
0x306c   :  { %v18902_v17 = vpop.eup %18901  ;;  %17710 = vmatprep.subr.bf16.mxu1 %v19632_v41 }
0x306d   :  { %v12334_v12 = vmul.f32 %v18902_v17, %v18898_v54  ;;  %v16297_v54 = vcombine.high %v12582_v37, %v12590_v49  ;;  %v12607_v17 = vld [vmem:[#allocation41 + $0x1c8] sm:$0xff]  ;;  %v12561_v37 = vld [vmem:[#allocation41 + $0x58] sm:$0xff] }
0x306e   :  { %v16315_v7 = vcombine.high %v12599_v22, %v12607_v17 }
0x306f   :  { %v12336_v45 = vpack.c.bf16 %v12334_v12, %v12334_v12  ;;  %17711 = vmatpush3.bf16.msra.mxu1 %v18622_v46  ;;  %v16312_v12 = vcombine.low %v12598_v47, %v12606_v24  ;;  %v12614_v46 = vld [vmem:[#allocation41 + $0x200] sm:$0xff] }
0x3071   :  { %17705 = vmatmul.mubr.msk.bf16.vlgmr.msra.gmra.mrb[200].mxu0 %vm3267_vm3, %v12336_v45  ;;  %v16314_v45 = vcombine.low %v12599_v22, %v12607_v17 }
0x3072   :  { %13434 = vmatprep.mubr.bf16.mxu0 %v19633_v2 }
0x313d   :  { %v12379_v51 = vpop.f32.mrb[196].mxu1 }
0x313e   :  { %v17700_v38 = vpop.f32.mrb[197].mxu1 }
0x313f   :  { %v12382_v21 = vpop.f32.mrb[198].mxu1  ;;  %v12615_v38 = vld [vmem:[#allocation41 + $0x208] sm:$0xff] }
0x3140   :  { %v17701_v52 = vpop.f32.mrb[199].mxu1 }
0x3141   :  { %v12623_v52 = vld [vmem:[#allocation41 + $0x248] sm:$0xff] }
0x3144   :  { %v12427_v32 = vpop.f32.mrb[200].mxu0 }
0x3145   :  { %v12433_v56 = vpack.c.bf16 %v12427_v32, %v12379_v51  ;;  %v17706_v62 = vpop.f32.mrb[201].mxu0  ;;  %v12622_v51 = vld [vmem:[#allocation41 + $0x240] sm:$0xff] }
0x3146   :  { %v12430_v50 = vpop.f32.mrb[202].mxu0  ;;  %v16329_v21 = vcombine.high %v12614_v46, %v12622_v51  ;;  %v16328_v32 = vcombine.low %v12614_v46, %v12622_v51  ;;  %v16331_v62 = vcombine.high %v12615_v38, %v12623_v52 }
0x3147   :  { %v17707_v53 = vpop.f32.mrb[203].mxu0  ;;  %17713 = vmatmul.mubr.msk.bf16.vlgmr.msra.gmra.mrb[200].mxu1 %vm3174_vm1, %v12433_v56  ;;  %v16330_v56 = vcombine.low %v12615_v38, %v12623_v52  ;;  %v12630_v50 = vld [vmem:[#allocation41 + $0x280] sm:$0xff] }
0x3148   :  { %13477 = vmatprep.mubr.bf16.mxu1 %v19633_v2  ;;  %v12638_v53 = vld [vmem:[#allocation41 + $0x2c0] sm:$0xff] }
0x321a   :  { %v12483_v11 = vpop.f32.mrb[200].mxu1 }
0x321b   :  { %v12490_v0 = vadd.f32 %v12483_v11, %v12211_v40  ;;  %v17714_v25 = vpop.f32.mrb[201].mxu1  ;;  %v12551_v40 = vld [vmem:[#allocation41 + $0x8] sm:$0xff] }
0x321c   :  { %v12486_v41 = vpop.f32.mrb[202].mxu1  ;;  %v16267_v6 = vcombine.high %v12551_v40, %v12559_v63  ;;  %v12631_v11 = vld [vmem:[#allocation41 + $0x288] sm:$0xff]  ;;  %v16344_v25 = vcombine.low %v12630_v50, %v12638_v53 }
0x321d   :  { %v12499_v27 = vadd.f32 %v16261_v19, %v12490_v0  ;;  %v12491_v20 = vadd.f32 %v12486_v41, %v12212_v33  ;;  %v17715_v28 = vpop.f32.mrb[203].mxu1  ;;  %v16266_v33 = vcombine.low %v12551_v40, %v12559_v63  ;;  %v12639_v0 = vld [vmem:[#allocation41 + $0x2c8] sm:$0xff]  ;;  %v12670_v63 = vld [vmem:[#allocation41 + $0x3c0] sm:$0xff] }
0x321e   :  { %13445 = vmatprep.subr.bf16.mxu1 %v16267_v6  ;;  %v16346_v41 = vcombine.low %v12631_v11, %v12639_v0  ;;  %v12654_v28 = vld [vmem:[#allocation41 + $0x340] sm:$0xff]  ;;  %v12671_v6 = vld [vmem:[#allocation41 + $0x3c8] sm:$0xff] }
0x321f   :  { %v12500_v42 = vadd.f32 %v16261_v19, %v12491_v20  ;;  %v20910_v57 = vadd.f32 %v12499_v27, %v20713_v13  ;;  %v16265_v13 = vcombine.high %v12550_v9, %v12558_v48  ;;  %13446 = vmatpush1.bf16.msra.mxu1 %v16266_v33  ;;  %v16345_v19 = vcombine.high %v12630_v50, %v12638_v53  ;;  %v12646_v20 = vld [vmem:[#allocation41 + $0x300] sm:$0xff] }
0x3220   :  { %13447 = vmatprep.subr.bf16.mxu1 %v16283_v4  ;;  %v16347_v27 = vcombine.high %v12631_v11, %v12639_v0  ;;  %v16360_v9 = vcombine.low %v12646_v20, %v12654_v28 }
0x3221   :  { %12505 = vadd.xlane.f32.xlu1 %v20910_v57  ;;  %v20914_v43 = vadd.f32 %v12500_v42, %v20715_v39  ;;  %v12511_v44 = vmul.f32 %v20910_v57, %v20910_v57  ;;  %13402 = vmatprep.subr.bf16.mxu0 %v16265_v13  ;;  %v12566_v39 = vld [vmem:[#allocation41 + $0x80] sm:$0xff]  ;;  %v12647_v42 = vld [vmem:[#allocation41 + $0x308] sm:$0xff] }
0x3222   :  { %13403 = vmatpush1.bf16.msra.mxu0 %v16264_v15  ;;  %v16281_v34 = vcombine.high %v12566_v39, %v12574_v10  ;;  %v16280_v35 = vcombine.low %v12566_v39, %v12574_v10  ;;  %v12662_v13 = vld [vmem:[#allocation41 + $0x380] sm:$0xff]  ;;  %v12663_v15 = vld [vmem:[#allocation41 + $0x388] sm:$0xff] }
0x3223   :  { %12507 = vadd.xlane.f32.xlu0 %v20914_v43  ;;  %v12512_v30 = vmul.f32 %v20914_v43, %v20914_v43  ;;  %13448 = vmatpush1.bf16.msra.mxu1 %v16282_v36  ;;  %v16377_v33 = vcombine.high %v12662_v13, %v12670_v63  ;;  %v16376_v39 = vcombine.low %v12662_v13, %v12670_v63 }
0x3224   :  { %13404 = vmatprep.subr.bf16.mxu0 %v16281_v34  ;;  %13449 = vmatprep.subr.bf16.mxu1 %v16299_v18  ;;  %v16378_v10 = vcombine.low %v12663_v15, %v12671_v6  ;;  %v16379_v55 = vcombine.high %v12663_v15, %v12671_v6  ;;  %v12552_v34 = vld [vmem:[#allocation41 + $0x10] sm:$0xff] }
0x3225   :  { %12515 = vadd.xlane.f32.xlu1 %v12512_v30  ;;  %v16361_v30 = vcombine.high %v12646_v20, %v12654_v28  ;;  %v16268_v36 = vcombine.low %v12552_v34, %v12560_v16  ;;  %v16269_v4 = vcombine.high %v12552_v34, %v12560_v16  ;;  %v12577_v20 = vld [vmem:[#allocation41 + $0xd8] sm:$0xff]  ;;  %v12600_v6 = vld [vmem:[#allocation41 + $0x190] sm:$0xff] }
0x3226   :  { %13405 = vmatpush1.bf16.msra.mxu0 %v16280_v35  ;;  %v12553_v35 = vld [vmem:[#allocation41 + $0x18] sm:$0xff] }
0x3227   :  { %12513 = vadd.xlane.f32.xlu0 %v12511_v44  ;;  %13406 = vmatprep.subr.bf16.mxu0 %v16297_v54  ;;  %v12655_v44 = vld [vmem:[#allocation41 + $0x348] sm:$0xff]  ;;  %v16270_v49 = vcombine.low %v12553_v35, %v12561_v37  ;;  %v16271_v29 = vcombine.high %v12553_v35, %v12561_v37  ;;  %v12624_v37 = vld [vmem:[#allocation41 + $0x250] sm:$0xff] }
0x3228   :  { %13450 = vmatpush1.bf16.msra.mxu1 %v16298_v26  ;;  %v16362_v48 = vcombine.low %v12647_v42, %v12655_v44  ;;  %v16363_v40 = vcombine.high %v12647_v42, %v12655_v44  ;;  %v12584_v44 = vld [vmem:[#allocation41 + $0x110] sm:$0xff] }
0x3229   :  { %13451 = vmatprep.subr.bf16.mxu1 %v16315_v7 }
0x322a   :  { %13407 = vmatpush1.bf16.msra.mxu0 %v16296_v23 }
0x322b   :  { %13408 = vmatprep.subr.bf16.mxu0 %v16313_v5 }
0x322c   :  { %13452 = vmatpush1.bf16.msra.mxu1 %v16314_v45 }
0x322d   :  { %13453 = vmatprep.subr.bf16.mxu1 %v16331_v62 }
0x322e   :  { %13409 = vmatpush1.bf16.msra.mxu0 %v16312_v12 }
0x322f   :  { %13410 = vmatprep.subr.bf16.mxu0 %v16329_v21 }
0x3230   :  { %13454 = vmatpush1.bf16.msra.mxu1 %v16330_v56 }
0x3231   :  { %13455 = vmatprep.subr.bf16.mxu1 %v16347_v27  ;;  %v12569_v27 = vld [vmem:[#allocation41 + $0x98] sm:$0xff] }
0x3232   :  { %13411 = vmatpush1.bf16.msra.mxu0 %v16328_v32  ;;  %v16262_v32 = vld [vmem:[%s21056_s15] ss:$0 sm:$0xff]  ;;  %v16286_v63 = vcombine.low %v12569_v27, %v12577_v20 }
0x3233   :  { %13412 = vmatprep.subr.bf16.mxu0 %v16345_v19  ;;  %v16263_v19 = vld [vmem:[%s21057_s27] ss:$0 sm:$0xff] }
0x3234   :  { %13456 = vmatpush1.bf16.msra.mxu1 %v16346_v41  ;;  %v12576_v41 = vld [vmem:[#allocation41 + $0xd0] sm:$0xff] }
0x3235   :  { %13457 = vmatprep.subr.bf16.mxu1 %v16363_v40  ;;  %v12593_v40 = vld [vmem:[#allocation41 + $0x158] sm:$0xff] }
0x3236   :  { %13413 = vmatpush1.bf16.msra.mxu0 %v16344_v25  ;;  %v12568_v25 = vld [vmem:[#allocation41 + $0x90] sm:$0xff] }
0x3237   :  { %13414 = vmatprep.subr.bf16.mxu0 %v16361_v30  ;;  %v16285_v30 = vcombine.high %v12568_v25, %v12576_v41  ;;  %v16284_v13 = vcombine.low %v12568_v25, %v12576_v41 }
0x3238   :  { %13458 = vmatpush1.bf16.msra.mxu1 %v16362_v48  ;;  %v12585_v48 = vld [vmem:[#allocation41 + $0x118] sm:$0xff] }
0x3239   :  { %13459 = vmatprep.subr.bf16.mxu1 %v16379_v55  ;;  %v12609_v55 = vld [vmem:[#allocation41 + $0x1d8] sm:$0xff]  ;;  %v16302_v16 = vcombine.low %v12585_v48, %v12593_v40 }
0x323a   :  { %13415 = vmatpush1.bf16.msra.mxu0 %v16360_v9  ;;  %v12592_v9 = vld [vmem:[#allocation41 + $0x150] sm:$0xff] }
0x323b   :  { %13416 = vmatprep.subr.bf16.mxu0 %v16377_v33  ;;  %v16301_v15 = vcombine.high %v12584_v44, %v12592_v9  ;;  %v16303_v33 = vcombine.high %v12585_v48, %v12593_v40  ;;  %v16300_v34 = vcombine.low %v12584_v44, %v12592_v9 }
0x323c   :  { %13460 = vmatpush1.bf16.msra.mxu1 %v16378_v10  ;;  %v12601_v10 = vld [vmem:[#allocation41 + $0x198] sm:$0xff] }
0x323d   :  { %13531 = vmatprep.subr.bf16.mxu1 %v16271_v29  ;;  %v12625_v29 = vld [vmem:[#allocation41 + $0x258] sm:$0xff] }
0x323e   :  { %13417 = vmatpush1.bf16.msra.mxu0 %v16376_v39  ;;  %v12608_v39 = vld [vmem:[#allocation41 + $0x1d0] sm:$0xff] }
0x323f   :  { %13488 = vmatprep.subr.bf16.mxu0 %v16269_v4  ;;  %v16317_v35 = vcombine.high %v12600_v6, %v12608_v39  ;;  %v12616_v4 = vld [vmem:[#allocation41 + $0x210] sm:$0xff] }
0x32ae   :  { %v12506_v54 = vpop.xlane.xlu1 %12505 }
0x32af   :  { %v12509_v23 = vmul.f32 0.0078125, %v12506_v54  ;;  %v16316_v54 = vcombine.low %v12600_v6, %v12608_v39 }
0x32b0   :  { %v12508_v31 = vpop.xlane.xlu0 %12507 }
0x32b1   :  { %v12510_v26 = vmul.f32 0.0078125, %v12508_v31  ;;  %v12519_v5 = vmul.f32 %v12509_v23, %v12509_v23  ;;  %v12525_v56 = vsub.f32 %v20910_v57, %v12509_v23  ;;  %v16287_v57 = vcombine.high %v12569_v27, %v12577_v20  ;;  %v12554_v27 = vld [vmem:[#allocation41 + $0x20] sm:$0xff] }
0x32b2   :  { %v12516_v18 = vpop.xlane.xlu1 %12515  ;;  %v16318_v31 = vcombine.low %v12601_v10, %v12609_v55  ;;  %v16333_v23 = vcombine.high %v12616_v4, %v12624_v37  ;;  %v12562_v20 = vld [vmem:[#allocation41 + $0x60] sm:$0xff] }
0x32b3   :  { %v12520_v47 = vmul.f32 %v12510_v26, %v12510_v26  ;;  %v12518_v24 = vmul.f32 0.0078125, %v12516_v18  ;;  %v12526_v21 = vsub.f32 %v20914_v43, %v12510_v26  ;;  %v12632_v18 = vld [vmem:[#allocation41 + $0x290] sm:$0xff]  ;;  %v16273_v48 = vcombine.high %v12554_v27, %v12562_v20 }
0x32b4   :  { %v12514_v22 = vpop.xlane.xlu0 %12513  ;;  %v16272_v6 = vcombine.low %v12554_v27, %v12562_v20 }
0x32b5   :  { %v12522_v17 = vsub.f32 %v12518_v24, %v12520_v47  ;;  %v12517_v12 = vmul.f32 0.0078125, %v12514_v22  ;;  %v12640_v47 = vld [vmem:[#allocation41 + $0x2d0] sm:$0xff]  ;;  %v12633_v24 = vld [vmem:[#allocation41 + $0x298] sm:$0xff] }
0x32b6   :  { %v12641_v22 = vld [vmem:[#allocation41 + $0x2d8] sm:$0xff] }
0x32b7   :  { %v12524_v45 = vmax.f32 %v12522_v17, 0.0  ;;  %v12521_v7 = vsub.f32 %v12517_v12, %v12519_v5  ;;  %v16332_v5 = vcombine.low %v12616_v4, %v12624_v37  ;;  %v16349_v12 = vcombine.high %v12632_v18, %v12640_v47 }
0x32b9   :  { %v12528_v46 = vadd.f32 1e-05, %v12524_v45  ;;  %v12523_v51 = vmax.f32 %v12521_v7, 0.0  ;;  %v16351_v45 = vcombine.high %v12633_v24, %v12641_v22  ;;  %v12648_v7 = vld [vmem:[#allocation41 + $0x310] sm:$0xff] }
0x32bb   :  { %18903 = vrsqrt.f32 %v12528_v46  ;;  %v12527_v38 = vadd.f32 1e-05, %v12523_v51  ;;  %v12656_v46 = vld [vmem:[#allocation41 + $0x350] sm:$0xff]  ;;  %v12649_v51 = vld [vmem:[#allocation41 + $0x318] sm:$0xff] }
0x32bd   :  { %18905 = vrsqrt.f32 %v12527_v38  ;;  %v12657_v38 = vld [vmem:[#allocation41 + $0x358] sm:$0xff] }
0x32c5   :  { %v18904_v52 = vpop.eup %18903 }
0x32c6   :  { %v12532_v62 = vmul.f32 %v18904_v52, %v12526_v21  ;;  %v16348_v21 = vcombine.low %v12632_v18, %v12640_v47  ;;  %v16350_v52 = vcombine.low %v12633_v24, %v12641_v22 }
0x32c7   :  { %v18906_v50 = vpop.eup %18905 }
0x32c8   :  { %v12540_v53 = vmul.f32 %v16262_v32, %v12532_v62  ;;  %v12531_v11 = vmul.f32 %v18906_v50, %v12525_v56  ;;  %v16367_v56 = vcombine.high %v12649_v51, %v12657_v38  ;;  %v12664_v62 = vld [vmem:[#allocation41 + $0x390] sm:$0xff] }
0x32c9   :  { %v12672_v50 = vld [vmem:[#allocation41 + $0x3d0] sm:$0xff] }
0x32ca   :  { %v12539_v0 = vmul.f32 %v16262_v32, %v12531_v11  ;;  %v20925_v28 = vadd.f32 %v16263_v19, %v12540_v53  ;;  %v16365_v32 = vcombine.high %v12648_v7, %v12656_v46  ;;  %v12665_v53 = vld [vmem:[#allocation41 + $0x398] sm:$0xff]  ;;  %v16381_v25 = vcombine.high %v12664_v62, %v12672_v50 }
0x32cb   :  { %v12673_v11 = vld [vmem:[#allocation41 + $0x3d8] sm:$0xff]  ;;  %v16380_v44 = vcombine.low %v12664_v62, %v12672_v50 }
0x32cc   :  { %v20927_v42 = vadd.f32 %v16263_v19, %v12539_v0  ;;  %v16364_v19 = vcombine.low %v12648_v7, %v12656_v46  ;;  %v16366_v0 = vcombine.low %v12649_v51, %v12657_v38  ;;  %v16383_v41 = vcombine.high %v12665_v53, %v12673_v11 }
0x32cd   :  { %v16382_v9 = vcombine.low %v12665_v53, %v12673_v11 }
0x32ce   :  { %v20931_v43 = vpack.c.bf16 %v20925_v28, %v20927_v42 }
0x32d0   :  { %13435 = vmatmul.mubr.bf16.vlgmr.msra.gmra.mrb[204].mxu0 %v20931_v43  ;;  %13478 = vmatmul.mubr.bf16.vlgmr.msra.gmra.mrb[204].mxu1 %v20931_v43 }
0x32d1   :  { %13489 = vmatpush1.bf16.msra.mxu0 %v16268_v36  ;;  %13532 = vmatpush1.bf16.msra.mxu1 %v16270_v49  ;;  %v16319_v36 = vcombine.high %v12601_v10, %v12609_v55  ;;  %v12617_v49 = vld [vmem:[#allocation41 + $0x218] sm:$0xff] }
0x32d2   :  { %13490 = vmatprep.subr.bf16.mxu0 %v16285_v30  ;;  %13533 = vmatprep.subr.bf16.mxu1 %v16287_v57  ;;  %v16335_v26 = vcombine.high %v12617_v49, %v12625_v29  ;;  %v16334_v17 = vcombine.low %v12617_v49, %v12625_v29  ;;  %v12555_v30 = vld [vmem:[#allocation41 + $0x28] sm:$0xff] }
0x32d3   :  { %13520 = vmatprep.mubr.bf16.mxu0 %v19633_v2  ;;  %13563 = vmatprep.mubr.bf16.mxu1 %v19633_v2  ;;  %v12563_v57 = vld [vmem:[#allocation41 + $0x68] sm:$0xff] }
0x32d4   :  { %v16275_v40 = vcombine.high %v12555_v30, %v12563_v57  ;;  %v16274_v39 = vcombine.low %v12555_v30, %v12563_v57 }
0x32d5   :  { %13491 = vmatpush1.bf16.msra.mxu0 %v16284_v13  ;;  %13534 = vmatpush1.bf16.msra.mxu1 %v16286_v63  ;;  %v12570_v13 = vld [vmem:[#allocation41 + $0xa0] sm:$0xff] }
0x32d6   :  { %13492 = vmatprep.subr.bf16.mxu0 %v16301_v15  ;;  %13535 = vmatprep.subr.bf16.mxu1 %v16303_v33  ;;  %v12578_v63 = vld [vmem:[#allocation41 + $0xe0] sm:$0xff]  ;;  %v12571_v15 = vld [vmem:[#allocation41 + $0xa8] sm:$0xff] }
0x32d7   :  { %v12579_v33 = vld [vmem:[#allocation41 + $0xe8] sm:$0xff]  ;;  %v16289_v10 = vcombine.high %v12570_v13, %v12578_v63  ;;  %v16288_v4 = vcombine.low %v12570_v13, %v12578_v63 }
0x32d8   :  { %v16291_v55 = vcombine.high %v12571_v15, %v12579_v33  ;;  %v16290_v37 = vcombine.low %v12571_v15, %v12579_v33 }
0x32d9   :  { %13493 = vmatpush1.bf16.msra.mxu0 %v16300_v34  ;;  %13536 = vmatpush1.bf16.msra.mxu1 %v16302_v16  ;;  %v12586_v34 = vld [vmem:[#allocation41 + $0x120] sm:$0xff] }
0x32da   :  { %13494 = vmatprep.subr.bf16.mxu0 %v16317_v35  ;;  %13537 = vmatprep.subr.bf16.mxu1 %v16319_v36  ;;  %v12594_v16 = vld [vmem:[#allocation41 + $0x160] sm:$0xff]  ;;  %v12587_v35 = vld [vmem:[#allocation41 + $0x128] sm:$0xff] }
0x32db   :  { %v12595_v36 = vld [vmem:[#allocation41 + $0x168] sm:$0xff]  ;;  %v16305_v49 = vcombine.high %v12586_v34, %v12594_v16  ;;  %v16304_v18 = vcombine.low %v12586_v34, %v12594_v16 }
0x32dc   :  { %v16307_v29 = vcombine.high %v12587_v35, %v12595_v36  ;;  %v16306_v47 = vcombine.low %v12587_v35, %v12595_v36 }
0x32dd   :  { %13495 = vmatpush1.bf16.msra.mxu0 %v16316_v54  ;;  %13538 = vmatpush1.bf16.msra.mxu1 %v16318_v31  ;;  %v12602_v54 = vld [vmem:[#allocation41 + $0x1a0] sm:$0xff] }
0x32de   :  { %13496 = vmatprep.subr.bf16.mxu0 %v16333_v23  ;;  %13539 = vmatprep.subr.bf16.mxu1 %v16335_v26  ;;  %v12610_v31 = vld [vmem:[#allocation41 + $0x1e0] sm:$0xff]  ;;  %v12603_v23 = vld [vmem:[#allocation41 + $0x1a8] sm:$0xff] }
0x32df   :  { %v12611_v26 = vld [vmem:[#allocation41 + $0x1e8] sm:$0xff]  ;;  %v16321_v24 = vcombine.high %v12602_v54, %v12610_v31  ;;  %v16320_v7 = vcombine.low %v12602_v54, %v12610_v31 }
0x32e0   :  { %v16323_v22 = vcombine.high %v12603_v23, %v12611_v26  ;;  %v16322_v46 = vcombine.low %v12603_v23, %v12611_v26 }
0x32e1   :  { %13497 = vmatpush1.bf16.msra.mxu0 %v16332_v5  ;;  %13540 = vmatpush1.bf16.msra.mxu1 %v16334_v17  ;;  %v12618_v5 = vld [vmem:[#allocation41 + $0x220] sm:$0xff] }
0x32e2   :  { %13498 = vmatprep.subr.bf16.mxu0 %v16349_v12  ;;  %13541 = vmatprep.subr.bf16.mxu1 %v16351_v45  ;;  %v12626_v17 = vld [vmem:[#allocation41 + $0x260] sm:$0xff]  ;;  %v12619_v12 = vld [vmem:[#allocation41 + $0x228] sm:$0xff] }
0x32e3   :  { %v12627_v45 = vld [vmem:[#allocation41 + $0x268] sm:$0xff]  ;;  %v16337_v51 = vcombine.high %v12618_v5, %v12626_v17  ;;  %v16336_v62 = vcombine.low %v12618_v5, %v12626_v17 }
0x32e4   :  { %v16339_v38 = vcombine.high %v12619_v12, %v12627_v45  ;;  %v16338_v50 = vcombine.low %v12619_v12, %v12627_v45 }
0x32e5   :  { %13499 = vmatpush1.bf16.msra.mxu0 %v16348_v21  ;;  %13542 = vmatpush1.bf16.msra.mxu1 %v16350_v52  ;;  %v12634_v21 = vld [vmem:[#allocation41 + $0x2a0] sm:$0xff] }
0x32e6   :  { %13500 = vmatprep.subr.bf16.mxu0 %v16365_v32  ;;  %13543 = vmatprep.subr.bf16.mxu1 %v16367_v56  ;;  %v12642_v52 = vld [vmem:[#allocation41 + $0x2e0] sm:$0xff]  ;;  %v12635_v32 = vld [vmem:[#allocation41 + $0x2a8] sm:$0xff] }
0x32e7   :  { %v12643_v56 = vld [vmem:[#allocation41 + $0x2e8] sm:$0xff]  ;;  %v16353_v53 = vcombine.high %v12634_v21, %v12642_v52  ;;  %v16352_v27 = vcombine.low %v12634_v21, %v12642_v52 }
0x32e8   :  { %v16355_v11 = vcombine.high %v12635_v32, %v12643_v56  ;;  %v16354_v20 = vcombine.low %v12635_v32, %v12643_v56 }
0x32e9   :  { %13501 = vmatpush1.bf16.msra.mxu0 %v16364_v19  ;;  %13544 = vmatpush1.bf16.msra.mxu1 %v16366_v0  ;;  %v12650_v19 = vld [vmem:[#allocation41 + $0x320] sm:$0xff] }
0x32ea   :  { %13502 = vmatprep.subr.bf16.mxu0 %v16381_v25  ;;  %13545 = vmatprep.subr.bf16.mxu1 %v16383_v41  ;;  %v12658_v0 = vld [vmem:[#allocation41 + $0x360] sm:$0xff]  ;;  %v12651_v25 = vld [vmem:[#allocation41 + $0x328] sm:$0xff] }
0x32eb   :  { %v12659_v41 = vld [vmem:[#allocation41 + $0x368] sm:$0xff]  ;;  %v16369_v30 = vcombine.high %v12650_v19, %v12658_v0  ;;  %v16368_v13 = vcombine.low %v12650_v19, %v12658_v0 }
0x32ec   :  { %v16371_v57 = vcombine.high %v12651_v25, %v12659_v41  ;;  %v16370_v63 = vcombine.low %v12651_v25, %v12659_v41  ;;  %v12636_v41 = vld [vmem:[#allocation41 + $0x2b0] sm:$0xff] }
0x32ed   :  { %13503 = vmatpush1.bf16.msra.mxu0 %v16380_v44  ;;  %13546 = vmatpush1.bf16.msra.mxu1 %v16382_v9  ;;  %v12666_v44 = vld [vmem:[#allocation41 + $0x3a0] sm:$0xff] }
0x32ee   :  { %13574 = vmatprep.subr.bf16.mxu0 %v16273_v48  ;;  %13617 = vmatprep.subr.bf16.mxu1 %v16275_v40  ;;  %v12674_v9 = vld [vmem:[#allocation41 + $0x3e0] sm:$0xff]  ;;  %v12667_v48 = vld [vmem:[#allocation41 + $0x3a8] sm:$0xff] }
0x32ef   :  { %v12675_v40 = vld [vmem:[#allocation41 + $0x3e8] sm:$0xff]  ;;  %v16385_v15 = vcombine.high %v12666_v44, %v12674_v9  ;;  %v16384_v34 = vcombine.low %v12666_v44, %v12674_v9 }
0x32f0   :  { %13521 = vmatmul.mubr.bf16.vlgmr.msra.gmra.mrb[208].mxu0 %v20931_v43  ;;  %13564 = vmatmul.mubr.bf16.vlgmr.msra.gmra.mrb[208].mxu1 %v20931_v43  ;;  %v16387_v33 = vcombine.high %v12667_v48, %v12675_v40  ;;  %v16386_v16 = vcombine.low %v12667_v48, %v12675_v40  ;;  %v12652_v40 = vld [vmem:[#allocation41 + $0x330] sm:$0xff] }
0x32f1   :  { %13575 = vmatpush1.bf16.msra.mxu0 %v16272_v6  ;;  %13618 = vmatpush1.bf16.msra.mxu1 %v16274_v39  ;;  %v12556_v6 = vld [vmem:[#allocation41 + $0x30] sm:$0xff] }
0x32f2   :  { %13576 = vmatprep.subr.bf16.mxu0 %v16289_v10  ;;  %13619 = vmatprep.subr.bf16.mxu1 %v16291_v55  ;;  %v12564_v39 = vld [vmem:[#allocation41 + $0x70] sm:$0xff]  ;;  %v12557_v10 = vld [vmem:[#allocation41 + $0x38] sm:$0xff] }
0x32f3   :  { %13606 = vmatprep.mubr.bf16.mxu0 %v19633_v2  ;;  %13649 = vmatprep.mubr.bf16.mxu1 %v19633_v2  ;;  %v12565_v55 = vld [vmem:[#allocation41 + $0x78] sm:$0xff]  ;;  %v16277_v35 = vcombine.high %v12556_v6, %v12564_v39  ;;  %v16276_v54 = vcombine.low %v12556_v6, %v12564_v39 }
0x32f4   :  { %v16279_v36 = vcombine.high %v12557_v10, %v12565_v55  ;;  %v16278_v31 = vcombine.low %v12557_v10, %v12565_v55  ;;  %v12668_v55 = vld [vmem:[#allocation41 + $0x3b0] sm:$0xff] }
0x32f5   :  { %13577 = vmatpush1.bf16.msra.mxu0 %v16288_v4  ;;  %13620 = vmatpush1.bf16.msra.mxu1 %v16290_v37  ;;  %v12572_v4 = vld [vmem:[#allocation41 + $0xb0] sm:$0xff] }
0x32f6   :  { %13578 = vmatprep.subr.bf16.mxu0 %v16305_v49  ;;  %13621 = vmatprep.subr.bf16.mxu1 %v16307_v29  ;;  %v12580_v37 = vld [vmem:[#allocation41 + $0xf0] sm:$0xff]  ;;  %v12573_v49 = vld [vmem:[#allocation41 + $0xb8] sm:$0xff] }
0x32f7   :  { %v12581_v29 = vld [vmem:[#allocation41 + $0xf8] sm:$0xff]  ;;  %v16293_v23 = vcombine.high %v12572_v4, %v12580_v37  ;;  %v16292_v5 = vcombine.low %v12572_v4, %v12580_v37 }
0x32f8   :  { %v16295_v26 = vcombine.high %v12573_v49, %v12581_v29  ;;  %v16294_v17 = vcombine.low %v12573_v49, %v12581_v29 }
0x32f9   :  { %13579 = vmatpush1.bf16.msra.mxu0 %v16304_v18  ;;  %13622 = vmatpush1.bf16.msra.mxu1 %v16306_v47  ;;  %v12588_v18 = vld [vmem:[#allocation41 + $0x130] sm:$0xff] }
0x32fa   :  { %13580 = vmatprep.subr.bf16.mxu0 %v16321_v24  ;;  %13623 = vmatprep.subr.bf16.mxu1 %v16323_v22  ;;  %v12596_v47 = vld [vmem:[#allocation41 + $0x170] sm:$0xff]  ;;  %v12589_v24 = vld [vmem:[#allocation41 + $0x138] sm:$0xff] }
0x32fb   :  { %v12597_v22 = vld [vmem:[#allocation41 + $0x178] sm:$0xff]  ;;  %v16309_v12 = vcombine.high %v12588_v18, %v12596_v47  ;;  %v16308_v21 = vcombine.low %v12588_v18, %v12596_v47  ;;  %v18626_v18 = vld [vmem:[#allocation43 + $0x80] sm:$0xff]   ;;  %v18627_v47 = vld [vmem:[#allocation43 + $0x48] sm:$0xff]  }
0x32fc   :  { %v16311_v45 = vcombine.high %v12589_v24, %v12597_v22  ;;  %v16310_v52 = vcombine.low %v12589_v24, %v12597_v22  ;;  %v18628_v24 = vld [vmem:[#allocation43 + $0xc8] sm:$0xff]  }
0x32fd   :  { %13581 = vmatpush1.bf16.msra.mxu0 %v16320_v7  ;;  %13624 = vmatpush1.bf16.msra.mxu1 %v16322_v46  ;;  %v12604_v7 = vld [vmem:[#allocation41 + $0x1b0] sm:$0xff]  ;;  %v18629_v22 = vld [vmem:[#allocation43 + $0x8] sm:$0xff]  }
0x32fe   :  { %13582 = vmatprep.subr.bf16.mxu0 %v16337_v51  ;;  %13625 = vmatprep.subr.bf16.mxu1 %v16339_v38  ;;  %v12612_v46 = vld [vmem:[#allocation41 + $0x1f0] sm:$0xff]  ;;  %v12605_v51 = vld [vmem:[#allocation41 + $0x1b8] sm:$0xff] }
0x32ff   :  { %v12613_v38 = vld [vmem:[#allocation41 + $0x1f8] sm:$0xff]  ;;  %v16325_v32 = vcombine.high %v12604_v7, %v12612_v46  ;;  %v16324_v19 = vcombine.low %v12604_v7, %v12612_v46  ;;  %v18634_v7 = vld [vmem:[#allocation43 + $0x90] sm:$0xff]  }
0x3300   :  { %v16327_v56 = vcombine.high %v12605_v51, %v12613_v38  ;;  %v16326_v0 = vcombine.low %v12605_v51, %v12613_v38  ;;  %v18635_v46 = vld [vmem:[#allocation43 + $0x58] sm:$0xff]  }
0x3301   :  { %13583 = vmatpush1.bf16.msra.mxu0 %v16336_v62  ;;  %13626 = vmatpush1.bf16.msra.mxu1 %v16338_v50  ;;  %v12620_v62 = vld [vmem:[#allocation41 + $0x230] sm:$0xff]  ;;  %v18636_v51 = vld [vmem:[#allocation43 + $0xd8] sm:$0xff]  }
0x3302   :  { %13584 = vmatprep.subr.bf16.mxu0 %v16353_v53  ;;  %13627 = vmatprep.subr.bf16.mxu1 %v16355_v11  ;;  %v12628_v50 = vld [vmem:[#allocation41 + $0x270] sm:$0xff]  ;;  %v12621_v53 = vld [vmem:[#allocation41 + $0x238] sm:$0xff] }
0x3303   :  { %v12629_v11 = vld [vmem:[#allocation41 + $0x278] sm:$0xff]  ;;  %v16341_v25 = vcombine.high %v12620_v62, %v12628_v50 }
0x3304   :  { %v16342_v44 = vcombine.low %v12621_v53, %v12629_v11  ;;  %v18637_v38 = vld [vmem:[#allocation43 + $0x18] sm:$0xff]  }
0x3305   :  { %13585 = vmatpush1.bf16.msra.mxu0 %v16352_v27  ;;  %13628 = vmatpush1.bf16.msra.mxu1 %v16354_v20  ;;  %v12644_v27 = vld [vmem:[#allocation41 + $0x2f0] sm:$0xff]  ;;  %v12637_v20 = vld [vmem:[#allocation41 + $0x2b8] sm:$0xff] }
0x3306   :  { %13586 = vmatprep.subr.bf16.mxu0 %v16369_v30  ;;  %13629 = vmatprep.subr.bf16.mxu1 %v16371_v57  ;;  %v12645_v30 = vld [vmem:[#allocation41 + $0x2f8] sm:$0xff]  ;;  %v16340_v57 = vcombine.low %v12620_v62, %v12628_v50  ;;  %v16357_v9 = vcombine.high %v12636_v41, %v12644_v27  ;;  %v18643_v62 = vld [vmem:[#allocation43 + $0x68] sm:$0xff]  }
0x3307   :  { %v16359_v48 = vcombine.high %v12637_v20, %v12645_v30  ;;  %v16358_v6 = vcombine.low %v12637_v20, %v12645_v30  ;;  %v18644_v50 = vld [vmem:[#allocation43 + $0xe8] sm:$0xff]   ;;  %v18653_v20 = vld [vmem:[#allocation43 + $0x38] sm:$0xff]  }
0x3308   :  { %v18654_v30 = vld [vmem:[#allocation43 + $0xb8] sm:$0xff]  }
0x3309   :  { %13587 = vmatpush1.bf16.msra.mxu0 %v16368_v13  ;;  %13630 = vmatpush1.bf16.msra.mxu1 %v16370_v63  ;;  %v12660_v13 = vld [vmem:[#allocation41 + $0x370] sm:$0xff]  ;;  %v12653_v63 = vld [vmem:[#allocation41 + $0x338] sm:$0xff] }
0x330a   :  { %13588 = vmatprep.subr.bf16.mxu0 %v16385_v15  ;;  %13631 = vmatprep.subr.bf16.mxu1 %v16387_v33  ;;  %v12661_v15 = vld [vmem:[#allocation41 + $0x378] sm:$0xff]  ;;  %v16356_v33 = vcombine.low %v12636_v41, %v12644_v27  ;;  %v16373_v39 = vcombine.high %v12652_v40, %v12660_v13 }
0x330b   :  { %v16375_v10 = vcombine.high %v12653_v63, %v12661_v15  ;;  %v16374_v4 = vcombine.low %v12653_v63, %v12661_v15  ;;  %v18651_v41 = vld [vmem:[#allocation43 + $0x78] sm:$0xff]  }
0x330c   :  { %v18652_v27 = vld [vmem:[#allocation43 + $0xf8] sm:$0xff]  }
0x330d   :  { %13589 = vmatpush1.bf16.msra.mxu0 %v16384_v34  ;;  %13632 = vmatpush1.bf16.msra.mxu1 %v16386_v16  ;;  %v12676_v34 = vld [vmem:[#allocation41 + $0x3f0] sm:$0xff]  ;;  %v12669_v16 = vld [vmem:[#allocation41 + $0x3b8] sm:$0xff] }
0x330e   :  { %13660 = vmatprep.subr.bf16.mxu0 %v16277_v35  ;;  %13703 = vmatprep.subr.bf16.mxu1 %v16279_v36  ;;  %v12677_v35 = vld [vmem:[#allocation41 + $0x3f8] sm:$0xff]  ;;  %v16372_v36 = vcombine.low %v12652_v40, %v12660_v13  ;;  %v16389_v37 = vcombine.high %v12668_v55, %v12676_v34  ;;  %v16388_v29 = vcombine.low %v12668_v55, %v12676_v34 }
0x330f   :  { %v16391_v49 = vcombine.high %v12669_v16, %v12677_v35 }
0x3310   :  { %13607 = vmatmul.mubr.bf16.vlgmr.msra.gmra.mrb[212].mxu0 %v20931_v43  ;;  %13650 = vmatmul.mubr.bf16.vlgmr.msra.gmra.mrb[212].mxu1 %v20931_v43 }
0x3311   :  { %13661 = vmatpush1.bf16.msra.mxu0 %v16276_v54  ;;  %13704 = vmatpush1.bf16.msra.mxu1 %v16278_v31  ;;  %v16390_v54 = vcombine.low %v12669_v16, %v12677_v35  ;;  %v18623_v31 = vld [vmem:[#allocation43 + $0x40] sm:$0xff]  }
0x3312   :  { %13662 = vmatprep.subr.bf16.mxu0 %v16293_v23  ;;  %13705 = vmatprep.subr.bf16.mxu1 %v16295_v26  ;;  %v18624_v23 = vld [vmem:[#allocation43 + $0xc0] sm:$0xff]  }
0x3313   :  { %13692 = vmatprep.mubr.bf16.mxu0 %v19633_v2  ;;  %13735 = vmatprep.mubr.bf16.mxu1 %v19633_v2  ;;  %v16343_v2 = vcombine.high %v12621_v53, %v12629_v11  ;;  %v18625_v26 = vld [vmem:[#allocation43] sm:$0xff]   ;;  %v18645_v53 = vld [vmem:[#allocation43 + $0x28] sm:$0xff]  }
0x3314   :  { %v18646_v11 = vld [vmem:[#allocation43 + $0xa8] sm:$0xff]  }
0x3315   :  { %13663 = vmatpush1.bf16.msra.mxu0 %v16292_v5  ;;  %13706 = vmatpush1.bf16.msra.mxu1 %v16294_v17  ;;  %v18630_v5 = vld [vmem:[#allocation43 + $0x88] sm:$0xff]   ;;  %v18631_v17 = vld [vmem:[#allocation43 + $0x50] sm:$0xff]  }
0x3316   :  { %13664 = vmatprep.subr.bf16.mxu0 %v16309_v12  ;;  %13707 = vmatprep.subr.bf16.mxu1 %v16311_v45  ;;  %v18632_v12 = vld [vmem:[#allocation43 + $0xd0] sm:$0xff]  }
0x3317   :  { %v18633_v45 = vld [vmem:[#allocation43 + $0x10] sm:$0xff]  }
0x3319   :  { %13665 = vmatpush1.bf16.msra.mxu0 %v16308_v21  ;;  %13708 = vmatpush1.bf16.msra.mxu1 %v16310_v52  ;;  %v18639_v21 = vld [vmem:[#allocation43 + $0x60] sm:$0xff]  }
0x331a   :  { %13666 = vmatprep.subr.bf16.mxu0 %v16325_v32  ;;  %13709 = vmatprep.subr.bf16.mxu1 %v16327_v56  ;;  %v18640_v52 = vld [vmem:[#allocation43 + $0xe0] sm:$0xff]  }
0x331b   :  { %v18641_v32 = vld [vmem:[#allocation43 + $0x20] sm:$0xff]  }
0x331c   :  { %v18642_v56 = vld [vmem:[#allocation43 + $0xa0] sm:$0xff]  }
0x331d   :  { %13667 = vmatpush1.bf16.msra.mxu0 %v16324_v19  ;;  %13710 = vmatpush1.bf16.msra.mxu1 %v16326_v0  ;;  %v18647_v19 = vld [vmem:[#allocation43 + $0x70] sm:$0xff]  }
0x331e   :  { %13668 = vmatprep.subr.bf16.mxu0 %v16341_v25  ;;  %13711 = vmatprep.subr.bf16.mxu1 %v16343_v2  ;;  %v18648_v0 = vld [vmem:[#allocation43 + $0xf0] sm:$0xff]  }
0x331f   :  { %v18649_v25 = vld [vmem:[#allocation43 + $0x30] sm:$0xff]  }
0x3320   :  { %v18650_v2 = vld [vmem:[#allocation43 + $0xb0] sm:$0xff]  }
0x3321   :  { %13669 = vmatpush1.bf16.msra.mxu0 %v16340_v57  ;;  %13712 = vmatpush1.bf16.msra.mxu1 %v16342_v44  ;;  %v18655_v57 = vld [vmem:[#allocation43 + $0x140] sm:$0xff]  }
0x3322   :  { %13670 = vmatprep.subr.bf16.mxu0 %v16357_v9  ;;  %13713 = vmatprep.subr.bf16.mxu1 %v16359_v48  ;;  %v18656_v44 = vld [vmem:[#allocation43 + $0x1c0] sm:$0xff]   ;;  %v20948_v9 = vld [vmem:[%s21058_s5] sm:$0xff] }
0x3323   :  { %v12685_v48 = vrot.slane %v20948_v9, %v20041_v58  ;;  %v12693_v40 = vrot.slane %v20948_v9, %v20044_v59  ;;  %v12689_v13 = vrot.slane %v20948_v9, %v20047_v60  ;;  %v12697_v63 = vrot.slane %v20948_v9, %v20050_v61 }
0x3325   :  { %13671 = vmatpush1.bf16.msra.mxu0 %v16356_v33  ;;  %13714 = vmatpush1.bf16.msra.mxu1 %v16358_v6 }
0x3326   :  { %13672 = vmatprep.subr.bf16.mxu0 %v16373_v39  ;;  %13715 = vmatprep.subr.bf16.mxu1 %v16375_v10 }
0x3329   :  { %13673 = vmatpush1.bf16.msra.mxu0 %v16372_v36  ;;  %13716 = vmatpush1.bf16.msra.mxu1 %v16374_v4 }
0x332a   :  { %13674 = vmatprep.subr.bf16.mxu0 %v16389_v37  ;;  %13717 = vmatprep.subr.bf16.mxu1 %v16391_v49 }
0x332d   :  { %13675 = vmatpush1.bf16.msra.mxu0 %v16388_v29  ;;  %13718 = vmatpush1.bf16.msra.mxu1 %v16390_v54 }
0x332e   :  { %17096 = vmatprep.subr.bf16.mxu0 %v18623_v31  ;;  %17118 = vmatprep.subr.bf16.mxu1 %v18624_v23 }
0x3330   :  { %13693 = vmatmul.mubr.bf16.vlgmr.msra.gmra.mrb[216].mxu0 %v20931_v43  ;;  %13736 = vmatmul.mubr.bf16.vlgmr.msra.gmra.mrb[216].mxu1 %v20931_v43  ;;  %v18638_v43 = vld [vmem:[#allocation43 + $0x98] sm:$0xff]  }
0x3331   :  { %17097 = vmatpush3.bf16.msra.mxu0 %v18625_v26  ;;  %17119 = vmatpush3.bf16.msra.mxu1 %v18626_v18 }
0x3332   :  { %17098 = vmatprep.subr.bf16.mxu0 %v18627_v47  ;;  %17120 = vmatprep.subr.bf16.mxu1 %v18628_v24 }
0x3335   :  { %17099 = vmatpush3.bf16.msra.mxu0 %v18629_v22  ;;  %17121 = vmatpush3.bf16.msra.mxu1 %v18630_v5 }
0x3336   :  { %17100 = vmatprep.subr.bf16.mxu0 %v18631_v17  ;;  %17122 = vmatprep.subr.bf16.mxu1 %v18632_v12 }
0x3339   :  { %17101 = vmatpush3.bf16.msra.mxu0 %v18633_v45  ;;  %17123 = vmatpush3.bf16.msra.mxu1 %v18634_v7 }
0x333a   :  { %17102 = vmatprep.subr.bf16.mxu0 %v18635_v46  ;;  %17124 = vmatprep.subr.bf16.mxu1 %v18636_v51  ;;  %v18657_v51 = vld [vmem:[#allocation43 + $0x100] sm:$0xff]  }
0x333d   :  { %17103 = vmatpush3.bf16.msra.mxu0 %v18637_v38  ;;  %17125 = vmatpush3.bf16.msra.mxu1 %v18638_v43  ;;  %v18658_v38 = vld [vmem:[#allocation43 + $0x180] sm:$0xff]   ;;  %v18659_v43 = vld [vmem:[#allocation43 + $0x148] sm:$0xff]  }
0x333e   :  { %17104 = vmatprep.subr.bf16.mxu0 %v18639_v21  ;;  %17126 = vmatprep.subr.bf16.mxu1 %v18640_v52  ;;  %v18660_v21 = vld [vmem:[#allocation43 + $0x1c8] sm:$0xff]  }
0x333f   :  { %v18661_v52 = vld [vmem:[#allocation43 + $0x108] sm:$0xff]  }
0x3341   :  { %17105 = vmatpush3.bf16.msra.mxu0 %v18641_v32  ;;  %17127 = vmatpush3.bf16.msra.mxu1 %v18642_v56  ;;  %v18662_v32 = vld [vmem:[#allocation43 + $0x188] sm:$0xff]   ;;  %v18663_v56 = vld [vmem:[#allocation43 + $0x150] sm:$0xff]  }
0x3342   :  { %17106 = vmatprep.subr.bf16.mxu0 %v18643_v62  ;;  %17128 = vmatprep.subr.bf16.mxu1 %v18644_v50  ;;  %v18664_v62 = vld [vmem:[#allocation43 + $0x1d0] sm:$0xff]  }
0x3343   :  { %v18665_v50 = vld [vmem:[#allocation43 + $0x110] sm:$0xff]  }
0x3345   :  { %17107 = vmatpush3.bf16.msra.mxu0 %v18645_v53  ;;  %17129 = vmatpush3.bf16.msra.mxu1 %v18646_v11  ;;  %v18666_v53 = vld [vmem:[#allocation43 + $0x190] sm:$0xff]   ;;  %v18667_v11 = vld [vmem:[#allocation43 + $0x158] sm:$0xff]  }
0x3346   :  { %17108 = vmatprep.subr.bf16.mxu0 %v18647_v19  ;;  %17130 = vmatprep.subr.bf16.mxu1 %v18648_v0  ;;  %v18668_v19 = vld [vmem:[#allocation43 + $0x1d8] sm:$0xff]  }
0x3347   :  { %v18669_v0 = vld [vmem:[#allocation43 + $0x118] sm:$0xff]  }
0x3349   :  { %17109 = vmatpush3.bf16.msra.mxu0 %v18649_v25  ;;  %17131 = vmatpush3.bf16.msra.mxu1 %v18650_v2  ;;  %v18670_v25 = vld [vmem:[#allocation43 + $0x198] sm:$0xff]   ;;  %v18671_v2 = vld [vmem:[#allocation43 + $0x160] sm:$0xff]  }
0x334a   :  { %17110 = vmatprep.subr.bf16.mxu0 %v18651_v41  ;;  %17132 = vmatprep.subr.bf16.mxu1 %v18652_v27  ;;  %v18672_v41 = vld [vmem:[#allocation43 + $0x1e0] sm:$0xff]  }
0x334b   :  { %v18673_v27 = vld [vmem:[#allocation43 + $0x120] sm:$0xff]  }
0x334d   :  { %17111 = vmatpush3.bf16.msra.mxu0 %v18653_v20  ;;  %17133 = vmatpush3.bf16.msra.mxu1 %v18654_v30  ;;  %v18674_v20 = vld [vmem:[#allocation43 + $0x1a0] sm:$0xff]   ;;  %v18675_v30 = vld [vmem:[#allocation43 + $0x168] sm:$0xff]  }
0x334e   :  { %17140 = vmatprep.subr.bf16.mxu0 %v18655_v57  ;;  %17162 = vmatprep.subr.bf16.mxu1 %v18656_v44  ;;  %v18676_v57 = vld [vmem:[#allocation43 + $0x1e8] sm:$0xff]  }
0x334f   :  { %v18677_v44 = vld [vmem:[#allocation43 + $0x128] sm:$0xff]  }
0x33a3   :  { %v13436_v15 = vpop.f32.mrb[204].mxu0  ;;  %v13479_v33 = vpop.f32.mrb[204].mxu1 }
0x33a4   :  { %v13437_v6 = vadd.f32 %v13436_v15, %v12685_v48  ;;  %v13480_v39 = vadd.f32 %v13479_v33, %v12693_v40  ;;  %v13438_v10 = vpop.f32.mrb[205].mxu0  ;;  %v13481_v55 = vpop.f32.mrb[205].mxu1  ;;  %v18680_v15 = vld [vmem:[#allocation43 + $0x1f0] sm:$0xff]   ;;  %v12705_v33 = vrot.slane %v20948_v9, %v20350_v8 }
0x33a5   :  { %v13439_v34 = vadd.f32 %v13438_v10, %v12689_v13  ;;  %v13482_v16 = vadd.f32 %v13481_v55, %v12697_v63  ;;  %v13440_v35 = vpop.f32.mrb[206].mxu0  ;;  %v13483_v36 = vpop.f32.mrb[206].mxu1  ;;  %v18681_v55 = vld [vmem:[#allocation43 + $0x130] sm:$0xff]  }
0x33a6   :  { %v13441_v4 = vadd.f32 %v13440_v35, %v12685_v48  ;;  %v13484_v37 = vadd.f32 %v13483_v36, %v12693_v40  ;;  %v13442_v49 = vpop.f32.mrb[207].mxu0  ;;  %v13485_v29 = vpop.f32.mrb[207].mxu1  ;;  %v13746_v23 = vmax.f32 %v13437_v6, 0.0  ;;  %v13748_v26 = vmax.f32 %v13480_v39, 0.0  ;;  %v18678_v48 = vld [vmem:[#allocation43 + $0x1a8] sm:$0xff]  }
0x33a7   :  { %v13443_v54 = vadd.f32 %v13442_v49, %v12689_v13  ;;  %v13486_v31 = vadd.f32 %v13485_v29, %v12697_v63  ;;  %v13747_v24 = vmax.f32 %v13439_v34, 0.0  ;;  %v13749_v22 = vmax.f32 %v13482_v16, 0.0  ;;  %v18679_v63 = vld [vmem:[#allocation43 + $0x170] sm:$0xff]   ;;  %v18684_v49 = vld [vmem:[#allocation43 + $0x1f8] sm:$0xff]  }
0x33a8   :  { %v13762_v18 = vmax.f32 %v13441_v4, 0.0  ;;  %v13764_v47 = vmax.f32 %v13484_v37, 0.0  ;;  %v12701_v40 = vrot.slane %v20948_v9, %v20344_v1  ;;  %v12709_v13 = vrot.slane %v20948_v9, %v20347_v3  ;;  %v18682_v34 = vld [vmem:[#allocation43 + $0x1b0] sm:$0xff]   ;;  %v18683_v37 = vld [vmem:[#allocation43 + $0x178] sm:$0xff]  }
0x33a9   :  { %v13763_v5 = vmax.f32 %v13443_v54, 0.0  ;;  %v13765_v17 = vmax.f32 %v13486_v31, 0.0  ;;  %v12713_v6 = vrot.slane %v20948_v9, %v20353_v14 }
0x33aa   :  { %v13778_v12 = vpack.c.bf16 %v13762_v18, %v13746_v23  ;;  %v13780_v45 = vpack.c.bf16 %v13764_v47, %v13748_v26 }
0x33ab   :  { %v13779_v7 = vpack.c.bf16 %v13763_v5, %v13747_v24  ;;  %v13781_v46 = vpack.c.bf16 %v13765_v17, %v13749_v22  ;;  %v18685_v5 = vld [vmem:[#allocation43 + $0x138] sm:$0xff]  }
0x33ac   :  { %v18686_v17 = vld [vmem:[#allocation43 + $0x1b8] sm:$0xff]  }
0x33ad   :  { %14857 = vmatprep.mubr.bf16.mxu0 %v13779_v7  ;;  %14898 = vmatprep.mubr.bf16.mxu1 %v13781_v46 }
0x33ae   :  { %14858 = vmatmul.mubr.bf16.vlgmr.msra.gmra.mrb[220].mxu0 %v13778_v12  ;;  %14899 = vmatmul.mubr.bf16.vlgmr.msra.gmra.mrb[220].mxu1 %v13780_v45 }
0x33af   :  { %17141 = vmatpush3.bf16.msra.mxu0 %v18657_v51  ;;  %17163 = vmatpush3.bf16.msra.mxu1 %v18658_v38  ;;  %v18687_v51 = vld [vmem:[#allocation43 + $0x240] sm:$0xff]  }
0x33b0   :  { %17142 = vmatprep.subr.bf16.mxu0 %v18659_v43  ;;  %17164 = vmatprep.subr.bf16.mxu1 %v18660_v21  ;;  %v18688_v38 = vld [vmem:[#allocation43 + $0x2c0] sm:$0xff]  }
0x33b3   :  { %17143 = vmatpush3.bf16.msra.mxu0 %v18661_v52  ;;  %17165 = vmatpush3.bf16.msra.mxu1 %v18662_v32 }
0x33b4   :  { %17144 = vmatprep.subr.bf16.mxu0 %v18663_v56  ;;  %17166 = vmatprep.subr.bf16.mxu1 %v18664_v62 }
0x33b7   :  { %17145 = vmatpush3.bf16.msra.mxu0 %v18665_v50  ;;  %17167 = vmatpush3.bf16.msra.mxu1 %v18666_v53 }
0x33b8   :  { %17146 = vmatprep.subr.bf16.mxu0 %v18667_v11  ;;  %17168 = vmatprep.subr.bf16.mxu1 %v18668_v19  ;;  %v18689_v11 = vld [vmem:[#allocation43 + $0x200] sm:$0xff]  }
0x33b9   :  { %v18690_v19 = vld [vmem:[#allocation43 + $0x280] sm:$0xff]  }
0x33bb   :  { %17147 = vmatpush3.bf16.msra.mxu0 %v18669_v0  ;;  %17169 = vmatpush3.bf16.msra.mxu1 %v18670_v25  ;;  %v18691_v0 = vld [vmem:[#allocation43 + $0x248] sm:$0xff]  }
0x33bc   :  { %17148 = vmatprep.subr.bf16.mxu0 %v18671_v2  ;;  %17170 = vmatprep.subr.bf16.mxu1 %v18672_v41  ;;  %v18692_v25 = vld [vmem:[#allocation43 + $0x2c8] sm:$0xff]  }
0x33bd   :  { %v18693_v2 = vld [vmem:[#allocation43 + $0x208] sm:$0xff]  }
0x33be   :  { %v18694_v41 = vld [vmem:[#allocation43 + $0x288] sm:$0xff]  }
0x33bf   :  { %17149 = vmatpush3.bf16.msra.mxu0 %v18673_v27  ;;  %17171 = vmatpush3.bf16.msra.mxu1 %v18674_v20  ;;  %v18695_v27 = vld [vmem:[#allocation43 + $0x250] sm:$0xff]  }
0x33c0   :  { %17150 = vmatprep.subr.bf16.mxu0 %v18675_v30  ;;  %17172 = vmatprep.subr.bf16.mxu1 %v18676_v57  ;;  %v18696_v20 = vld [vmem:[#allocation43 + $0x2d0] sm:$0xff]  }
0x33c1   :  { %v18697_v30 = vld [vmem:[#allocation43 + $0x210] sm:$0xff]  }
0x33c2   :  { %v18698_v57 = vld [vmem:[#allocation43 + $0x290] sm:$0xff]  }
0x33c3   :  { %v13522_v39 = vpop.f32.mrb[208].mxu0  ;;  %v13565_v10 = vpop.f32.mrb[208].mxu1  ;;  %17151 = vmatpush3.bf16.msra.mxu0 %v18677_v44  ;;  %17173 = vmatpush3.bf16.msra.mxu1 %v18678_v48  ;;  %v18699_v44 = vld [vmem:[#allocation43 + $0x258] sm:$0xff]  }
0x33c4   :  { %v13523_v16 = vadd.f32 %v13522_v39, %v12701_v40  ;;  %v13566_v35 = vadd.f32 %v13565_v10, %v12709_v13  ;;  %v13524_v36 = vpop.f32.mrb[209].mxu0  ;;  %v13567_v4 = vpop.f32.mrb[209].mxu1  ;;  %17152 = vmatprep.subr.bf16.mxu0 %v18679_v63  ;;  %17174 = vmatprep.subr.bf16.mxu1 %v18680_v15  ;;  %v18700_v48 = vld [vmem:[#allocation43 + $0x2d8] sm:$0xff]   ;;  %v18703_v63 = vld [vmem:[#allocation43 + $0x260] sm:$0xff]   ;;  %v18707_v39 = vld [vmem:[#allocation43 + $0x268] sm:$0xff]  }
0x33c5   :  { %v13525_v29 = vadd.f32 %v13524_v36, %v12705_v33  ;;  %v13568_v54 = vadd.f32 %v13567_v4, %v12713_v6  ;;  %v13526_v31 = vpop.f32.mrb[210].mxu0  ;;  %v13569_v23 = vpop.f32.mrb[210].mxu1  ;;  %v18704_v15 = vld [vmem:[#allocation43 + $0x2e0] sm:$0xff]   ;;  %v18708_v10 = vld [vmem:[#allocation43 + $0x2e8] sm:$0xff]   ;;  %v18711_v4 = vld [vmem:[#allocation43 + $0x270] sm:$0xff]  }
0x33c6   :  { %v13527_v26 = vadd.f32 %v13526_v31, %v12701_v40  ;;  %v13570_v9 = vadd.f32 %v13569_v23, %v12709_v13  ;;  %v13528_v18 = vpop.f32.mrb[211].mxu0  ;;  %v13571_v47 = vpop.f32.mrb[211].mxu1  ;;  %v13750_v12 = vmax.f32 %v13523_v16, 0.0  ;;  %v13752_v45 = vmax.f32 %v13566_v35, 0.0  ;;  %v18701_v40 = vld [vmem:[#allocation43 + $0x218] sm:$0xff]   ;;  %v18710_v16 = vld [vmem:[#allocation43 + $0x2a8] sm:$0xff]  }
0x33c7   :  { %v13529_v24 = vadd.f32 %v13528_v18, %v12705_v33  ;;  %v13572_v22 = vadd.f32 %v13571_v47, %v12713_v6  ;;  %17153 = vmatpush3.bf16.msra.mxu0 %v18681_v55  ;;  %17175 = vmatpush3.bf16.msra.mxu1 %v18682_v34  ;;  %v13751_v43 = vmax.f32 %v13525_v29, 0.0  ;;  %v13753_v21 = vmax.f32 %v13568_v54, 0.0  ;;  %v18702_v13 = vld [vmem:[#allocation43 + $0x298] sm:$0xff]   ;;  %v18705_v33 = vld [vmem:[#allocation43 + $0x220] sm:$0xff]   ;;  %v18709_v34 = vld [vmem:[#allocation43 + $0x228] sm:$0xff]  }
0x33c8   :  { %v13766_v7 = vmax.f32 %v13527_v26, 0.0  ;;  %v13768_v46 = vmax.f32 %v13570_v9, 0.0  ;;  %17154 = vmatprep.subr.bf16.mxu0 %v18683_v37  ;;  %17176 = vmatprep.subr.bf16.mxu1 %v18684_v49  ;;  %v18706_v6 = vld [vmem:[#allocation43 + $0x2a0] sm:$0xff]   ;;  %v18712_v37 = vld [vmem:[#allocation43 + $0x2f0] sm:$0xff]  }
0x33c9   :  { %v13767_v52 = vmax.f32 %v13529_v24, 0.0  ;;  %v13769_v32 = vmax.f32 %v13572_v22, 0.0  ;;  %v20967_v55 = vld [vmem:[%s21058_s5 + $0x8] sm:$0xff]  ;;  %v18713_v23 = vld [vmem:[#allocation43 + $0x230] sm:$0xff]  }
0x33ca   :  { %v13782_v56 = vpack.c.bf16 %v13766_v7, %v13750_v12  ;;  %v13784_v62 = vpack.c.bf16 %v13768_v46, %v13752_v45  ;;  %v12717_v35 = vrot.slane %v20967_v55, %v20041_v58  ;;  %v12725_v36 = vrot.slane %v20967_v55, %v20044_v59  ;;  %v18714_v26 = vld [vmem:[#allocation43 + $0x2b0] sm:$0xff]   ;;  %v18715_v59 = vld [vmem:[#allocation43 + $0x278] sm:$0xff]  }
0x33cb   :  { %v13783_v50 = vpack.c.bf16 %v13767_v52, %v13751_v43  ;;  %v13785_v53 = vpack.c.bf16 %v13769_v32, %v13753_v21  ;;  %17155 = vmatpush3.bf16.msra.mxu0 %v18685_v5  ;;  %17177 = vmatpush3.bf16.msra.mxu1 %v18686_v17  ;;  %v12721_v49 = vrot.slane %v20967_v55, %v20047_v60  ;;  %v18716_v24 = vld [vmem:[#allocation43 + $0x2f8] sm:$0xff]  }
0x33cc   :  { %17184 = vmatprep.subr.bf16.mxu0 %v18687_v51  ;;  %17206 = vmatprep.subr.bf16.mxu1 %v18688_v38  ;;  %v12729_v29 = vrot.slane %v20967_v55, %v20050_v61  ;;  %v18717_v38 = vld [vmem:[#allocation43 + $0x238] sm:$0xff]  }
0x33cd   :  { %14939 = vmatprep.mubr.bf16.mxu0 %v13783_v50  ;;  %14980 = vmatprep.mubr.bf16.mxu1 %v13785_v53  ;;  %v18718_v43 = vld [vmem:[#allocation43 + $0x2b8] sm:$0xff]   ;;  %v18720_v50 = vld [vmem:[#allocation43 + $0x3c0] sm:$0xff]  }
0x33ce   :  { %14940 = vmatmul.mubr.bf16.vlgmr.msra.gmra.mrb[224].mxu0 %v13782_v56  ;;  %14981 = vmatmul.mubr.bf16.vlgmr.msra.gmra.mrb[224].mxu1 %v13784_v62  ;;  %v18719_v62 = vld [vmem:[#allocation43 + $0x340] sm:$0xff]  }
0x33cf   :  { %17185 = vmatpush3.bf16.msra.mxu0 %v18689_v11  ;;  %17207 = vmatpush3.bf16.msra.mxu1 %v18690_v19 }
0x33d0   :  { %17186 = vmatprep.subr.bf16.mxu0 %v18691_v0  ;;  %17208 = vmatprep.subr.bf16.mxu1 %v18692_v25 }
0x33d3   :  { %17187 = vmatpush3.bf16.msra.mxu0 %v18693_v2  ;;  %17209 = vmatpush3.bf16.msra.mxu1 %v18694_v41 }
0x33d4   :  { %17188 = vmatprep.subr.bf16.mxu0 %v18695_v27  ;;  %17210 = vmatprep.subr.bf16.mxu1 %v18696_v20  ;;  %v18721_v20 = vld [vmem:[#allocation43 + $0x300] sm:$0xff]  }
0x33d7   :  { %17189 = vmatpush3.bf16.msra.mxu0 %v18697_v30  ;;  %17211 = vmatpush3.bf16.msra.mxu1 %v18698_v57  ;;  %v18722_v30 = vld [vmem:[#allocation43 + $0x380] sm:$0xff]   ;;  %v18723_v57 = vld [vmem:[#allocation43 + $0x348] sm:$0xff]  }
0x33d8   :  { %17190 = vmatprep.subr.bf16.mxu0 %v18699_v44  ;;  %17212 = vmatprep.subr.bf16.mxu1 %v18700_v48  ;;  %v18724_v44 = vld [vmem:[#allocation43 + $0x3c8] sm:$0xff]  }
0x33d9   :  { %v18725_v48 = vld [vmem:[#allocation43 + $0x308] sm:$0xff]  }
0x33db   :  { %17191 = vmatpush3.bf16.msra.mxu0 %v18701_v40  ;;  %17213 = vmatpush3.bf16.msra.mxu1 %v18702_v13  ;;  %v18726_v40 = vld [vmem:[#allocation43 + $0x388] sm:$0xff]   ;;  %v18727_v13 = vld [vmem:[#allocation43 + $0x350] sm:$0xff]  }
0x33dc   :  { %17192 = vmatprep.subr.bf16.mxu0 %v18703_v63  ;;  %17214 = vmatprep.subr.bf16.mxu1 %v18704_v15  ;;  %v18728_v63 = vld [vmem:[#allocation43 + $0x3d0] sm:$0xff]  }
0x33dd   :  { %v18729_v15 = vld [vmem:[#allocation43 + $0x310] sm:$0xff]  }
0x33df   :  { %17193 = vmatpush3.bf16.msra.mxu0 %v18705_v33  ;;  %17215 = vmatpush3.bf16.msra.mxu1 %v18706_v6  ;;  %v18730_v33 = vld [vmem:[#allocation43 + $0x390] sm:$0xff]   ;;  %v18731_v6 = vld [vmem:[#allocation43 + $0x358] sm:$0xff]  }
0x33e0   :  { %17194 = vmatprep.subr.bf16.mxu0 %v18707_v39  ;;  %17216 = vmatprep.subr.bf16.mxu1 %v18708_v10  ;;  %v18732_v39 = vld [vmem:[#allocation43 + $0x3d8] sm:$0xff]  }
0x33e1   :  { %v18733_v10 = vld [vmem:[#allocation43 + $0x318] sm:$0xff]  }
0x33e3   :  { %v13608_v54 = vpop.f32.mrb[212].mxu0  ;;  %v13651_v31 = vpop.f32.mrb[212].mxu1  ;;  %17195 = vmatpush3.bf16.msra.mxu0 %v18709_v34  ;;  %17217 = vmatpush3.bf16.msra.mxu1 %v18710_v16  ;;  %v18734_v34 = vld [vmem:[#allocation43 + $0x398] sm:$0xff]   ;;  %v18735_v16 = vld [vmem:[#allocation43 + $0x360] sm:$0xff]  }
0x33e4   :  { %v13609_v9 = vadd.f32 %v13608_v54, %v12717_v35  ;;  %v13652_v18 = vadd.f32 %v13651_v31, %v12725_v36  ;;  %v13610_v58 = vpop.f32.mrb[213].mxu0  ;;  %v13653_v47 = vpop.f32.mrb[213].mxu1  ;;  %17196 = vmatprep.subr.bf16.mxu0 %v18711_v4  ;;  %17218 = vmatprep.subr.bf16.mxu1 %v18712_v37  ;;  %v18738_v4 = vld [vmem:[#allocation43 + $0x3a0] sm:$0xff]   ;;  %v18739_v37 = vld [vmem:[#allocation43 + $0x368] sm:$0xff]   ;;  %v12733_v31 = vrot.slane %v20967_v55, %v20344_v1 }
0x33e5   :  { %v13611_v22 = vadd.f32 %v13610_v58, %v12721_v49  ;;  %v13654_v5 = vadd.f32 %v13653_v47, %v12729_v29  ;;  %v13612_v60 = vpop.f32.mrb[214].mxu0  ;;  %v13655_v17 = vpop.f32.mrb[214].mxu1  ;;  %v18742_v54 = vld [vmem:[#allocation43 + $0x3a8] sm:$0xff]   ;;  %v12745_v58 = vrot.slane %v20967_v55, %v20353_v14 }
0x33e6   :  { %v13613_v12 = vadd.f32 %v13612_v60, %v12717_v35  ;;  %v13656_v61 = vadd.f32 %v13655_v17, %v12725_v36  ;;  %v13614_v45 = vpop.f32.mrb[215].mxu0  ;;  %v13657_v7 = vpop.f32.mrb[215].mxu1  ;;  %v13754_v21 = vmax.f32 %v13609_v9, 0.0  ;;  %v13756_v52 = vmax.f32 %v13652_v18, 0.0  ;;  %v18736_v35 = vld [vmem:[#allocation43 + $0x3e0] sm:$0xff]   ;;  %v18744_v9 = vld [vmem:[#allocation43 + $0x3f0] sm:$0xff]  }
0x33e7   :  { %v13615_v46 = vadd.f32 %v13614_v45, %v12721_v49  ;;  %v13658_v51 = vadd.f32 %v13657_v7, %v12729_v29  ;;  %17197 = vmatpush3.bf16.msra.mxu0 %v18713_v23  ;;  %17219 = vmatpush3.bf16.msra.mxu1 %v18714_v26  ;;  %v13755_v53 = vmax.f32 %v13611_v22, 0.0  ;;  %v13757_v11 = vmax.f32 %v13654_v5, 0.0  ;;  %v18737_v36 = vld [vmem:[#allocation43 + $0x320] sm:$0xff]   ;;  %v18740_v49 = vld [vmem:[#allocation43 + $0x3e8] sm:$0xff]   ;;  %v18743_v26 = vld [vmem:[#allocation43 + $0x370] sm:$0xff]  }
0x33e8   :  { %v13770_v32 = vmax.f32 %v13613_v12, 0.0  ;;  %v13772_v56 = vmax.f32 %v13656_v61, 0.0  ;;  %17198 = vmatprep.subr.bf16.mxu0 %v18715_v59  ;;  %17220 = vmatprep.subr.bf16.mxu1 %v18716_v24  ;;  %v18741_v29 = vld [vmem:[#allocation43 + $0x328] sm:$0xff]   ;;  %v12741_v23 = vrot.slane %v20967_v55, %v20347_v3  ;;  %v12737_v18 = vrot.slane %v20967_v55, %v20350_v8  ;;  %v18745_v24 = vld [vmem:[#allocation43 + $0x330] sm:$0xff]   ;;  %v18747_v3 = vld [vmem:[#allocation43 + $0x378] sm:$0xff]  }
0x33e9   :  { %v13771_v19 = vmax.f32 %v13615_v46, 0.0  ;;  %v13773_v0 = vmax.f32 %v13658_v51, 0.0  ;;  %v18746_v22 = vld [vmem:[#allocation43 + $0x3b0] sm:$0xff]   ;;  %v18748_v12 = vld [vmem:[#allocation43 + $0x3f8] sm:$0xff]  }
0x33ea   :  { %v13786_v25 = vpack.c.bf16 %v13770_v32, %v13754_v21  ;;  %v13788_v2 = vpack.c.bf16 %v13772_v56, %v13756_v52  ;;  %v18749_v21 = vld [vmem:[#allocation43 + $0x338] sm:$0xff]  }
0x33eb   :  { %v13787_v41 = vpack.c.bf16 %v13771_v19, %v13755_v53  ;;  %v13789_v27 = vpack.c.bf16 %v13773_v0, %v13757_v11  ;;  %17199 = vmatpush3.bf16.msra.mxu0 %v18717_v38  ;;  %17221 = vmatpush3.bf16.msra.mxu1 %v18718_v43  ;;  %v18750_v52 = vld [vmem:[#allocation43 + $0x3b8] sm:$0xff]  }
0x33ec   :  { %17228 = vmatprep.subr.bf16.mxu0 %v18719_v62  ;;  %17250 = vmatprep.subr.bf16.mxu1 %v18720_v50 }
0x33ed   :  { %15021 = vmatprep.mubr.bf16.mxu0 %v13787_v41  ;;  %15062 = vmatprep.mubr.bf16.mxu1 %v13789_v27 }
0x33ee   :  { %15022 = vmatmul.mubr.bf16.vlgmr.msra.gmra.mrb[228].mxu0 %v13786_v25  ;;  %15063 = vmatmul.mubr.bf16.vlgmr.msra.gmra.mrb[228].mxu1 %v13788_v2 }
0x33ef   :  { %17229 = vmatpush3.bf16.msra.mxu0 %v18721_v20  ;;  %17251 = vmatpush3.bf16.msra.mxu1 %v18722_v30 }
0x33f0   :  { %17230 = vmatprep.subr.bf16.mxu0 %v18723_v57  ;;  %17252 = vmatprep.subr.bf16.mxu1 %v18724_v44  ;;  %v16392_v57 = vld [vmem:[%s19838_s19] ss:$0 sm:$0xff]  ;;  %s19637_s19 = smov [#allocation44]  }
0x33f1   :  { %s15208_s6 = sshll.u32 %s19637_s19, 4  ;;  %s15209_s6 = int_to_ptr.vmem [resolvable:$true] %s15208_s6 }
0x33f2   :  { %s19505_s8 = scalar_lea.vmem %s15209_s6, 256  ;;  %p19510_p7 = scmp.lt.s32.totalorder %s15209_s6, %s15209_s6 }
0x33f3   :  { %17231 = vmatpush3.bf16.msra.mxu0 %v18725_v48  ;;  %17253 = vmatpush3.bf16.msra.mxu1 %v18726_v40  ;;  %p19506_p6 = scmp.ne.s32.totalorder %s15209_s6, %s19505_s8  ;;  %p19511_p8 = scmp.lt.s32.totalorder %s19505_s8, %s19505_s8 }
0x33f4   :  { %17232 = vmatprep.subr.bf16.mxu0 %v18727_v13  ;;  %17254 = vmatprep.subr.bf16.mxu1 %v18728_v63 }
0x33f5   :  { %p19512_p9 = por %p19511_p8, %p19510_p7 }
0x33f7   :  { %17233 = vmatpush3.bf16.msra.mxu0 %v18729_v15  ;;  %17255 = vmatpush3.bf16.msra.mxu1 %v18730_v33  ;;  %p19513_p10 = pnand %p19512_p9, %p19506_p6 }
0x33f8   :  { %17234 = vmatprep.subr.bf16.mxu0 %v18731_v6  ;;  %17256 = vmatprep.subr.bf16.mxu1 %v18732_v39 }
0x33fb   :  { %17235 = vmatpush3.bf16.msra.mxu0 %v18733_v10  ;;  %17257 = vmatpush3.bf16.msra.mxu1 %v18734_v34 }
0x33fc   :  { %17236 = vmatprep.subr.bf16.mxu0 %v18735_v16  ;;  %17258 = vmatprep.subr.bf16.mxu1 %v18736_v35 }
0x33ff   :  { %17237 = vmatpush3.bf16.msra.mxu0 %v18737_v36  ;;  %17259 = vmatpush3.bf16.msra.mxu1 %v18738_v4 }
0x3400   :  { %17238 = vmatprep.subr.bf16.mxu0 %v18739_v37  ;;  %17260 = vmatprep.subr.bf16.mxu1 %v18740_v49 }
0x3403   :  { %v13694_v47 = vpop.f32.mrb[216].mxu0  ;;  %v13737_v59 = vpop.f32.mrb[216].mxu1  ;;  %17239 = vmatpush3.bf16.msra.mxu0 %v18741_v29  ;;  %17261 = vmatpush3.bf16.msra.mxu1 %v18742_v54 }
0x3404   :  { %v13695_v5 = vadd.f32 %v13694_v47, %v12733_v31  ;;  %v13738_v60 = vadd.f32 %v13737_v59, %v12741_v23  ;;  %v13696_v1 = vpop.f32.mrb[217].mxu0  ;;  %v13739_v17 = vpop.f32.mrb[217].mxu1  ;;  %17240 = vmatprep.subr.bf16.mxu0 %v18743_v26  ;;  %17262 = vmatprep.subr.bf16.mxu1 %v18744_v9 }
0x3405   :  { %v13697_v61 = vadd.f32 %v13696_v1, %v12737_v18  ;;  %v13740_v45 = vadd.f32 %v13739_v17, %v12745_v58  ;;  %v13698_v8 = vpop.f32.mrb[218].mxu0  ;;  %v13741_v7 = vpop.f32.mrb[218].mxu1 }
0x3406   :  { %v13699_v46 = vadd.f32 %v13698_v8, %v12733_v31  ;;  %v13742_v14 = vadd.f32 %v13741_v7, %v12741_v23  ;;  %v13700_v55 = vpop.f32.mrb[219].mxu0  ;;  %v13743_v51 = vpop.f32.mrb[219].mxu1  ;;  %v13758_v32 = vmax.f32 %v13695_v5, 0.0  ;;  %v13760_v56 = vmax.f32 %v13738_v60, 0.0 }
0x3407   :  { %v13701_v38 = vadd.f32 %v13700_v55, %v12737_v18  ;;  %v13744_v43 = vadd.f32 %v13743_v51, %v12745_v58  ;;  %17241 = vmatpush3.bf16.msra.mxu0 %v18745_v24  ;;  %17263 = vmatpush3.bf16.msra.mxu1 %v18746_v22  ;;  %v13759_v53 = vmax.f32 %v13697_v61, 0.0  ;;  %v13761_v11 = vmax.f32 %v13740_v45, 0.0 }
0x3408   :  { %v13774_v62 = vmax.f32 %v13699_v46, 0.0  ;;  %v13776_v50 = vmax.f32 %v13742_v14, 0.0  ;;  %17242 = vmatprep.subr.bf16.mxu0 %v18747_v3  ;;  %17264 = vmatprep.subr.bf16.mxu1 %v18748_v12 }
0x3409   :  { %v13775_v19 = vmax.f32 %v13701_v38, 0.0  ;;  %v13777_v0 = vmax.f32 %v13744_v43, 0.0 }
0x340a   :  { %v13790_v25 = vpack.c.bf16 %v13774_v62, %v13758_v32  ;;  %v13792_v2 = vpack.c.bf16 %v13776_v50, %v13760_v56 }
0x340b   :  { %v13791_v41 = vpack.c.bf16 %v13775_v19, %v13759_v53  ;;  %v13793_v27 = vpack.c.bf16 %v13777_v0, %v13761_v11  ;;  %17243 = vmatpush3.bf16.msra.mxu0 %v18749_v21  ;;  %17265 = vmatpush3.bf16.msra.mxu1 %v18750_v52 }
0x340d   :  { %15103 = vmatprep.mubr.bf16.mxu0 %v13791_v41  ;;  %15144 = vmatprep.mubr.bf16.mxu1 %v13793_v27 }
0x340e   :  { %15104 = vmatmul.mubr.bf16.vlgmr.msra.gmra.mrb[232].mxu0 %v13790_v25  ;;  %15145 = vmatmul.mubr.bf16.vlgmr.msra.gmra.mrb[232].mxu1 %v13792_v2 }
0x3481   :  { %v17112_v20 = vpop.f32.mrb[220].mxu0  ;;  %v17134_v30 = vpop.f32.mrb[220].mxu1 }
0x3482   :  { %v17113_v44 = vpop.f32.mrb[221].mxu0  ;;  %v17135_v48 = vpop.f32.mrb[221].mxu1 }
0x3483   :  { %v17114_v40 = vadd.f32 %v17113_v44, %v17112_v20  ;;  %v17136_v13 = vadd.f32 %v17135_v48, %v17134_v30  ;;  %v17115_v63 = vpop.f32.mrb[222].mxu0  ;;  %v17137_v15 = vpop.f32.mrb[222].mxu1 }
0x3484   :  { %v17116_v33 = vpop.f32.mrb[223].mxu0  ;;  %v17138_v6 = vpop.f32.mrb[223].mxu1 }
0x3485   :  { %v14860_v39 = vadd.f32 %v17114_v40, %v16392_v57  ;;  %v17117_v10 = vadd.f32 %v17116_v33, %v17115_v63  ;;  %v17139_v34 = vadd.f32 %v17138_v6, %v17137_v15 }
0x3487   :  { %v14901_v16 = vadd.f32 %v17136_v13, %v14860_v39  ;;  %v14863_v35 = vadd.f32 %v17117_v10, %v16392_v57 }
0x3489   :  { %v14904_v36 = vadd.f32 %v17139_v34, %v14863_v35 }
0x34a1   :  { %v17156_v4 = vpop.f32.mrb[224].mxu0  ;;  %v17178_v37 = vpop.f32.mrb[224].mxu1 }
0x34a2   :  { %v17157_v49 = vpop.f32.mrb[225].mxu0  ;;  %v17179_v29 = vpop.f32.mrb[225].mxu1 }
0x34a3   :  { %v17158_v54 = vadd.f32 %v17157_v49, %v17156_v4  ;;  %v17180_v31 = vadd.f32 %v17179_v29, %v17178_v37  ;;  %v17159_v23 = vpop.f32.mrb[226].mxu0  ;;  %v17181_v26 = vpop.f32.mrb[226].mxu1 }
0x34a4   :  { %v17160_v9 = vpop.f32.mrb[227].mxu0  ;;  %v17182_v18 = vpop.f32.mrb[227].mxu1 }
0x34a5   :  { %v14942_v58 = vadd.f32 %v17158_v54, %v14901_v16  ;;  %v17161_v47 = vadd.f32 %v17160_v9, %v17159_v23  ;;  %v17183_v59 = vadd.f32 %v17182_v18, %v17181_v26  ;;  %v16521_v23 = vld [vmem:[%s19843_s13] ss:$0 sm:$0xff] }
0x34a7   :  { %v14983_v24 = vadd.f32 %v17180_v31, %v14942_v58  ;;  %v14945_v22 = vadd.f32 %v17161_v47, %v14904_v36  ;;  %v16522_v58 = vld [vmem:[%s19848_s30] ss:$0 sm:$0xff] }
0x34a9   :  { %v14986_v5 = vadd.f32 %v17183_v59, %v14945_v22 }
0x34c1   :  { %v17200_v60 = vpop.f32.mrb[228].mxu0  ;;  %v17222_v1 = vpop.f32.mrb[228].mxu1 }
0x34c2   :  { %v17201_v17 = vpop.f32.mrb[229].mxu0  ;;  %v17223_v3 = vpop.f32.mrb[229].mxu1 }
0x34c3   :  { %v17202_v12 = vadd.f32 %v17201_v17, %v17200_v60  ;;  %v17224_v61 = vadd.f32 %v17223_v3, %v17222_v1  ;;  %v17203_v45 = vpop.f32.mrb[230].mxu0  ;;  %v17225_v8 = vpop.f32.mrb[230].mxu1 }
0x34c4   :  { %v17204_v7 = vpop.f32.mrb[231].mxu0  ;;  %v17226_v46 = vpop.f32.mrb[231].mxu1 }
0x34c5   :  { %v15024_v14 = vadd.f32 %v17202_v12, %v14983_v24  ;;  %v17205_v55 = vadd.f32 %v17204_v7, %v17203_v45  ;;  %v17227_v51 = vadd.f32 %v17226_v46, %v17225_v8 }
0x34c7   :  { %v15065_v38 = vadd.f32 %v17224_v61, %v15024_v14  ;;  %v15027_v43 = vadd.f32 %v17205_v55, %v14986_v5 }
0x34c9   :  { %v15068_v21 = vadd.f32 %v17227_v51, %v15027_v43 }
0x34e1   :  { %v17244_v52 = vpop.f32.mrb[232].mxu0  ;;  %v17266_v32 = vpop.f32.mrb[232].mxu1 }
0x34e2   :  { %v17245_v56 = vpop.f32.mrb[233].mxu0  ;;  %v17267_v62 = vpop.f32.mrb[233].mxu1 }
0x34e3   :  { %v17246_v50 = vadd.f32 %v17245_v56, %v17244_v52  ;;  %v17268_v53 = vadd.f32 %v17267_v62, %v17266_v32  ;;  %v17247_v11 = vpop.f32.mrb[234].mxu0  ;;  %v17269_v19 = vpop.f32.mrb[234].mxu1 }
0x34e4   :  { %v17248_v0 = vpop.f32.mrb[235].mxu0  ;;  %v17270_v25 = vpop.f32.mrb[235].mxu1 }
0x34e5   :  { %v15106_v2 = vadd.f32 %v17246_v50, %v15065_v38  ;;  %v17249_v41 = vadd.f32 %v17248_v0, %v17247_v11  ;;  %v17271_v27 = vadd.f32 %v17270_v25, %v17269_v19 }
0x34e7   :  { %v15147_v20 = vadd.f32 %v17268_v53, %v15106_v2  ;;  %v15109_v30 = vadd.f32 %v17249_v41, %v15068_v21 }
0x34e9   :  { %v15150_v57 = vadd.f32 %v17271_v27, %v15109_v30  ;;  %v15153_v44 = vadd.f32 %v15147_v20, %v20927_v42 }
0x34eb   :  { %15157 = vadd.xlane.f32.xlu0 %v15153_v44  ;;  %v15154_v48 = vadd.f32 %v15150_v57, %v20925_v28  ;;  %v15163_v40 = vmul.f32 %v15153_v44, %v15153_v44 }
0x34ed   :  { %15159 = vadd.xlane.f32.xlu1 %v15154_v48  ;;  %v15164_v13 = vmul.f32 %v15154_v48, %v15154_v48 }
0x34ef   :  { %15165 = vadd.xlane.f32.xlu0 %v15163_v40 }
0x34f1   :  { %15167 = vadd.xlane.f32.xlu1 %v15164_v13 }
0x3578   :  { %v15158_v63 = vpop.xlane.xlu0 %15157 }
0x3579   :  { %v15161_v15 = vmul.f32 0.0078125, %v15158_v63 }
0x357a   :  { %v15160_v33 = vpop.xlane.xlu1 %15159 }
0x357b   :  { %v15162_v6 = vmul.f32 0.0078125, %v15160_v33  ;;  %v15171_v10 = vmul.f32 %v15161_v15, %v15161_v15  ;;  %v15177_v54 = vsub.f32 %v15153_v44, %v15161_v15 }
0x357c   :  { %v15166_v39 = vpop.xlane.xlu0 %15165 }
0x357d   :  { %v15169_v34 = vmul.f32 0.0078125, %v15166_v39  ;;  %v15172_v35 = vmul.f32 %v15162_v6, %v15162_v6  ;;  %v15178_v26 = vsub.f32 %v15154_v48, %v15162_v6 }
0x357e   :  { %v15168_v16 = vpop.xlane.xlu1 %15167 }
0x357f   :  { %v15173_v42 = vsub.f32 %v15169_v34, %v15171_v10  ;;  %v15170_v36 = vmul.f32 0.0078125, %v15168_v16 }
0x3581   :  { %v15175_v4 = vmax.f32 %v15173_v42, 0.0  ;;  %v15174_v28 = vsub.f32 %v15170_v36, %v15172_v35 }
0x3583   :  { %v15179_v37 = vadd.f32 1e-05, %v15175_v4  ;;  %v15176_v49 = vmax.f32 %v15174_v28, 0.0 }
0x3585   :  { %18907 = vrsqrt.f32 %v15179_v37  ;;  %v15180_v29 = vadd.f32 1e-05, %v15176_v49 }
0x3587   :  { %18909 = vrsqrt.f32 %v15180_v29 }
0x358f   :  { %v18908_v31 = vpop.eup %18907 }
0x3590   :  { %v15183_v9 = vmul.f32 %v18908_v31, %v15177_v54 }
0x3591   :  { %v18910_v18 = vpop.eup %18909 }
0x3592   :  { %v15184_v47 = vmul.f32 %v18910_v18, %v15178_v26  ;;  %v15191_v59 = vmul.f32 %v16521_v23, %v15183_v9 }
0x3594   :  { %v15192_v24 = vmul.f32 %v16521_v23, %v15184_v47  ;;  %v15199_v22 = vadd.f32 %v16522_v58, %v15191_v59 }
0x3596   :  { %v15200_v5 = vadd.f32 %v16522_v58, %v15192_v24  ;;  %15201 = vst [vmem:[#allocation44] sm:$0xff] %v15199_v22 }
0x3598   :  { %15202 = vst [vmem:[#allocation44 + $0x8] sm:$0xff] %v15200_v5 }
0x3599   :  { %19516 = shalt.err (!%p19513_p10)
}
0x359a   :  { %s19517_s13 = scalar_lea.hbm %s19853_s25, 256 }
0x359b   :  { %p19518_p11 = scmp.ne.s32.totalorder %s19853_s25, %s19517_s13  ;;  %p19521_p12 = scmp.lt.u32.totalorder %s19517_s13, %s19853_s25 }
0x359d   :  { %p19523_p13 = pnand %p19521_p12, %p19518_p11 }
0x359f   :  { %19526 = shalt.err (!%p19523_p13)
}
0x35a0   :  { %s19638_s30 = smov 128   ;;  %s19639_s16 = smov 8  }
0x35a1   :  { %15214 = dma.vmem_to_hbm [thread:$0]  %s15209_s6, 256, %s19853_s25, [#allocation4], %s19638_s30, %s19638_s30, %s19639_s16  }
0x35a2   :  { %19555 = dma.done.wait [#allocation4], 256  }
0x35a3   :  { %19556 = vsyncadd [#allocation4], 4294967040 }
0x35a4   :  { %15218 = vsyncpa [#allocation3], 1 }
0x35a5   :  { %15219 = vsyncpa [#allocation6], 1 }
0x35a6   :  { %15220 = vsyncpa [#allocation9], 1 }
0x35a7   :  { %15221 = vsyncpa [#allocation12], 1 }
0x35a8   :  { %15222 = vsyncpa [#allocation15], 1 }
0x35a9   :  { %15223 = vsyncpa [#allocation18], 1 }
0x35aa   :  { %15224 = vsyncpa [#allocation21], 1 }
0x35ab   :  { %15225 = vsyncpa [#allocation24], 1 }
0x35ac   :  { %15226 = vsyncpa [#allocation27], 1 }
0x35ad   :  { %15227 = vsyncpa [#allocation30], 1 }
0x35ae   :  { %15228 = vsyncpa [#allocation33], 1 }
0x35af   :  { %15229 = vsyncpa [#allocation36], 1 }
0x35b0   :  { %15230 = vsyncpa [#allocation39], 1 }
0x35b1   :  { %15231 = vsyncpa [#allocation42], 1 }
0x35b2   :  { %15232 = vsyncpa [#allocation4], 1 }

</bundles_post_ra>
